<compile_context>
chip_gen: v5e
topology: v5e:2x2
jax: 0.10.0
libtpu: 0.0.40
codegen_flags: <defaults>
</compile_context>

<pallas_src>
import functools

import jax
import jax.numpy as jnp
from jax.experimental import pallas as pl
from jax.experimental.pallas import tpu as pltpu


_H = _W = 32        # LeNet's fc1 = 16*5*5 forces a 32x32 input
_KS = 5             # conv kernel size
_CIN_PAD = 8        # conv1: in 3 -> pad 8, out 6 -> pad 8
_C2 = 16            # conv2 output channels (exact)
_FCW = 128          # padded fc widths (120 / 84 / num_classes -> 128)
_NP = 128           # lane width of the fc / output path (lane-dense writeback)
_MAX_BATCH = 16     # fully-resident design; see TODO above for larger batches


def _round_up(v, m):
    return (v + m - 1) // m * m


def _extents(nb):
    """Lane extents of every buffer.  Each bound guarantees the in-kernel reads
    stay inside the (fully initialized) source buffer:
      zf reads p2 at offsets <= 16*rs + 16*dw, length _NP
      pool2 reads a2 at offsets <= 2*rs + 2*dw
      conv2 reads p1_aug at offsets <= 8*rs        (blocks valid on [0, e_p1c))
      p1_aug copies read block 0 at offsets <= 8*dw
      pool1 reads a1 at offsets <= rs + dw
      conv1 reads x_aug at offsets <= 4*rs
      x_aug copies read x at offsets <= 4*dw
    """
    rs = _round_up(_W * nb, 128)     # lanes per image row (+1 in h -> +rs lanes)
    dw = nb                          # lanes per pixel     (+1 in w -> +dw lanes)
    e_p2 = _round_up(16 * rs + 16 * dw + _NP, 128)
    e_a2 = _round_up(e_p2 + 2 * rs + 2 * dw, 128)
    e_p1c = _round_up(e_a2 + 8 * rs, 128)             # valid span per p1_aug block
    e_p1 = e_p1c + _round_up(8 * dw, 128)             # p1_aug buffer extent
    e_a1 = _round_up(e_p1 + rs + dw, 128)
    e_xa = e_a1 + 4 * rs                               # rs is a multiple of 128
    e_x = max(e_xa + _round_up(4 * dw, 128), _H * rs)
    return rs, dw, e_x, e_xa, e_a1, e_p1, e_p1c, e_a2, e_p2


# ---------------------------------------------------------------------------
# The single fused Pallas kernel
# ---------------------------------------------------------------------------
def _lenet_fused_kernel(x_ref, w1_ref, b1_ref, w2_ref, b2_ref,
                        wf1_ref, bf1_ref, wf2_ref, bf2_ref, wf3_ref, bf3_ref,
                        out_ref,
                        xa_ref, a1_ref, p1_ref, a2_ref, p2_ref, zf_ref,
                        *, rs, dw, e_xa, e_a1, e_p1, e_p1c, e_a2, e_p2):
    f32 = jnp.float32

    # -- x_aug: 5 w-shifted copies of the padded input channels ---------------
    #    (row block kj = input shifted by kj pixels in w; the only misaligned
    #     copies left for conv1, 5 instead of 25 im2col taps)
    for kj in range(_KS):
        xa_ref[kj * _CIN_PAD:(kj + 1) * _CIN_PAD, :] = x_ref[:, pl.ds(kj * dw, e_xa)]

    # -- conv1: 5 accumulated (8,40)x(40,E) MXU matmuls, 128-aligned RHS ------
    a1_ref[...] = b1_ref[...] + jnp.dot(
        w1_ref[0], xa_ref[:, pl.ds(0, e_a1)], preferred_element_type=f32)
    for ki in range(1, _KS):
        a1_ref[...] += jnp.dot(
            w1_ref[ki], xa_ref[:, pl.ds(ki * rs, e_a1)], preferred_element_type=f32)

    # -- relu + 2x2/2 maxpool (kept at base-grid resolution) -> p1_aug block 0
    p1_ref[0:_CIN_PAD, :] = jnp.maximum(
        jnp.maximum(
            jnp.maximum(a1_ref[:, pl.ds(0, e_p1)], a1_ref[:, pl.ds(dw, e_p1)]),
            jnp.maximum(a1_ref[:, pl.ds(rs, e_p1)], a1_ref[:, pl.ds(rs + dw, e_p1)])),
        0.0)
    # w-replication for conv2 (4 misaligned 8-row copies)
    for qj in range(1, _KS):
        p1_ref[qj * _CIN_PAD:(qj + 1) * _CIN_PAD, 0:e_p1c] = \
            p1_ref[0:_CIN_PAD, pl.ds(2 * qj * dw, e_p1c)]

    # -- conv2: 5 accumulated (16,40)x(40,E) matmuls, RHS at aligned 2*qi*rs --
    a2_ref[...] = b2_ref[...] + jnp.dot(
        w2_ref[0], p1_ref[:, pl.ds(0, e_a2)], preferred_element_type=f32)
    for qi in range(1, _KS):
        a2_ref[...] += jnp.dot(
            w2_ref[qi], p1_ref[:, pl.ds(2 * qi * rs, e_a2)], preferred_element_type=f32)

    # -- relu + 2x2/2 maxpool on the stride-2 grid ----------------------------
    p2_ref[...] = jnp.maximum(
        jnp.maximum(
            jnp.maximum(a2_ref[:, pl.ds(0, e_p2)], a2_ref[:, pl.ds(2 * dw, e_p2)]),
            jnp.maximum(a2_ref[:, pl.ds(2 * rs, e_p2)],
                        a2_ref[:, pl.ds(2 * (rs + dw), e_p2)])),
        0.0)

    # -- gather the valid 5x5x16 patch per batch lane -> (400, 128) fc input --
    for t in range(25):
        qh, qw = divmod(t, 5)
        s = 4 * qh * rs + 4 * qw * dw          # stride-4 anchors of the pool2 grid
        zf_ref[t * _C2:(t + 1) * _C2, :] = p2_ref[:, pl.ds(s, _NP)]

    # -- fc1 -> relu -> fc2 -> relu -> fc3 (128-padded, lane-dense) -----------
    h = jnp.maximum(jnp.dot(wf1_ref[...], zf_ref[...],
                            preferred_element_type=f32) + bf1_ref[...], 0.0)
    h = jnp.maximum(jnp.dot(wf2_ref[...], h,
                            preferred_element_type=f32) + bf2_ref[...], 0.0)
    out_ref[...] = jnp.dot(wf3_ref[...], h,
                           preferred_element_type=f32) + bf3_ref[...]


# ---------------------------------------------------------------------------
# Host-side parameter / input re-layout (done once, outside the forward pass)
# ---------------------------------------------------------------------------
def init_lenet_params(key, num_classes, inputs=3):
    ks = jax.random.split(key, 10)

    def dense_init(kw_, kb_, fan_in, shape_w, shape_b):
        scale = 1.0 / jnp.sqrt(jnp.float32(fan_in))
        w = jax.random.uniform(kw_, shape_w, jnp.float32, -scale, scale)
        b = jax.random.uniform(kb_, shape_b, jnp.float32, -scale, scale)
        return w, b

    p = {}
    p["conv1_w"], p["conv1_b"] = dense_init(ks[0], ks[1], inputs * 25,
                                            (6, inputs, 5, 5), (6,))
    p["conv2_w"], p["conv2_b"] = dense_init(ks[2], ks[3], 6 * 25, (16, 6, 5, 5), (16,))
    p["fc1_w"], p["fc1_b"] = dense_init(ks[4], ks[5], 16 * 5 * 5, (16 * 5 * 5, 120), (120,))
    p["fc2_w"], p["fc2_b"] = dense_init(ks[6], ks[7], 120, (120, 84), (84,))
    p["fc3_w"], p["fc3_b"] = dense_init(ks[8], ks[9], 84, (84, num_classes), (num_classes,))
    return p


def prepare_params(params, num_classes):
    """Zero-pad + transpose weights into the kernel's feature-major layout."""
    cin = params["conv1_w"].shape[1]
    # conv1 -> (ki, co_pad8, kj, ci_pad8) -> (5, 8, 40); column index = kj*8 + ci
    w1 = jnp.transpose(params["conv1_w"], (2, 0, 3, 1))
    w1 = jnp.pad(w1, ((0, 0), (0, _CIN_PAD - 6), (0, 0), (0, _CIN_PAD - cin)))
    w1t = w1.reshape(_KS, _CIN_PAD, _KS * _CIN_PAD)
    b1 = jnp.pad(params["conv1_b"], (0, _CIN_PAD - 6)).reshape(_CIN_PAD, 1)

    # conv2 -> (qi, co=16, qj, ci_pad8) -> (5, 16, 40)
    w2 = jnp.transpose(params["conv2_w"], (2, 0, 3, 1))
    w2 = jnp.pad(w2, ((0, 0), (0, 0), (0, 0), (0, _CIN_PAD - 6)))
    w2t = w2.reshape(_KS, _C2, _KS * _CIN_PAD)
    b2 = params["conv2_b"].reshape(_C2, 1)

    # fc1: PyTorch NCHW flatten order is (c, h, w); the kernel's zf rows are
    # ordered ((qh, qw), c) -> permute rows accordingly and transpose to (out, in).
    wf1 = params["fc1_w"].reshape(_C2, 5, 5, 120)                      # (c, h, w, j)
    wf1t = jnp.transpose(wf1, (3, 1, 2, 0)).reshape(120, 25 * _C2)     # (j, (h, w, c))
    wf1t = jnp.pad(wf1t, ((0, _FCW - 120), (0, 0)))
    bf1 = jnp.pad(params["fc1_b"], (0, _FCW - 120)).reshape(_FCW, 1)

    wf2t = jnp.pad(params["fc2_w"].T, ((0, _FCW - 84), (0, _FCW - 120)))
    bf2 = jnp.pad(params["fc2_b"], (0, _FCW - 84)).reshape(_FCW, 1)

    wf3t = jnp.pad(params["fc3_w"].T, ((0, _FCW - num_classes), (0, _FCW - 84)))
    bf3 = jnp.pad(params["fc3_b"], (0, _FCW - num_classes)).reshape(_FCW, 1)

    return dict(w1t=w1t, b1=b1, w2t=w2t, b2=b2, wf1t=wf1t, bf1=bf1,
                wf2t=wf2t, bf2=bf2, wf3t=wf3t, bf3=bf3)


def make_lenet_forward(num_classes, batch):
    assert 1 <= batch <= _MAX_BATCH, "fully-resident kernel supports batch <= 16"
    assert batch <= _NP
    rs, dw, e_x, e_xa, e_a1, e_p1, e_p1c, e_a2, e_p2 = _extents(batch)

    kernel = functools.partial(_lenet_fused_kernel, rs=rs, dw=dw, e_xa=e_xa,
                               e_a1=e_a1, e_p1=e_p1, e_p1c=e_p1c,
                               e_a2=e_a2, e_p2=e_p2)

    k40 = _KS * _CIN_PAD
    flops = 2 * (_CIN_PAD * _KS * k40 * e_a1 + _C2 * _KS * k40 * e_a2
                 + _FCW * 25 * _C2 * _NP + 2 * _FCW * _FCW * _NP)
    scratch_bytes = 4 * (k40 * e_xa + _CIN_PAD * e_a1 + k40 * e_p1
                         + _C2 * e_a2 + _C2 * e_p2 + 25 * _C2 * _NP)
    io_bytes = 4 * (_CIN_PAD * e_x + _KS * _CIN_PAD * 128 + _KS * _C2 * 128
                    + _FCW * 512 + 2 * _FCW * _FCW + 5 * _FCW + _FCW * _NP)
    vmem_limit = int(min(64 * 2**20, max(32 * 2**20, 2 * (scratch_bytes + io_bytes))))

    call = pl.pallas_call(
        kernel,
        out_shape=jax.ShapeDtypeStruct((_FCW, _NP), jnp.float32),
        scratch_shapes=[
            pltpu.VMEM((k40, e_xa), jnp.float32),    # x_aug: 5 w-shifted channel blocks
            pltpu.VMEM((_CIN_PAD, e_a1), jnp.float32),   # a1: conv1 accumulator
            pltpu.VMEM((k40, e_p1), jnp.float32),    # p1_aug: pool1 + 4 w-shifted copies
            pltpu.VMEM((_C2, e_a2), jnp.float32),    # a2: conv2 accumulator
            pltpu.VMEM((_C2, e_p2), jnp.float32),    # p2: pool2
            pltpu.VMEM((25 * _C2, _NP), jnp.float32),    # zf: flattened fc input
        ],
        compiler_params=pltpu.CompilerParams(vmem_limit_bytes=vmem_limit),
        cost_estimate=pl.CostEstimate(flops=flops, transcendentals=0,
                                      bytes_accessed=io_bytes),
    )

    def forward(prepped, x):
        n, c = x.shape[0], x.shape[1]
        assert n == batch and c <= _CIN_PAD
        assert x.shape[2] == _H and x.shape[3] == _W
        # NCHW -> channel-major lanes: m = h*rs + w*n + n_idx  (rs is 128-aligned)
        xt = jnp.transpose(x, (1, 2, 3, 0)).reshape(c, _H, _W * n)
        xt = jnp.pad(xt, ((0, _CIN_PAD - c), (0, 0), (0, rs - _W * n)))
        xf = xt.reshape(_CIN_PAD, _H * rs)
        xf = jnp.pad(xf, ((0, 0), (0, e_x - _H * rs)))
        out = call(xf, prepped["w1t"], prepped["b1"], prepped["w2t"], prepped["b2"],
                   prepped["wf1t"], prepped["bf1"], prepped["wf2t"], prepped["bf2"],
                   prepped["wf3t"], prepped["bf3"])
        logits = out[:num_classes, :n].T                  # (N, num_classes)
        kl = jnp.float32(0.0)   # ModuleWrapper: no Bayesian children -> KL sum is 0.0
        return logits, kl

    return forward


# ---------------------------------------------------------------------------
# Pure-JAX reference (for a one-time numerical check)
# ---------------------------------------------------------------------------
def reference_forward(params, x):
    prec = jax.lax.Precision.HIGHEST
    dn = ("NCHW", "OIHW", "NCHW")

    def conv(v, w, b):
        out = jax.lax.conv_general_dilated(v, w, (1, 1), "VALID",
                                           dimension_numbers=dn, precision=prec)
        return out + b[None, :, None, None]

    def pool(v):
        return jax.lax.reduce_window(v, -jnp.inf, jax.lax.max,
                                     (1, 1, 2, 2), (1, 1, 2, 2), "VALID")

    y = pool(jnp.maximum(conv(x, params["conv1_w"], params["conv1_b"]), 0.0))
    y = pool(jnp.maximum(conv(y, params["conv2_w"], params["conv2_b"]), 0.0))
    y = y.reshape(y.shape[0], -1)
    y = jnp.maximum(jnp.dot(y, params["fc1_w"], precision=prec) + params["fc1_b"], 0.0)
    y = jnp.maximum(jnp.dot(y, params["fc2_w"], precision=prec) + params["fc2_b"], 0.0)
    return jnp.dot(y, params["fc3_w"], precision=prec) + params["fc3_b"]


if __name__ == "__main__":
    num_classes = 10
    batch = 2
    key = jax.random.PRNGKey(0)
    kx, kp = jax.random.split(key)

    # LeNet's fc1 (16*5*5) forces 32x32 spatial input; batch=2, channels=3.
    x = jax.random.normal(kx, (batch, 3, _H, _W), dtype=jnp.float32)
    params = init_lenet_params(kp, num_classes, inputs=3)
    prepped = prepare_params(params, num_classes)

    forward = jax.jit(make_lenet_forward(num_classes, batch))
    logits, kl = forward(prepped, x)
    jax.block_until_ready(logits)
    assert logits.shape == (batch, num_classes), logits.shape

    ref = jax.jit(reference_forward)(params, x)
    err = float(jnp.max(jnp.abs(logits - ref)))
    assert jnp.allclose(logits, ref, atol=1e-2, rtol=1e-2), err

    # Second (odd) batch size: exercises the extent arithmetic flagged in review.
    batch_b = 3
    x_b = jax.random.normal(jax.random.split(kx)[0], (batch_b, 3, _H, _W), jnp.float32)
    forward_b = jax.jit(make_lenet_forward(num_classes, batch_b))
    logits_b, _ = forward_b(prepped, x_b)
    jax.block_until_ready(logits_b)
    ref_b = jax.jit(reference_forward)(params, x_b)
    err_b = float(jnp.max(jnp.abs(logits_b - ref_b)))
    assert jnp.allclose(logits_b, ref_b, atol=1e-2, rtol=1e-2), err_b

    print("KERNEL_OK")
</pallas_src>

<mosaic_0001>
module attributes {stable_mosaic.version = 11 : i64} {
  func.func @_lenet_fused_kernel(%arg0: memref<8x4736xf32, #tpu.memory_space<vmem>>, %arg1: memref<5x8x40xf32, #tpu.memory_space<vmem>>, %arg2: memref<8x1xf32, #tpu.memory_space<vmem>>, %arg3: memref<5x16x40xf32, #tpu.memory_space<vmem>>, %arg4: memref<16x1xf32, #tpu.memory_space<vmem>>, %arg5: memref<128x400xf32, #tpu.memory_space<vmem>>, %arg6: memref<128x1xf32, #tpu.memory_space<vmem>>, %arg7: memref<128x128xf32, #tpu.memory_space<vmem>>, %arg8: memref<128x1xf32, #tpu.memory_space<vmem>>, %arg9: memref<128x128xf32, #tpu.memory_space<vmem>>, %arg10: memref<128x1xf32, #tpu.memory_space<vmem>>, %arg11: memref<128x128xf32, #tpu.memory_space<vmem>>, %arg12: memref<40x4608xf32, #tpu.memory_space<vmem>>, %arg13: memref<8x4096xf32, #tpu.memory_space<vmem>>, %arg14: memref<40x3840xf32, #tpu.memory_space<vmem>>, %arg15: memref<16x2688xf32, #tpu.memory_space<vmem>>, %arg16: memref<16x2304xf32, #tpu.memory_space<vmem>>, %arg17: memref<400x128xf32, #tpu.memory_space<vmem>>) attributes {dimension_semantics = [], scalar_prefetch = 0 : i64, scratch_operands = 6 : i64, tpu.core_type = #tpu.core_type<tc>} {
    %c0 = arith.constant 0 : index
    %c0_0 = arith.constant 0 : index
    %0 = vector.load %arg0[%c0, %c0_0] : memref<8x4736xf32, #tpu.memory_space<vmem>>, vector<8x4608xf32>
    %c0_1 = arith.constant 0 : index
    %c0_2 = arith.constant 0 : index
    %1 = vector.load %arg12[%c0_1, %c0_2] : memref<40x4608xf32, #tpu.memory_space<vmem>>, vector<8x4608xf32>
    tpu.vector_store %arg12[%c0_1, %c0_2], %0 {strides = array<i32>} : memref<40x4608xf32, #tpu.memory_space<vmem>>, vector<8x4608xf32>,
    %c0_3 = arith.constant 0 : index
    %c2 = arith.constant 2 : index
    %2 = vector.load %arg0[%c0_3, %c2] : memref<8x4736xf32, #tpu.memory_space<vmem>>, vector<8x4608xf32>
    %c8 = arith.constant 8 : index
    %c0_4 = arith.constant 0 : index
    %3 = vector.load %arg12[%c8, %c0_4] : memref<40x4608xf32, #tpu.memory_space<vmem>>, vector<8x4608xf32>
    tpu.vector_store %arg12[%c8, %c0_4], %2 {strides = array<i32>} : memref<40x4608xf32, #tpu.memory_space<vmem>>, vector<8x4608xf32>,
    %c0_5 = arith.constant 0 : index
    %c4 = arith.constant 4 : index
    %4 = vector.load %arg0[%c0_5, %c4] : memref<8x4736xf32, #tpu.memory_space<vmem>>, vector<8x4608xf32>
    %c16 = arith.constant 16 : index
    %c0_6 = arith.constant 0 : index
    %5 = vector.load %arg12[%c16, %c0_6] : memref<40x4608xf32, #tpu.memory_space<vmem>>, vector<8x4608xf32>
    tpu.vector_store %arg12[%c16, %c0_6], %4 {strides = array<i32>} : memref<40x4608xf32, #tpu.memory_space<vmem>>, vector<8x4608xf32>,
    %c0_7 = arith.constant 0 : index
    %c6 = arith.constant 6 : index
    %6 = vector.load %arg0[%c0_7, %c6] : memref<8x4736xf32, #tpu.memory_space<vmem>>, vector<8x4608xf32>
    %c24 = arith.constant 24 : index
    %c0_8 = arith.constant 0 : index
    %7 = vector.load %arg12[%c24, %c0_8] : memref<40x4608xf32, #tpu.memory_space<vmem>>, vector<8x4608xf32>
    tpu.vector_store %arg12[%c24, %c0_8], %6 {strides = array<i32>} : memref<40x4608xf32, #tpu.memory_space<vmem>>, vector<8x4608xf32>,
    %c0_9 = arith.constant 0 : index
    %c8_10 = arith.constant 8 : index
    %8 = vector.load %arg0[%c0_9, %c8_10] : memref<8x4736xf32, #tpu.memory_space<vmem>>, vector<8x4608xf32>
    %c32 = arith.constant 32 : index
    %c0_11 = arith.constant 0 : index
    %9 = vector.load %arg12[%c32, %c0_11] : memref<40x4608xf32, #tpu.memory_space<vmem>>, vector<8x4608xf32>
    tpu.vector_store %arg12[%c32, %c0_11], %8 {strides = array<i32>} : memref<40x4608xf32, #tpu.memory_space<vmem>>, vector<8x4608xf32>,
    %c0_12 = arith.constant 0 : index
    %c0_13 = arith.constant 0 : index
    %10 = vector.load %arg2[%c0_12, %c0_13] : memref<8x1xf32, #tpu.memory_space<vmem>>, vector<8x1xf32>
    %c0_14 = arith.constant 0 : index
    %c0_15 = arith.constant 0 : index
    %c0_16 = arith.constant 0 : index
    %11 = vector.load %arg1[%c0_14, %c0_15, %c0_16] : memref<5x8x40xf32, #tpu.memory_space<vmem>>, vector<1x8x40xf32>
    %12 = vector.shape_cast %11 : vector<1x8x40xf32> to vector<8x40xf32>
    %c0_17 = arith.constant 0 : index
    %c0_18 = arith.constant 0 : index
    %13 = vector.load %arg12[%c0_17, %c0_18] : memref<40x4608xf32, #tpu.memory_space<vmem>>, vector<40x4096xf32>
    %cst = arith.constant dense<0.000000e+00> : vector<8x4096xf32>
    %14 = tpu.matmul %12, %13, %cst {dimension_numbers = #tpu.dot_dimension_numbers<[1], [0], [0], [1], [0, 0, 1, 1], [], []>} : vector<8x40xf32>, vector<40x4096xf32>, vector<8x4096xf32> -> vector<8x4096xf32>
    %15 = vector.broadcast %10 : vector<8x1xf32> to vector<8x4096xf32>
    %16 = arith.addf %15, %14 : vector<8x4096xf32>
    %c0_19 = arith.constant 0 : index
    %c0_20 = arith.constant 0 : index
    %17 = vector.load %arg13[%c0_19, %c0_20] : memref<8x4096xf32, #tpu.memory_space<vmem>>, vector<8x4096xf32>
    tpu.vector_store %arg13[%c0_19, %c0_20], %16 {strides = array<i32>} : memref<8x4096xf32, #tpu.memory_space<vmem>>, vector<8x4096xf32>,
    %c0_21 = arith.constant 0 : index
    %c0_22 = arith.constant 0 : index
    %18 = vector.load %arg13[%c0_21, %c0_22] : memref<8x4096xf32, #tpu.memory_space<vmem>>, vector<8x4096xf32>
    %c1 = arith.constant 1 : index
    %c0_23 = arith.constant 0 : index
    %c0_24 = arith.constant 0 : index
    %19 = vector.load %arg1[%c1, %c0_23, %c0_24] : memref<5x8x40xf32, #tpu.memory_space<vmem>>, vector<1x8x40xf32>
    %20 = vector.shape_cast %19 : vector<1x8x40xf32> to vector<8x40xf32>
    %c0_25 = arith.constant 0 : index
    %c128 = arith.constant 128 : index
    %21 = vector.load %arg12[%c0_25, %c128] : memref<40x4608xf32, #tpu.memory_space<vmem>>, vector<40x4096xf32>
    %cst_26 = arith.constant dense<0.000000e+00> : vector<8x4096xf32>
    %22 = tpu.matmul %20, %21, %cst_26 {dimension_numbers = #tpu.dot_dimension_numbers<[1], [0], [0], [1], [0, 0, 1, 1], [], []>} : vector<8x40xf32>, vector<40x4096xf32>, vector<8x4096xf32> -> vector<8x4096xf32>
    %23 = arith.addf %18, %22 : vector<8x4096xf32>
    %c0_27 = arith.constant 0 : index
    %c0_28 = arith.constant 0 : index
    %24 = vector.load %arg13[%c0_27, %c0_28] : memref<8x4096xf32, #tpu.memory_space<vmem>>, vector<8x4096xf32>
    tpu.vector_store %arg13[%c0_27, %c0_28], %23 {strides = array<i32>} : memref<8x4096xf32, #tpu.memory_space<vmem>>, vector<8x4096xf32>,
    %c0_29 = arith.constant 0 : index
    %c0_30 = arith.constant 0 : index
    %25 = vector.load %arg13[%c0_29, %c0_30] : memref<8x4096xf32, #tpu.memory_space<vmem>>, vector<8x4096xf32>
    %c2_31 = arith.constant 2 : index
    %c0_32 = arith.constant 0 : index
    %c0_33 = arith.constant 0 : index
    %26 = vector.load %arg1[%c2_31, %c0_32, %c0_33] : memref<5x8x40xf32, #tpu.memory_space<vmem>>, vector<1x8x40xf32>
    %27 = vector.shape_cast %26 : vector<1x8x40xf32> to vector<8x40xf32>
    %c0_34 = arith.constant 0 : index
    %c256 = arith.constant 256 : index
    %28 = vector.load %arg12[%c0_34, %c256] : memref<40x4608xf32, #tpu.memory_space<vmem>>, vector<40x4096xf32>
    %cst_35 = arith.constant dense<0.000000e+00> : vector<8x4096xf32>
    %29 = tpu.matmul %27, %28, %cst_35 {dimension_numbers = #tpu.dot_dimension_numbers<[1], [0], [0], [1], [0, 0, 1, 1], [], []>} : vector<8x40xf32>, vector<40x4096xf32>, vector<8x4096xf32> -> vector<8x4096xf32>
    %30 = arith.addf %25, %29 : vector<8x4096xf32>
    %c0_36 = arith.constant 0 : index
    %c0_37 = arith.constant 0 : index
    %31 = vector.load %arg13[%c0_36, %c0_37] : memref<8x4096xf32, #tpu.memory_space<vmem>>, vector<8x4096xf32>
    tpu.vector_store %arg13[%c0_36, %c0_37], %30 {strides = array<i32>} : memref<8x4096xf32, #tpu.memory_space<vmem>>, vector<8x4096xf32>,
    %c0_38 = arith.constant 0 : index
    %c0_39 = arith.constant 0 : index
    %32 = vector.load %arg13[%c0_38, %c0_39] : memref<8x4096xf32, #tpu.memory_space<vmem>>, vector<8x4096xf32>
    %c3 = arith.constant 3 : index
    %c0_40 = arith.constant 0 : index
    %c0_41 = arith.constant 0 : index
    %33 = vector.load %arg1[%c3, %c0_40, %c0_41] : memref<5x8x40xf32, #tpu.memory_space<vmem>>, vector<1x8x40xf32>
    %34 = vector.shape_cast %33 : vector<1x8x40xf32> to vector<8x40xf32>
    %c0_42 = arith.constant 0 : index
    %c384 = arith.constant 384 : index
    %35 = vector.load %arg12[%c0_42, %c384] : memref<40x4608xf32, #tpu.memory_space<vmem>>, vector<40x4096xf32>
    %cst_43 = arith.constant dense<0.000000e+00> : vector<8x4096xf32>
    %36 = tpu.matmul %34, %35, %cst_43 {dimension_numbers = #tpu.dot_dimension_numbers<[1], [0], [0], [1], [0, 0, 1, 1], [], []>} : vector<8x40xf32>, vector<40x4096xf32>, vector<8x4096xf32> -> vector<8x4096xf32>
    %37 = arith.addf %32, %36 : vector<8x4096xf32>
    %c0_44 = arith.constant 0 : index
    %c0_45 = arith.constant 0 : index
    %38 = vector.load %arg13[%c0_44, %c0_45] : memref<8x4096xf32, #tpu.memory_space<vmem>>, vector<8x4096xf32>
    tpu.vector_store %arg13[%c0_44, %c0_45], %37 {strides = array<i32>} : memref<8x4096xf32, #tpu.memory_space<vmem>>, vector<8x4096xf32>,
    %c0_46 = arith.constant 0 : index
    %c0_47 = arith.constant 0 : index
    %39 = vector.load %arg13[%c0_46, %c0_47] : memref<8x4096xf32, #tpu.memory_space<vmem>>, vector<8x4096xf32>
    %c4_48 = arith.constant 4 : index
    %c0_49 = arith.constant 0 : index
    %c0_50 = arith.constant 0 : index
    %40 = vector.load %arg1[%c4_48, %c0_49, %c0_50] : memref<5x8x40xf32, #tpu.memory_space<vmem>>, vector<1x8x40xf32>
    %41 = vector.shape_cast %40 : vector<1x8x40xf32> to vector<8x40xf32>
    %c0_51 = arith.constant 0 : index
    %c512 = arith.constant 512 : index
    %42 = vector.load %arg12[%c0_51, %c512] : memref<40x4608xf32, #tpu.memory_space<vmem>>, vector<40x4096xf32>
    %cst_52 = arith.constant dense<0.000000e+00> : vector<8x4096xf32>
    %43 = tpu.matmul %41, %42, %cst_52 {dimension_numbers = #tpu.dot_dimension_numbers<[1], [0], [0], [1], [0, 0, 1, 1], [], []>} : vector<8x40xf32>, vector<40x4096xf32>, vector<8x4096xf32> -> vector<8x4096xf32>
    %44 = arith.addf %39, %43 : vector<8x4096xf32>
    %c0_53 = arith.constant 0 : index
    %c0_54 = arith.constant 0 : index
    %45 = vector.load %arg13[%c0_53, %c0_54] : memref<8x4096xf32, #tpu.memory_space<vmem>>, vector<8x4096xf32>
    tpu.vector_store %arg13[%c0_53, %c0_54], %44 {strides = array<i32>} : memref<8x4096xf32, #tpu.memory_space<vmem>>, vector<8x4096xf32>,
    %c0_55 = arith.constant 0 : index
    %c0_56 = arith.constant 0 : index
    %46 = vector.load %arg13[%c0_55, %c0_56] : memref<8x4096xf32, #tpu.memory_space<vmem>>, vector<8x3840xf32>
    %c0_57 = arith.constant 0 : index
    %c2_58 = arith.constant 2 : index
    %47 = vector.load %arg13[%c0_57, %c2_58] : memref<8x4096xf32, #tpu.memory_space<vmem>>, vector<8x3840xf32>
    %48 = arith.maximumf %46, %47 : vector<8x3840xf32>
    %c0_59 = arith.constant 0 : index
    %c128_60 = arith.constant 128 : index
    %49 = vector.load %arg13[%c0_59, %c128_60] : memref<8x4096xf32, #tpu.memory_space<vmem>>, vector<8x3840xf32>
    %c0_61 = arith.constant 0 : index
    %c130 = arith.constant 130 : index
    %50 = vector.load %arg13[%c0_61, %c130] : memref<8x4096xf32, #tpu.memory_space<vmem>>, vector<8x3840xf32>
    %51 = arith.maximumf %49, %50 : vector<8x3840xf32>
    %52 = arith.maximumf %48, %51 : vector<8x3840xf32>
    %cst_62 = arith.constant 0.000000e+00 : f32
    %53 = vector.broadcast %cst_62 : f32 to vector<8x3840xf32>
    %54 = arith.maximumf %52, %53 : vector<8x3840xf32>
    %c0_63 = arith.constant 0 : index
    %c0_64 = arith.constant 0 : index
    %55 = vector.load %arg14[%c0_63, %c0_64] : memref<40x3840xf32, #tpu.memory_space<vmem>>, vector<8x3840xf32>
    tpu.vector_store %arg14[%c0_63, %c0_64], %54 {strides = array<i32>} : memref<40x3840xf32, #tpu.memory_space<vmem>>, vector<8x3840xf32>,
    %c0_65 = arith.constant 0 : index
    %c4_66 = arith.constant 4 : index
    %56 = vector.load %arg14[%c0_65, %c4_66] : memref<40x3840xf32, #tpu.memory_space<vmem>>, vector<8x3712xf32>
    %c8_67 = arith.constant 8 : index
    %c0_68 = arith.constant 0 : index
    %57 = vector.load %arg14[%c8_67, %c0_68] : memref<40x3840xf32, #tpu.memory_space<vmem>>, vector<8x3712xf32>
    tpu.vector_store %arg14[%c8_67, %c0_68], %56 {strides = array<i32>} : memref<40x3840xf32, #tpu.memory_space<vmem>>, vector<8x3712xf32>,
    %c0_69 = arith.constant 0 : index
    %c8_70 = arith.constant 8 : index
    %58 = vector.load %arg14[%c0_69, %c8_70] : memref<40x3840xf32, #tpu.memory_space<vmem>>, vector<8x3712xf32>
    %c16_71 = arith.constant 16 : index
    %c0_72 = arith.constant 0 : index
    %59 = vector.load %arg14[%c16_71, %c0_72] : memref<40x3840xf32, #tpu.memory_space<vmem>>, vector<8x3712xf32>
    tpu.vector_store %arg14[%c16_71, %c0_72], %58 {strides = array<i32>} : memref<40x3840xf32, #tpu.memory_space<vmem>>, vector<8x3712xf32>,
    %c0_73 = arith.constant 0 : index
    %c12 = arith.constant 12 : index
    %60 = vector.load %arg14[%c0_73, %c12] : memref<40x3840xf32, #tpu.memory_space<vmem>>, vector<8x3712xf32>
    %c24_74 = arith.constant 24 : index
    %c0_75 = arith.constant 0 : index
    %61 = vector.load %arg14[%c24_74, %c0_75] : memref<40x3840xf32, #tpu.memory_space<vmem>>, vector<8x3712xf32>
    tpu.vector_store %arg14[%c24_74, %c0_75], %60 {strides = array<i32>} : memref<40x3840xf32, #tpu.memory_space<vmem>>, vector<8x3712xf32>,
    %c0_76 = arith.constant 0 : index
    %c16_77 = arith.constant 16 : index
    %62 = vector.load %arg14[%c0_76, %c16_77] : memref<40x3840xf32, #tpu.memory_space<vmem>>, vector<8x3712xf32>
    %c32_78 = arith.constant 32 : index
    %c0_79 = arith.constant 0 : index
    %63 = vector.load %arg14[%c32_78, %c0_79] : memref<40x3840xf32, #tpu.memory_space<vmem>>, vector<8x3712xf32>
    tpu.vector_store %arg14[%c32_78, %c0_79], %62 {strides = array<i32>} : memref<40x3840xf32, #tpu.memory_space<vmem>>, vector<8x3712xf32>,
    %c0_80 = arith.constant 0 : index
    %c0_81 = arith.constant 0 : index
    %64 = vector.load %arg4[%c0_80, %c0_81] : memref<16x1xf32, #tpu.memory_space<vmem>>, vector<16x1xf32>
    %c0_82 = arith.constant 0 : index
    %c0_83 = arith.constant 0 : index
    %c0_84 = arith.constant 0 : index
    %65 = vector.load %arg3[%c0_82, %c0_83, %c0_84] : memref<5x16x40xf32, #tpu.memory_space<vmem>>, vector<1x16x40xf32>
    %66 = vector.shape_cast %65 : vector<1x16x40xf32> to vector<16x40xf32>
    %c0_85 = arith.constant 0 : index
    %c0_86 = arith.constant 0 : index
    %67 = vector.load %arg14[%c0_85, %c0_86] : memref<40x3840xf32, #tpu.memory_space<vmem>>, vector<40x2688xf32>
    %cst_87 = arith.constant dense<0.000000e+00> : vector<16x2688xf32>
    %68 = tpu.matmul %66, %67, %cst_87 {dimension_numbers = #tpu.dot_dimension_numbers<[1], [0], [0], [1], [0, 0, 1, 1], [], []>} : vector<16x40xf32>, vector<40x2688xf32>, vector<16x2688xf32> -> vector<16x2688xf32>
    %69 = vector.broadcast %64 : vector<16x1xf32> to vector<16x2688xf32>
    %70 = arith.addf %69, %68 : vector<16x2688xf32>
    %c0_88 = arith.constant 0 : index
    %c0_89 = arith.constant 0 : index
    %71 = vector.load %arg15[%c0_88, %c0_89] : memref<16x2688xf32, #tpu.memory_space<vmem>>, vector<16x2688xf32>
    tpu.vector_store %arg15[%c0_88, %c0_89], %70 {strides = array<i32>} : memref<16x2688xf32, #tpu.memory_space<vmem>>, vector<16x2688xf32>,
    %c0_90 = arith.constant 0 : index
    %c0_91 = arith.constant 0 : index
    %72 = vector.load %arg15[%c0_90, %c0_91] : memref<16x2688xf32, #tpu.memory_space<vmem>>, vector<16x2688xf32>
    %c1_92 = arith.constant 1 : index
    %c0_93 = arith.constant 0 : index
    %c0_94 = arith.constant 0 : index
    %73 = vector.load %arg3[%c1_92, %c0_93, %c0_94] : memref<5x16x40xf32, #tpu.memory_space<vmem>>, vector<1x16x40xf32>
    %74 = vector.shape_cast %73 : vector<1x16x40xf32> to vector<16x40xf32>
    %c0_95 = arith.constant 0 : index
    %c256_96 = arith.constant 256 : index
    %75 = vector.load %arg14[%c0_95, %c256_96] : memref<40x3840xf32, #tpu.memory_space<vmem>>, vector<40x2688xf32>
    %cst_97 = arith.constant dense<0.000000e+00> : vector<16x2688xf32>
    %76 = tpu.matmul %74, %75, %cst_97 {dimension_numbers = #tpu.dot_dimension_numbers<[1], [0], [0], [1], [0, 0, 1, 1], [], []>} : vector<16x40xf32>, vector<40x2688xf32>, vector<16x2688xf32> -> vector<16x2688xf32>
    %77 = arith.addf %72, %76 : vector<16x2688xf32>
    %c0_98 = arith.constant 0 : index
    %c0_99 = arith.constant 0 : index
    %78 = vector.load %arg15[%c0_98, %c0_99] : memref<16x2688xf32, #tpu.memory_space<vmem>>, vector<16x2688xf32>
    tpu.vector_store %arg15[%c0_98, %c0_99], %77 {strides = array<i32>} : memref<16x2688xf32, #tpu.memory_space<vmem>>, vector<16x2688xf32>,
    %c0_100 = arith.constant 0 : index
    %c0_101 = arith.constant 0 : index
    %79 = vector.load %arg15[%c0_100, %c0_101] : memref<16x2688xf32, #tpu.memory_space<vmem>>, vector<16x2688xf32>
    %c2_102 = arith.constant 2 : index
    %c0_103 = arith.constant 0 : index
    %c0_104 = arith.constant 0 : index
    %80 = vector.load %arg3[%c2_102, %c0_103, %c0_104] : memref<5x16x40xf32, #tpu.memory_space<vmem>>, vector<1x16x40xf32>
    %81 = vector.shape_cast %80 : vector<1x16x40xf32> to vector<16x40xf32>
    %c0_105 = arith.constant 0 : index
    %c512_106 = arith.constant 512 : index
    %82 = vector.load %arg14[%c0_105, %c512_106] : memref<40x3840xf32, #tpu.memory_space<vmem>>, vector<40x2688xf32>
    %cst_107 = arith.constant dense<0.000000e+00> : vector<16x2688xf32>
    %83 = tpu.matmul %81, %82, %cst_107 {dimension_numbers = #tpu.dot_dimension_numbers<[1], [0], [0], [1], [0, 0, 1, 1], [], []>} : vector<16x40xf32>, vector<40x2688xf32>, vector<16x2688xf32> -> vector<16x2688xf32>
    %84 = arith.addf %79, %83 : vector<16x2688xf32>
    %c0_108 = arith.constant 0 : index
    %c0_109 = arith.constant 0 : index
    %85 = vector.load %arg15[%c0_108, %c0_109] : memref<16x2688xf32, #tpu.memory_space<vmem>>, vector<16x2688xf32>
    tpu.vector_store %arg15[%c0_108, %c0_109], %84 {strides = array<i32>} : memref<16x2688xf32, #tpu.memory_space<vmem>>, vector<16x2688xf32>,
    %c0_110 = arith.constant 0 : index
    %c0_111 = arith.constant 0 : index
    %86 = vector.load %arg15[%c0_110, %c0_111] : memref<16x2688xf32, #tpu.memory_space<vmem>>, vector<16x2688xf32>
    %c3_112 = arith.constant 3 : index
    %c0_113 = arith.constant 0 : index
    %c0_114 = arith.constant 0 : index
    %87 = vector.load %arg3[%c3_112, %c0_113, %c0_114] : memref<5x16x40xf32, #tpu.memory_space<vmem>>, vector<1x16x40xf32>
    %88 = vector.shape_cast %87 : vector<1x16x40xf32> to vector<16x40xf32>
    %c0_115 = arith.constant 0 : index
    %c768 = arith.constant 768 : index
    %89 = vector.load %arg14[%c0_115, %c768] : memref<40x3840xf32, #tpu.memory_space<vmem>>, vector<40x2688xf32>
    %cst_116 = arith.constant dense<0.000000e+00> : vector<16x2688xf32>
    %90 = tpu.matmul %88, %89, %cst_116 {dimension_numbers = #tpu.dot_dimension_numbers<[1], [0], [0], [1], [0, 0, 1, 1], [], []>} : vector<16x40xf32>, vector<40x2688xf32>, vector<16x2688xf32> -> vector<16x2688xf32>
    %91 = arith.addf %86, %90 : vector<16x2688xf32>
    %c0_117 = arith.constant 0 : index
    %c0_118 = arith.constant 0 : index
    %92 = vector.load %arg15[%c0_117, %c0_118] : memref<16x2688xf32, #tpu.memory_space<vmem>>, vector<16x2688xf32>
    tpu.vector_store %arg15[%c0_117, %c0_118], %91 {strides = array<i32>} : memref<16x2688xf32, #tpu.memory_space<vmem>>, vector<16x2688xf32>,
    %c0_119 = arith.constant 0 : index
    %c0_120 = arith.constant 0 : index
    %93 = vector.load %arg15[%c0_119, %c0_120] : memref<16x2688xf32, #tpu.memory_space<vmem>>, vector<16x2688xf32>
    %c4_121 = arith.constant 4 : index
    %c0_122 = arith.constant 0 : index
    %c0_123 = arith.constant 0 : index
    %94 = vector.load %arg3[%c4_121, %c0_122, %c0_123] : memref<5x16x40xf32, #tpu.memory_space<vmem>>, vector<1x16x40xf32>
    %95 = vector.shape_cast %94 : vector<1x16x40xf32> to vector<16x40xf32>
    %c0_124 = arith.constant 0 : index
    %c1024 = arith.constant 1024 : index
    %96 = vector.load %arg14[%c0_124, %c1024] : memref<40x3840xf32, #tpu.memory_space<vmem>>, vector<40x2688xf32>
    %cst_125 = arith.constant dense<0.000000e+00> : vector<16x2688xf32>
    %97 = tpu.matmul %95, %96, %cst_125 {dimension_numbers = #tpu.dot_dimension_numbers<[1], [0], [0], [1], [0, 0, 1, 1], [], []>} : vector<16x40xf32>, vector<40x2688xf32>, vector<16x2688xf32> -> vector<16x2688xf32>
    %98 = arith.addf %93, %97 : vector<16x2688xf32>
    %c0_126 = arith.constant 0 : index
    %c0_127 = arith.constant 0 : index
    %99 = vector.load %arg15[%c0_126, %c0_127] : memref<16x2688xf32, #tpu.memory_space<vmem>>, vector<16x2688xf32>
    tpu.vector_store %arg15[%c0_126, %c0_127], %98 {strides = array<i32>} : memref<16x2688xf32, #tpu.memory_space<vmem>>, vector<16x2688xf32>,
    %c0_128 = arith.constant 0 : index
    %c0_129 = arith.constant 0 : index
    %100 = vector.load %arg15[%c0_128, %c0_129] : memref<16x2688xf32, #tpu.memory_space<vmem>>, vector<16x2304xf32>
    %c0_130 = arith.constant 0 : index
    %c4_131 = arith.constant 4 : index
    %101 = vector.load %arg15[%c0_130, %c4_131] : memref<16x2688xf32, #tpu.memory_space<vmem>>, vector<16x2304xf32>
    %102 = arith.maximumf %100, %101 : vector<16x2304xf32>
    %c0_132 = arith.constant 0 : index
    %c256_133 = arith.constant 256 : index
    %103 = vector.load %arg15[%c0_132, %c256_133] : memref<16x2688xf32, #tpu.memory_space<vmem>>, vector<16x2304xf32>
    %c0_134 = arith.constant 0 : index
    %c260 = arith.constant 260 : index
    %104 = vector.load %arg15[%c0_134, %c260] : memref<16x2688xf32, #tpu.memory_space<vmem>>, vector<16x2304xf32>
    %105 = arith.maximumf %103, %104 : vector<16x2304xf32>
    %106 = arith.maximumf %102, %105 : vector<16x2304xf32>
    %cst_135 = arith.constant 0.000000e+00 : f32
    %107 = vector.broadcast %cst_135 : f32 to vector<16x2304xf32>
    %108 = arith.maximumf %106, %107 : vector<16x2304xf32>
    %c0_136 = arith.constant 0 : index
    %c0_137 = arith.constant 0 : index
    %109 = vector.load %arg16[%c0_136, %c0_137] : memref<16x2304xf32, #tpu.memory_space<vmem>>, vector<16x2304xf32>
    tpu.vector_store %arg16[%c0_136, %c0_137], %108 {strides = array<i32>} : memref<16x2304xf32, #tpu.memory_space<vmem>>, vector<16x2304xf32>,
    %c0_138 = arith.constant 0 : index
    %c0_139 = arith.constant 0 : index
    %110 = vector.load %arg16[%c0_138, %c0_139] : memref<16x2304xf32, #tpu.memory_space<vmem>>, vector<16x128xf32>
    %c0_140 = arith.constant 0 : index
    %c0_141 = arith.constant 0 : index
    %111 = vector.load %arg17[%c0_140, %c0_141] : memref<400x128xf32, #tpu.memory_space<vmem>>, vector<16x128xf32>
    tpu.vector_store %arg17[%c0_140, %c0_141], %110 {strides = array<i32>} : memref<400x128xf32, #tpu.memory_space<vmem>>, vector<16x128xf32>,
    %c0_142 = arith.constant 0 : index
    %c8_143 = arith.constant 8 : index
    %112 = vector.load %arg16[%c0_142, %c8_143] : memref<16x2304xf32, #tpu.memory_space<vmem>>, vector<16x128xf32>
    %c16_144 = arith.constant 16 : index
    %c0_145 = arith.constant 0 : index
    %113 = vector.load %arg17[%c16_144, %c0_145] : memref<400x128xf32, #tpu.memory_space<vmem>>, vector<16x128xf32>
    tpu.vector_store %arg17[%c16_144, %c0_145], %112 {strides = array<i32>} : memref<400x128xf32, #tpu.memory_space<vmem>>, vector<16x128xf32>,
    %c0_146 = arith.constant 0 : index
    %c16_147 = arith.constant 16 : index
    %114 = vector.load %arg16[%c0_146, %c16_147] : memref<16x2304xf32, #tpu.memory_space<vmem>>, vector<16x128xf32>
    %c32_148 = arith.constant 32 : index
    %c0_149 = arith.constant 0 : index
    %115 = vector.load %arg17[%c32_148, %c0_149] : memref<400x128xf32, #tpu.memory_space<vmem>>, vector<16x128xf32>
    tpu.vector_store %arg17[%c32_148, %c0_149], %114 {strides = array<i32>} : memref<400x128xf32, #tpu.memory_space<vmem>>, vector<16x128xf32>,
    %c0_150 = arith.constant 0 : index
    %c24_151 = arith.constant 24 : index
    %116 = vector.load %arg16[%c0_150, %c24_151] : memref<16x2304xf32, #tpu.memory_space<vmem>>, vector<16x128xf32>
    %c48 = arith.constant 48 : index
    %c0_152 = arith.constant 0 : index
    %117 = vector.load %arg17[%c48, %c0_152] : memref<400x128xf32, #tpu.memory_space<vmem>>, vector<16x128xf32>
    tpu.vector_store %arg17[%c48, %c0_152], %116 {strides = array<i32>} : memref<400x128xf32, #tpu.memory_space<vmem>>, vector<16x128xf32>,
    %c0_153 = arith.constant 0 : index
    %c32_154 = arith.constant 32 : index
    %118 = vector.load %arg16[%c0_153, %c32_154] : memref<16x2304xf32, #tpu.memory_space<vmem>>, vector<16x128xf32>
    %c64 = arith.constant 64 : index
    %c0_155 = arith.constant 0 : index
    %119 = vector.load %arg17[%c64, %c0_155] : memref<400x128xf32, #tpu.memory_space<vmem>>, vector<16x128xf32>
    tpu.vector_store %arg17[%c64, %c0_155], %118 {strides = array<i32>} : memref<400x128xf32, #tpu.memory_space<vmem>>, vector<16x128xf32>,
    %c0_156 = arith.constant 0 : index
    %c512_157 = arith.constant 512 : index
    %120 = vector.load %arg16[%c0_156, %c512_157] : memref<16x2304xf32, #tpu.memory_space<vmem>>, vector<16x128xf32>
    %c80 = arith.constant 80 : index
    %c0_158 = arith.constant 0 : index
    %121 = vector.load %arg17[%c80, %c0_158] : memref<400x128xf32, #tpu.memory_space<vmem>>, vector<16x128xf32>
    tpu.vector_store %arg17[%c80, %c0_158], %120 {strides = array<i32>} : memref<400x128xf32, #tpu.memory_space<vmem>>, vector<16x128xf32>,
    %c0_159 = arith.constant 0 : index
    %c520 = arith.constant 520 : index
    %122 = vector.load %arg16[%c0_159, %c520] : memref<16x2304xf32, #tpu.memory_space<vmem>>, vector<16x128xf32>
    %c96 = arith.constant 96 : index
    %c0_160 = arith.constant 0 : index
    %123 = vector.load %arg17[%c96, %c0_160] : memref<400x128xf32, #tpu.memory_space<vmem>>, vector<16x128xf32>
    tpu.vector_store %arg17[%c96, %c0_160], %122 {strides = array<i32>} : memref<400x128xf32, #tpu.memory_space<vmem>>, vector<16x128xf32>,
    %c0_161 = arith.constant 0 : index
    %c528 = arith.constant 528 : index
    %124 = vector.load %arg16[%c0_161, %c528] : memref<16x2304xf32, #tpu.memory_space<vmem>>, vector<16x128xf32>
    %c112 = arith.constant 112 : index
    %c0_162 = arith.constant 0 : index
    %125 = vector.load %arg17[%c112, %c0_162] : memref<400x128xf32, #tpu.memory_space<vmem>>, vector<16x128xf32>
    tpu.vector_store %arg17[%c112, %c0_162], %124 {strides = array<i32>} : memref<400x128xf32, #tpu.memory_space<vmem>>, vector<16x128xf32>,
    %c0_163 = arith.constant 0 : index
    %c536 = arith.constant 536 : index
    %126 = vector.load %arg16[%c0_163, %c536] : memref<16x2304xf32, #tpu.memory_space<vmem>>, vector<16x128xf32>
    %c128_164 = arith.constant 128 : index
    %c0_165 = arith.constant 0 : index
    %127 = vector.load %arg17[%c128_164, %c0_165] : memref<400x128xf32, #tpu.memory_space<vmem>>, vector<16x128xf32>
    tpu.vector_store %arg17[%c128_164, %c0_165], %126 {strides = array<i32>} : memref<400x128xf32, #tpu.memory_space<vmem>>, vector<16x128xf32>,
    %c0_166 = arith.constant 0 : index
    %c544 = arith.constant 544 : index
    %128 = vector.load %arg16[%c0_166, %c544] : memref<16x2304xf32, #tpu.memory_space<vmem>>, vector<16x128xf32>
    %c144 = arith.constant 144 : index
    %c0_167 = arith.constant 0 : index
    %129 = vector.load %arg17[%c144, %c0_167] : memref<400x128xf32, #tpu.memory_space<vmem>>, vector<16x128xf32>
    tpu.vector_store %arg17[%c144, %c0_167], %128 {strides = array<i32>} : memref<400x128xf32, #tpu.memory_space<vmem>>, vector<16x128xf32>,
    %c0_168 = arith.constant 0 : index
    %c1024_169 = arith.constant 1024 : index
    %130 = vector.load %arg16[%c0_168, %c1024_169] : memref<16x2304xf32, #tpu.memory_space<vmem>>, vector<16x128xf32>
    %c160 = arith.constant 160 : index
    %c0_170 = arith.constant 0 : index
    %131 = vector.load %arg17[%c160, %c0_170] : memref<400x128xf32, #tpu.memory_space<vmem>>, vector<16x128xf32>
    tpu.vector_store %arg17[%c160, %c0_170], %130 {strides = array<i32>} : memref<400x128xf32, #tpu.memory_space<vmem>>, vector<16x128xf32>,
    %c0_171 = arith.constant 0 : index
    %c1032 = arith.constant 1032 : index
    %132 = vector.load %arg16[%c0_171, %c1032] : memref<16x2304xf32, #tpu.memory_space<vmem>>, vector<16x128xf32>
    %c176 = arith.constant 176 : index
    %c0_172 = arith.constant 0 : index
    %133 = vector.load %arg17[%c176, %c0_172] : memref<400x128xf32, #tpu.memory_space<vmem>>, vector<16x128xf32>
    tpu.vector_store %arg17[%c176, %c0_172], %132 {strides = array<i32>} : memref<400x128xf32, #tpu.memory_space<vmem>>, vector<16x128xf32>,
    %c0_173 = arith.constant 0 : index
    %c1040 = arith.constant 1040 : index
    %134 = vector.load %arg16[%c0_173, %c1040] : memref<16x2304xf32, #tpu.memory_space<vmem>>, vector<16x128xf32>
    %c192 = arith.constant 192 : index
    %c0_174 = arith.constant 0 : index
    %135 = vector.load %arg17[%c192, %c0_174] : memref<400x128xf32, #tpu.memory_space<vmem>>, vector<16x128xf32>
    tpu.vector_store %arg17[%c192, %c0_174], %134 {strides = array<i32>} : memref<400x128xf32, #tpu.memory_space<vmem>>, vector<16x128xf32>,
    %c0_175 = arith.constant 0 : index
    %c1048 = arith.constant 1048 : index
    %136 = vector.load %arg16[%c0_175, %c1048] : memref<16x2304xf32, #tpu.memory_space<vmem>>, vector<16x128xf32>
    %c208 = arith.constant 208 : index
    %c0_176 = arith.constant 0 : index
    %137 = vector.load %arg17[%c208, %c0_176] : memref<400x128xf32, #tpu.memory_space<vmem>>, vector<16x128xf32>
    tpu.vector_store %arg17[%c208, %c0_176], %136 {strides = array<i32>} : memref<400x128xf32, #tpu.memory_space<vmem>>, vector<16x128xf32>,
    %c0_177 = arith.constant 0 : index
    %c1056 = arith.constant 1056 : index
    %138 = vector.load %arg16[%c0_177, %c1056] : memref<16x2304xf32, #tpu.memory_space<vmem>>, vector<16x128xf32>
    %c224 = arith.constant 224 : index
    %c0_178 = arith.constant 0 : index
    %139 = vector.load %arg17[%c224, %c0_178] : memref<400x128xf32, #tpu.memory_space<vmem>>, vector<16x128xf32>
    tpu.vector_store %arg17[%c224, %c0_178], %138 {strides = array<i32>} : memref<400x128xf32, #tpu.memory_space<vmem>>, vector<16x128xf32>,
    %c0_179 = arith.constant 0 : index
    %c1536 = arith.constant 1536 : index
    %140 = vector.load %arg16[%c0_179, %c1536] : memref<16x2304xf32, #tpu.memory_space<vmem>>, vector<16x128xf32>
    %c240 = arith.constant 240 : index
    %c0_180 = arith.constant 0 : index
    %141 = vector.load %arg17[%c240, %c0_180] : memref<400x128xf32, #tpu.memory_space<vmem>>, vector<16x128xf32>
    tpu.vector_store %arg17[%c240, %c0_180], %140 {strides = array<i32>} : memref<400x128xf32, #tpu.memory_space<vmem>>, vector<16x128xf32>,
    %c0_181 = arith.constant 0 : index
    %c1544 = arith.constant 1544 : index
    %142 = vector.load %arg16[%c0_181, %c1544] : memref<16x2304xf32, #tpu.memory_space<vmem>>, vector<16x128xf32>
    %c256_182 = arith.constant 256 : index
    %c0_183 = arith.constant 0 : index
    %143 = vector.load %arg17[%c256_182, %c0_183] : memref<400x128xf32, #tpu.memory_space<vmem>>, vector<16x128xf32>
    tpu.vector_store %arg17[%c256_182, %c0_183], %142 {strides = array<i32>} : memref<400x128xf32, #tpu.memory_space<vmem>>, vector<16x128xf32>,
    %c0_184 = arith.constant 0 : index
    %c1552 = arith.constant 1552 : index
    %144 = vector.load %arg16[%c0_184, %c1552] : memref<16x2304xf32, #tpu.memory_space<vmem>>, vector<16x128xf32>
    %c272 = arith.constant 272 : index
    %c0_185 = arith.constant 0 : index
    %145 = vector.load %arg17[%c272, %c0_185] : memref<400x128xf32, #tpu.memory_space<vmem>>, vector<16x128xf32>
    tpu.vector_store %arg17[%c272, %c0_185], %144 {strides = array<i32>} : memref<400x128xf32, #tpu.memory_space<vmem>>, vector<16x128xf32>,
    %c0_186 = arith.constant 0 : index
    %c1560 = arith.constant 1560 : index
    %146 = vector.load %arg16[%c0_186, %c1560] : memref<16x2304xf32, #tpu.memory_space<vmem>>, vector<16x128xf32>
    %c288 = arith.constant 288 : index
    %c0_187 = arith.constant 0 : index
    %147 = vector.load %arg17[%c288, %c0_187] : memref<400x128xf32, #tpu.memory_space<vmem>>, vector<16x128xf32>
    tpu.vector_store %arg17[%c288, %c0_187], %146 {strides = array<i32>} : memref<400x128xf32, #tpu.memory_space<vmem>>, vector<16x128xf32>,
    %c0_188 = arith.constant 0 : index
    %c1568 = arith.constant 1568 : index
    %148 = vector.load %arg16[%c0_188, %c1568] : memref<16x2304xf32, #tpu.memory_space<vmem>>, vector<16x128xf32>
    %c304 = arith.constant 304 : index
    %c0_189 = arith.constant 0 : index
    %149 = vector.load %arg17[%c304, %c0_189] : memref<400x128xf32, #tpu.memory_space<vmem>>, vector<16x128xf32>
    tpu.vector_store %arg17[%c304, %c0_189], %148 {strides = array<i32>} : memref<400x128xf32, #tpu.memory_space<vmem>>, vector<16x128xf32>,
    %c0_190 = arith.constant 0 : index
    %c2048 = arith.constant 2048 : index
    %150 = vector.load %arg16[%c0_190, %c2048] : memref<16x2304xf32, #tpu.memory_space<vmem>>, vector<16x128xf32>
    %c320 = arith.constant 320 : index
    %c0_191 = arith.constant 0 : index
    %151 = vector.load %arg17[%c320, %c0_191] : memref<400x128xf32, #tpu.memory_space<vmem>>, vector<16x128xf32>
    tpu.vector_store %arg17[%c320, %c0_191], %150 {strides = array<i32>} : memref<400x128xf32, #tpu.memory_space<vmem>>, vector<16x128xf32>,
    %c0_192 = arith.constant 0 : index
    %c2056 = arith.constant 2056 : index
    %152 = vector.load %arg16[%c0_192, %c2056] : memref<16x2304xf32, #tpu.memory_space<vmem>>, vector<16x128xf32>
    %c336 = arith.constant 336 : index
    %c0_193 = arith.constant 0 : index
    %153 = vector.load %arg17[%c336, %c0_193] : memref<400x128xf32, #tpu.memory_space<vmem>>, vector<16x128xf32>
    tpu.vector_store %arg17[%c336, %c0_193], %152 {strides = array<i32>} : memref<400x128xf32, #tpu.memory_space<vmem>>, vector<16x128xf32>,
    %c0_194 = arith.constant 0 : index
    %c2064 = arith.constant 2064 : index
    %154 = vector.load %arg16[%c0_194, %c2064] : memref<16x2304xf32, #tpu.memory_space<vmem>>, vector<16x128xf32>
    %c352 = arith.constant 352 : index
    %c0_195 = arith.constant 0 : index
    %155 = vector.load %arg17[%c352, %c0_195] : memref<400x128xf32, #tpu.memory_space<vmem>>, vector<16x128xf32>
    tpu.vector_store %arg17[%c352, %c0_195], %154 {strides = array<i32>} : memref<400x128xf32, #tpu.memory_space<vmem>>, vector<16x128xf32>,
    %c0_196 = arith.constant 0 : index
    %c2072 = arith.constant 2072 : index
    %156 = vector.load %arg16[%c0_196, %c2072] : memref<16x2304xf32, #tpu.memory_space<vmem>>, vector<16x128xf32>
    %c368 = arith.constant 368 : index
    %c0_197 = arith.constant 0 : index
    %157 = vector.load %arg17[%c368, %c0_197] : memref<400x128xf32, #tpu.memory_space<vmem>>, vector<16x128xf32>
    tpu.vector_store %arg17[%c368, %c0_197], %156 {strides = array<i32>} : memref<400x128xf32, #tpu.memory_space<vmem>>, vector<16x128xf32>,
    %c0_198 = arith.constant 0 : index
    %c2080 = arith.constant 2080 : index
    %158 = vector.load %arg16[%c0_198, %c2080] : memref<16x2304xf32, #tpu.memory_space<vmem>>, vector<16x128xf32>
    %c384_199 = arith.constant 384 : index
    %c0_200 = arith.constant 0 : index
    %159 = vector.load %arg17[%c384_199, %c0_200] : memref<400x128xf32, #tpu.memory_space<vmem>>, vector<16x128xf32>
    tpu.vector_store %arg17[%c384_199, %c0_200], %158 {strides = array<i32>} : memref<400x128xf32, #tpu.memory_space<vmem>>, vector<16x128xf32>,
    %c0_201 = arith.constant 0 : index
    %c0_202 = arith.constant 0 : index
    %160 = vector.load %arg5[%c0_201, %c0_202] : memref<128x400xf32, #tpu.memory_space<vmem>>, vector<128x400xf32>
    %c0_203 = arith.constant 0 : index
    %c0_204 = arith.constant 0 : index
    %161 = vector.load %arg17[%c0_203, %c0_204] : memref<400x128xf32, #tpu.memory_space<vmem>>, vector<400x128xf32>
    %cst_205 = arith.constant dense<0.000000e+00> : vector<128x128xf32>
    %162 = tpu.matmul %160, %161, %cst_205 {dimension_numbers = #tpu.dot_dimension_numbers<[1], [0], [0], [1], [0, 0, 1, 1], [], []>} : vector<128x400xf32>, vector<400x128xf32>, vector<128x128xf32> -> vector<128x128xf32>
    %c0_206 = arith.constant 0 : index
    %c0_207 = arith.constant 0 : index
    %163 = vector.load %arg6[%c0_206, %c0_207] : memref<128x1xf32, #tpu.memory_space<vmem>>, vector<128x1xf32>
    %164 = vector.broadcast %163 : vector<128x1xf32> to vector<128x128xf32>
    %165 = arith.addf %162, %164 : vector<128x128xf32>
    %cst_208 = arith.constant 0.000000e+00 : f32
    %166 = vector.broadcast %cst_208 : f32 to vector<128x128xf32>
    %167 = arith.maximumf %165, %166 : vector<128x128xf32>
    %c0_209 = arith.constant 0 : index
    %c0_210 = arith.constant 0 : index
    %168 = vector.load %arg7[%c0_209, %c0_210] : memref<128x128xf32, #tpu.memory_space<vmem>>, vector<128x128xf32>
    %cst_211 = arith.constant dense<0.000000e+00> : vector<128x128xf32>
    %169 = tpu.matmul %168, %167, %cst_211 {dimension_numbers = #tpu.dot_dimension_numbers<[1], [0], [0], [1], [0, 0, 1, 1], [], []>} : vector<128x128xf32>, vector<128x128xf32>, vector<128x128xf32> -> vector<128x128xf32>
    %c0_212 = arith.constant 0 : index
    %c0_213 = arith.constant 0 : index
    %170 = vector.load %arg8[%c0_212, %c0_213] : memref<128x1xf32, #tpu.memory_space<vmem>>, vector<128x1xf32>
    %171 = vector.broadcast %170 : vector<128x1xf32> to vector<128x128xf32>
    %172 = arith.addf %169, %171 : vector<128x128xf32>
    %cst_214 = arith.constant 0.000000e+00 : f32
    %173 = vector.broadcast %cst_214 : f32 to vector<128x128xf32>
    %174 = arith.maximumf %172, %173 : vector<128x128xf32>
    %c0_215 = arith.constant 0 : index
    %c0_216 = arith.constant 0 : index
    %175 = vector.load %arg9[%c0_215, %c0_216] : memref<128x128xf32, #tpu.memory_space<vmem>>, vector<128x128xf32>
    %cst_217 = arith.constant dense<0.000000e+00> : vector<128x128xf32>
    %176 = tpu.matmul %175, %174, %cst_217 {dimension_numbers = #tpu.dot_dimension_numbers<[1], [0], [0], [1], [0, 0, 1, 1], [], []>} : vector<128x128xf32>, vector<128x128xf32>, vector<128x128xf32> -> vector<128x128xf32>
    %c0_218 = arith.constant 0 : index
    %c0_219 = arith.constant 0 : index
    %177 = vector.load %arg10[%c0_218, %c0_219] : memref<128x1xf32, #tpu.memory_space<vmem>>, vector<128x1xf32>
    %178 = vector.broadcast %177 : vector<128x1xf32> to vector<128x128xf32>
    %179 = arith.addf %176, %178 : vector<128x128xf32>
    %c0_220 = arith.constant 0 : index
    %c0_221 = arith.constant 0 : index
    %180 = vector.load %arg11[%c0_220, %c0_221] : memref<128x128xf32, #tpu.memory_space<vmem>>, vector<128x128xf32>
    tpu.vector_store %arg11[%c0_220, %c0_221], %179 {strides = array<i32>} : memref<128x128xf32, #tpu.memory_space<vmem>>, vector<128x128xf32>,
    return
  }
}

</mosaic_0001>

<bundles_post_ra>
// kernel: forward.1
= control target key start
LH: loop header
LB: loop body
LE: loop exit
PB: predicated region body
PF: predicated region fallthrough
CT: control target
= control target key end

     0   :  { %s14161_s21 = smov 120   ;;  %s14162_s22 = smov 122   ;;  %vm1029_vm0 = vcmask 982016   ;;  %vm772_vm1 = vcmask 998400   ;;  %vm515_vm2 = vcmask 1014784   ;;  %vm258_vm3 = vcmask 1031168   ;;  %s20949_s0 = inlined_call_operand.vmem [shape: f32[8,4736], index: 0, kind: input, shape index: {}]   ;;  %s20950_s1 = inlined_call_operand.vmem [shape: f32[5,8,40], index: 1, kind: input, shape index: {}]   ;;  %s20951_s2 = inlined_call_operand.vmem [shape: f32[8,1], index: 2, kind: input, shape index: {}]   ;;  %s20952_s3 = inlined_call_operand.vmem [shape: f32[5,16,40], index: 3, kind: input, shape index: {}]   ;;  %s20953_s4 = inlined_call_operand.vmem [shape: f32[16,1], index: 4, kind: input, shape index: {}]   ;;  %s20954_s5 = inlined_call_operand.vmem [shape: f32[128,400], index: 5, kind: input, shape index: {}]   ;;  %s20955_s6 = inlined_call_operand.vmem [shape: f32[128,1], index: 6, kind: input, shape index: {}]   ;;  %s20956_s8 = inlined_call_operand.vmem [shape: f32[128,1], index: 8, kind: input, shape index: {}]   ;;  %s20957_s10 = inlined_call_operand.vmem [shape: f32[128,1], index: 10, kind: input, shape index: {}]   ;;  %s20958_s7 = inlined_call_operand.vmem [shape: f32[128,128], index: 7, kind: input, shape index: {}]   ;;  %s20959_s9 = inlined_call_operand.vmem [shape: f32[128,128], index: 9, kind: input, shape index: {}]   ;;  %s20960_s11 = inlined_call_operand.vmem [shape: f32[128,128], index: 11, kind: output, shape index: {}]  }
   0x1   :  { %v14233_v0 = vld [vmem:[%s20949_s0 + $0x10] sm:$0xff]  ;;  %v14238_v1 = vld [vmem:[%s20949_s0 + $0x18] sm:$0xff]  ;;  %s14163_s23 = smov 124   ;;  %v14248_v3 = vld [vmem:[%s20949_s0] sm:$0xff]  ;;  %s14164_s13 = smov 126   ;;  %vm1300_vm4 = vcmask 326656  }
   0x2   :  { %v12991_v2 = vpack.i.bf16 %v14238_v1, %v14233_v0  ;;  %v14253_v4 = vld [vmem:[%s20949_s0 + $0x20] sm:$0xff]  ;;  %v14263_v6 = vld [vmem:[%s20949_s0 + $0x8] sm:$0xff]  ;;  %v14268_v7 = vld [vmem:[%s20949_s0 + $0x30] sm:$0xff]  ;;  %s14166_s27 = smov 112   ;;  %s14167_s28 = smov 116   ;;  %vm6877_vm5 = vcmask 916480  }
   0x3   :  { %v12996_v5 = vpack.i.bf16 %v14248_v3, %v14253_v4  ;;  %v13031_v8 = vpack.i.bf16 %v14268_v7, %v14263_v6  ;;  %v14278_v9 = vld [vmem:[%s20949_s0 + $0x38] sm:$0xff]  ;;  %v14283_v10 = vld [vmem:[%s20949_s0 + $0x40] sm:$0xff]  ;;  %v14296_v12 = vld [vmem:[%s20949_s0 + $0x28] sm:$0xff]  ;;  %vm6669_vm6 = vcmask 949248   ;;  %s14169_s16 = smov 96   ;;  %vm11266_vm7 = vcmask 785408  }
   0x4   :  { %12992 = vrot.lane.b32.xlu0 %v12991_v2, %s14161_s21  ;;  %13002 = vrot.lane.b32.xlu1 %v12991_v2, %s14162_s22  ;;  %v13041_v11 = vpack.i.bf16 %v14283_v10, %v14278_v9  ;;  %v14301_v13 = vld [vmem:[%s20949_s0 + $0x50] sm:$0xff]  ;;  %v14311_v15 = vld [vmem:[%s20949_s0 + $0x58] sm:$0xff]  ;;  %vm11243_vm8 = vcmask 850944   ;;  %vm11851_vm9 = vcmask 130048  }
   0x5   :  { %13012 = vrot.lane.b32.xlu2 %v12991_v2, %s14163_s23  ;;  %v13076_v14 = vpack.i.bf16 %v14301_v13, %v14296_v12  ;;  %v636_v16 = vld [vmem:[%s20949_s0 + $0x60] sm:$0xff]  ;;  %v14326_v18 = vld [vmem:[%s20949_s0 + $0x48] sm:$0xff]  ;;  %v14331_v19 = vld [vmem:[%s20949_s0 + $0x70] sm:$0xff] }
   0x6   :  { %v13091_v17 = vpack.i.bf16 %v636_v16, %v14311_v15  ;;  %v14336_v20 = vld [vmem:[%s20949_s0 + $0x78] sm:$0xff]  ;;  %v897_v21 = vld [vmem:[%s20949_s0 + $0x80] sm:$0xff]  ;;  %v13111_v22 = vpack.i.bf16 %v14331_v19, %v14326_v18  ;;  %v14353_v24 = vld [vmem:[%s20949_s0 + $0x68] sm:$0xff] }
   0x7   :  { %v13121_v23 = vpack.i.bf16 %v897_v21, %v14336_v20  ;;  %v14358_v25 = vld [vmem:[%s20949_s0 + $0x90] sm:$0xff]  ;;  %v14368_v27 = vld [vmem:[%s20949_s0 + $0x98] sm:$0xff]  ;;  %v901_v28 = vld [vmem:[%s20949_s0 + $0xa0] sm:$0xff] }
   0x8   :  { %v13151_v26 = vpack.i.bf16 %v14358_v25, %v14353_v24  ;;  %v13161_v29 = vpack.i.bf16 %v901_v28, %v14368_v27  ;;  %v14385_v31 = vld [vmem:[%s20949_s0 + $0x88] sm:$0xff]  ;;  %v14390_v32 = vld [vmem:[%s20949_s0 + $0xb0] sm:$0xff]  ;;  %v647_v35 = vld [vmem:[%s20949_s0 + $0xb8] sm:$0xff] }
   0x9   :  { %v13196_v34 = vpack.i.bf16 %v14390_v32, %v14385_v31  ;;  %v648_v36 = vld [vmem:[%s20949_s0 + $0xc0] sm:$0xff]  ;;  %v14444_v53 = vld [vmem:[%s20949_s0 + $0xa8] sm:$0xff]  ;;  %v907_v54 = vld [vmem:[%s20949_s0 + $0xd0] sm:$0xff] }
   0xa   :  { %v13211_v38 = vpack.i.bf16 %v648_v36, %v647_v35  ;;  %v908_v57 = vld [vmem:[%s20949_s0 + $0xd8] sm:$0xff]  ;;  %v909_v58 = vld [vmem:[%s20949_s0 + $0xe0] sm:$0xff]  ;;  %v13231_v63 = vpack.i.bf16 %v907_v54, %v14444_v53  ;;  %v906_v36 = vld [vmem:[%s20949_s0 + $0xc8] sm:$0xff] }
   0xb   :  { %v14511_v35 = vld [vmem:[%s20950_s1] sm:$0xff] }
   0xc   :  { %12997 = vrot.lane.b32.xlu0 %v12996_v5, %s14161_s21  ;;  %13007 = vrot.lane.b32.xlu1 %v12996_v5, %s14162_s22 }
   0xd   :  { %13017 = vrot.lane.b32.xlu2 %v12996_v5, %s14163_s23 }
  0x14   :  { %13022 = vrot.lane.b32.xlu0 %v12991_v2, %s14164_s13  ;;  %13027 = vrot.lane.b32.xlu1 %v12996_v5, %s14164_s13 }
  0x15   :  { %13032 = vrot.lane.b32.xlu2 %v13031_v8, %s14161_s21 }
  0x1c   :  { %13037 = vrot.lane.b32.xlu0 %v13031_v8, %s14162_s22  ;;  %13042 = vrot.lane.b32.xlu1 %v13041_v11, %s14161_s21 }
  0x1d   :  { %13047 = vrot.lane.b32.xlu2 %v13031_v8, %s14163_s23 }
  0x24   :  { %13052 = vrot.lane.b32.xlu0 %v13041_v11, %s14162_s22  ;;  %13057 = vrot.lane.b32.xlu1 %v13031_v8, %s14164_s13 }
  0x25   :  { %13062 = vrot.lane.b32.xlu2 %v13041_v11, %s14163_s23 }
  0x2c   :  { %13067 = vrot.lane.b32.xlu0 %v13041_v11, %s14164_s13  ;;  %13072 = vrot.lane.b32.xlu1 %v13076_v14, %s14161_s21  ;;  %v13241_v11 = vpack.i.bf16 %v909_v58, %v908_v57 }
  0x2d   :  { %13077 = vrot.lane.b32.xlu2 %v13076_v14, %s14162_s22 }
  0x34   :  { %13082 = vrot.lane.b32.xlu0 %v13091_v17, %s14161_s21  ;;  %13087 = vrot.lane.b32.xlu1 %v13076_v14, %s14163_s23 }
  0x35   :  { %13092 = vrot.lane.b32.xlu2 %v13091_v17, %s14162_s22 }
  0x3c   :  { %13097 = vrot.lane.b32.xlu0 %v13076_v14, %s14164_s13  ;;  %13102 = vrot.lane.b32.xlu1 %v13091_v17, %s14163_s23 }
  0x3d   :  { %13107 = vrot.lane.b32.xlu2 %v13091_v17, %s14164_s13 }
  0x44   :  { %13112 = vrot.lane.b32.xlu0 %v13111_v22, %s14161_s21  ;;  %13117 = vrot.lane.b32.xlu1 %v13111_v22, %s14162_s22 }
  0x45   :  { %13122 = vrot.lane.b32.xlu2 %v13121_v23, %s14161_s21 }
  0x4c   :  { %13127 = vrot.lane.b32.xlu0 %v13111_v22, %s14163_s23  ;;  %13132 = vrot.lane.b32.xlu1 %v13121_v23, %s14162_s22 }
  0x4d   :  { %13137 = vrot.lane.b32.xlu2 %v13111_v22, %s14164_s13 }
  0x54   :  { %13142 = vrot.lane.b32.xlu0 %v13121_v23, %s14163_s23  ;;  %13147 = vrot.lane.b32.xlu1 %v13121_v23, %s14164_s13 }
  0x55   :  { %13152 = vrot.lane.b32.xlu2 %v13151_v26, %s14161_s21 }
  0x5c   :  { %13157 = vrot.lane.b32.xlu0 %v13151_v26, %s14162_s22  ;;  %13162 = vrot.lane.b32.xlu1 %v13161_v29, %s14161_s21 }
  0x5d   :  { %13167 = vrot.lane.b32.xlu2 %v13151_v26, %s14163_s23 }
  0x5f   :  { %v14377_v30 = vpop.permute.xlu2 %13012 }
  0x60   :  { %v13015_v40 = vunpack.i.h.bf16 %v14377_v30  ;;  %v13014_v41 = vunpack.i.l.bf16 %v14377_v30 }
  0x62   :  { %v14435_v52 = vsel %vm515_vm2, %v13014_v41, %v13015_v40 }
  0x64   :  { %13172 = vrot.lane.b32.xlu0 %v13161_v29, %s14162_s22  ;;  %13177 = vrot.lane.b32.xlu1 %v13151_v26, %s14164_s13 }
  0x65   :  { %13182 = vrot.lane.b32.xlu2 %v13161_v29, %s14163_s23 }
  0x67   :  { %v14392_v33 = vpop.permute.xlu2 %13017 }
  0x68   :  { %v20963_v2 = vunpack.i.l.bf16 %v14392_v33 }
  0x6a   :  { %v14486_v16 = vsel %vm515_vm2, %v13015_v40, %v20963_v2 }
  0x6c   :  { %13187 = vrot.lane.b32.xlu0 %v13161_v29, %s14164_s13  ;;  %13192 = vrot.lane.b32.xlu1 %v13196_v34, %s14161_s21 }
  0x6d   :  { %13197 = vrot.lane.b32.xlu2 %v13196_v34, %s14162_s22 }
  0x6f   :  { %v14405_v37 = vpop.permute.xlu2 %13032 }
  0x70   :  { %v13034_v39 = vunpack.i.l.bf16 %v14405_v37  ;;  %v13035_v40 = vunpack.i.h.bf16 %v14405_v37 }
  0x74   :  { %13202 = vrot.lane.b32.xlu0 %v13211_v38, %s14161_s21  ;;  %13207 = vrot.lane.b32.xlu1 %v13196_v34, %s14163_s23 }
  0x75   :  { %13212 = vrot.lane.b32.xlu2 %v13211_v38, %s14162_s22 }
  0x76   :  { %v12993_v42 = vpop.permute.xlu0 %12992  ;;  %v14413_v43 = vpop.permute.xlu1 %13002 }
  0x77   :  { %v12995_v44 = vunpack.i.h.bf16 %v12993_v42  ;;  %v12994_v45 = vunpack.i.l.bf16 %v12993_v42  ;;  %v13005_v46 = vunpack.i.h.bf16 %v14413_v43  ;;  %v13004_v47 = vunpack.i.l.bf16 %v14413_v43  ;;  %v14417_v48 = vpop.permute.xlu2 %13047 }
  0x78   :  { %v13049_v58 = vunpack.i.l.bf16 %v14417_v48 }
  0x79   :  { %v14420_v49 = vsel %vm1029_vm0, %v13034_v39, %v12994_v45  ;;  %v14423_v50 = vsel %vm1029_vm0, %v12994_v45, %v12995_v44  ;;  %v14428_v51 = vsel %vm772_vm1, %v13004_v47, %v13005_v46 }
  0x7a   :  { %1335 = vmatpush.msra.mxu1 %v14420_v49  ;;  %1355 = vmatpush.msra.mxu2 %v14423_v50 }
  0x7c   :  { %1356 = vmatpush.msra.mxu2 %v14428_v51  ;;  %13217 = vrot.lane.b32.xlu0 %v13196_v34, %s14164_s13 }
  0x7d   :  { %13227 = vrot.lane.b32.xlu2 %v13211_v38, %s14164_s13  ;;  %13222 = vrot.lane.b32.xlu1 %v13211_v38, %s14163_s23  ;;  %v911_v38 = vld [vmem:[%s20949_s0 + $0xf0] sm:$0xff] }
  0x7e   :  { %v14449_v55 = vpop.permute.xlu0 %12997  ;;  %v14451_v56 = vpop.permute.xlu1 %13007  ;;  %1357 = vmatpush.msra.mxu2 %v14435_v52 }
  0x7f   :  { %v13000_v59 = vunpack.i.h.bf16 %v14449_v55  ;;  %v12999_v60 = vunpack.i.l.bf16 %v14449_v55  ;;  %v20966_v61 = vunpack.i.l.bf16 %v14451_v56  ;;  %v14463_v62 = vpop.permute.xlu2 %13062  ;;  %v21535_v37 = vunpack.i.l.bf16 %v14451_v56 }
  0x81   :  { %v1030_v5 = vsel %vm1029_vm0, %v13000_v59, %v13034_v39  ;;  %v14471_v8 = vsel %vm1029_vm0, %v12995_v44, %v12999_v60  ;;  %v14477_v14 = vsel %vm772_vm1, %v13005_v46, %v20966_v61  ;;  %v13020_v39 = vunpack.i.h.bf16 %v14392_v33 }
  0x82   :  { %1315 = vmatpush.msra.mxu0 %v1030_v5  ;;  %1375 = vmatpush.msra.mxu3 %v14471_v8  ;;  %v14541_v59 = vpack.i.bf16 %v911_v38, %v906_v36 }
  0x83   :  { %v516_v43 = vsel %vm515_vm2, %v13020_v39, %v13049_v58 }
  0x84   :  { %1376 = vmatpush.msra.mxu3 %v14477_v14  ;;  %13232 = vrot.lane.b32.xlu0 %v13231_v63, %s14161_s21 }
  0x85   :  { %13242 = vrot.lane.b32.xlu2 %v13241_v11, %s14161_s21  ;;  %13237 = vrot.lane.b32.xlu1 %v13231_v63, %s14162_s22 }
  0x86   :  { %1377 = vmatpush.msra.mxu3 %v14486_v16  ;;  %v14489_v17 = vpop.permute.xlu0 %13022  ;;  %v14491_v21 = vpop.permute.xlu1 %13027 }
  0x87   :  { %v14493_v22 = vpop.permute.xlu2 %13077  ;;  %v13025_v23 = vunpack.i.h.bf16 %v14489_v17  ;;  %v13024_v26 = vunpack.i.l.bf16 %v14489_v17  ;;  %v20962_v28 = vunpack.i.l.bf16 %v14491_v21  ;;  %v13030_v36 = vunpack.i.h.bf16 %v14491_v21 }
  0x89   :  { %v14499_v29 = vsel %vm258_vm3, %v13024_v26, %v13025_v23  ;;  %v14504_v34 = vsel %vm258_vm3, %v13025_v23, %v20962_v28  ;;  %v20964_v23 = vunpack.i.h.bf16 %v14463_v62 }
  0x8a   :  { %1358 = vmatpush.msra.mxu2 %v14499_v29  ;;  %1378 = vmatpush.msra.mxu3 %v14504_v34 }
  0x8c   :  { %13247 = vrot.lane.b32.xlu0 %v13231_v63, %s14163_s23  ;;  %1359 = vmatpush.msra.mxu2 %v14233_v0  ;;  %v13010_v0 = vunpack.i.h.bf16 %v14451_v56 }
  0x8d   :  { %13257 = vrot.lane.b32.xlu2 %v13231_v63, %s14164_s13  ;;  %13252 = vrot.lane.b32.xlu1 %v13241_v11, %s14162_s22 }
  0x8e   :  { %v14525_v42 = vpop.permute.xlu0 %13037  ;;  %v14527_v44 = vpop.permute.xlu1 %13042  ;;  %1379 = vmatpush.msra.mxu3 %v14238_v1  ;;  %12568 = vmatmul.msk.f32.vlgmr.msra.gmra.mxu2 %vm1300_vm4, %v14511_v35 }
  0x8f   :  { %v14533_v45 = vpop.permute.xlu2 %13092  ;;  %v13039_v46 = vunpack.i.l.bf16 %v14525_v42  ;;  %v20961_v54 = vunpack.i.h.bf16 %v14527_v44  ;;  %v13044_v57 = vunpack.i.l.bf16 %v14527_v44  ;;  %12569 = vmatmul.msk.f32.vlgmr.msra.gmra.mxu3 %vm1300_vm4, %v14511_v35  ;;  %v13040_v30 = vunpack.i.h.bf16 %v14525_v42 }
  0x90   :  { %v13064_v42 = vunpack.i.l.bf16 %v14463_v62 }
  0x91   :  { %v773_v1 = vsel %vm772_vm1, %v13010_v0, %v13039_v46  ;;  %v14547_v63 = vsel %vm772_vm1, %v13039_v46, %v13004_v47  ;;  %v14552_v5 = vsel %vm1029_vm0, %v13035_v40, %v13044_v57  ;;  %v14557_v17 = vsel %vm1029_vm0, %v13044_v57, %v20961_v54 }
  0x92   :  { %21525 = vst [vmem:[#allocation8_spill] sm:$0xff] %v14552_v5  ;;  %1316 = vmatpush.msra.mxu0 %v773_v1  ;;  %1336 = vmatpush.msra.mxu1 %v14547_v63  ;;  %v14567_v47 = vsel %vm515_vm2, %v13049_v58, %v13014_v41  ;;  %v14588_v58 = vld [vmem:[%s20949_s0 + $0xf8] sm:$0xff]  ;;  %v13050_v1 = vunpack.i.h.bf16 %v14417_v48 }
  0x93   :  { %21526 = vst [vmem:[#allocation9_spill] sm:$0xff] %v14557_v17  ;;  %1435 = vmatpush.msrb.mxu2 %v14552_v5  ;;  %1455 = vmatpush.msrb.mxu3 %v14557_v17 }
  0x94   :  { %13262 = vrot.lane.b32.xlu0 %v13241_v11, %s14163_s23  ;;  %1317 = vmatpush.msra.mxu0 %v516_v43 }
  0x95   :  { %13272 = vrot.lane.b32.xlu2 %v14541_v59, %s14161_s21  ;;  %1337 = vmatpush.msra.mxu1 %v14567_v47 }
  0x96   :  { %13267 = vrot.lane.b32.xlu1 %v13241_v11, %s14164_s13  ;;  %v14575_v38 = vpop.permute.xlu0 %13052  ;;  %v14577_v39 = vpop.permute.xlu1 %13057  ;;  %v913_v11 = vld [vmem:[%s20949_s0 + $0x100] sm:$0xff] }
  0x97   :  { %v14580_v0 = vpop.permute.xlu2 %13107  ;;  %v20965_v41 = vunpack.i.h.bf16 %v14575_v38  ;;  %v13054_v46 = vunpack.i.l.bf16 %v14575_v38  ;;  %v13059_v57 = vunpack.i.l.bf16 %v14577_v39  ;;  %v13281_v48 = vpack.i.bf16 %v913_v11, %v14588_v58 }
  0x99   :  { %v259_v43 = vsel %vm258_vm3, %v13030_v36, %v13059_v57  ;;  %v14597_v54 = vsel %vm258_vm3, %v13059_v57, %v13024_v26  ;;  %v14600_v28 = vsel %vm772_vm1, %v13040_v30, %v13054_v46  ;;  %v14605_v2 = vsel %vm772_vm1, %v13054_v46, %v20965_v41 }
  0x9a   :  { %21527 = vst [vmem:[#allocation10_spill] sm:$0xff] %v14600_v28  ;;  %1318 = vmatpush.msra.mxu0 %v259_v43  ;;  %1338 = vmatpush.msra.mxu1 %v14597_v54  ;;  %v14614_v26 = vsel %vm515_vm2, %v13064_v42, %v20964_v23  ;;  %v14619_v36 = vsel %vm515_vm2, %v13050_v1, %v13064_v42  ;;  %v13079_v46 = vunpack.i.l.bf16 %v14493_v22  ;;  %v20971_v42 = vunpack.i.h.bf16 %v14577_v39 }
  0x9b   :  { %21528 = vst [vmem:[#allocation11_spill] sm:$0xff] %v14605_v2  ;;  %1436 = vmatpush.msrb.mxu2 %v14600_v28  ;;  %1456 = vmatpush.msrb.mxu3 %v14605_v2 }
  0x9c   :  { %21529 = vst [vmem:[#allocation12_spill] sm:$0xff] %v14614_v26  ;;  %13277 = vrot.lane.b32.xlu0 %v14541_v59, %s14162_s22  ;;  %1319 = vmatpush.msra.mxu0 %v14248_v3  ;;  %v14670_v55 = vsel %vm772_vm1, %v21535_v37, %v13079_v46 }
  0x9d   :  { %21530 = vst [vmem:[#allocation13_spill] sm:$0xff] %v14619_v36  ;;  %13287 = vrot.lane.b32.xlu2 %v14541_v59, %s14163_s23  ;;  %1437 = vmatpush.msrb.mxu2 %v14619_v36 }
  0x9e   :  { %13282 = vrot.lane.b32.xlu1 %v13281_v48, %s14161_s21  ;;  %v14627_v57 = vpop.permute.xlu0 %13067  ;;  %v14629_v11 = vpop.permute.xlu1 %13072  ;;  %1457 = vmatpush.msrb.mxu3 %v14614_v26  ;;  %21536 = vst [vmem:[#allocation17_spill] sm:$0xff] %v14670_v55 }
  0x9f   :  { %v14633_v43 = vpop.permute.xlu2 %13122  ;;  %v13069_v23 = vunpack.i.l.bf16 %v14627_v57  ;;  %v13074_v41 = vunpack.i.l.bf16 %v14629_v11  ;;  %1339 = vmatpush.msra.mxu1 %v14263_v6  ;;  %12566 = vmatmul.msk.f32.vlgmr.msra.gmra.mxu0 %vm1300_vm4, %v14511_v35  ;;  %v21533_v36 = vunpack.i.h.bf16 %v14627_v57 }
  0xa0   :  { %12567 = vmatmul.msk.f32.vlgmr.msra.gmra.mxu1 %vm1300_vm4, %v14511_v35 }
  0xa1   :  { %v14646_v61 = vsel %vm1029_vm0, %v12999_v60, %v13074_v41  ;;  %v14651_v3 = vsel %vm1029_vm0, %v13074_v41, %v13035_v40  ;;  %v14656_v6 = vsel %vm258_vm3, %v20971_v42, %v13069_v23  ;;  %v14661_v28 = vsel %vm258_vm3, %v13069_v23, %v21533_v36 }
  0xa2   :  { %21531 = vst [vmem:[#allocation14_spill] sm:$0xff] %v14651_v3  ;;  %1395 = vmatpush.msrb.mxu0 %v14646_v61  ;;  %1415 = vmatpush.msrb.mxu1 %v14651_v3  ;;  %v14675_v60 = vsel %vm772_vm1, %v13079_v46, %v13040_v30  ;;  %v20974_v41 = vunpack.i.h.bf16 %v14629_v11  ;;  %v13094_v42 = vunpack.i.l.bf16 %v14533_v45  ;;  %v20998_v3 = vunpack.i.h.bf16 %v14633_v43 }
  0xa3   :  { %21532 = vst [vmem:[#allocation15_spill] sm:$0xff] %v14656_v6  ;;  %1438 = vmatpush.msrb.mxu2 %v14656_v6  ;;  %1458 = vmatpush.msrb.mxu3 %v14661_v28 }
  0xa4   :  { %21534 = vst [vmem:[#allocation16_spill] sm:$0xff] %v14661_v28  ;;  %13292 = vrot.lane.b32.xlu0 %v13281_v48, %s14162_s22  ;;  %1396 = vmatpush.msrb.mxu0 %v14670_v55 }
  0xa5   :  { %21537 = vst [vmem:[#allocation18_spill] sm:$0xff] %v14675_v60  ;;  %13302 = vrot.lane.b32.xlu2 %v13281_v48, %s14163_s23  ;;  %1416 = vmatpush.msrb.mxu1 %v14675_v60  ;;  %v21548_v60 = vunpack.i.l.bf16 %v14491_v21 }
  0xa6   :  { %13297 = vrot.lane.b32.xlu1 %v14541_v59, %s14164_s13  ;;  %v14682_v56 = vpop.permute.xlu0 %13082  ;;  %v14684_v23 = vpop.permute.xlu1 %13087  ;;  %1439 = vmatpush.msrb.mxu2 %v14268_v7  ;;  %v21538_v7 = vunpack.i.l.bf16 %v14392_v33  ;;  %v14723_v33 = vld [vmem:[%s20949_s0 + $0xe8] sm:$0xff] }
  0xa7   :  { %v14688_v36 = vpop.permute.xlu2 %13137  ;;  %v13084_v46 = vunpack.i.l.bf16 %v14682_v56  ;;  %v13089_v37 = vunpack.i.l.bf16 %v14684_v23  ;;  %1459 = vmatpush.msrb.mxu3 %v14278_v9  ;;  %12572 = vmatmul.msk.f32.vlgmr.msrb.gmra.mxu2 %vm1300_vm4, %v14511_v35  ;;  %v21542_v59 = vunpack.i.h.bf16 %v14682_v56  ;;  %v21551_v5 = vunpack.i.h.bf16 %v14684_v23 }
  0xa8   :  { %12573 = vmatmul.msk.f32.vlgmr.msrb.gmra.mxu3 %vm1300_vm4, %v14511_v35 }
  0xa9   :  { %v14703_v40 = vsel %vm515_vm2, %v21538_v7, %v13089_v37  ;;  %v14706_v30 = vsel %vm515_vm2, %v13089_v37, %v13050_v1  ;;  %v14711_v9 = vsel %vm1029_vm0, %v20974_v41, %v13084_v46  ;;  %v14716_v6 = vsel %vm1029_vm0, %v13084_v46, %v21542_v59 }
  0xaa   :  { %21539 = vst [vmem:[#allocation19_spill] sm:$0xff] %v14703_v40  ;;  %1397 = vmatpush.msrb.mxu0 %v14703_v40  ;;  %1417 = vmatpush.msrb.mxu1 %v14706_v30  ;;  %v21544_v1 = vunpack.i.h.bf16 %v14533_v45  ;;  %v21546_v46 = vunpack.i.h.bf16 %v14493_v22  ;;  %v13109_v7 = vunpack.i.l.bf16 %v14580_v0 }
  0xab   :  { %21540 = vst [vmem:[#allocation20_spill] sm:$0xff] %v14706_v30  ;;  %1515 = vmatpush.msra.mxu2 %v14711_v9  ;;  %1535 = vmatpush.msra.mxu3 %v14716_v6 }
  0xac   :  { %21541 = vst [vmem:[#allocation21_spill] sm:$0xff] %v14711_v9  ;;  %v14730_v37 = vsel %vm772_vm1, %v13094_v42, %v21544_v1  ;;  %13307 = vrot.lane.b32.xlu0 %v13281_v48, %s14164_s13  ;;  %v14736_v59 = vsel %vm772_vm1, %v21546_v46, %v13094_v42 }
  0xad   :  { %21543 = vst [vmem:[#allocation22_spill] sm:$0xff] %v14716_v6  ;;  %756 = vrot.lane.b32.xlu2 %v14723_v33, %s14162_s22  ;;  %1516 = vmatpush.msra.mxu2 %v14736_v59 }
  0xae   :  { %21545 = vst [vmem:[#allocation23_spill] sm:$0xff] %v14730_v37  ;;  %1013 = vrot.lane.b32.xlu1 %v14723_v33, %s14161_s21  ;;  %v14744_v41 = vpop.permute.xlu0 %13097  ;;  %v14746_v1 = vpop.permute.xlu1 %13102  ;;  %1536 = vmatpush.msra.mxu3 %v14730_v37  ;;  %v21549_v37 = vunpack.i.h.bf16 %v14577_v39  ;;  %v914_v39 = vld [vmem:[%s20949_s0 + $0x108] sm:$0xff] }
  0xaf   :  { %21547 = vst [vmem:[#allocation24_spill] sm:$0xff] %v14736_v59  ;;  %v14750_v42 = vpop.permute.xlu2 %13152  ;;  %v13099_v46 = vunpack.i.l.bf16 %v14744_v41  ;;  %v13104_v59 = vunpack.i.l.bf16 %v14746_v1  ;;  %v20993_v30 = vunpack.i.h.bf16 %v14744_v41  ;;  %v21553_v21 = vunpack.i.h.bf16 %v14746_v1 }
  0xb1   :  { %v14760_v6 = vsel %vm258_vm3, %v21548_v60, %v13099_v46  ;;  %v14765_v48 = vsel %vm258_vm3, %v13099_v46, %v21549_v37  ;;  %v14770_v9 = vsel %vm515_vm2, %v21551_v5, %v13104_v59  ;;  %v14778_v60 = vsel %vm515_vm2, %v13104_v59, %v21553_v21 }
  0xb2   :  { %21550 = vst [vmem:[#allocation25_spill] sm:$0xff] %v14765_v48  ;;  %1398 = vmatpush.msrb.mxu0 %v14760_v6  ;;  %1418 = vmatpush.msrb.mxu1 %v14765_v48  ;;  %v21555_v5 = vunpack.i.h.bf16 %v14580_v0  ;;  %v13124_v46 = vunpack.i.l.bf16 %v14633_v43  ;;  %v14796_v59 = vsel %vm258_vm3, %v20993_v30, %v13109_v7 }
  0xb3   :  { %21552 = vst [vmem:[#allocation26_spill] sm:$0xff] %v14770_v9  ;;  %1517 = vmatpush.msra.mxu2 %v14770_v9  ;;  %1537 = vmatpush.msra.mxu3 %v14778_v60 }
  0xb4   :  { %21554 = vst [vmem:[#allocation27_spill] sm:$0xff] %v14778_v60  ;;  %v14788_v37 = vsel %vm258_vm3, %v13109_v7, %v21555_v5  ;;  %499 = vrot.lane.b32.xlu0 %v14723_v33, %s14163_s23  ;;  %1399 = vmatpush.msrb.mxu0 %v14253_v4  ;;  %v14809_v9 = vsel %vm1029_vm0, %v13124_v46, %v20998_v3 }
  0xb5   :  { %21556 = vst [vmem:[#allocation28_spill] sm:$0xff] %v14788_v37  ;;  %1518 = vmatpush.msra.mxu2 %v14796_v59  ;;  %1021 = vrot.lane.b32.xlu2 %v914_v39, %s14161_s21 }
  0xb6   :  { %21557 = vst [vmem:[#allocation29_spill] sm:$0xff] %v14796_v59  ;;  %242 = vrot.lane.b32.xlu1 %v14723_v33, %s14164_s13  ;;  %v13113_v21 = vpop.permute.xlu0 %13112  ;;  %v14803_v5 = vpop.permute.xlu1 %13117  ;;  %1538 = vmatpush.msra.mxu3 %v14788_v37  ;;  %v21559_v37 = vunpack.i.h.bf16 %v14527_v44  ;;  %v21566_v44 = vunpack.i.h.bf16 %v14493_v22 }
  0xb7   :  { %21558 = vst [vmem:[#allocation30_spill] sm:$0xff] %v14809_v9  ;;  %v13115_v7 = vunpack.i.h.bf16 %v13113_v21  ;;  %v13114_v30 = vunpack.i.l.bf16 %v13113_v21  ;;  %v13119_v4 = vunpack.i.l.bf16 %v14803_v5  ;;  %1419 = vmatpush.msrb.mxu1 %v14296_v12  ;;  %1519 = vmatpush.msra.mxu2 %v14301_v13  ;;  %v14817_v59 = vpop.permute.xlu2 %13167  ;;  %v21561_v21 = vunpack.i.h.bf16 %v14629_v11 }
  0xb8   :  { %1539 = vmatpush.msra.mxu3 %v14311_v15  ;;  %12570 = vmatmul.msk.f32.vlgmr.msrb.gmra.mxu0 %vm1300_vm4, %v14511_v35  ;;  %v21564_v13 = vunpack.i.h.bf16 %v14575_v38  ;;  %v13139_v38 = vunpack.i.l.bf16 %v14688_v36  ;;  %v13120_v22 = vunpack.i.h.bf16 %v14803_v5 }
  0xb9   :  { %v14822_v3 = vsel %vm1029_vm0, %v21559_v37, %v13114_v30  ;;  %v14827_v48 = vsel %vm1029_vm0, %v13114_v30, %v21561_v21  ;;  %v14830_v12 = vsel %vm1029_vm0, %v13115_v7, %v13124_v46  ;;  %12571 = vmatmul.msk.f32.vlgmr.msrb.gmra.mxu1 %vm1300_vm4, %v14511_v35  ;;  %v14848_v11 = vsel %vm772_vm1, %v13119_v4, %v21566_v44 }
  0xba   :  { %21560 = vst [vmem:[#allocation31_spill] sm:$0xff] %v14822_v3  ;;  %1615 = vmatpush.msrb.mxu3 %v14809_v9  ;;  %1475 = vmatpush.msra.mxu0 %v14822_v3  ;;  %v14839_v15 = vsel %vm772_vm1, %v21564_v13, %v13119_v4  ;;  %v21570_v44 = vunpack.i.h.bf16 %v14684_v23  ;;  %v13154_v9 = vunpack.i.l.bf16 %v14750_v42  ;;  %v21574_v23 = vunpack.i.h.bf16 %v14627_v57 }
  0xbb   :  { %21562 = vst [vmem:[#allocation32_spill] sm:$0xff] %v14827_v48  ;;  %1495 = vmatpush.msra.mxu1 %v14827_v48  ;;  %1595 = vmatpush.msrb.mxu2 %v14830_v12  ;;  %v21578_v57 = vunpack.i.h.bf16 %v14682_v56 }
  0xbc   :  { %21563 = vst [vmem:[#allocation33_spill] sm:$0xff] %v14830_v12  ;;  %764 = vrot.lane.b32.xlu0 %v914_v39, %s14162_s22  ;;  %1476 = vmatpush.msra.mxu0 %v14839_v15 }
  0xbd   :  { %21565 = vst [vmem:[#allocation34_spill] sm:$0xff] %v14839_v15  ;;  %1496 = vmatpush.msra.mxu1 %v14848_v11  ;;  %250 = vrot.lane.b32.xlu2 %v914_v39, %s14164_s13 }
  0xbe   :  { %21567 = vst [vmem:[#allocation35_spill] sm:$0xff] %v14848_v11  ;;  %507 = vrot.lane.b32.xlu1 %v914_v39, %s14163_s23  ;;  %v14854_v30 = vpop.permute.xlu0 %13127  ;;  %v14856_v37 = vpop.permute.xlu1 %13132  ;;  %12576 = vmatmul.msk.f32.vlgmr.msra.gmra.mxu2 %vm1300_vm4, %v14511_v35  ;;  %v21568_v39 = vunpack.i.h.bf16 %v14463_v62 }
  0xbf   :  { %v13129_v46 = vunpack.i.l.bf16 %v14854_v30  ;;  %v21007_v4 = vunpack.i.h.bf16 %v14856_v37  ;;  %v13134_v21 = vunpack.i.l.bf16 %v14856_v37  ;;  %12577 = vmatmul.msk.f32.vlgmr.msra.gmra.mxu3 %vm1300_vm4, %v14511_v35  ;;  %v14887_v62 = vpop.permute.xlu2 %13182 }
  0xc1   :  { %v14869_v13 = vsel %vm515_vm2, %v21568_v39, %v13129_v46  ;;  %v14874_v12 = vsel %vm515_vm2, %v13129_v46, %v21570_v44  ;;  %v14877_v5 = vsel %vm772_vm1, %v13120_v22, %v13134_v21  ;;  %v14882_v11 = vsel %vm772_vm1, %v13134_v21, %v21007_v4 }
  0xc2   :  { %21569 = vst [vmem:[#allocation36_spill] sm:$0xff] %v14869_v13  ;;  %1477 = vmatpush.msra.mxu0 %v14869_v13  ;;  %1497 = vmatpush.msra.mxu1 %v14874_v12  ;;  %v14893_v46 = vsel %vm258_vm3, %v21574_v23, %v13139_v38  ;;  %v21576_v39 = vunpack.i.h.bf16 %v14744_v41  ;;  %v13130_v44 = vunpack.i.h.bf16 %v14854_v30  ;;  %v14913_v41 = vsel %vm1029_vm0, %v21578_v57, %v13154_v9 }
  0xc3   :  { %21571 = vst [vmem:[#allocation37_spill] sm:$0xff] %v14874_v12  ;;  %1596 = vmatpush.msrb.mxu2 %v14877_v5  ;;  %1616 = vmatpush.msrb.mxu3 %v14882_v11  ;;  %v21585_v57 = vunpack.i.h.bf16 %v14533_v45  ;;  %v21592_v45 = vunpack.i.h.bf16 %v14746_v1 }
  0xc4   :  { %21572 = vst [vmem:[#allocation38_spill] sm:$0xff] %v14877_v5  ;;  %v14898_v21 = vsel %vm258_vm3, %v13139_v38, %v21576_v39  ;;  %1478 = vmatpush.msra.mxu0 %v14893_v46  ;;  %v14916_v38 = vsel %vm1029_vm0, %v13154_v9, %v13115_v7 }
  0xc5   :  { %21573 = vst [vmem:[#allocation39_spill] sm:$0xff] %v14882_v11  ;;  %1498 = vmatpush.msra.mxu1 %v14898_v21 }
  0xc6   :  { %21575 = vst [vmem:[#allocation40_spill] sm:$0xff] %v14893_v46  ;;  %v14904_v4 = vpop.permute.xlu0 %13142  ;;  %v14906_v5 = vpop.permute.xlu1 %13147  ;;  %1479 = vmatpush.msra.mxu0 %v14283_v10  ;;  %v13140_v10 = vunpack.i.h.bf16 %v14688_v36 }
  0xc7   :  { %21577 = vst [vmem:[#allocation41_spill] sm:$0xff] %v14898_v21  ;;  %1499 = vmatpush.msra.mxu1 %v14326_v18  ;;  %v21012_v23 = vunpack.i.h.bf16 %v14904_v4  ;;  %v13144_v30 = vunpack.i.l.bf16 %v14904_v4  ;;  %v21013_v39 = vunpack.i.h.bf16 %v14906_v5  ;;  %v13149_v21 = vunpack.i.l.bf16 %v14906_v5  ;;  %12574 = vmatmul.msk.f32.vlgmr.msra.gmra.mxu0 %vm1300_vm4, %v14511_v35  ;;  %v14949_v36 = vpop.permute.xlu2 %13197 }
  0xc8   :  { %21579 = vst [vmem:[#allocation42_spill] sm:$0xff] %v14913_v41  ;;  %1555 = vmatpush.msrb.mxu0 %v14913_v41  ;;  %12575 = vmatmul.msk.f32.vlgmr.msra.gmra.mxu1 %vm1300_vm4, %v14511_v35 }
  0xc9   :  { %21580 = vst [vmem:[#allocation43_spill] sm:$0xff] %v14916_v38  ;;  %1575 = vmatpush.msrb.mxu1 %v14916_v38  ;;  %v14930_v18 = vsel %vm515_vm2, %v13130_v44, %v13144_v30  ;;  %v14935_v56 = vsel %vm515_vm2, %v13144_v30, %v21012_v23  ;;  %v14940_v9 = vsel %vm258_vm3, %v13149_v21, %v21013_v39  ;;  %v13169_v39 = vunpack.i.l.bf16 %v14817_v59 }
  0xca   :  { %21581 = vst [vmem:[#allocation44_spill] sm:$0xff] %v14930_v18  ;;  %1597 = vmatpush.msrb.mxu2 %v14930_v18  ;;  %1617 = vmatpush.msrb.mxu3 %v14935_v56  ;;  %v14945_v7 = vsel %vm258_vm3, %v13140_v10, %v13149_v21  ;;  %v21588_v38 = vunpack.i.h.bf16 %v14750_v42 }
  0xcb   :  { %21582 = vst [vmem:[#allocation45_spill] sm:$0xff] %v14935_v56 }
  0xcc   :  { %21583 = vst [vmem:[#allocation46_spill] sm:$0xff] %v14940_v9  ;;  %1598 = vmatpush.msrb.mxu2 %v14945_v7  ;;  %1618 = vmatpush.msrb.mxu3 %v14940_v9 }
  0xcd   :  { %21584 = vst [vmem:[#allocation47_spill] sm:$0xff] %v14945_v7 }
  0xce   :  { %v14952_v30 = vpop.permute.xlu0 %13157  ;;  %v14954_v23 = vpop.permute.xlu1 %13162  ;;  %1599 = vmatpush.msrb.mxu2 %v14331_v19  ;;  %1619 = vmatpush.msrb.mxu3 %v14336_v20 }
  0xcf   :  { %v13159_v21 = vunpack.i.l.bf16 %v14952_v30  ;;  %v13164_v18 = vunpack.i.l.bf16 %v14954_v23  ;;  %12580 = vmatmul.msk.f32.vlgmr.msrb.gmra.mxu2 %vm1300_vm4, %v14511_v35  ;;  %12581 = vmatmul.msk.f32.vlgmr.msrb.gmra.mxu3 %vm1300_vm4, %v14511_v35  ;;  %v21590_v9 = vunpack.i.h.bf16 %v14954_v23  ;;  %v13160_v1 = vunpack.i.h.bf16 %v14952_v30 }
  0xd0   :  { %v21595_v30 = vunpack.i.h.bf16 %v14580_v0  ;;  %v21602_v0 = vunpack.i.h.bf16 %v14887_v62 }
  0xd1   :  { %v14969_v19 = vsel %vm772_vm1, %v21585_v57, %v13159_v21  ;;  %v14972_v20 = vsel %vm772_vm1, %v13159_v21, %v13120_v22  ;;  %v14977_v7 = vsel %vm1029_vm0, %v21588_v38, %v13164_v18  ;;  %v14982_v56 = vsel %vm1029_vm0, %v13164_v18, %v21590_v9  ;;  %v15003_v21 = vpop.permute.xlu2 %13212  ;;  %v916_v38 = vld [vmem:[%s20949_s0 + $0x118] sm:$0xff] }
  0xd2   :  { %21586 = vst [vmem:[#allocation48_spill] sm:$0xff] %v14969_v19  ;;  %1556 = vmatpush.msrb.mxu0 %v14969_v19  ;;  %1576 = vmatpush.msrb.mxu1 %v14972_v20  ;;  %v14990_v22 = vsel %vm515_vm2, %v21592_v45, %v13169_v39  ;;  %v14993_v57 = vsel %vm515_vm2, %v13169_v39, %v13130_v44 }
  0xd3   :  { %21587 = vst [vmem:[#allocation49_spill] sm:$0xff] %v14972_v20  ;;  %1675 = vmatpush.msra.mxu2 %v14977_v7  ;;  %1695 = vmatpush.msra.mxu3 %v14982_v56  ;;  %v13184_v20 = vunpack.i.l.bf16 %v14887_v62 }
  0xd4   :  { %21589 = vst [vmem:[#allocation50_spill] sm:$0xff] %v14977_v7  ;;  %1557 = vmatpush.msrb.mxu0 %v14990_v22  ;;  %1577 = vmatpush.msrb.mxu1 %v14993_v57  ;;  %v915_v7 = vld [vmem:[%s20949_s0 + $0x110] sm:$0xff] }
  0xd5   :  { %21591 = vst [vmem:[#allocation51_spill] sm:$0xff] %v14982_v56 }
  0xd6   :  { %21593 = vst [vmem:[#allocation52_spill] sm:$0xff] %v14990_v22  ;;  %v14999_v18 = vpop.permute.xlu0 %13172  ;;  %v15001_v9 = vpop.permute.xlu1 %13177  ;;  %v14165_v22 = vmov 0  }
  0xd7   :  { %21594 = vst [vmem:[#allocation53_spill] sm:$0xff] %v14993_v57  ;;  %v13174_v44 = vunpack.i.l.bf16 %v14999_v18  ;;  %v13179_v39 = vunpack.i.l.bf16 %v15001_v9  ;;  %v21599_v11 = vunpack.i.h.bf16 %v14999_v18  ;;  %v15036_v57 = vld [vmem:[%s20949_s0 + $0x60] sm:$0xff]  ;;  %13331 = vset.pattern.permute.xlu1 %v14165_v22  ;;  %13757 = vset.pattern.permute.xlu2 %v14165_v22 }
  0xd8   :  { %21601 = vst [vmem:[#allocation58_spill] sm:$0xff] %v15036_v57  ;;  %14108 = vset.pattern.permute.xlu0 %v14165_v22 }
  0xd9   :  { %v15020_v45 = vsel %vm258_vm3, %v21595_v30, %v13179_v39  ;;  %v15023_v56 = vsel %vm258_vm3, %v13179_v39, %v13140_v10  ;;  %v15026_v12 = vsel %vm772_vm1, %v13160_v1, %v13174_v44  ;;  %v15031_v48 = vsel %vm772_vm1, %v13174_v44, %v21599_v11 }
  0xda   :  { %21596 = vst [vmem:[#allocation54_spill] sm:$0xff] %v15020_v45  ;;  %1558 = vmatpush.msrb.mxu0 %v15020_v45  ;;  %1578 = vmatpush.msrb.mxu1 %v15023_v56  ;;  %v15043_v10 = vsel %vm515_vm2, %v13184_v20, %v21602_v0  ;;  %v13311_v39 = vpack.i.bf16 %v916_v38, %v915_v7  ;;  %v21604_v11 = vunpack.i.h.bf16 %v14817_v59  ;;  %v13199_v30 = vunpack.i.l.bf16 %v14949_v36 }
  0xdb   :  { %21597 = vst [vmem:[#allocation55_spill] sm:$0xff] %v15023_v56  ;;  %1676 = vmatpush.msra.mxu2 %v15026_v12  ;;  %1696 = vmatpush.msra.mxu3 %v15031_v48  ;;  %v21608_v0 = vunpack.i.h.bf16 %v14750_v42 }
  0xdc   :  { %21598 = vst [vmem:[#allocation56_spill] sm:$0xff] %v15026_v12  ;;  %v15050_v44 = vsel %vm515_vm2, %v21604_v11, %v13184_v20  ;;  %1559 = vmatpush.msrb.mxu0 %v15036_v57  ;;  %1579 = vmatpush.msrb.mxu1 %v14353_v24  ;;  %v21606_v12 = vunpack.i.h.bf16 %v14633_v43  ;;  %v21614_v43 = vunpack.i.h.bf16 %v14856_v37  ;;  %v21619_v37 = vunpack.i.h.bf16 %v14817_v59 }
  0xdd   :  { %21600 = vst [vmem:[#allocation57_spill] sm:$0xff] %v15031_v48  ;;  %1677 = vmatpush.msra.mxu2 %v15050_v44  ;;  %1697 = vmatpush.msra.mxu3 %v15043_v10 }
  0xde   :  { %21603 = vst [vmem:[#allocation59_spill] sm:$0xff] %v15043_v10  ;;  %v15057_v7 = vpop.permute.xlu0 %13187  ;;  %v15059_v38 = vpop.permute.xlu1 %13192  ;;  %13312 = vrot.lane.b32.xlu0 %v13311_v39, %s14161_s21  ;;  %13317 = vrot.lane.b32.xlu1 %v13311_v39, %s14162_s22  ;;  %v21610_v10 = vunpack.i.h.bf16 %v15001_v9  ;;  %v15101_v42 = vsel %vm772_vm1, %v21614_v43, %v13199_v30 }
  0xdf   :  { %21605 = vst [vmem:[#allocation60_spill] sm:$0xff] %v15050_v44  ;;  %v13189_v24 = vunpack.i.l.bf16 %v15057_v7  ;;  %v13194_v11 = vunpack.i.l.bf16 %v15059_v38  ;;  %12578 = vmatmul.msk.f32.vlgmr.msrb.gmra.mxu0 %vm1300_vm4, %v14511_v35  ;;  %12579 = vmatmul.msk.f32.vlgmr.msrb.gmra.mxu1 %vm1300_vm4, %v14511_v35  ;;  %v15072_v44 = vpop.permute.xlu2 %13227  ;;  %v21612_v57 = vunpack.i.h.bf16 %v15057_v7 }
  0xe0   :  { %13322 = vrot.lane.b32.xlu2 %v13311_v39, %s14163_s23  ;;  %21615 = vst [vmem:[#allocation65_spill] sm:$0xff] %v15101_v42 }
  0xe1   :  { %v15077_v20 = vsel %vm1029_vm0, %v21606_v12, %v13194_v11  ;;  %v15082_v56 = vsel %vm1029_vm0, %v13194_v11, %v21608_v0  ;;  %v15087_v48 = vsel %vm258_vm3, %v21610_v10, %v13189_v24  ;;  %v15092_v45 = vsel %vm258_vm3, %v13189_v24, %v21612_v57  ;;  %v1138_v57 = vld [vmem:[%s20951_s2] sm:$0xff] }
  0xe2   :  { %21607 = vst [vmem:[#allocation61_spill] sm:$0xff] %v15077_v20  ;;  %1635 = vmatpush.msra.mxu0 %v15077_v20  ;;  %1655 = vmatpush.msra.mxu1 %v15082_v56  ;;  %v15104_v12 = vsel %vm772_vm1, %v13199_v30, %v13160_v1  ;;  %v21055_v1 = vunpack.i.h.bf16 %v15059_v38  ;;  %v13214_v11 = vunpack.i.l.bf16 %v15003_v21 }
  0xe3   :  { %21609 = vst [vmem:[#allocation62_spill] sm:$0xff] %v15082_v56  ;;  %1678 = vmatpush.msra.mxu2 %v15087_v48  ;;  %1698 = vmatpush.msra.mxu3 %v15092_v45 }
  0xe4   :  { %21611 = vst [vmem:[#allocation63_spill] sm:$0xff] %v15087_v48  ;;  %1636 = vmatpush.msra.mxu0 %v15101_v42  ;;  %1656 = vmatpush.msra.mxu1 %v15104_v12 }
  0xe5   :  { %21613 = vst [vmem:[#allocation64_spill] sm:$0xff] %v15092_v45  ;;  %1679 = vmatpush.msra.mxu2 %v14358_v25  ;;  %1699 = vmatpush.msra.mxu3 %v14368_v27 }
  0xe6   :  { %21616 = vst [vmem:[#allocation66_spill] sm:$0xff] %v15104_v12  ;;  %v15114_v10 = vpop.permute.xlu0 %13202  ;;  %v15116_v0 = vpop.permute.xlu1 %13207  ;;  %12584 = vmatmul.msk.f32.vlgmr.msra.gmra.mxu2 %vm1300_vm4, %v14511_v35  ;;  %13327 = vrot.lane.b32.xlu0 %v13311_v39, %s14164_s13  ;;  %v21617_v39 = vunpack.i.h.bf16 %v14904_v4  ;;  %v21624_v4 = vunpack.i.h.bf16 %v15003_v21  ;;  %v21630_v12 = vunpack.i.h.bf16 %v15001_v9  ;;  %v21635_v9 = vunpack.i.h.bf16 %v15072_v44 }
  0xe7   :  { %v13204_v24 = vunpack.i.l.bf16 %v15114_v10  ;;  %v13209_v25 = vunpack.i.l.bf16 %v15116_v0  ;;  %12585 = vmatmul.msk.f32.vlgmr.msra.gmra.mxu3 %vm1300_vm4, %v14511_v35  ;;  %1946 = vperm.xlu1 %13331, %v1138_v57   ;;  %v21622_v27 = vunpack.i.h.bf16 %v15114_v10  ;;  %v15156_v22 = vpop.permute.xlu2 %13242 }
  0xe8   :  { %v15154_v59 = vsel %vm772_vm1, %v13214_v11, %v21624_v4 }
  0xe9   :  { %v15132_v43 = vsel %vm515_vm2, %v21617_v39, %v13209_v25  ;;  %v15137_v30 = vsel %vm515_vm2, %v13209_v25, %v21619_v37  ;;  %v15142_v57 = vsel %vm1029_vm0, %v21055_v1, %v13204_v24  ;;  %v15147_v48 = vsel %vm1029_vm0, %v13204_v24, %v21622_v27  ;;  %21625 = vst [vmem:[#allocation71_spill] sm:$0xff] %v15154_v59 }
  0xea   :  { %21618 = vst [vmem:[#allocation67_spill] sm:$0xff] %v15132_v43  ;;  %1637 = vmatpush.msra.mxu0 %v15132_v43  ;;  %1657 = vmatpush.msra.mxu1 %v15137_v30  ;;  %v21626_v37 = vunpack.i.h.bf16 %v14949_v36  ;;  %v13229_v39 = vunpack.i.l.bf16 %v15072_v44  ;;  %v21628_v25 = vunpack.i.h.bf16 %v14906_v5 }
  0xeb   :  { %21620 = vst [vmem:[#allocation68_spill] sm:$0xff] %v15137_v30  ;;  %1755 = vmatpush.msrb.mxu2 %v15142_v57  ;;  %1775 = vmatpush.msrb.mxu3 %v15147_v48 }
  0xec   :  { %21621 = vst [vmem:[#allocation69_spill] sm:$0xff] %v15142_v57  ;;  %v15163_v24 = vsel %vm772_vm1, %v21626_v37, %v13214_v11  ;;  %v13210_v57 = vunpack.i.h.bf16 %v15116_v0  ;;  %v15192_v0 = vld [vmem:[%s20949_s0 + $0x80] sm:$0xff] }
  0xed   :  { %21623 = vst [vmem:[#allocation70_spill] sm:$0xff] %v15147_v48  ;;  %1756 = vmatpush.msrb.mxu2 %v15163_v24  ;;  %1776 = vmatpush.msrb.mxu3 %v15154_v59 }
  0xee   :  { %21627 = vst [vmem:[#allocation72_spill] sm:$0xff] %v15163_v24  ;;  %v15168_v27 = vpop.permute.xlu0 %13217 }
  0xef   :  { %v13219_v4 = vunpack.i.l.bf16 %v15168_v27  ;;  %v15172_v1 = vpop.permute.xlu1 %13222  ;;  %v21069_v30 = vunpack.i.h.bf16 %v15168_v27  ;;  %21632 = vst [vmem:[#allocation75_spill] sm:$0xff] %v15192_v0 }
  0xf0   :  { %v21068_v11 = vunpack.i.h.bf16 %v15172_v1  ;;  %v13224_v37 = vunpack.i.l.bf16 %v15172_v1 }
  0xf1   :  { %v15182_v59 = vsel %vm258_vm3, %v21628_v25, %v13219_v4  ;;  %v15187_v48 = vsel %vm258_vm3, %v13219_v4, %v21630_v12  ;;  %v15207_v12 = vsel %vm258_vm3, %v13229_v39, %v21635_v9  ;;  %v13244_v25 = vunpack.i.l.bf16 %v15156_v22  ;;  %v15224_v9 = vpop.permute.xlu2 %13257 }
  0xf2   :  { %21629 = vst [vmem:[#allocation73_spill] sm:$0xff] %v15182_v59  ;;  %1638 = vmatpush.msra.mxu0 %v15182_v59  ;;  %1658 = vmatpush.msra.mxu1 %v15187_v48  ;;  %v15197_v24 = vsel %vm515_vm2, %v13210_v57, %v13224_v37  ;;  %v15202_v5 = vsel %vm515_vm2, %v13224_v37, %v21068_v11  ;;  %v15222_v37 = vld [vmem:[%s20949_s0 + $0xb8] sm:$0xff]  ;;  %v21639_v11 = vunpack.i.h.bf16 %v15156_v22 }
  0xf3   :  { %21631 = vst [vmem:[#allocation74_spill] sm:$0xff] %v15187_v48  ;;  %1757 = vmatpush.msrb.mxu2 %v15197_v24  ;;  %1777 = vmatpush.msrb.mxu3 %v15202_v5  ;;  %v15215_v4 = vsel %vm258_vm3, %v21069_v30, %v13229_v39 }
  0xf4   :  { %21633 = vst [vmem:[#allocation76_spill] sm:$0xff] %v15197_v24  ;;  %1639 = vmatpush.msra.mxu0 %v15192_v0  ;;  %1659 = vmatpush.msra.mxu1 %v14385_v31  ;;  %v15231_v39 = vsel %vm1029_vm0, %v13244_v25, %v21639_v11  ;;  %v21641_v11 = vunpack.i.h.bf16 %v14954_v23  ;;  %v21646_v23 = vunpack.i.h.bf16 %v14999_v18 }
  0xf5   :  { %21634 = vst [vmem:[#allocation77_spill] sm:$0xff] %v15202_v5  ;;  %1758 = vmatpush.msrb.mxu2 %v15215_v4  ;;  %1778 = vmatpush.msrb.mxu3 %v15207_v12 }
  0xf6   :  { %21636 = vst [vmem:[#allocation78_spill] sm:$0xff] %v15207_v12  ;;  %v13233_v30 = vpop.permute.xlu0 %13232  ;;  %12582 = vmatmul.msk.f32.vlgmr.msra.gmra.mxu0 %vm1300_vm4, %v14511_v35  ;;  %12583 = vmatmul.msk.f32.vlgmr.msra.gmra.mxu1 %vm1300_vm4, %v14511_v35 }
  0xf7   :  { %21637 = vst [vmem:[#allocation79_spill] sm:$0xff] %v15215_v4  ;;  %v13235_v31 = vunpack.i.h.bf16 %v13233_v30  ;;  %v13234_v24 = vunpack.i.l.bf16 %v13233_v30  ;;  %v15237_v48 = vpop.permute.xlu1 %13237  ;;  %1759 = vmatpush.msrb.mxu2 %v14390_v32  ;;  %1779 = vmatpush.msrb.mxu3 %v15222_v37  ;;  %v21643_v30 = vunpack.i.h.bf16 %v15059_v38  ;;  %v21648_v38 = vunpack.i.h.bf16 %v14949_v36 }
  0xf8   :  { %21638 = vst [vmem:[#allocation80_spill] sm:$0xff] %v15222_v37  ;;  %v13239_v4 = vunpack.i.l.bf16 %v15237_v48  ;;  %12588 = vmatmul.msk.f32.vlgmr.msrb.gmra.mxu2 %vm1300_vm4, %v14511_v35  ;;  %12589 = vmatmul.msk.f32.vlgmr.msrb.gmra.mxu3 %vm1300_vm4, %v14511_v35 }
  0xf9   :  { %21640 = vst [vmem:[#allocation81_spill] sm:$0xff] %v15231_v39  ;;  %1855 = vmatpush.msra.mxu3 %v15231_v39  ;;  %v15248_v12 = vsel %vm1029_vm0, %v21641_v11, %v13234_v24  ;;  %v15253_v5 = vsel %vm1029_vm0, %v13234_v24, %v21643_v30  ;;  %v15256_v32 = vsel %vm1029_vm0, %v13235_v31, %v13244_v25  ;;  %v13259_v30 = vunpack.i.l.bf16 %v15224_v9  ;;  %v15278_v39 = vpop.permute.xlu2 %13272 }
  0xfa   :  { %21642 = vst [vmem:[#allocation82_spill] sm:$0xff] %v15248_v12  ;;  %1715 = vmatpush.msrb.mxu0 %v15248_v12  ;;  %1735 = vmatpush.msrb.mxu1 %v15253_v5  ;;  %v15266_v11 = vsel %vm772_vm1, %v21646_v23, %v13239_v4  ;;  %v15271_v24 = vsel %vm772_vm1, %v13239_v4, %v21648_v38  ;;  %v13240_v23 = vunpack.i.h.bf16 %v15237_v48  ;;  %v21650_v38 = vunpack.i.h.bf16 %v14887_v62 }
  0xfb   :  { %21644 = vst [vmem:[#allocation83_spill] sm:$0xff] %v15253_v5  ;;  %1835 = vmatpush.msra.mxu2 %v15256_v32  ;;  %v13274_v5 = vunpack.i.l.bf16 %v15278_v39  ;;  %v21655_v62 = vunpack.i.h.bf16 %v15057_v7 }
  0xfc   :  { %21645 = vst [vmem:[#allocation84_spill] sm:$0xff] %v15256_v32  ;;  %1716 = vmatpush.msrb.mxu0 %v15266_v11  ;;  %1736 = vmatpush.msrb.mxu1 %v15271_v24 }
  0xfd   :  { %21647 = vst [vmem:[#allocation85_spill] sm:$0xff] %v15266_v11 }
  0xfe   :  { %21649 = vst [vmem:[#allocation86_spill] sm:$0xff] %v15271_v24  ;;  %v15275_v25 = vpop.permute.xlu0 %13247 }
  0xff   :  { %v13249_v18 = vunpack.i.l.bf16 %v15275_v25  ;;  %v15281_v32 = vpop.permute.xlu1 %13252 }
 0x100   :  { %v21093_v36 = vunpack.i.h.bf16 %v15281_v32  ;;  %v13254_v4 = vunpack.i.l.bf16 %v15281_v32 }
 0x101   :  { %v15289_v24 = vsel %vm515_vm2, %v21650_v38, %v13249_v18  ;;  %v15292_v37 = vsel %vm515_vm2, %v13249_v18, %v13210_v57  ;;  %v15309_v57 = vsel %vm258_vm3, %v21655_v62, %v13259_v30  ;;  %v21657_v18 = vunpack.i.h.bf16 %v15168_v27 }
 0x102   :  { %21651 = vst [vmem:[#allocation87_spill] sm:$0xff] %v15289_v24  ;;  %1717 = vmatpush.msrb.mxu0 %v15289_v24  ;;  %1737 = vmatpush.msrb.mxu1 %v15292_v37  ;;  %v15298_v48 = vsel %vm772_vm1, %v13240_v23, %v13254_v4  ;;  %v15303_v56 = vsel %vm772_vm1, %v13254_v4, %v21093_v36  ;;  %v21660_v27 = vunpack.i.h.bf16 %v15114_v10  ;;  %v13250_v62 = vunpack.i.h.bf16 %v15275_v25 }
 0x103   :  { %21652 = vst [vmem:[#allocation88_spill] sm:$0xff] %v15292_v37  ;;  %1836 = vmatpush.msra.mxu2 %v15298_v48  ;;  %v15314_v38 = vsel %vm258_vm3, %v13259_v30, %v21657_v18  ;;  %1856 = vmatpush.msra.mxu3 %v15303_v56  ;;  %v15320_v37 = vld [vmem:[%s20949_s0 + $0xa0] sm:$0xff]  ;;  %v15334_v4 = vsel %vm1029_vm0, %v13274_v5, %v13235_v31 }
 0x104   :  { %21653 = vst [vmem:[#allocation89_spill] sm:$0xff] %v15298_v48  ;;  %1718 = vmatpush.msrb.mxu0 %v15309_v57  ;;  %1738 = vmatpush.msrb.mxu1 %v15314_v38  ;;  %v15331_v30 = vsel %vm1029_vm0, %v21660_v27, %v13274_v5 }
 0x105   :  { %21654 = vst [vmem:[#allocation90_spill] sm:$0xff] %v15303_v56 }
 0x106   :  { %21656 = vst [vmem:[#allocation91_spill] sm:$0xff] %v15309_v57  ;;  %v15324_v7 = vpop.permute.xlu0 %13262  ;;  %1719 = vmatpush.msrb.mxu0 %v15320_v37  ;;  %1739 = vmatpush.msrb.mxu1 %v14444_v53  ;;  %v13260_v53 = vunpack.i.h.bf16 %v15224_v9  ;;  %v15360_v9 = vpop.permute.xlu2 %13287 }
 0x107   :  { %21658 = vst [vmem:[#allocation92_spill] sm:$0xff] %v15314_v38  ;;  %v21100_v18 = vunpack.i.h.bf16 %v15324_v7  ;;  %v13264_v36 = vunpack.i.l.bf16 %v15324_v7  ;;  %12586 = vmatmul.msk.f32.vlgmr.msrb.gmra.mxu0 %vm1300_vm4, %v14511_v35  ;;  %12587 = vmatmul.msk.f32.vlgmr.msrb.gmra.mxu1 %vm1300_vm4, %v14511_v35  ;;  %v15373_v38 = vld [vmem:[%s20949_s0 + $0xd0] sm:$0xff] }
 0x108   :  { %21659 = vst [vmem:[#allocation93_spill] sm:$0xff] %v15320_v37  ;;  %1795 = vmatpush.msra.mxu0 %v15331_v30  ;;  %1815 = vmatpush.msra.mxu1 %v15334_v4  ;;  %v15342_v48 = vpop.permute.xlu1 %13267 }
 0x109   :  { %21661 = vst [vmem:[#allocation94_spill] sm:$0xff] %v15331_v30  ;;  %v21101_v10 = vunpack.i.h.bf16 %v15342_v48  ;;  %v13269_v5 = vunpack.i.l.bf16 %v15342_v48  ;;  %v15351_v31 = vsel %vm515_vm2, %v13250_v62, %v13264_v36  ;;  %v15356_v25 = vsel %vm515_vm2, %v13264_v36, %v21100_v18  ;;  %v15378_v36 = vld [vmem:[%s20949_s0 + $0xd8] sm:$0xff] }
 0x10a   :  { %21662 = vst [vmem:[#allocation95_spill] sm:$0xff] %v15334_v4  ;;  %1837 = vmatpush.msra.mxu2 %v15351_v31  ;;  %1857 = vmatpush.msra.mxu3 %v15356_v25  ;;  %v21674_v30 = vunpack.i.h.bf16 %v15172_v1 }
 0x10b   :  { %21663 = vst [vmem:[#allocation96_spill] sm:$0xff] %v15351_v31  ;;  %v15363_v27 = vsel %vm258_vm3, %v13260_v53, %v13269_v5  ;;  %v15368_v4 = vsel %vm258_vm3, %v13269_v5, %v21101_v10  ;;  %v13289_v5 = vunpack.i.l.bf16 %v15360_v9 }
 0x10c   :  { %21664 = vst [vmem:[#allocation97_spill] sm:$0xff] %v15356_v25  ;;  %1838 = vmatpush.msra.mxu2 %v15363_v27  ;;  %1858 = vmatpush.msra.mxu3 %v15368_v4 }
 0x10d   :  { %21665 = vst [vmem:[#allocation98_spill] sm:$0xff] %v15363_v27  ;;  %v13275_v27 = vunpack.i.h.bf16 %v15278_v39 }
 0x10e   :  { %21666 = vst [vmem:[#allocation99_spill] sm:$0xff] %v15368_v4  ;;  %v15382_v18 = vpop.permute.xlu0 %13277  ;;  %1839 = vmatpush.msra.mxu2 %v15373_v38  ;;  %1859 = vmatpush.msra.mxu3 %v15378_v36  ;;  %v15413_v4 = vsel %vm515_vm2, %v21674_v30, %v13289_v5 }
 0x10f   :  { %21667 = vst [vmem:[#allocation100_spill] sm:$0xff] %v15373_v38  ;;  %v13279_v10 = vunpack.i.l.bf16 %v15382_v18  ;;  %12592 = vmatmul.msk.f32.vlgmr.msra.gmra.mxu2 %vm1300_vm4, %v14511_v35  ;;  %12593 = vmatmul.msk.f32.vlgmr.msra.gmra.mxu3 %vm1300_vm4, %v14511_v35 }
 0x110   :  { %21668 = vst [vmem:[#allocation101_spill] sm:$0xff] %v15378_v36  ;;  %v15393_v31 = vpop.permute.xlu1 %13282  ;;  %v21670_v36 = vunpack.i.h.bf16 %v15003_v21 }
 0x111   :  { %21669 = vst [vmem:[#allocation102_spill] sm:$0xff] %v15393_v31  ;;  %v13284_v38 = vunpack.i.l.bf16 %v15393_v31  ;;  %v15403_v56 = vsel %vm772_vm1, %v13279_v10, %v13240_v23  ;;  %v21676_v21 = vunpack.i.h.bf16 %v15393_v31  ;;  %v15423_v23 = vsel %vm515_vm2, %v13289_v5, %v13250_v62 }
 0x112   :  { %v15400_v25 = vsel %vm772_vm1, %v21670_v36, %v13279_v10  ;;  %21672 = vst [vmem:[#allocation104_spill] sm:$0xff] %v15403_v56  ;;  %1816 = vmatpush.msra.mxu1 %v15403_v56  ;;  %v15425_v10 = vpop.permute.xlu2 %13302  ;;  %v13290_v56 = vunpack.i.h.bf16 %v15360_v9 }
 0x113   :  { %21671 = vst [vmem:[#allocation103_spill] sm:$0xff] %v15400_v25  ;;  %1796 = vmatpush.msra.mxu0 %v15400_v25  ;;  %v15408_v39 = vsel %vm1029_vm0, %v13275_v27, %v13284_v38  ;;  %v15418_v36 = vsel %vm1029_vm0, %v13284_v38, %v21676_v21  ;;  %v13280_v38 = vunpack.i.h.bf16 %v15382_v18  ;;  %v13304_v62 = vunpack.i.l.bf16 %v15425_v10 }
 0x114   :  { %21673 = vst [vmem:[#allocation105_spill] sm:$0xff] %v15408_v39  ;;  %1915 = vmatpush.msrb.mxu2 %v15408_v39  ;;  %1817 = vmatpush.msra.mxu1 %v15423_v23  ;;  %v21682_v18 = vunpack.i.h.bf16 %v15425_v10 }
 0x115   :  { %21675 = vst [vmem:[#allocation106_spill] sm:$0xff] %v15413_v4  ;;  %1797 = vmatpush.msra.mxu0 %v15413_v4  ;;  %1935 = vmatpush.msrb.mxu3 %v15418_v36 }
 0x116   :  { %21677 = vst [vmem:[#allocation107_spill] sm:$0xff] %v15418_v36  ;;  %v15430_v30 = vpop.permute.xlu0 %13292  ;;  %v15450_v9 = vsel %vm515_vm2, %v13304_v62, %v21682_v18  ;;  %v21684_v36 = vunpack.i.h.bf16 %v15072_v44  ;;  %v15473_v44 = vsel %vm515_vm2, %v13290_v56, %v13304_v62 }
 0x117   :  { %21678 = vst [vmem:[#allocation108_spill] sm:$0xff] %v15423_v23  ;;  %v21129_v21 = vunpack.i.h.bf16 %v15430_v30  ;;  %v13294_v39 = vunpack.i.l.bf16 %v15430_v30 }
 0x118   :  { %21679 = vst [vmem:[#allocation109_spill] sm:$0xff] %v15425_v10  ;;  %v13298_v5 = vpop.permute.xlu1 %13297 }
 0x119   :  { %v13299_v31 = vunpack.i.l.bf16 %v13298_v5  ;;  %v15438_v23 = vsel %vm772_vm1, %v13280_v38, %v13294_v39  ;;  %v15443_v1 = vsel %vm772_vm1, %v13294_v39, %v21129_v21  ;;  %21683 = vst [vmem:[#allocation112_spill] sm:$0xff] %v15450_v9  ;;  %v15463_v39 = vld [vmem:[%s20949_s0 + $0xc0] sm:$0xff]  ;;  %v15468_v21 = vld [vmem:[%s20949_s0 + $0xc8] sm:$0xff] }
 0x11a   :  { %21680 = vst [vmem:[#allocation110_spill] sm:$0xff] %v15438_v23  ;;  %1916 = vmatpush.msrb.mxu2 %v15438_v23  ;;  %1936 = vmatpush.msrb.mxu3 %v15443_v1  ;;  %v757_v62 = vpop.permute.xlu2 %756  ;;  %v21690_v23 = vunpack.i.h.bf16 %v15156_v22  ;;  %v21694_v22 = vunpack.i.h.bf16 %v15281_v32 }
 0x11b   :  { %21681 = vst [vmem:[#allocation111_spill] sm:$0xff] %v15443_v1  ;;  %v15455_v4 = vsel %vm258_vm3, %v21684_v36, %v13299_v31  ;;  %v15458_v25 = vsel %vm258_vm3, %v13299_v31, %v13260_v53  ;;  %v13300_v31 = vunpack.i.h.bf16 %v13298_v5 }
 0x11c   :  { %21685 = vst [vmem:[#allocation113_spill] sm:$0xff] %v15455_v4  ;;  %1798 = vmatpush.msra.mxu0 %v15455_v4  ;;  %1818 = vmatpush.msra.mxu1 %v15458_v25 }
 0x11d   :  { %21686 = vst [vmem:[#allocation114_spill] sm:$0xff] %v15458_v25  ;;  %1917 = vmatpush.msrb.mxu2 %v15473_v44  ;;  %1937 = vmatpush.msrb.mxu3 %v15450_v9 }
 0x11e   :  { %21687 = vst [vmem:[#allocation115_spill] sm:$0xff] %v15463_v39  ;;  %v15477_v53 = vpop.permute.xlu0 %13307  ;;  %1799 = vmatpush.msra.mxu0 %v15463_v39  ;;  %1819 = vmatpush.msra.mxu1 %v15468_v21 }
 0x11f   :  { %21688 = vst [vmem:[#allocation116_spill] sm:$0xff] %v15468_v21  ;;  %v21139_v36 = vunpack.i.h.bf16 %v15477_v53  ;;  %v13309_v18 = vunpack.i.l.bf16 %v15477_v53  ;;  %12590 = vmatmul.msk.f32.vlgmr.msra.gmra.mxu0 %vm1300_vm4, %v14511_v35  ;;  %12591 = vmatmul.msk.f32.vlgmr.msra.gmra.mxu1 %vm1300_vm4, %v14511_v35  ;;  %v15508_v35 = vld [vmem:[%s20949_s0 + $0xf0] sm:$0xff] }
 0x120   :  { %21689 = vst [vmem:[#allocation117_spill] sm:$0xff] %v15473_v44  ;;  %v1014_v44 = vpop.permute.xlu1 %1013 }
 0x121   :  { %v15490_v25 = vsel %vm1029_vm0, %v21690_v23, %v1014_v44  ;;  %v15493_v21 = vsel %vm1029_vm0, %v1014_v44, %v13275_v27  ;;  %v15496_v5 = vsel %vm258_vm3, %v13300_v31, %v13309_v18  ;;  %v15501_v10 = vsel %vm258_vm3, %v13309_v18, %v21139_v36  ;;  %v21711_v36 = vld [vmem:[#allocation23_spill] sm:$0xff] }
 0x122   :  { %21691 = vst [vmem:[#allocation118_spill] sm:$0xff] %v15490_v25  ;;  %1875 = vmatpush.msrb.mxu0 %v15490_v25  ;;  %1895 = vmatpush.msrb.mxu1 %v15493_v21  ;;  %v15513_v27 = vsel %vm772_vm1, %v21694_v22, %v757_v62  ;;  %v15516_v23 = vsel %vm772_vm1, %v757_v62, %v13280_v38  ;;  %v21697_v38 = vunpack.i.h.bf16 %v15324_v7  ;;  %v14109_v62 = vld [vmem:[%s20950_s1] sm:$0xff] }
 0x123   :  { %21692 = vst [vmem:[#allocation119_spill] sm:$0xff] %v15493_v21  ;;  %1918 = vmatpush.msrb.mxu2 %v15496_v5  ;;  %1938 = vmatpush.msrb.mxu3 %v15501_v10 }
 0x124   :  { %21693 = vst [vmem:[#allocation120_spill] sm:$0xff] %v15496_v5  ;;  %1876 = vmatpush.msrb.mxu0 %v15513_v27  ;;  %1896 = vmatpush.msrb.mxu1 %v15516_v23 }
 0x125   :  { %21695 = vst [vmem:[#allocation121_spill] sm:$0xff] %v15513_v27  ;;  %1919 = vmatpush.msrb.mxu2 %v15508_v35  ;;  %1939 = vmatpush.msrb.mxu3 %v14588_v58 }
 0x126   :  { %21696 = vst [vmem:[#allocation122_spill] sm:$0xff] %v15516_v23  ;;  %v500_v32 = vpop.permute.xlu0 %499  ;;  %12596 = vmatmul.msk.f32.vlgmr.msrb.gmra.mxu2 %vm1300_vm4, %v14109_v62  ;;  %12597 = vmatmul.msk.f32.vlgmr.msrb.gmra.mxu3 %vm1300_vm4, %v14109_v62 }
 0x127   :  { %2261 = vmatpush.msra.mxu2 %v14471_v8  ;;  %2281 = vmatpush.msra.mxu3 %v14646_v61  ;;  %v15529_v44 = vsel %vm515_vm2, %v21697_v38, %v500_v32  ;;  %v15532_v18 = vsel %vm515_vm2, %v500_v32, %v13290_v56  ;;  %v21700_v56 = vunpack.i.h.bf16 %v15342_v48  ;;  %v15556_v32 = vld [vmem:[%s20949_s0 + $0xe0] sm:$0xff]  ;;  %v15569_v48 = vld [vmem:[%s20950_s1 + $0x8] sm:$0xff]  ;;  %v15621_v38 = vld [vmem:[%s20949_s0 + $0x38] sm:$0xff] }
 0x128   :  { %21698 = vst [vmem:[#allocation123_spill] sm:$0xff] %v15529_v44  ;;  %v243_v58 = vpop.permute.xlu1 %242  ;;  %1877 = vmatpush.msrb.mxu0 %v15529_v44  ;;  %1897 = vmatpush.msrb.mxu1 %v15532_v18 }
 0x129   :  { %21699 = vst [vmem:[#allocation124_spill] sm:$0xff] %v15532_v18  ;;  %2262 = vmatpush.msra.mxu2 %v14477_v14  ;;  %2282 = vmatpush.msra.mxu3 %v14670_v55  ;;  %v15546_v7 = vsel %vm258_vm3, %v21700_v56, %v243_v58  ;;  %v15549_v22 = vsel %vm258_vm3, %v243_v58, %v13300_v31  ;;  %v15574_v31 = vld [vmem:[%s20949_s0 + $0x18] sm:$0xff]  ;;  %v21708_v58 = vld [vmem:[#allocation22_spill] sm:$0xff] }
 0x12a   :  { %21701 = vst [vmem:[#allocation125_spill] sm:$0xff] %v15546_v7  ;;  %1878 = vmatpush.msrb.mxu0 %v15546_v7  ;;  %1898 = vmatpush.msrb.mxu1 %v15549_v22  ;;  %v21709_v56 = vld [vmem:[#allocation18_spill] sm:$0xff] }
 0x12b   :  { %21702 = vst [vmem:[#allocation126_spill] sm:$0xff] %v15549_v22  ;;  %2263 = vmatpush.msra.mxu2 %v14486_v16  ;;  %2283 = vmatpush.msra.mxu3 %v14703_v40 }
 0x12c   :  { %21703 = vst [vmem:[#allocation127_spill] sm:$0xff] %v15556_v32  ;;  %1879 = vmatpush.msrb.mxu0 %v15556_v32  ;;  %1899 = vmatpush.msrb.mxu1 %v14723_v33  ;;  %v15580_v33 = vld [vmem:[%s20949_s0 + $0x20] sm:$0xff] }
 0x12d   :  { %2264 = vmatpush.msra.mxu2 %v14504_v34  ;;  %2284 = vmatpush.msra.mxu3 %v14760_v6 }
 0x12e   :  { %2221 = vmatpush.msra.mxu0 %v14420_v49  ;;  %2241 = vmatpush.msra.mxu1 %v14423_v50  ;;  %v14112_v49 = vld [vmem:[%s20949_s0 + $0x8] sm:$0xff] }
 0x12f   :  { %2265 = vmatpush.msra.mxu2 %v15574_v31  ;;  %2285 = vmatpush.msra.mxu3 %v15580_v33 }
 0x130   :  { %12594 = vmatmul.msk.f32.vlgmr.msrb.gmra.mxu0 %vm1300_vm4, %v14109_v62  ;;  %12595 = vmatmul.msk.f32.vlgmr.msrb.gmra.mxu1 %vm1300_vm4, %v14109_v62  ;;  %v15627_v62 = vld [vmem:[%s20949_s0 + $0x40] sm:$0xff] }
 0x131   :  { %12601 = vmatmul.msk.f32.vlgmr.msra.gmra.mxu2 %vm1300_vm4, %v15569_v48  ;;  %12602 = vmatmul.msk.f32.vlgmr.msra.gmra.mxu3 %vm1300_vm4, %v15569_v48 }
 0x132   :  { %2341 = vmatpush.msrb.mxu2 %v14557_v17  ;;  %2361 = vmatpush.msrb.mxu3 %v14822_v3  ;;  %v21731_v17 = vld [vmem:[#allocation41_spill] sm:$0xff] }
 0x133   :  { %2222 = vmatpush.msra.mxu0 %v14547_v63  ;;  %2242 = vmatpush.msra.mxu1 %v14428_v51  ;;  %v15609_v63 = vld [vmem:[%s20949_s0 + $0x10] sm:$0xff] }
 0x134   :  { %2342 = vmatpush.msrb.mxu2 %v14605_v2  ;;  %2362 = vmatpush.msrb.mxu3 %v14839_v15  ;;  %v21715_v2 = vld [vmem:[#allocation25_spill] sm:$0xff] }
 0x135   :  { %2223 = vmatpush.msra.mxu0 %v14567_v47  ;;  %2243 = vmatpush.msra.mxu1 %v14435_v52  ;;  %v21705_v47 = vld [vmem:[#allocation8_spill] sm:$0xff] }
 0x136   :  { %2343 = vmatpush.msrb.mxu2 %v14614_v26  ;;  %2363 = vmatpush.msrb.mxu3 %v14869_v13  ;;  %21707 = vst [vmem:[#allocation8_spill] sm:$0xff] %v15627_v62  ;;  %v21714_v26 = vld [vmem:[#allocation52_spill] sm:$0xff] }
 0x137   :  { %2224 = vmatpush.msra.mxu0 %v14597_v54  ;;  %2244 = vmatpush.msra.mxu1 %v14499_v29  ;;  %v21704_v54 = vld [vmem:[#allocation14_spill] sm:$0xff] }
 0x138   :  { %2344 = vmatpush.msrb.mxu2 %v14661_v28  ;;  %2364 = vmatpush.msrb.mxu3 %v14893_v46  ;;  %21706 = vst [vmem:[#allocation14_spill] sm:$0xff] %v15621_v38  ;;  %v21713_v28 = vld [vmem:[#allocation13_spill] sm:$0xff] }
 0x139   :  { %2225 = vmatpush.msra.mxu0 %v14112_v49  ;;  %2245 = vmatpush.msra.mxu1 %v15609_v63  ;;  %v21710_v49 = vld [vmem:[#allocation10_spill] sm:$0xff] }
 0x13a   :  { %12599 = vmatmul.msk.f32.vlgmr.msra.gmra.mxu0 %vm1300_vm4, %v15569_v48  ;;  %12600 = vmatmul.msk.f32.vlgmr.msra.gmra.mxu1 %vm1300_vm4, %v15569_v48 }
 0x13b   :  { %2301 = vmatpush.msrb.mxu0 %v21704_v54  ;;  %2321 = vmatpush.msrb.mxu1 %v21705_v47 }
 0x13c   :  { %2345 = vmatpush.msrb.mxu2 %v15621_v38  ;;  %2365 = vmatpush.msrb.mxu3 %v15627_v62  ;;  %v21712_v38 = vld [vmem:[#allocation20_spill] sm:$0xff]  ;;  %v21718_v62 = vld [vmem:[#allocation54_spill] sm:$0xff] }
 0x13d   :  { %12605 = vmatmul.msk.f32.vlgmr.msrb.gmra.mxu2 %vm1300_vm4, %v15569_v48  ;;  %12606 = vmatmul.msk.f32.vlgmr.msrb.gmra.mxu3 %vm1300_vm4, %v15569_v48 }
 0x13e   :  { %2421 = vmatpush.msra.mxu2 %v21708_v58  ;;  %2441 = vmatpush.msra.mxu3 %v14913_v41  ;;  %v21716_v58 = vld [vmem:[#allocation15_spill] sm:$0xff]  ;;  %v21717_v41 = vld [vmem:[#allocation28_spill] sm:$0xff] }
 0x13f   :  { %2302 = vmatpush.msrb.mxu0 %v21709_v56  ;;  %2322 = vmatpush.msrb.mxu1 %v21710_v49  ;;  %v21730_v49 = vld [vmem:[#allocation45_spill] sm:$0xff] }
 0x140   :  { %2422 = vmatpush.msra.mxu2 %v21711_v36  ;;  %2442 = vmatpush.msra.mxu3 %v14969_v19  ;;  %v15651_v36 = vld [vmem:[%s20949_s0 + $0x28] sm:$0xff]  ;;  %v21727_v19 = vld [vmem:[#allocation39_spill] sm:$0xff] }
 0x141   :  { %2303 = vmatpush.msrb.mxu0 %v21712_v38  ;;  %2323 = vmatpush.msrb.mxu1 %v21713_v28  ;;  %v21726_v28 = vld [vmem:[#allocation24_spill] sm:$0xff] }
 0x142   :  { %2423 = vmatpush.msra.mxu2 %v14778_v60  ;;  %2443 = vmatpush.msra.mxu3 %v21714_v26  ;;  %v15657_v60 = vld [vmem:[%s20949_s0 + $0x30] sm:$0xff] }
 0x143   :  { %2304 = vmatpush.msrb.mxu0 %v21715_v2  ;;  %2324 = vmatpush.msrb.mxu1 %v21716_v58  ;;  %21719 = vst [vmem:[#allocation25_spill] sm:$0xff] %v15657_v60  ;;  %v15669_v58 = vld [vmem:[%s20949_s0 + $0x58] sm:$0xff]  ;;  %v21723_v26 = vld [vmem:[#allocation58_spill] sm:$0xff] }
 0x144   :  { %2424 = vmatpush.msra.mxu2 %v21717_v41  ;;  %2444 = vmatpush.msra.mxu3 %v21718_v62  ;;  %v21720_v41 = vld [vmem:[#allocation32_spill] sm:$0xff]  ;;  %v21721_v62 = vld [vmem:[#allocation21_spill] sm:$0xff] }
 0x145   :  { %2305 = vmatpush.msrb.mxu0 %v15651_v36  ;;  %2325 = vmatpush.msrb.mxu1 %v15657_v60  ;;  %21722 = vst [vmem:[#allocation32_spill] sm:$0xff] %v15669_v58  ;;  %v21724_v60 = vld [vmem:[#allocation30_spill] sm:$0xff] }
 0x146   :  { %12603 = vmatmul.msk.f32.vlgmr.msrb.gmra.mxu0 %vm1300_vm4, %v15569_v48  ;;  %12604 = vmatmul.msk.f32.vlgmr.msrb.gmra.mxu1 %vm1300_vm4, %v15569_v48 }
 0x147   :  { %2381 = vmatpush.msra.mxu0 %v21720_v41  ;;  %2401 = vmatpush.msra.mxu1 %v21721_v62  ;;  %v21725_v62 = vld [vmem:[#allocation35_spill] sm:$0xff] }
 0x148   :  { %2425 = vmatpush.msra.mxu2 %v15669_v58  ;;  %2445 = vmatpush.msra.mxu3 %v21723_v26  ;;  %v21728_v58 = vld [vmem:[#allocation37_spill] sm:$0xff]  ;;  %v21729_v26 = vld [vmem:[#allocation26_spill] sm:$0xff] }
 0x149   :  { %12609 = vmatmul.msk.f32.vlgmr.msra.gmra.mxu2 %vm1300_vm4, %v15569_v48  ;;  %12610 = vmatmul.msk.f32.vlgmr.msra.gmra.mxu3 %vm1300_vm4, %v15569_v48 }
 0x14a   :  { %2501 = vmatpush.msrb.mxu2 %v21724_v60  ;;  %2521 = vmatpush.msrb.mxu3 %v15077_v20  ;;  %v21732_v60 = vld [vmem:[#allocation29_spill] sm:$0xff]  ;;  %v21733_v20 = vld [vmem:[#allocation46_spill] sm:$0xff] }
 0x14b   :  { %2382 = vmatpush.msra.mxu0 %v21725_v62  ;;  %2402 = vmatpush.msra.mxu1 %v21726_v28  ;;  %v21746_v28 = vld [vmem:[#allocation55_spill] sm:$0xff] }
 0x14c   :  { %2502 = vmatpush.msrb.mxu2 %v21727_v19  ;;  %2522 = vmatpush.msrb.mxu3 %v15101_v42  ;;  %v15694_v19 = vld [vmem:[%s20949_s0 + $0x48] sm:$0xff]  ;;  %v21745_v42 = vld [vmem:[#allocation59_spill] sm:$0xff] }
 0x14d   :  { %2383 = vmatpush.msra.mxu0 %v21728_v58  ;;  %2403 = vmatpush.msra.mxu1 %v21729_v26  ;;  %21734 = vst [vmem:[#allocation58_spill] sm:$0xff] %v15694_v19  ;;  %v21742_v26 = vld [vmem:[#allocation57_spill] sm:$0xff] }
 0x14e   :  { %2503 = vmatpush.msrb.mxu2 %v21730_v49  ;;  %2523 = vmatpush.msrb.mxu3 %v15132_v43  ;;  %v15700_v49 = vld [vmem:[%s20949_s0 + $0x50] sm:$0xff] }
 0x14f   :  { %2384 = vmatpush.msra.mxu0 %v21731_v17  ;;  %2404 = vmatpush.msra.mxu1 %v21732_v60  ;;  %21735 = vst [vmem:[#allocation128_spill] sm:$0xff] %v15700_v49  ;;  %v15712_v60 = vld [vmem:[%s20949_s0 + $0x78] sm:$0xff]  ;;  %v21741_v43 = vld [vmem:[#allocation38_spill] sm:$0xff] }
 0x150   :  { %2504 = vmatpush.msrb.mxu2 %v21733_v20  ;;  %2524 = vmatpush.msrb.mxu3 %v15182_v59  ;;  %v21736_v20 = vld [vmem:[#allocation43_spill] sm:$0xff]  ;;  %v21737_v59 = vld [vmem:[#allocation33_spill] sm:$0xff]  ;;  %21738 = vst [vmem:[#allocation129_spill] sm:$0xff] %v15712_v60 }
 0x151   :  { %2385 = vmatpush.msra.mxu0 %v15694_v19  ;;  %2405 = vmatpush.msra.mxu1 %v15700_v49  ;;  %v21739_v49 = vld [vmem:[#allocation51_spill] sm:$0xff] }
 0x152   :  { %12607 = vmatmul.msk.f32.vlgmr.msra.gmra.mxu0 %vm1300_vm4, %v15569_v48  ;;  %12608 = vmatmul.msk.f32.vlgmr.msra.gmra.mxu1 %vm1300_vm4, %v15569_v48 }
 0x153   :  { %2461 = vmatpush.msrb.mxu0 %v21736_v20  ;;  %2481 = vmatpush.msrb.mxu1 %v21737_v59  ;;  %v21740_v59 = vld [vmem:[#allocation49_spill] sm:$0xff] }
 0x154   :  { %2505 = vmatpush.msrb.mxu2 %v15712_v60  ;;  %2525 = vmatpush.msrb.mxu3 %v15192_v0  ;;  %v21743_v60 = vld [vmem:[#allocation53_spill] sm:$0xff]  ;;  %v21744_v0 = vld [vmem:[#allocation44_spill] sm:$0xff] }
 0x155   :  { %12613 = vmatmul.msk.f32.vlgmr.msrb.gmra.mxu2 %vm1300_vm4, %v15569_v48  ;;  %12614 = vmatmul.msk.f32.vlgmr.msrb.gmra.mxu3 %vm1300_vm4, %v15569_v48 }
 0x156   :  { %2581 = vmatpush.msra.mxu2 %v21739_v49  ;;  %2601 = vmatpush.msra.mxu3 %v15248_v12  ;;  %v21747_v49 = vld [vmem:[#allocation47_spill] sm:$0xff]  ;;  %v21761_v12 = vld [vmem:[#allocation77_spill] sm:$0xff] }
 0x157   :  { %2462 = vmatpush.msrb.mxu0 %v21740_v59  ;;  %2482 = vmatpush.msrb.mxu1 %v21741_v43  ;;  %v21758_v43 = vld [vmem:[#allocation103_spill] sm:$0xff] }
 0x158   :  { %2582 = vmatpush.msra.mxu2 %v21742_v26  ;;  %2602 = vmatpush.msra.mxu3 %v15266_v11  ;;  %v15737_v26 = vld [vmem:[%s20949_s0 + $0x68] sm:$0xff]  ;;  %v21757_v11 = vld [vmem:[#allocation71_spill] sm:$0xff] }
 0x159   :  { %2463 = vmatpush.msrb.mxu0 %v21743_v60  ;;  %2483 = vmatpush.msrb.mxu1 %v21744_v0  ;;  %21748 = vst [vmem:[#allocation130_spill] sm:$0xff] %v15737_v26  ;;  %v21756_v0 = vld [vmem:[#allocation56_spill] sm:$0xff] }
 0x15a   :  { %2583 = vmatpush.msra.mxu2 %v21745_v42  ;;  %2603 = vmatpush.msra.mxu3 %v15289_v24  ;;  %v15743_v42 = vld [vmem:[%s20949_s0 + $0x70] sm:$0xff] }
 0x15b   :  { %2464 = vmatpush.msrb.mxu0 %v21746_v28  ;;  %2484 = vmatpush.msrb.mxu1 %v21747_v49  ;;  %21749 = vst [vmem:[#allocation131_spill] sm:$0xff] %v15743_v42  ;;  %v15755_v49 = vld [vmem:[%s20949_s0 + $0x98] sm:$0xff]  ;;  %v21754_v24 = vld [vmem:[#allocation94_spill] sm:$0xff] }
 0x15c   :  { %2584 = vmatpush.msra.mxu2 %v15092_v45  ;;  %2604 = vmatpush.msra.mxu3 %v15309_v57  ;;  %v21750_v45 = vld [vmem:[#allocation62_spill] sm:$0xff]  ;;  %21752 = vst [vmem:[#allocation132_spill] sm:$0xff] %v15755_v49 }
 0x15d   :  { %2465 = vmatpush.msrb.mxu0 %v15737_v26  ;;  %2485 = vmatpush.msrb.mxu1 %v15743_v42  ;;  %v21751_v57 = vld [vmem:[#allocation50_spill] sm:$0xff] }
 0x15e   :  { %12611 = vmatmul.msk.f32.vlgmr.msrb.gmra.mxu0 %vm1300_vm4, %v15569_v48  ;;  %12612 = vmatmul.msk.f32.vlgmr.msrb.gmra.mxu1 %vm1300_vm4, %v15569_v48  ;;  %v21753_v42 = vld [vmem:[#allocation70_spill] sm:$0xff] }
 0x15f   :  { %2541 = vmatpush.msra.mxu0 %v21750_v45  ;;  %2561 = vmatpush.msra.mxu1 %v21751_v57  ;;  %v21755_v57 = vld [vmem:[#allocation66_spill] sm:$0xff] }
 0x160   :  { %2585 = vmatpush.msra.mxu2 %v15755_v49  ;;  %2605 = vmatpush.msra.mxu3 %v15320_v37  ;;  %v21759_v49 = vld [vmem:[#allocation68_spill] sm:$0xff]  ;;  %v21762_v45 = vld [vmem:[#allocation106_spill] sm:$0xff] }
 0x161   :  { %12617 = vmatmul.msk.f32.vlgmr.msra.gmra.mxu2 %vm1300_vm4, %v15569_v48  ;;  %12618 = vmatmul.msk.f32.vlgmr.msra.gmra.mxu3 %vm1300_vm4, %v15569_v48  ;;  %v21760_v37 = vld [vmem:[#allocation60_spill] sm:$0xff]  ;;  %v21763_v26 = vld [vmem:[#allocation74_spill] sm:$0xff] }
 0x162   :  { %2661 = vmatpush.msrb.mxu2 %v21753_v42  ;;  %2681 = vmatpush.msrb.mxu3 %v21754_v24  ;;  %v21764_v42 = vld [vmem:[#allocation63_spill] sm:$0xff]  ;;  %v21765_v24 = vld [vmem:[#allocation78_spill] sm:$0xff] }
 0x163   :  { %2542 = vmatpush.msra.mxu0 %v21755_v57  ;;  %2562 = vmatpush.msra.mxu1 %v21756_v0  ;;  %v21777_v0 = vld [vmem:[#allocation97_spill] sm:$0xff] }
 0x164   :  { %2662 = vmatpush.msrb.mxu2 %v21757_v11  ;;  %2682 = vmatpush.msrb.mxu3 %v21758_v43  ;;  %v15780_v11 = vld [vmem:[%s20949_s0 + $0x88] sm:$0xff]  ;;  %v21776_v43 = vld [vmem:[#allocation76_spill] sm:$0xff] }
 0x165   :  { %2543 = vmatpush.msra.mxu0 %v21759_v49  ;;  %2563 = vmatpush.msra.mxu1 %v21760_v37  ;;  %21766 = vst [vmem:[#allocation133_spill] sm:$0xff] %v15780_v11  ;;  %v21772_v37 = vld [vmem:[#allocation86_spill] sm:$0xff] }
 0x166   :  { %2663 = vmatpush.msrb.mxu2 %v21761_v12  ;;  %2683 = vmatpush.msrb.mxu3 %v21762_v45  ;;  %v15786_v12 = vld [vmem:[%s20949_s0 + $0x90] sm:$0xff]  ;;  %v21771_v45 = vld [vmem:[#allocation81_spill] sm:$0xff] }
 0x167   :  { %2544 = vmatpush.msra.mxu0 %v21763_v26  ;;  %2564 = vmatpush.msra.mxu1 %v21764_v42  ;;  %21767 = vst [vmem:[#allocation134_spill] sm:$0xff] %v15786_v12  ;;  %v21770_v42 = vld [vmem:[#allocation80_spill] sm:$0xff] }
 0x168   :  { %2664 = vmatpush.msrb.mxu2 %v21765_v24  ;;  %2684 = vmatpush.msrb.mxu3 %v15455_v4  ;;  %v21768_v24 = vld [vmem:[#allocation83_spill] sm:$0xff]  ;;  %v21769_v4 = vld [vmem:[#allocation69_spill] sm:$0xff] }
 0x169   :  { %2545 = vmatpush.msra.mxu0 %v15780_v11  ;;  %2565 = vmatpush.msra.mxu1 %v15786_v12  ;;  %v660_v12 = vld [vmem:[%s20949_s0 + $0x120] sm:$0xff] }
 0x16a   :  { %12615 = vmatmul.msk.f32.vlgmr.msra.gmra.mxu0 %vm1300_vm4, %v15569_v48  ;;  %12616 = vmatmul.msk.f32.vlgmr.msra.gmra.mxu1 %vm1300_vm4, %v15569_v48 }
 0x16b   :  { %2621 = vmatpush.msrb.mxu0 %v21768_v24  ;;  %2641 = vmatpush.msrb.mxu1 %v21769_v4  ;;  %v21773_v4 = vld [vmem:[#allocation72_spill] sm:$0xff] }
 0x16c   :  { %2665 = vmatpush.msrb.mxu2 %v21770_v42  ;;  %2685 = vmatpush.msrb.mxu3 %v15463_v39  ;;  %v21774_v42 = vld [vmem:[#allocation90_spill] sm:$0xff]  ;;  %v21775_v39 = vld [vmem:[#allocation88_spill] sm:$0xff] }
 0x16d   :  { %12621 = vmatmul.msk.f32.vlgmr.msrb.gmra.mxu2 %vm1300_vm4, %v15569_v48  ;;  %12622 = vmatmul.msk.f32.vlgmr.msrb.gmra.mxu3 %vm1300_vm4, %v15569_v48 }
 0x16e   :  { %2741 = vmatpush.msra.mxu2 %v21771_v45  ;;  %2761 = vmatpush.msra.mxu3 %v15490_v25  ;;  %v21778_v45 = vld [vmem:[#allocation92_spill] sm:$0xff]  ;;  %v21779_v25 = vld [vmem:[#allocation79_spill] sm:$0xff] }
 0x16f   :  { %2622 = vmatpush.msrb.mxu0 %v21772_v37  ;;  %2642 = vmatpush.msrb.mxu1 %v21773_v4  ;;  %v21780_v37 = vld [vmem:[#allocation99_spill] sm:$0xff]  ;;  %v15818_v4 = vpop.permute.xlu2 %1021 }
 0x170   :  { %770 = vrot.lane.b32.xlu2 %v660_v12, %s14162_s22  ;;  %2742 = vmatpush.msra.mxu2 %v21774_v42  ;;  %21781 = vst [vmem:[#allocation80_spill] sm:$0xff] %v15818_v4  ;;  %v15824_v12 = vld [vmem:[%s20949_s0 + $0xa8] sm:$0xff]  ;;  %v21785_v42 = vld [vmem:[#allocation84_spill] sm:$0xff] }
 0x171   :  { %2762 = vmatpush.msra.mxu3 %v15513_v27  ;;  %2623 = vmatpush.msrb.mxu0 %v21775_v39  ;;  %21782 = vst [vmem:[#allocation135_spill] sm:$0xff] %v15824_v12 }
 0x172   :  { %2643 = vmatpush.msrb.mxu1 %v21776_v43  ;;  %2743 = vmatpush.msra.mxu2 %v21777_v0  ;;  %v15830_v0 = vld [vmem:[%s20949_s0 + $0xb0] sm:$0xff] }
 0x173   :  { %2763 = vmatpush.msra.mxu3 %v15529_v44  ;;  %2624 = vmatpush.msrb.mxu0 %v21778_v45  ;;  %21783 = vst [vmem:[#allocation136_spill] sm:$0xff] %v15830_v0  ;;  %v21789_v44 = vld [vmem:[#allocation102_spill] sm:$0xff] }
 0x174   :  { %2644 = vmatpush.msrb.mxu1 %v21779_v25  ;;  %2744 = vmatpush.msra.mxu2 %v21780_v37  ;;  %v21784_v37 = vld [vmem:[#allocation95_spill] sm:$0xff]  ;;  %v15840_v25 = vpop.permute.xlu0 %764  ;;  %v21790_v43 = vunpack.i.h.bf16 %v21789_v44 }
 0x175   :  { %2764 = vmatpush.msra.mxu3 %v15546_v7  ;;  %2625 = vmatpush.msrb.mxu0 %v15824_v12  ;;  %v21786_v7 = vld [vmem:[#allocation101_spill] sm:$0xff] }
 0x176   :  { %2645 = vmatpush.msrb.mxu1 %v15830_v0  ;;  %12619 = vmatmul.msk.f32.vlgmr.msrb.gmra.mxu0 %vm1300_vm4, %v15569_v48  ;;  %21787 = vst [vmem:[#allocation101_spill] sm:$0xff] %v15840_v25  ;;  %v21788_v0 = vld [vmem:[#allocation107_spill] sm:$0xff]  ;;  %v15852_v27 = vsel %vm1029_vm0, %v21790_v43, %v15818_v4  ;;  %v21796_v43 = vld [vmem:[#allocation108_spill] sm:$0xff] }
 0x177   :  { %12620 = vmatmul.msk.f32.vlgmr.msrb.gmra.mxu1 %vm1300_vm4, %v15569_v48  ;;  %2701 = vmatpush.msra.mxu0 %v21784_v37  ;;  %21791 = vst [vmem:[#allocation102_spill] sm:$0xff] %v15852_v27  ;;  %v21794_v37 = vunpack.i.h.bf16 %v15430_v30  ;;  %v15866_v44 = vpop.permute.xlu2 %250  ;;  %v21797_v4 = vld [vmem:[#allocation96_spill] sm:$0xff]  ;;  %v21802_v30 = vld [vmem:[#allocation98_spill] sm:$0xff] }
 0x178   :  { %2721 = vmatpush.msra.mxu1 %v21785_v42  ;;  %2745 = vmatpush.msra.mxu2 %v21786_v7  ;;  %v15854_v42 = vpop.permute.xlu1 %507  ;;  %v21792_v7 = vld [vmem:[#allocation104_spill] sm:$0xff] }
 0x179   :  { %2765 = vmatpush.msra.mxu3 %v15556_v32  ;;  %12625 = vmatmul.msk.f32.vlgmr.msra.gmra.mxu2 %vm1300_vm4, %v15569_v48  ;;  %v21793_v32 = vld [vmem:[#allocation89_spill] sm:$0xff] }
 0x17a   :  { %12626 = vmatmul.msk.f32.vlgmr.msra.gmra.mxu3 %vm1300_vm4, %v15569_v48  ;;  %2821 = vmatpush.msrb.mxu2 %v21788_v0  ;;  %v15864_v0 = vsel %vm772_vm1, %v21794_v37, %v15840_v25  ;;  %v21801_v37 = vld [vmem:[#allocation114_spill] sm:$0xff]  ;;  %v21803_v25 = vunpack.i.h.bf16 %v15477_v53  ;;  %v15905_v53 = vld [vmem:[%s20949_s0 + $0xf8] sm:$0xff] }
 0x17b   :  { %2841 = vmatpush.msrb.mxu3 %v15852_v27  ;;  %2702 = vmatpush.msra.mxu0 %v21792_v7  ;;  %21795 = vst [vmem:[#allocation137_spill] sm:$0xff] %v15864_v0 }
 0x17c   :  { %2722 = vmatpush.msra.mxu1 %v21793_v32  ;;  %2822 = vmatpush.msrb.mxu2 %v15443_v1  ;;  %v21798_v32 = vld [vmem:[#allocation109_spill] sm:$0xff] }
 0x17d   :  { %2842 = vmatpush.msrb.mxu3 %v15864_v0  ;;  %2703 = vmatpush.msra.mxu0 %v21796_v43  ;;  %v21799_v27 = vunpack.i.h.bf16 %v21798_v32  ;;  %v21805_v32 = vld [vmem:[#allocation116_spill] sm:$0xff] }
 0x17e   :  { %2723 = vmatpush.msra.mxu1 %v21797_v4  ;;  %2823 = vmatpush.msrb.mxu2 %v15450_v9  ;;  %v15886_v4 = vsel %vm258_vm3, %v21803_v25, %v15866_v44  ;;  %v15896_v9 = vld [vmem:[%s20949_s0 + $0x100] sm:$0xff]  ;;  %v21808_v25 = vld [vmem:[#allocation105_spill] sm:$0xff] }
 0x17f   :  { %v15876_v1 = vsel %vm515_vm2, %v21799_v27, %v15854_v42  ;;  %2704 = vmatpush.msra.mxu0 %v21801_v37  ;;  %21804 = vst [vmem:[#allocation138_spill] sm:$0xff] %v15886_v4  ;;  %v21806_v27 = vld [vmem:[#allocation100_spill] sm:$0xff] }
 0x180   :  { %21800 = vst [vmem:[#allocation109_spill] sm:$0xff] %v15876_v1  ;;  %2843 = vmatpush.msrb.mxu3 %v15876_v1  ;;  %2724 = vmatpush.msra.mxu1 %v21802_v30 }
 0x181   :  { %2824 = vmatpush.msrb.mxu2 %v15501_v10  ;;  %2705 = vmatpush.msra.mxu0 %v21805_v32  ;;  %21807 = vst [vmem:[#allocation116_spill] sm:$0xff] %v15896_v9 }
 0x182   :  { %2844 = vmatpush.msrb.mxu3 %v15886_v4  ;;  %2725 = vmatpush.msra.mxu1 %v21806_v27  ;;  %21809 = vst [vmem:[#allocation100_spill] sm:$0xff] %v15905_v53  ;;  %v21810_v27 = vld [vmem:[#allocation110_spill] sm:$0xff] }
 0x183   :  { %12623 = vmatmul.msk.f32.vlgmr.msra.gmra.mxu0 %vm1300_vm4, %v15569_v48  ;;  %12624 = vmatmul.msk.f32.vlgmr.msra.gmra.mxu1 %vm1300_vm4, %v15569_v48 }
 0x184   :  { %2781 = vmatpush.msrb.mxu0 %v15493_v21  ;;  %2801 = vmatpush.msrb.mxu1 %v21808_v25 }
 0x185   :  { %2825 = vmatpush.msrb.mxu2 %v15905_v53  ;;  %2845 = vmatpush.msrb.mxu3 %v15896_v9  ;;  %v21811_v53 = vld [vmem:[#allocation117_spill] sm:$0xff] }
 0x186   :  { %12629 = vmatmul.msk.f32.vlgmr.msrb.gmra.mxu2 %vm1300_vm4, %v15569_v48  ;;  %12630 = vmatmul.msk.f32.vlgmr.msrb.gmra.mxu3 %vm1300_vm4, %v15569_v48 }
 0x187   :  { %3162 = vmatpush.msra.mxu2 %v14646_v61  ;;  %3182 = vmatpush.msra.mxu3 %v21704_v54 }
 0x188   :  { %2782 = vmatpush.msrb.mxu0 %v15516_v23  ;;  %2802 = vmatpush.msrb.mxu1 %v21810_v27 }
 0x189   :  { %3163 = vmatpush.msra.mxu2 %v14670_v55  ;;  %3183 = vmatpush.msra.mxu3 %v21709_v56  ;;  %v15930_v55 = vld [vmem:[%s20949_s0 + $0xe8] sm:$0xff] }
 0x18a   :  { %2783 = vmatpush.msrb.mxu0 %v15532_v18  ;;  %2803 = vmatpush.msrb.mxu1 %v21811_v53  ;;  %21812 = vst [vmem:[#allocation139_spill] sm:$0xff] %v15930_v55 }
 0x18b   :  { %3164 = vmatpush.msra.mxu2 %v14703_v40  ;;  %3184 = vmatpush.msra.mxu3 %v21712_v38  ;;  %v15939_v40 = vld [vmem:[%s20950_s1 + $0x10] sm:$0xff] }
 0x18c   :  { %2784 = vmatpush.msrb.mxu0 %v15549_v22  ;;  %2804 = vmatpush.msrb.mxu1 %v15496_v5 }
 0x18d   :  { %3165 = vmatpush.msra.mxu2 %v14760_v6  ;;  %3185 = vmatpush.msra.mxu3 %v21715_v2 }
 0x18e   :  { %2785 = vmatpush.msrb.mxu0 %v15930_v55  ;;  %2805 = vmatpush.msrb.mxu1 %v15508_v35 }
 0x18f   :  { %12627 = vmatmul.msk.f32.vlgmr.msrb.gmra.mxu0 %vm1300_vm4, %v15569_v48  ;;  %12628 = vmatmul.msk.f32.vlgmr.msrb.gmra.mxu1 %vm1300_vm4, %v15569_v48  ;;  %v15954_v48 = vpop.f32.mrf.mxu2 }
 0x190   :  { %3122 = vmatpush.msra.mxu0 %v14423_v50  ;;  %3142 = vmatpush.msra.mxu1 %v14471_v8  ;;  %21813 = vst [vmem:[#allocation140_spill] sm:$0xff] %v15954_v48  ;;  %v15958_v50 = vpop.f32.mrf.mxu3  ;;  %v21823_v48 = vld [vmem:[#allocation11_spill] sm:$0xff] }
 0x191   :  { %3166 = vmatpush.msra.mxu2 %v15580_v33  ;;  %3186 = vmatpush.msra.mxu3 %v15651_v36  ;;  %21814 = vst [vmem:[#allocation141_spill] sm:$0xff] %v15958_v50  ;;  %v21822_v50 = vld [vmem:[#allocation10_spill] sm:$0xff] }
 0x192   :  { %12634 = vmatmul.msk.f32.vlgmr.msra.gmra.mxu2 %vm1300_vm4, %v15939_v40  ;;  %12635 = vmatmul.msk.f32.vlgmr.msra.gmra.mxu3 %vm1300_vm4, %v15939_v40 }
 0x193   :  { %3242 = vmatpush.msrb.mxu2 %v14822_v3  ;;  %3262 = vmatpush.msrb.mxu3 %v21720_v41  ;;  %v15964_v3 = vpop.f32.mrf.mxu0 }
 0x194   :  { %3123 = vmatpush.msra.mxu0 %v14428_v51  ;;  %3143 = vmatpush.msra.mxu1 %v14477_v14  ;;  %21815 = vst [vmem:[#allocation142_spill] sm:$0xff] %v15964_v3  ;;  %v15968_v51 = vpop.f32.mrf.mxu1 }
 0x195   :  { %3243 = vmatpush.msrb.mxu2 %v14839_v15  ;;  %3263 = vmatpush.msrb.mxu3 %v21725_v62  ;;  %21816 = vst [vmem:[#allocation143_spill] sm:$0xff] %v15968_v51  ;;  %v21820_v51 = vld [vmem:[#allocation42_spill] sm:$0xff]  ;;  %v21828_v15 = vld [vmem:[#allocation12_spill] sm:$0xff] }
 0x196   :  { %3124 = vmatpush.msra.mxu0 %v14435_v52  ;;  %3144 = vmatpush.msra.mxu1 %v14486_v16  ;;  %v21817_v52 = vld [vmem:[#allocation9_spill] sm:$0xff] }
 0x197   :  { %3244 = vmatpush.msrb.mxu2 %v14869_v13  ;;  %3264 = vmatpush.msrb.mxu3 %v21728_v58 }
 0x198   :  { %3125 = vmatpush.msra.mxu0 %v14499_v29  ;;  %3145 = vmatpush.msra.mxu1 %v14504_v34  ;;  %v21818_v29 = vld [vmem:[#allocation8_spill] sm:$0xff]  ;;  %v15990_v3 = vpop.f32.mrf.mxu3 }
 0x199   :  { %3245 = vmatpush.msrb.mxu2 %v14893_v46  ;;  %3265 = vmatpush.msrb.mxu3 %v21731_v17  ;;  %21821 = vst [vmem:[#allocation145_spill] sm:$0xff] %v15990_v3  ;;  %v21830_v3 = vld [vmem:[#allocation15_spill] sm:$0xff] }
 0x19a   :  { %3126 = vmatpush.msra.mxu0 %v15609_v63  ;;  %3146 = vmatpush.msra.mxu1 %v15574_v31  ;;  %v15985_v63 = vpop.f32.mrf.mxu2 }
 0x19b   :  { %12632 = vmatmul.msk.f32.vlgmr.msra.gmra.mxu0 %vm1300_vm4, %v15939_v40  ;;  %12633 = vmatmul.msk.f32.vlgmr.msra.gmra.mxu1 %vm1300_vm4, %v15939_v40  ;;  %21819 = vst [vmem:[#allocation144_spill] sm:$0xff] %v15985_v63  ;;  %v15996_v46 = vpop.f32.mrf.mxu0  ;;  %v21826_v63 = vld [vmem:[#allocation13_spill] sm:$0xff] }
 0x19c   :  { %3202 = vmatpush.msrb.mxu0 %v21705_v47  ;;  %3222 = vmatpush.msrb.mxu1 %v21817_v52  ;;  %21825 = vst [vmem:[#allocation10_spill] sm:$0xff] %v15996_v46  ;;  %v16000_v13 = vpop.f32.mrf.mxu1  ;;  %v21833_v46 = vld [vmem:[#allocation25_spill] sm:$0xff]  ;;  %v21850_v52 = vld [vmem:[#allocation67_spill] sm:$0xff] }
 0x19d   :  { %3246 = vmatpush.msrb.mxu2 %v21818_v29  ;;  %3266 = vmatpush.msrb.mxu3 %v15694_v19  ;;  %v21824_v29 = vld [vmem:[#allocation48_spill] sm:$0xff]  ;;  %21827 = vst [vmem:[#allocation13_spill] sm:$0xff] %v16000_v13  ;;  %v21835_v13 = vld [vmem:[#allocation21_spill] sm:$0xff]  ;;  %v21849_v19 = vld [vmem:[#allocation27_spill] sm:$0xff] }
 0x19e   :  { %12638 = vmatmul.msk.f32.vlgmr.msrb.gmra.mxu2 %vm1300_vm4, %v15939_v40  ;;  %12639 = vmatmul.msk.f32.vlgmr.msrb.gmra.mxu3 %vm1300_vm4, %v15939_v40 }
 0x19f   :  { %3322 = vmatpush.msra.mxu2 %v21820_v51  ;;  %3342 = vmatpush.msra.mxu3 %v21736_v20  ;;  %v21829_v51 = vld [vmem:[#allocation52_spill] sm:$0xff] }
 0x1a0   :  { %3203 = vmatpush.msrb.mxu0 %v21822_v50  ;;  %3223 = vmatpush.msrb.mxu1 %v21823_v48  ;;  %v21831_v20 = vld [vmem:[#allocation16_spill] sm:$0xff]  ;;  %v21832_v48 = vld [vmem:[#allocation54_spill] sm:$0xff] }
 0x1a1   :  { %3323 = vmatpush.msra.mxu2 %v21824_v29  ;;  %3343 = vmatpush.msra.mxu3 %v21740_v59  ;;  %v21834_v29 = vld [vmem:[#allocation14_spill] sm:$0xff] }
 0x1a2   :  { %3204 = vmatpush.msrb.mxu0 %v21826_v63  ;;  %3224 = vmatpush.msrb.mxu1 %v21828_v15  ;;  %v21844_v15 = vld [vmem:[#allocation24_spill] sm:$0xff] }
 0x1a3   :  { %3324 = vmatpush.msra.mxu2 %v21829_v51  ;;  %3344 = vmatpush.msra.mxu3 %v21743_v60  ;;  %v16016_v51 = vpop.f32.mrf.mxu2  ;;  %v21837_v60 = vld [vmem:[#allocation22_spill] sm:$0xff] }
 0x1a4   :  { %3205 = vmatpush.msrb.mxu0 %v21830_v3  ;;  %3225 = vmatpush.msrb.mxu1 %v21831_v20  ;;  %21836 = vst [vmem:[#allocation15_spill] sm:$0xff] %v16016_v51  ;;  %v21841_v51 = vld [vmem:[#allocation61_spill] sm:$0xff]  ;;  %v21843_v20 = vld [vmem:[#allocation62_spill] sm:$0xff]  ;;  %v16037_v59 = vpop.f32.mrf.mxu1 }
 0x1a5   :  { %3325 = vmatpush.msra.mxu2 %v21832_v48  ;;  %3345 = vmatpush.msra.mxu3 %v21746_v28  ;;  %v16022_v48 = vld [vmem:[%s20949_s0 + $0x60] sm:$0xff]  ;;  %v21840_v28 = vld [vmem:[#allocation130_spill] sm:$0xff]  ;;  %21845 = vst [vmem:[#allocation24_spill] sm:$0xff] %v16037_v59 }
 0x1a6   :  { %3206 = vmatpush.msrb.mxu0 %v21833_v46  ;;  %3226 = vmatpush.msrb.mxu1 %v21834_v29  ;;  %21838 = vst [vmem:[#allocation25_spill] sm:$0xff] %v16022_v48  ;;  %v16025_v29 = vpop.f32.mrf.mxu3  ;;  %v21854_v59 = vld [vmem:[#allocation128_spill] sm:$0xff] }
 0x1a7   :  { %12636 = vmatmul.msk.f32.vlgmr.msrb.gmra.mxu0 %vm1300_vm4, %v15939_v40  ;;  %12637 = vmatmul.msk.f32.vlgmr.msrb.gmra.mxu1 %vm1300_vm4, %v15939_v40  ;;  %21839 = vst [vmem:[#allocation21_spill] sm:$0xff] %v16025_v29  ;;  %v21847_v29 = vld [vmem:[#allocation65_spill] sm:$0xff] }
 0x1a8   :  { %3282 = vmatpush.msra.mxu0 %v21835_v13  ;;  %3302 = vmatpush.msra.mxu1 %v21837_v60  ;;  %v16033_v60 = vpop.f32.mrf.mxu0 }
 0x1a9   :  { %3326 = vmatpush.msra.mxu2 %v16022_v48  ;;  %3346 = vmatpush.msra.mxu3 %v21840_v28  ;;  %21842 = vst [vmem:[#allocation146_spill] sm:$0xff] %v16033_v60  ;;  %v21846_v48 = vld [vmem:[#allocation23_spill] sm:$0xff]  ;;  %v21848_v28 = vld [vmem:[#allocation26_spill] sm:$0xff]  ;;  %v21851_v60 = vld [vmem:[#allocation29_spill] sm:$0xff] }
 0x1aa   :  { %12642 = vmatmul.msk.f32.vlgmr.msra.gmra.mxu2 %vm1300_vm4, %v15939_v40  ;;  %12643 = vmatmul.msk.f32.vlgmr.msra.gmra.mxu3 %vm1300_vm4, %v15939_v40 }
 0x1ab   :  { %3402 = vmatpush.msrb.mxu2 %v21841_v51  ;;  %3422 = vmatpush.msrb.mxu3 %v21843_v20  ;;  %v21852_v51 = vld [vmem:[#allocation28_spill] sm:$0xff]  ;;  %v21853_v20 = vld [vmem:[#allocation73_spill] sm:$0xff] }
 0x1ac   :  { %3283 = vmatpush.msra.mxu0 %v21844_v15  ;;  %3303 = vmatpush.msra.mxu1 %v21846_v48  ;;  %v21871_v48 = vld [vmem:[#allocation47_spill] sm:$0xff] }
 0x1ad   :  { %3403 = vmatpush.msrb.mxu2 %v21847_v29  ;;  %3423 = vmatpush.msrb.mxu3 %v21755_v57  ;;  %v16051_v29 = vpop.f32.mrf.mxu2  ;;  %v21856_v57 = vld [vmem:[#allocation32_spill] sm:$0xff] }
 0x1ae   :  { %3284 = vmatpush.msra.mxu0 %v21848_v28  ;;  %3304 = vmatpush.msra.mxu1 %v21849_v19  ;;  %21855 = vst [vmem:[#allocation26_spill] sm:$0xff] %v16051_v29  ;;  %v16068_v29 = vpop.f32.mrf.mxu1  ;;  %v21869_v19 = vld [vmem:[#allocation45_spill] sm:$0xff] }
 0x1af   :  { %3404 = vmatpush.msrb.mxu2 %v21850_v52  ;;  %3424 = vmatpush.msrb.mxu3 %v21759_v49  ;;  %v16056_v52 = vpop.f32.mrf.mxu3  ;;  %v21858_v49 = vld [vmem:[#allocation33_spill] sm:$0xff] }
 0x1b0   :  { %3285 = vmatpush.msra.mxu0 %v21851_v60  ;;  %3305 = vmatpush.msra.mxu1 %v21852_v51  ;;  %21857 = vst [vmem:[#allocation29_spill] sm:$0xff] %v16056_v52  ;;  %v21859_v51 = vld [vmem:[#allocation30_spill] sm:$0xff] }
 0x1b1   :  { %3405 = vmatpush.msrb.mxu2 %v21853_v20  ;;  %3425 = vmatpush.msrb.mxu3 %v21763_v26  ;;  %v21860_v20 = vld [vmem:[#allocation75_spill] sm:$0xff]  ;;  %v16063_v26 = vpop.f32.mrf.mxu0  ;;  %21862 = vst [vmem:[#allocation33_spill] sm:$0xff] %v16068_v29  ;;  %v21863_v52 = vld [vmem:[#allocation82_spill] sm:$0xff] }
 0x1b2   :  { %3286 = vmatpush.msra.mxu0 %v21854_v59  ;;  %3306 = vmatpush.msra.mxu1 %v21856_v57  ;;  %21861 = vst [vmem:[#allocation128_spill] sm:$0xff] %v16063_v26  ;;  %v21864_v57 = vld [vmem:[#allocation38_spill] sm:$0xff]  ;;  %v21870_v29 = vld [vmem:[#allocation87_spill] sm:$0xff] }
 0x1b3   :  { %12640 = vmatmul.msk.f32.vlgmr.msra.gmra.mxu0 %vm1300_vm4, %v15939_v40  ;;  %12641 = vmatmul.msk.f32.vlgmr.msra.gmra.mxu1 %vm1300_vm4, %v15939_v40  ;;  %v21867_v26 = vld [vmem:[#allocation86_spill] sm:$0xff] }
 0x1b4   :  { %3362 = vmatpush.msrb.mxu0 %v21858_v49  ;;  %3382 = vmatpush.msrb.mxu1 %v21859_v51  ;;  %v21865_v51 = vld [vmem:[#allocation39_spill] sm:$0xff] }
 0x1b5   :  { %3406 = vmatpush.msrb.mxu2 %v21860_v20  ;;  %3426 = vmatpush.msrb.mxu3 %v15780_v11  ;;  %v21866_v20 = vld [vmem:[#allocation85_spill] sm:$0xff]  ;;  %v21868_v11 = vld [vmem:[#allocation44_spill] sm:$0xff] }
 0x1b6   :  { %12646 = vmatmul.msk.f32.vlgmr.msrb.gmra.mxu2 %vm1300_vm4, %v15939_v40  ;;  %12647 = vmatmul.msk.f32.vlgmr.msrb.gmra.mxu3 %vm1300_vm4, %v15939_v40 }
 0x1b7   :  { %3482 = vmatpush.msra.mxu2 %v21863_v52  ;;  %3502 = vmatpush.msra.mxu3 %v21768_v24  ;;  %v16083_v52 = vpop.f32.mrf.mxu2  ;;  %v21873_v24 = vld [vmem:[#allocation46_spill] sm:$0xff] }
 0x1b8   :  { %3363 = vmatpush.msrb.mxu0 %v21864_v57  ;;  %3383 = vmatpush.msrb.mxu1 %v21865_v51  ;;  %21872 = vst [vmem:[#allocation75_spill] sm:$0xff] %v16083_v52  ;;  %v21874_v57 = vld [vmem:[#allocation91_spill] sm:$0xff]  ;;  %v16087_v51 = vpop.f32.mrf.mxu3  ;;  %v21879_v52 = vld [vmem:[#allocation50_spill] sm:$0xff] }
 0x1b9   :  { %3483 = vmatpush.msra.mxu2 %v21866_v20  ;;  %3503 = vmatpush.msra.mxu3 %v21867_v26  ;;  %21875 = vst [vmem:[#allocation147_spill] sm:$0xff] %v16087_v51  ;;  %v21876_v20 = vld [vmem:[#allocation131_spill] sm:$0xff]  ;;  %v21877_v26 = vld [vmem:[#allocation129_spill] sm:$0xff] }
 0x1ba   :  { %3364 = vmatpush.msrb.mxu0 %v21868_v11  ;;  %3384 = vmatpush.msrb.mxu1 %v21869_v19  ;;  %v21882_v51 = vld [vmem:[#allocation93_spill] sm:$0xff]  ;;  %v21891_v19 = vld [vmem:[#allocation106_spill] sm:$0xff] }
 0x1bb   :  { %3484 = vmatpush.msra.mxu2 %v21870_v29  ;;  %3504 = vmatpush.msra.mxu3 %v21775_v39  ;;  %v16094_v29 = vpop.f32.mrf.mxu0  ;;  %v21886_v39 = vld [vmem:[#allocation57_spill] sm:$0xff] }
 0x1bc   :  { %3365 = vmatpush.msrb.mxu0 %v21871_v48  ;;  %3385 = vmatpush.msrb.mxu1 %v21873_v24  ;;  %21878 = vst [vmem:[#allocation131_spill] sm:$0xff] %v16094_v29  ;;  %v16099_v24 = vpop.f32.mrf.mxu1  ;;  %v21883_v29 = vld [vmem:[#allocation94_spill] sm:$0xff] }
 0x1bd   :  { %3485 = vmatpush.msra.mxu2 %v21874_v57  ;;  %3505 = vmatpush.msra.mxu3 %v21778_v45  ;;  %21880 = vst [vmem:[#allocation148_spill] sm:$0xff] %v16099_v24  ;;  %v21881_v57 = vld [vmem:[#allocation51_spill] sm:$0xff]  ;;  %v21885_v45 = vld [vmem:[#allocation56_spill] sm:$0xff] }
 0x1be   :  { %3366 = vmatpush.msrb.mxu0 %v21876_v20  ;;  %3386 = vmatpush.msrb.mxu1 %v21877_v26  ;;  %v21884_v26 = vld [vmem:[#allocation95_spill] sm:$0xff] }
 0x1bf   :  { %12644 = vmatmul.msk.f32.vlgmr.msrb.gmra.mxu0 %vm1300_vm4, %v15939_v40  ;;  %12645 = vmatmul.msk.f32.vlgmr.msrb.gmra.mxu1 %vm1300_vm4, %v15939_v40  ;;  %v21887_v24 = vld [vmem:[#allocation103_spill] sm:$0xff] }
 0x1c0   :  { %3442 = vmatpush.msra.mxu0 %v21879_v52  ;;  %3462 = vmatpush.msra.mxu1 %v21881_v57  ;;  %v21890_v57 = vld [vmem:[#allocation59_spill] sm:$0xff]  ;;  %v16119_v52 = vpop.f32.mrf.mxu3 }
 0x1c1   :  { %3486 = vmatpush.msra.mxu2 %v21882_v51  ;;  %3506 = vmatpush.msra.mxu3 %v15824_v12  ;;  %v21888_v51 = vld [vmem:[#allocation60_spill] sm:$0xff]  ;;  %v16115_v12 = vpop.f32.mrf.mxu2  ;;  %21892 = vst [vmem:[#allocation149_spill] sm:$0xff] %v16119_v52  ;;  %v21900_v52 = vld [vmem:[#allocation69_spill] sm:$0xff] }
 0x1c2   :  { %12650 = vmatmul.msk.f32.vlgmr.msra.gmra.mxu2 %vm1300_vm4, %v15939_v40  ;;  %12651 = vmatmul.msk.f32.vlgmr.msra.gmra.mxu3 %vm1300_vm4, %v15939_v40  ;;  %21889 = vst [vmem:[#allocation93_spill] sm:$0xff] %v16115_v12 }
 0x1c3   :  { %3562 = vmatpush.msrb.mxu2 %v21883_v29  ;;  %3582 = vmatpush.msrb.mxu3 %v21884_v26  ;;  %v21893_v29 = vld [vmem:[#allocation63_spill] sm:$0xff]  ;;  %v21894_v26 = vld [vmem:[#allocation64_spill] sm:$0xff] }
 0x1c4   :  { %3443 = vmatpush.msra.mxu0 %v21885_v45  ;;  %3463 = vmatpush.msra.mxu1 %v21886_v39  ;;  %v21895_v39 = vld [vmem:[#allocation113_spill] sm:$0xff]  ;;  %v16129_v12 = vpop.f32.mrf.mxu1 }
 0x1c5   :  { %3563 = vmatpush.msrb.mxu2 %v21887_v24  ;;  %3583 = vmatpush.msrb.mxu3 %v21792_v7  ;;  %v16125_v24 = vpop.f32.mrf.mxu0  ;;  %v21897_v7 = vld [vmem:[#allocation134_spill] sm:$0xff] }
 0x1c6   :  { %3444 = vmatpush.msra.mxu0 %v21888_v51  ;;  %3464 = vmatpush.msra.mxu1 %v21890_v57  ;;  %21896 = vst [vmem:[#allocation150_spill] sm:$0xff] %v16125_v24  ;;  %v21899_v57 = vld [vmem:[#allocation132_spill] sm:$0xff]  ;;  %v16145_v24 = vpop.permute.xlu0 %13312 }
 0x1c7   :  { %3564 = vmatpush.msrb.mxu2 %v21891_v19  ;;  %3584 = vmatpush.msrb.mxu3 %v21796_v43  ;;  %21898 = vst [vmem:[#allocation134_spill] sm:$0xff] %v16129_v12  ;;  %v21901_v19 = vld [vmem:[#allocation70_spill] sm:$0xff]  ;;  %v21911_v43 = vld [vmem:[#allocation77_spill] sm:$0xff] }
 0x1c8   :  { %3445 = vmatpush.msra.mxu0 %v21893_v29  ;;  %3465 = vmatpush.msra.mxu1 %v21894_v26  ;;  %v21903_v12 = vld [vmem:[#allocation118_spill] sm:$0xff]  ;;  %v21910_v26 = vld [vmem:[#allocation76_spill] sm:$0xff] }
 0x1c9   :  { %3565 = vmatpush.msrb.mxu2 %v21895_v39  ;;  %3585 = vmatpush.msrb.mxu3 %v21801_v37  ;;  %v21902_v39 = vld [vmem:[#allocation115_spill] sm:$0xff]  ;;  %v16149_v37 = vpop.f32.mrf.mxu2 }
 0x1ca   :  { %3446 = vmatpush.msra.mxu0 %v21897_v7  ;;  %3466 = vmatpush.msra.mxu1 %v21899_v57  ;;  %21904 = vst [vmem:[#allocation115_spill] sm:$0xff] %v16145_v24  ;;  %v21905_v57 = vld [vmem:[#allocation72_spill] sm:$0xff] }
 0x1cb   :  { %12648 = vmatmul.msk.f32.vlgmr.msra.gmra.mxu0 %vm1300_vm4, %v15939_v40  ;;  %12649 = vmatmul.msk.f32.vlgmr.msra.gmra.mxu1 %vm1300_vm4, %v15939_v40  ;;  %21906 = vst [vmem:[#allocation151_spill] sm:$0xff] %v16149_v37 }
 0x1cc   :  { %3522 = vmatpush.msrb.mxu0 %v21900_v52  ;;  %3542 = vmatpush.msrb.mxu1 %v21901_v19  ;;  %v21907_v19 = vld [vmem:[#allocation71_spill] sm:$0xff]  ;;  %v16163_v37 = vpop.f32.mrf.mxu1 }
 0x1cd   :  { %3566 = vmatpush.msrb.mxu2 %v21902_v39  ;;  %3586 = vmatpush.msrb.mxu3 %v21805_v32  ;;  %v21908_v39 = vld [vmem:[#allocation121_spill] sm:$0xff]  ;;  %v16153_v32 = vpop.f32.mrf.mxu3  ;;  %v16159_v52 = vpop.f32.mrf.mxu0  ;;  %21915 = vst [vmem:[#allocation154_spill] sm:$0xff] %v16163_v37 }
 0x1ce   :  { %12654 = vmatmul.msk.f32.vlgmr.msrb.gmra.mxu2 %vm1300_vm4, %v15939_v40  ;;  %12655 = vmatmul.msk.f32.vlgmr.msrb.gmra.mxu3 %vm1300_vm4, %v15939_v40  ;;  %21909 = vst [vmem:[#allocation152_spill] sm:$0xff] %v16153_v32  ;;  %v16167_v32 = vpop.permute.xlu1 %13317  ;;  %v16180_v37 = vpop.permute.xlu2 %13322 }
 0x1cf   :  { %3642 = vmatpush.msra.mxu2 %v21903_v12  ;;  %3662 = vmatpush.msra.mxu3 %v15493_v21  ;;  %v21912_v12 = vld [vmem:[#allocation123_spill] sm:$0xff]  ;;  %21913 = vst [vmem:[#allocation153_spill] sm:$0xff] %v16159_v52 }
 0x1d0   :  { %3523 = vmatpush.msrb.mxu0 %v21905_v57  ;;  %3543 = vmatpush.msrb.mxu1 %v21907_v19  ;;  %v21914_v21 = vld [vmem:[#allocation79_spill] sm:$0xff]  ;;  %v21916_v19 = vld [vmem:[#allocation78_spill] sm:$0xff]  ;;  %21918 = vst [vmem:[#allocation155_spill] sm:$0xff] %v16167_v32 }
 0x1d1   :  { %3643 = vmatpush.msra.mxu2 %v21908_v39  ;;  %3663 = vmatpush.msra.mxu3 %v15516_v23  ;;  %v21917_v39 = vld [vmem:[#allocation125_spill] sm:$0xff]  ;;  %v21919_v23 = vld [vmem:[#allocation136_spill] sm:$0xff]  ;;  %v16175_v52 = vld [vmem:[%s20949_s0 + $0xb8] sm:$0xff]  ;;  %21921 = vst [vmem:[#allocation157_spill] sm:$0xff] %v16180_v37 }
 0x1d2   :  { %3524 = vmatpush.msrb.mxu0 %v21910_v26  ;;  %3544 = vmatpush.msrb.mxu1 %v21911_v43  ;;  %21920 = vst [vmem:[#allocation156_spill] sm:$0xff] %v16175_v52  ;;  %v16194_v43 = vpop.f32.mrf.mxu2 }
 0x1d3   :  { %3644 = vmatpush.msra.mxu2 %v21912_v12  ;;  %3664 = vmatpush.msra.mxu3 %v15532_v18  ;;  %v21923_v12 = vld [vmem:[#allocation81_spill] sm:$0xff]  ;;  %v16188_v18 = vpop.permute.xlu0 %13327  ;;  %21926 = vst [vmem:[#allocation158_spill] sm:$0xff] %v16194_v43  ;;  %v21933_v43 = vld [vmem:[#allocation90_spill] sm:$0xff] }
 0x1d4   :  { %3525 = vmatpush.msrb.mxu0 %v21914_v21  ;;  %3545 = vmatpush.msrb.mxu1 %v21916_v19  ;;  %v21924_v19 = vld [vmem:[#allocation127_spill] sm:$0xff]  ;;  %v21935_v21 = vld [vmem:[#allocation101_spill] sm:$0xff] }
 0x1d5   :  { %3645 = vmatpush.msra.mxu2 %v21917_v39  ;;  %3665 = vmatpush.msra.mxu3 %v15549_v22  ;;  %v21922_v39 = vld [vmem:[#allocation84_spill] sm:$0xff]  ;;  %21925 = vst [vmem:[#allocation127_spill] sm:$0xff] %v16188_v18  ;;  %v21928_v22 = vunpack.i.l.bf16 %v16145_v24 }
 0x1d6   :  { %3526 = vmatpush.msrb.mxu0 %v21919_v23  ;;  %3546 = vmatpush.msrb.mxu1 %v16175_v52  ;;  %v16205_v23 = vpop.f32.mrf.mxu3  ;;  %v21941_v52 = vunpack.i.l.bf16 %v16180_v37 }
 0x1d7   :  { %12652 = vmatmul.msk.f32.vlgmr.msrb.gmra.mxu0 %vm1300_vm4, %v15939_v40  ;;  %12653 = vmatmul.msk.f32.vlgmr.msrb.gmra.mxu1 %vm1300_vm4, %v15939_v40  ;;  %21931 = vst [vmem:[#allocation159_spill] sm:$0xff] %v16205_v23  ;;  %v16222_v23 = vpop.f32.mrf.mxu1 }
 0x1d8   :  { %3602 = vmatpush.msra.mxu0 %v21922_v39  ;;  %3622 = vmatpush.msra.mxu1 %v21923_v12  ;;  %v21927_v39 = vld [vmem:[#allocation102_spill] sm:$0xff]  ;;  %v21929_v12 = vld [vmem:[#allocation80_spill] sm:$0xff]  ;;  %21939 = vst [vmem:[#allocation160_spill] sm:$0xff] %v16222_v23 }
 0x1d9   :  { %3646 = vmatpush.msra.mxu2 %v21924_v19  ;;  %3666 = vmatpush.msra.mxu3 %v15930_v55  ;;  %v16203_v19 = vsel %vm1029_vm0, %v21929_v12, %v21928_v22  ;;  %v21932_v55 = vld [vmem:[#allocation89_spill] sm:$0xff]  ;;  %v16218_v22 = vpop.f32.mrf.mxu0  ;;  %v21938_v12 = vld [vmem:[#allocation96_spill] sm:$0xff] }
 0x1da   :  { %12658 = vmatmul.msk.f32.vlgmr.msra.gmra.mxu2 %vm1300_vm4, %v15939_v40  ;;  %12659 = vmatmul.msk.f32.vlgmr.msra.gmra.mxu3 %vm1300_vm4, %v15939_v40  ;;  %21930 = vst [vmem:[#allocation80_spill] sm:$0xff] %v16203_v19 }
 0x1db   :  { %3722 = vmatpush.msrb.mxu2 %v21927_v39  ;;  %3742 = vmatpush.msrb.mxu3 %v16203_v19  ;;  %v21934_v39 = vunpack.i.l.bf16 %v16167_v32  ;;  %21937 = vst [vmem:[#allocation101_spill] sm:$0xff] %v16218_v22  ;;  %v21940_v19 = vld [vmem:[#allocation97_spill] sm:$0xff]  ;;  %v21947_v22 = vld [vmem:[#allocation107_spill] sm:$0xff] }
 0x1dc   :  { %3603 = vmatpush.msra.mxu0 %v21932_v55  ;;  %3623 = vmatpush.msra.mxu1 %v21933_v43 }
 0x1dd   :  { %3723 = vmatpush.msrb.mxu2 %v15864_v0  ;;  %v16216_v24 = vsel %vm772_vm1, %v21935_v21, %v21934_v39  ;;  %v16230_v0 = vsel %vm515_vm2, %v15854_v42, %v21941_v52  ;;  %v21943_v21 = vld [vmem:[#allocation99_spill] sm:$0xff]  ;;  %v21944_v39 = vunpack.i.l.bf16 %v16188_v18  ;;  %v16246_v42 = vld [vmem:[%s20949_s0 + $0xd0] sm:$0xff] }
 0x1de   :  { %21936 = vst [vmem:[#allocation90_spill] sm:$0xff] %v16216_v24  ;;  %3743 = vmatpush.msrb.mxu3 %v16216_v24  ;;  %3604 = vmatpush.msra.mxu0 %v21938_v12  ;;  %v16252_v52 = vld [vmem:[%s20949_s0 + $0xd8] sm:$0xff] }
 0x1df   :  { %3624 = vmatpush.msra.mxu1 %v21940_v19  ;;  %3724 = vmatpush.msrb.mxu2 %v15876_v1  ;;  %21942 = vst [vmem:[#allocation97_spill] sm:$0xff] %v16230_v0  ;;  %v16240_v23 = vsel %vm258_vm3, %v15866_v44, %v21944_v39  ;;  %v16260_v44 = vld [vmem:[%s20949_s0 + $0x108] sm:$0xff]  ;;  %v16265_v39 = vpop.f32.mrf.mxu2 }
 0x1e0   :  { %3744 = vmatpush.msrb.mxu3 %v16230_v0  ;;  %3605 = vmatpush.msra.mxu0 %v21802_v30  ;;  %21945 = vst [vmem:[#allocation99_spill] sm:$0xff] %v16246_v42 }
 0x1e1   :  { %3625 = vmatpush.msra.mxu1 %v21943_v21  ;;  %3725 = vmatpush.msrb.mxu2 %v15886_v4  ;;  %21946 = vst [vmem:[#allocation161_spill] sm:$0xff] %v16265_v39  ;;  %v16269_v4 = vpop.f32.mrf.mxu3  ;;  %v16277_v1 = vpop.f32.mrf.mxu0 }
 0x1e2   :  { %3745 = vmatpush.msrb.mxu3 %v16240_v23  ;;  %3606 = vmatpush.msra.mxu0 %v16246_v42  ;;  %21948 = vst [vmem:[#allocation107_spill] sm:$0xff] %v16269_v4  ;;  %v16281_v39 = vpop.f32.mrf.mxu1  ;;  %v21952_v4 = vld [vmem:[#allocation112_spill] sm:$0xff] }
 0x1e3   :  { %3626 = vmatpush.msra.mxu1 %v16252_v52  ;;  %12656 = vmatmul.msk.f32.vlgmr.msra.gmra.mxu0 %vm1300_vm4, %v15939_v40  ;;  %21949 = vst [vmem:[#allocation162_spill] sm:$0xff] %v16277_v1  ;;  %v21954_v1 = vld [vmem:[#allocation100_spill] sm:$0xff] }
 0x1e4   :  { %12657 = vmatmul.msk.f32.vlgmr.msra.gmra.mxu1 %vm1300_vm4, %v15939_v40  ;;  %3682 = vmatpush.msrb.mxu0 %v21808_v25  ;;  %21950 = vst [vmem:[#allocation163_spill] sm:$0xff] %v16281_v39 }
 0x1e5   :  { %3702 = vmatpush.msrb.mxu1 %v21947_v22  ;;  %3726 = vmatpush.msrb.mxu2 %v15896_v9  ;;  %v21951_v9 = vld [vmem:[#allocation111_spill] sm:$0xff] }
 0x1e6   :  { %3746 = vmatpush.msrb.mxu3 %v16260_v44  ;;  %12662 = vmatmul.msk.f32.vlgmr.msrb.gmra.mxu2 %vm1300_vm4, %v15939_v40 }
 0x1e7   :  { %12663 = vmatmul.msk.f32.vlgmr.msrb.gmra.mxu3 %vm1300_vm4, %v15939_v40  ;;  %4063 = vmatpush.msra.mxu2 %v21704_v54  ;;  %v16295_v39 = vpop.f32.mrf.mxu2 }
 0x1e8   :  { %4083 = vmatpush.msra.mxu3 %v21705_v47  ;;  %3683 = vmatpush.msrb.mxu0 %v21810_v27  ;;  %21953 = vst [vmem:[#allocation111_spill] sm:$0xff] %v16295_v39 }
 0x1e9   :  { %3703 = vmatpush.msrb.mxu1 %v21951_v9  ;;  %4064 = vmatpush.msra.mxu2 %v21709_v56  ;;  %v16305_v56 = vpop.f32.mrf.mxu3 }
 0x1ea   :  { %4084 = vmatpush.msra.mxu3 %v21822_v50  ;;  %3684 = vmatpush.msrb.mxu0 %v21811_v53  ;;  %21955 = vst [vmem:[#allocation112_spill] sm:$0xff] %v16305_v56  ;;  %v16317_v39 = vpop.f32.mrf.mxu1  ;;  %v21971_v56 = vld [vmem:[#allocation38_spill] sm:$0xff] }
 0x1eb   :  { %3704 = vmatpush.msrb.mxu1 %v21952_v4  ;;  %4065 = vmatpush.msra.mxu2 %v21712_v38  ;;  %v16303_v38 = vld [vmem:[%s20950_s1 + $0x18] sm:$0xff]  ;;  %21957 = vst [vmem:[#allocation164_spill] sm:$0xff] %v16317_v39  ;;  %v21974_v39 = vld [vmem:[#allocation53_spill] sm:$0xff] }
 0x1ec   :  { %4085 = vmatpush.msra.mxu3 %v21826_v63  ;;  %3685 = vmatpush.msrb.mxu0 %v15496_v5 }
 0x1ed   :  { %3705 = vmatpush.msrb.mxu1 %v15501_v10  ;;  %4066 = vmatpush.msra.mxu2 %v21715_v2 }
 0x1ee   :  { %4086 = vmatpush.msra.mxu3 %v21830_v3  ;;  %3686 = vmatpush.msrb.mxu0 %v15508_v35  ;;  %v16312_v35 = vpop.f32.mrf.mxu0 }
 0x1ef   :  { %3706 = vmatpush.msrb.mxu1 %v21954_v1  ;;  %12660 = vmatmul.msk.f32.vlgmr.msrb.gmra.mxu0 %vm1300_vm4, %v15939_v40  ;;  %21956 = vst [vmem:[#allocation100_spill] sm:$0xff] %v16312_v35 }
 0x1f0   :  { %12661 = vmatmul.msk.f32.vlgmr.msrb.gmra.mxu1 %vm1300_vm4, %v15939_v40  ;;  %4023 = vmatpush.msra.mxu0 %v14471_v8  ;;  %v21958_v8 = vld [vmem:[#allocation17_spill] sm:$0xff]  ;;  %v21959_v40 = vld [vmem:[#allocation19_spill] sm:$0xff] }
 0x1f1   :  { %4043 = vmatpush.msra.mxu1 %v14646_v61  ;;  %4067 = vmatpush.msra.mxu2 %v15651_v36 }
 0x1f2   :  { %4087 = vmatpush.msra.mxu3 %v21833_v46  ;;  %12667 = vmatmul.msk.f32.vlgmr.msra.gmra.mxu2 %vm1300_vm4, %v16303_v38  ;;  %v16332_v46 = vpop.f32.mrf.mxu2  ;;  %v16348_v36 = vpop.f32.mrf.mxu1 }
 0x1f3   :  { %12668 = vmatmul.msk.f32.vlgmr.msra.gmra.mxu3 %vm1300_vm4, %v16303_v38  ;;  %4143 = vmatpush.msrb.mxu2 %v21720_v41  ;;  %21960 = vst [vmem:[#allocation17_spill] sm:$0xff] %v16332_v46  ;;  %v21965_v46 = vld [vmem:[#allocation31_spill] sm:$0xff] }
 0x1f4   :  { %4163 = vmatpush.msrb.mxu3 %v21835_v13  ;;  %4024 = vmatpush.msra.mxu0 %v14477_v14  ;;  %v16336_v14 = vpop.f32.mrf.mxu3 }
 0x1f5   :  { %4044 = vmatpush.msra.mxu1 %v21958_v8  ;;  %4144 = vmatpush.msrb.mxu2 %v21725_v62  ;;  %21961 = vst [vmem:[#allocation19_spill] sm:$0xff] %v16336_v14  ;;  %v21966_v14 = vld [vmem:[#allocation58_spill] sm:$0xff]  ;;  %v21979_v62 = vld [vmem:[#allocation55_spill] sm:$0xff] }
 0x1f6   :  { %4164 = vmatpush.msrb.mxu3 %v21844_v15  ;;  %4025 = vmatpush.msra.mxu0 %v14486_v16  ;;  %v16343_v16 = vpop.f32.mrf.mxu0 }
 0x1f7   :  { %4045 = vmatpush.msra.mxu1 %v21959_v40  ;;  %4145 = vmatpush.msrb.mxu2 %v21728_v58  ;;  %21962 = vst [vmem:[#allocation165_spill] sm:$0xff] %v16343_v16  ;;  %v21969_v16 = vld [vmem:[#allocation34_spill] sm:$0xff]  ;;  %v21978_v58 = vld [vmem:[#allocation40_spill] sm:$0xff] }
 0x1f8   :  { %4165 = vmatpush.msrb.mxu3 %v21848_v28  ;;  %4026 = vmatpush.msra.mxu0 %v14504_v34  ;;  %v21963_v34 = vld [vmem:[#allocation9_spill] sm:$0xff] }
 0x1f9   :  { %4046 = vmatpush.msra.mxu1 %v14760_v6  ;;  %4146 = vmatpush.msrb.mxu2 %v21731_v17  ;;  %21964 = vst [vmem:[#allocation9_spill] sm:$0xff] %v16348_v36  ;;  %v21970_v36 = vld [vmem:[#allocation49_spill] sm:$0xff]  ;;  %v21977_v17 = vld [vmem:[#allocation16_spill] sm:$0xff] }
 0x1fa   :  { %4166 = vmatpush.msrb.mxu3 %v21851_v60  ;;  %4027 = vmatpush.msra.mxu0 %v15574_v31  ;;  %v21967_v31 = vld [vmem:[#allocation43_spill] sm:$0xff]  ;;  %v16366_v35 = vpop.f32.mrf.mxu2 }
 0x1fb   :  { %4047 = vmatpush.msra.mxu1 %v15580_v33  ;;  %12665 = vmatmul.msk.f32.vlgmr.msra.gmra.mxu0 %vm1300_vm4, %v16303_v38  ;;  %v21968_v33 = vld [vmem:[#allocation11_spill] sm:$0xff]  ;;  %21975 = vst [vmem:[#allocation31_spill] sm:$0xff] %v16366_v35  ;;  %v21985_v35 = vld [vmem:[#allocation42_spill] sm:$0xff] }
 0x1fc   :  { %12666 = vmatmul.msk.f32.vlgmr.msra.gmra.mxu1 %vm1300_vm4, %v16303_v38  ;;  %4103 = vmatpush.msrb.mxu0 %v21963_v34 }
 0x1fd   :  { %4123 = vmatpush.msrb.mxu1 %v21965_v46  ;;  %4147 = vmatpush.msrb.mxu2 %v21966_v14  ;;  %v21972_v14 = vld [vmem:[#allocation12_spill] sm:$0xff] }
 0x1fe   :  { %4167 = vmatpush.msrb.mxu3 %v21854_v59  ;;  %12671 = vmatmul.msk.f32.vlgmr.msrb.gmra.mxu2 %vm1300_vm4, %v16303_v38  ;;  %v21973_v59 = vld [vmem:[#allocation36_spill] sm:$0xff] }
 0x1ff   :  { %12672 = vmatmul.msk.f32.vlgmr.msrb.gmra.mxu3 %vm1300_vm4, %v16303_v38  ;;  %4223 = vmatpush.msra.mxu2 %v21967_v31  ;;  %v16369_v31 = vpop.f32.mrf.mxu3 }
 0x200   :  { %4243 = vmatpush.msra.mxu3 %v21858_v49  ;;  %4104 = vmatpush.msrb.mxu0 %v21968_v33  ;;  %21976 = vst [vmem:[#allocation58_spill] sm:$0xff] %v16369_v31  ;;  %v21984_v31 = vld [vmem:[#allocation22_spill] sm:$0xff] }
 0x201   :  { %4124 = vmatpush.msrb.mxu1 %v21969_v16  ;;  %4224 = vmatpush.msra.mxu2 %v21970_v36  ;;  %v16375_v36 = vpop.f32.mrf.mxu0 }
 0x202   :  { %4244 = vmatpush.msra.mxu3 %v21971_v56  ;;  %4105 = vmatpush.msrb.mxu0 %v21972_v14  ;;  %21980 = vst [vmem:[#allocation11_spill] sm:$0xff] %v16375_v36  ;;  %v21981_v56 = vld [vmem:[#allocation14_spill] sm:$0xff]  ;;  %v21990_v36 = vld [vmem:[#allocation48_spill] sm:$0xff] }
 0x203   :  { %4125 = vmatpush.msrb.mxu1 %v21973_v59  ;;  %4225 = vmatpush.msra.mxu2 %v21974_v39  ;;  %v16378_v59 = vpop.f32.mrf.mxu1  ;;  %v21983_v39 = vld [vmem:[#allocation8_spill] sm:$0xff] }
 0x204   :  { %4245 = vmatpush.msra.mxu3 %v21868_v11  ;;  %4106 = vmatpush.msrb.mxu0 %v21977_v17  ;;  %21982 = vst [vmem:[#allocation34_spill] sm:$0xff] %v16378_v59  ;;  %v21989_v59 = vld [vmem:[#allocation23_spill] sm:$0xff]  ;;  %v21996_v11 = vld [vmem:[#allocation68_spill] sm:$0xff] }
 0x205   :  { %4126 = vmatpush.msrb.mxu1 %v21978_v58  ;;  %4226 = vmatpush.msra.mxu2 %v21979_v62  ;;  %v21986_v62 = vld [vmem:[#allocation130_spill] sm:$0xff]  ;;  %v21995_v58 = vld [vmem:[#allocation52_spill] sm:$0xff] }
 0x206   :  { %4246 = vmatpush.msra.mxu3 %v21871_v48  ;;  %4107 = vmatpush.msrb.mxu0 %v21981_v56  ;;  %v21987_v56 = vld [vmem:[#allocation62_spill] sm:$0xff] }
 0x207   :  { %4127 = vmatpush.msrb.mxu1 %v21983_v39  ;;  %12669 = vmatmul.msk.f32.vlgmr.msrb.gmra.mxu0 %vm1300_vm4, %v16303_v38  ;;  %v21988_v39 = vld [vmem:[#allocation50_spill] sm:$0xff] }
 0x208   :  { %12670 = vmatmul.msk.f32.vlgmr.msrb.gmra.mxu1 %vm1300_vm4, %v16303_v38  ;;  %4183 = vmatpush.msra.mxu0 %v21984_v31  ;;  %v21991_v48 = vld [vmem:[#allocation66_spill] sm:$0xff] }
 0x209   :  { %4203 = vmatpush.msra.mxu1 %v21985_v35  ;;  %4227 = vmatpush.msra.mxu2 %v21986_v62  ;;  %v16398_v35 = vpop.f32.mrf.mxu2  ;;  %v21993_v62 = vld [vmem:[#allocation27_spill] sm:$0xff] }
 0x20a   :  { %4247 = vmatpush.msra.mxu3 %v21876_v20  ;;  %12675 = vmatmul.msk.f32.vlgmr.msra.gmra.mxu2 %vm1300_vm4, %v16303_v38  ;;  %21992 = vst [vmem:[#allocation12_spill] sm:$0xff] %v16398_v35  ;;  %v16402_v20 = vpop.f32.mrf.mxu3 }
 0x20b   :  { %12676 = vmatmul.msk.f32.vlgmr.msra.gmra.mxu3 %vm1300_vm4, %v16303_v38  ;;  %4303 = vmatpush.msrb.mxu2 %v21987_v56  ;;  %21994 = vst [vmem:[#allocation16_spill] sm:$0xff] %v16402_v20  ;;  %v21997_v56 = vld [vmem:[#allocation28_spill] sm:$0xff]  ;;  %v16412_v35 = vpop.f32.mrf.mxu1  ;;  %v22003_v20 = vld [vmem:[#allocation25_spill] sm:$0xff] }
 0x20c   :  { %4323 = vmatpush.msrb.mxu3 %v21988_v39  ;;  %4184 = vmatpush.msra.mxu0 %v21989_v59  ;;  %v16408_v39 = vpop.f32.mrf.mxu0  ;;  %22001 = vst [vmem:[#allocation8_spill] sm:$0xff] %v16412_v35 }
 0x20d   :  { %4204 = vmatpush.msra.mxu1 %v21990_v36  ;;  %4304 = vmatpush.msrb.mxu2 %v21991_v48  ;;  %21998 = vst [vmem:[#allocation14_spill] sm:$0xff] %v16408_v39  ;;  %v21999_v36 = vld [vmem:[#allocation54_spill] sm:$0xff]  ;;  %v22005_v39 = vld [vmem:[#allocation61_spill] sm:$0xff] }
 0x20e   :  { %4324 = vmatpush.msrb.mxu3 %v21885_v45  ;;  %4185 = vmatpush.msra.mxu0 %v21993_v62  ;;  %v22000_v48 = vld [vmem:[#allocation74_spill] sm:$0xff]  ;;  %v22002_v45 = vld [vmem:[#allocation32_spill] sm:$0xff] }
 0x20f   :  { %4205 = vmatpush.msra.mxu1 %v21995_v58  ;;  %4305 = vmatpush.msrb.mxu2 %v21996_v11  ;;  %v22004_v11 = vld [vmem:[#allocation30_spill] sm:$0xff]  ;;  %v22016_v58 = vld [vmem:[#allocation67_spill] sm:$0xff] }
 0x210   :  { %4325 = vmatpush.msrb.mxu3 %v21888_v51  ;;  %4186 = vmatpush.msra.mxu0 %v21997_v56 }
 0x211   :  { %4206 = vmatpush.msra.mxu1 %v21999_v36  ;;  %4306 = vmatpush.msrb.mxu2 %v22000_v48  ;;  %v22006_v36 = vld [vmem:[#allocation133_spill] sm:$0xff]  ;;  %v16430_v35 = vpop.f32.mrf.mxu2 }
 0x212   :  { %4326 = vmatpush.msrb.mxu3 %v21893_v29  ;;  %4187 = vmatpush.msra.mxu0 %v22002_v45  ;;  %v22007_v45 = vld [vmem:[#allocation83_spill] sm:$0xff]  ;;  %22008 = vst [vmem:[#allocation22_spill] sm:$0xff] %v16430_v35  ;;  %v22009_v48 = vld [vmem:[#allocation69_spill] sm:$0xff]  ;;  %v16434_v29 = vpop.f32.mrf.mxu3 }
 0x213   :  { %4207 = vmatpush.msra.mxu1 %v22003_v20  ;;  %12673 = vmatmul.msk.f32.vlgmr.msra.gmra.mxu0 %vm1300_vm4, %v16303_v38  ;;  %v22010_v20 = vld [vmem:[#allocation39_spill] sm:$0xff]  ;;  %22011 = vst [vmem:[#allocation130_spill] sm:$0xff] %v16434_v29  ;;  %v16444_v35 = vpop.f32.mrf.mxu1  ;;  %v22020_v29 = vld [vmem:[#allocation73_spill] sm:$0xff] }
 0x214   :  { %12674 = vmatmul.msk.f32.vlgmr.msra.gmra.mxu1 %vm1300_vm4, %v16303_v38  ;;  %4263 = vmatpush.msrb.mxu0 %v22004_v11  ;;  %v16440_v51 = vpop.f32.mrf.mxu0  ;;  %22018 = vst [vmem:[#allocation27_spill] sm:$0xff] %v16444_v35  ;;  %v22025_v35 = vld [vmem:[#allocation51_spill] sm:$0xff] }
 0x215   :  { %4283 = vmatpush.msrb.mxu1 %v22005_v39  ;;  %4307 = vmatpush.msrb.mxu2 %v22006_v36  ;;  %v22012_v39 = vld [vmem:[#allocation65_spill] sm:$0xff]  ;;  %v22013_v36 = vld [vmem:[#allocation86_spill] sm:$0xff]  ;;  %22015 = vst [vmem:[#allocation23_spill] sm:$0xff] %v16440_v51  ;;  %v16455_v51 = vld [vmem:[%s20949_s0 + $0x80] sm:$0xff] }
 0x216   :  { %4327 = vmatpush.msrb.mxu3 %v21897_v7  ;;  %12679 = vmatmul.msk.f32.vlgmr.msrb.gmra.mxu2 %vm1300_vm4, %v16303_v38  ;;  %v22014_v7 = vld [vmem:[#allocation45_spill] sm:$0xff]  ;;  %22024 = vst [vmem:[#allocation28_spill] sm:$0xff] %v16455_v51 }
 0x217   :  { %12680 = vmatmul.msk.f32.vlgmr.msrb.gmra.mxu3 %vm1300_vm4, %v16303_v38  ;;  %4383 = vmatpush.msra.mxu2 %v22007_v45  ;;  %v22017_v45 = vld [vmem:[#allocation88_spill] sm:$0xff] }
 0x218   :  { %4403 = vmatpush.msra.mxu3 %v22009_v48  ;;  %4264 = vmatpush.msrb.mxu0 %v22010_v20  ;;  %v22019_v48 = vld [vmem:[#allocation46_spill] sm:$0xff] }
 0x219   :  { %4284 = vmatpush.msrb.mxu1 %v22012_v39  ;;  %4384 = vmatpush.msra.mxu2 %v22013_v36  ;;  %v22021_v39 = vld [vmem:[#allocation92_spill] sm:$0xff]  ;;  %v22022_v36 = vld [vmem:[#allocation79_spill] sm:$0xff] }
 0x21a   :  { %4404 = vmatpush.msra.mxu3 %v21905_v57  ;;  %4265 = vmatpush.msrb.mxu0 %v22014_v7  ;;  %v22023_v57 = vld [vmem:[#allocation129_spill] sm:$0xff] }
 0x21b   :  { %4285 = vmatpush.msrb.mxu1 %v22016_v58  ;;  %4385 = vmatpush.msra.mxu2 %v22017_v45  ;;  %v22027_v45 = vld [vmem:[#allocation135_spill] sm:$0xff]  ;;  %v22033_v58 = vld [vmem:[#allocation57_spill] sm:$0xff] }
 0x21c   :  { %4405 = vmatpush.msra.mxu3 %v21910_v26  ;;  %4266 = vmatpush.msrb.mxu0 %v22019_v48  ;;  %v22032_v26 = vld [vmem:[#allocation84_spill] sm:$0xff] }
 0x21d   :  { %4286 = vmatpush.msrb.mxu1 %v22020_v29  ;;  %4386 = vmatpush.msra.mxu2 %v22021_v39  ;;  %v22026_v39 = vld [vmem:[#allocation82_spill] sm:$0xff]  ;;  %v22031_v29 = vld [vmem:[#allocation95_spill] sm:$0xff]  ;;  %v22040_v48 = vld [vmem:[#allocation108_spill] sm:$0xff] }
 0x21e   :  { %4406 = vmatpush.msra.mxu3 %v22022_v36  ;;  %4267 = vmatpush.msrb.mxu0 %v22023_v57  ;;  %v16465_v57 = vpop.f32.mrf.mxu2  ;;  %v22029_v36 = vld [vmem:[#allocation136_spill] sm:$0xff] }
 0x21f   :  { %4287 = vmatpush.msrb.mxu1 %v16455_v51  ;;  %12677 = vmatmul.msk.f32.vlgmr.msrb.gmra.mxu0 %vm1300_vm4, %v16303_v38  ;;  %22028 = vst [vmem:[#allocation32_spill] sm:$0xff] %v16465_v57  ;;  %v16470_v51 = vpop.f32.mrf.mxu3  ;;  %v22036_v57 = vld [vmem:[#allocation104_spill] sm:$0xff] }
 0x220   :  { %12678 = vmatmul.msk.f32.vlgmr.msrb.gmra.mxu1 %vm1300_vm4, %v16303_v38  ;;  %4343 = vmatpush.msra.mxu0 %v22025_v35  ;;  %22030 = vst [vmem:[#allocation30_spill] sm:$0xff] %v16470_v51  ;;  %v22038_v51 = vld [vmem:[#allocation59_spill] sm:$0xff] }
 0x221   :  { %4363 = vmatpush.msra.mxu1 %v22026_v39  ;;  %4387 = vmatpush.msra.mxu2 %v22027_v45  ;;  %v16477_v39 = vpop.f32.mrf.mxu0  ;;  %v22035_v45 = vld [vmem:[#allocation85_spill] sm:$0xff]  ;;  %v22039_v35 = vld [vmem:[#allocation87_spill] sm:$0xff] }
 0x222   :  { %4407 = vmatpush.msra.mxu3 %v22029_v36  ;;  %12683 = vmatmul.msk.f32.vlgmr.msra.gmra.mxu2 %vm1300_vm4, %v16303_v38  ;;  %22034 = vst [vmem:[#allocation133_spill] sm:$0xff] %v16477_v39  ;;  %v16481_v36 = vpop.f32.mrf.mxu1  ;;  %v22043_v39 = vld [vmem:[#allocation114_spill] sm:$0xff] }
 0x223   :  { %12684 = vmatmul.msk.f32.vlgmr.msra.gmra.mxu3 %vm1300_vm4, %v16303_v38  ;;  %4463 = vmatpush.msrb.mxu2 %v22031_v29  ;;  %22037 = vst [vmem:[#allocation39_spill] sm:$0xff] %v16481_v36  ;;  %v22041_v29 = vld [vmem:[#allocation64_spill] sm:$0xff] }
 0x224   :  { %4483 = vmatpush.msrb.mxu3 %v22032_v26  ;;  %4344 = vmatpush.msra.mxu0 %v22033_v58  ;;  %v22042_v26 = vld [vmem:[#allocation91_spill] sm:$0xff]  ;;  %v16496_v36 = vld [vmem:[%s20949_s0 + $0xa0] sm:$0xff] }
 0x225   :  { %4364 = vmatpush.msra.mxu1 %v22035_v45  ;;  %4464 = vmatpush.msrb.mxu2 %v22036_v57  ;;  %v22044_v57 = vld [vmem:[#allocation132_spill] sm:$0xff]  ;;  %22045 = vst [vmem:[#allocation45_spill] sm:$0xff] %v16496_v36 }
 0x226   :  { %4484 = vmatpush.msrb.mxu3 %v21932_v55  ;;  %4345 = vmatpush.msra.mxu0 %v22038_v51 }
 0x227   :  { %4365 = vmatpush.msra.mxu1 %v22039_v35  ;;  %4465 = vmatpush.msrb.mxu2 %v22040_v48  ;;  %v16501_v48 = vpop.f32.mrf.mxu2  ;;  %v22059_v35 = vld [vmem:[#allocation124_spill] sm:$0xff] }
 0x228   :  { %4485 = vmatpush.msrb.mxu3 %v21938_v12  ;;  %4346 = vmatpush.msra.mxu0 %v22041_v29  ;;  %22046 = vst [vmem:[#allocation129_spill] sm:$0xff] %v16501_v48  ;;  %v22055_v12 = vld [vmem:[#allocation103_spill] sm:$0xff] }
 0x229   :  { %4366 = vmatpush.msra.mxu1 %v22042_v26  ;;  %4466 = vmatpush.msrb.mxu2 %v22043_v39  ;;  %v22047_v39 = vld [vmem:[#allocation70_spill] sm:$0xff]  ;;  %v16512_v26 = vld [vmem:[%s20949_s0 + $0xc8] sm:$0xff]  ;;  %v16518_v48 = vpop.f32.mrf.mxu0 }
 0x22a   :  { %4486 = vmatpush.msrb.mxu3 %v21802_v30  ;;  %4347 = vmatpush.msra.mxu0 %v22044_v57  ;;  %v16506_v30 = vpop.f32.mrf.mxu3  ;;  %v22049_v57 = vld [vmem:[#allocation94_spill] sm:$0xff]  ;;  %22050 = vst [vmem:[#allocation136_spill] sm:$0xff] %v16512_v26 }
 0x22b   :  { %4367 = vmatpush.msra.mxu1 %v16496_v36  ;;  %12681 = vmatmul.msk.f32.vlgmr.msra.gmra.mxu0 %vm1300_vm4, %v16303_v38  ;;  %22048 = vst [vmem:[#allocation135_spill] sm:$0xff] %v16506_v30  ;;  %v22052_v30 = vld [vmem:[#allocation119_spill] sm:$0xff] }
 0x22c   :  { %12682 = vmatmul.msk.f32.vlgmr.msra.gmra.mxu1 %vm1300_vm4, %v16303_v38  ;;  %4423 = vmatpush.msrb.mxu0 %v22047_v39  ;;  %22051 = vst [vmem:[#allocation57_spill] sm:$0xff] %v16518_v48  ;;  %v22054_v36 = vld [vmem:[#allocation71_spill] sm:$0xff]  ;;  %v22058_v48 = vld [vmem:[#allocation106_spill] sm:$0xff] }
 0x22d   :  { %4443 = vmatpush.msrb.mxu1 %v22049_v57  ;;  %4467 = vmatpush.msrb.mxu2 %v16512_v26  ;;  %v16523_v57 = vpop.f32.mrf.mxu1  ;;  %v22056_v26 = vld [vmem:[#allocation122_spill] sm:$0xff] }
 0x22e   :  { %4487 = vmatpush.msrb.mxu3 %v16246_v42  ;;  %12687 = vmatmul.msk.f32.vlgmr.msrb.gmra.mxu2 %vm1300_vm4, %v16303_v38  ;;  %22053 = vst [vmem:[#allocation59_spill] sm:$0xff] %v16523_v57  ;;  %v22057_v42 = vld [vmem:[#allocation77_spill] sm:$0xff] }
 0x22f   :  { %12688 = vmatmul.msk.f32.vlgmr.msrb.gmra.mxu3 %vm1300_vm4, %v16303_v38  ;;  %4543 = vmatpush.msra.mxu2 %v22052_v30  ;;  %v22060_v30 = vld [vmem:[#allocation78_spill] sm:$0xff]  ;;  %v22061_v57 = vld [vmem:[#allocation113_spill] sm:$0xff]  ;;  %v16537_v55 = vpop.f32.mrf.mxu2 }
 0x230   :  { %4563 = vmatpush.msra.mxu3 %v21808_v25  ;;  %4424 = vmatpush.msrb.mxu0 %v22054_v36  ;;  %v22062_v25 = vld [vmem:[#allocation126_spill] sm:$0xff]  ;;  %22063 = vst [vmem:[#allocation64_spill] sm:$0xff] %v16537_v55  ;;  %v22068_v55 = vld [vmem:[#allocation81_spill] sm:$0xff] }
 0x231   :  { %4444 = vmatpush.msrb.mxu1 %v22055_v12  ;;  %4544 = vmatpush.msra.mxu2 %v22056_v26  ;;  %v22064_v26 = vld [vmem:[#allocation156_spill] sm:$0xff]  ;;  %v22066_v12 = vld [vmem:[#allocation115_spill] sm:$0xff] }
 0x232   :  { %4564 = vmatpush.msra.mxu3 %v21810_v27  ;;  %4425 = vmatpush.msrb.mxu0 %v22057_v42  ;;  %v16541_v27 = vpop.f32.mrf.mxu3 }
 0x233   :  { %4445 = vmatpush.msrb.mxu1 %v22058_v48  ;;  %4545 = vmatpush.msra.mxu2 %v22059_v35  ;;  %22065 = vst [vmem:[#allocation132_spill] sm:$0xff] %v16541_v27  ;;  %v16547_v35 = vld [vmem:[%s20949_s0 + $0xc0] sm:$0xff]  ;;  %v22070_v48 = vld [vmem:[#allocation118_spill] sm:$0xff] }
 0x234   :  { %4565 = vmatpush.msra.mxu3 %v21811_v53  ;;  %4426 = vmatpush.msrb.mxu0 %v22060_v30  ;;  %22067 = vst [vmem:[#allocation70_spill] sm:$0xff] %v16547_v35  ;;  %v22074_v27 = vld [vmem:[#allocation80_spill] sm:$0xff]  ;;  %v22077_v53 = vld [vmem:[#allocation121_spill] sm:$0xff] }
 0x235   :  { %4446 = vmatpush.msrb.mxu1 %v22061_v57  ;;  %4546 = vmatpush.msra.mxu2 %v22062_v25  ;;  %v16555_v25 = vpop.f32.mrf.mxu0  ;;  %v16560_v57 = vpop.f32.mrf.mxu1 }
 0x236   :  { %4566 = vmatpush.msra.mxu3 %v15496_v5  ;;  %4427 = vmatpush.msrb.mxu0 %v22064_v26  ;;  %22069 = vst [vmem:[#allocation71_spill] sm:$0xff] %v16555_v25  ;;  %v22071_v5 = vld [vmem:[#allocation139_spill] sm:$0xff]  ;;  %v22078_v25 = vunpack.i.h.bf16 %v16167_v32 }
 0x237   :  { %4447 = vmatpush.msrb.mxu1 %v16547_v35  ;;  %12685 = vmatmul.msk.f32.vlgmr.msrb.gmra.mxu0 %vm1300_vm4, %v16303_v38  ;;  %22072 = vst [vmem:[#allocation77_spill] sm:$0xff] %v16560_v57  ;;  %v16565_v35 = vld [vmem:[%s20949_s0 + $0xf0] sm:$0xff]  ;;  %v22076_v57 = vunpack.i.l.bf16 %v22066_v12 }
 0x238   :  { %12686 = vmatmul.msk.f32.vlgmr.msrb.gmra.mxu1 %vm1300_vm4, %v16303_v38  ;;  %4503 = vmatpush.msra.mxu0 %v22068_v55  ;;  %22073 = vst [vmem:[#allocation78_spill] sm:$0xff] %v16565_v35 }
 0x239   :  { %4523 = vmatpush.msra.mxu1 %v22070_v48  ;;  %4547 = vmatpush.msra.mxu2 %v22071_v5  ;;  %v22075_v5 = vunpack.i.h.bf16 %v22066_v12 }
 0x23a   :  { %4567 = vmatpush.msra.mxu3 %v16565_v35  ;;  %12691 = vmatmul.msk.f32.vlgmr.msra.gmra.mxu2 %vm1300_vm4, %v16303_v38  ;;  %v22082_v35 = vunpack.i.l.bf16 %v16180_v37 }
 0x23b   :  { %12692 = vmatmul.msk.f32.vlgmr.msra.gmra.mxu3 %vm1300_vm4, %v16303_v38  ;;  %4623 = vmatpush.msrb.mxu2 %v22074_v27  ;;  %v16579_v48 = vsel %vm1029_vm0, %v22076_v57, %v22075_v5  ;;  %v22079_v27 = vunpack.i.l.bf16 %v16167_v32  ;;  %v22080_v57 = vld [vmem:[#allocation123_spill] sm:$0xff]  ;;  %v22081_v5 = vunpack.i.h.bf16 %v16180_v37  ;;  %v22086_v32 = vunpack.i.h.bf16 %v16188_v18 }
 0x23c   :  { %4643 = vmatpush.msrb.mxu3 %v16579_v48  ;;  %4504 = vmatpush.msra.mxu0 %v21933_v43 }
 0x23d   :  { %4524 = vmatpush.msra.mxu1 %v22077_v53  ;;  %4624 = vmatpush.msrb.mxu2 %v16216_v24  ;;  %v16591_v45 = vsel %vm772_vm1, %v22079_v27, %v22078_v25  ;;  %v16602_v12 = vsel %vm515_vm2, %v22082_v35, %v22081_v5  ;;  %v16604_v24 = vpop.f32.mrf.mxu2  ;;  %v16608_v25 = vpop.f32.mrf.mxu3  ;;  %v22085_v27 = vld [vmem:[#allocation125_spill] sm:$0xff]  ;;  %v16626_v5 = vld [vmem:[%s20949_s0 + $0xe0] sm:$0xff] }
 0x23e   :  { %4644 = vmatpush.msrb.mxu3 %v16591_v45  ;;  %4505 = vmatpush.msra.mxu0 %v21940_v19  ;;  %22083 = vst [vmem:[#allocation156_spill] sm:$0xff] %v16604_v24  ;;  %v16621_v35 = vpop.f32.mrf.mxu0 }
 0x23f   :  { %4525 = vmatpush.msra.mxu1 %v22080_v57  ;;  %4625 = vmatpush.msrb.mxu2 %v16230_v0  ;;  %22084 = vst [vmem:[#allocation81_spill] sm:$0xff] %v16608_v25  ;;  %v22087_v0 = vunpack.i.l.bf16 %v16188_v18  ;;  %v22090_v18 = vld [vmem:[#allocation102_spill] sm:$0xff]  ;;  %v22091_v25 = vld [vmem:[#allocation137_spill] sm:$0xff] }
 0x240   :  { %4645 = vmatpush.msrb.mxu3 %v16602_v12  ;;  %4506 = vmatpush.msra.mxu0 %v21943_v21  ;;  %22088 = vst [vmem:[#allocation139_spill] sm:$0xff] %v16621_v35  ;;  %v22092_v35 = vld [vmem:[#allocation109_spill] sm:$0xff] }
 0x241   :  { %4526 = vmatpush.msra.mxu1 %v22085_v27  ;;  %4626 = vmatpush.msrb.mxu2 %v16240_v23  ;;  %v16617_v37 = vsel %vm258_vm3, %v22087_v0, %v22086_v32  ;;  %v16634_v0 = vld [vmem:[%s20949_s0 + $0x110] sm:$0xff]  ;;  %v16636_v32 = vpop.f32.mrf.mxu1 }
 0x242   :  { %4646 = vmatpush.msrb.mxu3 %v16617_v37  ;;  %4507 = vmatpush.msra.mxu0 %v16252_v52  ;;  %22089 = vst [vmem:[#allocation121_spill] sm:$0xff] %v16636_v32 }
 0x243   :  { %4527 = vmatpush.msra.mxu1 %v16626_v5  ;;  %12689 = vmatmul.msk.f32.vlgmr.msra.gmra.mxu0 %vm1300_vm4, %v16303_v38 }
 0x244   :  { %12690 = vmatmul.msk.f32.vlgmr.msra.gmra.mxu1 %vm1300_vm4, %v16303_v38  ;;  %4583 = vmatpush.msrb.mxu0 %v21947_v22 }
 0x245   :  { %4603 = vmatpush.msrb.mxu1 %v22090_v18  ;;  %4627 = vmatpush.msrb.mxu2 %v16260_v44  ;;  %v16653_v32 = vpop.f32.mrf.mxu2  ;;  %v16657_v24 = vpop.f32.mrf.mxu3 }
 0x246   :  { %4647 = vmatpush.msrb.mxu3 %v16634_v0  ;;  %12695 = vmatmul.msk.f32.vlgmr.msrb.gmra.mxu2 %vm1300_vm4, %v16303_v38 }
 0x247   :  { %12696 = vmatmul.msk.f32.vlgmr.msrb.gmra.mxu3 %vm1300_vm4, %v16303_v38  ;;  %4964 = vmatpush.msra.mxu2 %v21705_v47  ;;  %v16663_v47 = vpop.f32.mrf.mxu0 }
 0x248   :  { %4984 = vmatpush.msra.mxu3 %v21963_v34  ;;  %4584 = vmatpush.msrb.mxu0 %v21951_v9  ;;  %v22093_v34 = vld [vmem:[#allocation138_spill] sm:$0xff] }
 0x249   :  { %4604 = vmatpush.msrb.mxu1 %v22091_v25  ;;  %4965 = vmatpush.msra.mxu2 %v21822_v50  ;;  %v16667_v50 = vpop.f32.mrf.mxu1 }
 0x24a   :  { %4985 = vmatpush.msra.mxu3 %v21968_v33  ;;  %4585 = vmatpush.msrb.mxu0 %v21952_v4  ;;  %v22094_v33 = vld [vmem:[#allocation116_spill] sm:$0xff] }
 0x24b   :  { %4605 = vmatpush.msrb.mxu1 %v22092_v35  ;;  %4966 = vmatpush.msra.mxu2 %v21826_v63  ;;  %v16677_v63 = vld [vmem:[%s20950_s1 + $0x20] sm:$0xff] }
 0x24c   :  { %4986 = vmatpush.msra.mxu3 %v21972_v14  ;;  %4586 = vmatpush.msrb.mxu0 %v15501_v10  ;;  %v22096_v14 = vld [vmem:[#allocation20_spill] sm:$0xff] }
 0x24d   :  { %4606 = vmatpush.msrb.mxu1 %v22093_v34  ;;  %4967 = vmatpush.msra.mxu2 %v21830_v3  ;;  %v14142_v3 = vld [vmem:[%s20949_s0 + $0x38] sm:$0xff] }
 0x24e   :  { %4987 = vmatpush.msra.mxu3 %v21977_v17  ;;  %4587 = vmatpush.msrb.mxu0 %v21954_v1  ;;  %v14141_v17 = vld [vmem:[%s20949_s0 + $0x30] sm:$0xff]  ;;  %v16698_v1 = vpop.f32.mrf.mxu3 }
 0x24f   :  { %4607 = vmatpush.msrb.mxu1 %v22094_v33  ;;  %12693 = vmatmul.msk.f32.vlgmr.msrb.gmra.mxu0 %vm1300_vm4, %v16303_v38  ;;  %v22105_v33 = vld [vmem:[#allocation46_spill] sm:$0xff] }
 0x250   :  { %12694 = vmatmul.msk.f32.vlgmr.msrb.gmra.mxu1 %vm1300_vm4, %v16303_v38  ;;  %4924 = vmatpush.msra.mxu0 %v14646_v61  ;;  %v16694_v61 = vpop.f32.mrf.mxu2  ;;  %v16704_v38 = vpop.f32.mrf.mxu0 }
 0x251   :  { %4944 = vmatpush.msra.mxu1 %v21704_v54  ;;  %4968 = vmatpush.msra.mxu2 %v14141_v17  ;;  %v22095_v54 = vld [vmem:[#allocation18_spill] sm:$0xff]  ;;  %v14148_v17 = vld [vmem:[%s20949_s0 + $0x48] sm:$0xff] }
 0x252   :  { %4988 = vmatpush.msra.mxu3 %v14142_v3  ;;  %12700 = vmatmul.msk.f32.vlgmr.msra.gmra.mxu2 %vm1300_vm4, %v16677_v63  ;;  %v22106_v3 = vld [vmem:[#allocation42_spill] sm:$0xff] }
 0x253   :  { %12701 = vmatmul.msk.f32.vlgmr.msra.gmra.mxu3 %vm1300_vm4, %v16677_v63  ;;  %5044 = vmatpush.msrb.mxu2 %v21835_v13  ;;  %v16708_v13 = vpop.f32.mrf.mxu1 }
 0x254   :  { %5064 = vmatpush.msrb.mxu3 %v21984_v31  ;;  %4925 = vmatpush.msra.mxu0 %v21958_v8 }
 0x255   :  { %4945 = vmatpush.msra.mxu1 %v22095_v54  ;;  %5045 = vmatpush.msrb.mxu2 %v21844_v15  ;;  %v14143_v15 = vld [vmem:[%s20949_s0 + $0x20] sm:$0xff] }
 0x256   :  { %5065 = vmatpush.msrb.mxu3 %v21989_v59  ;;  %4926 = vmatpush.msra.mxu0 %v21959_v40  ;;  %v16737_v8 = vpop.f32.mrf.mxu3  ;;  %v22097_v40 = vld [vmem:[#allocation35_spill] sm:$0xff]  ;;  %v22099_v59 = vld [vmem:[#allocation36_spill] sm:$0xff] }
 0x257   :  { %4946 = vmatpush.msra.mxu1 %v22096_v14  ;;  %5046 = vmatpush.msrb.mxu2 %v21848_v28  ;;  %v14144_v28 = vld [vmem:[%s20949_s0 + $0x28] sm:$0xff]  ;;  %v22107_v14 = vld [vmem:[#allocation43_spill] sm:$0xff] }
 0x258   :  { %5066 = vmatpush.msrb.mxu3 %v21993_v62  ;;  %4927 = vmatpush.msra.mxu0 %v14760_v6  ;;  %v16730_v6 = vpop.f32.mrf.mxu2  ;;  %v22101_v62 = vld [vmem:[#allocation44_spill] sm:$0xff] }
 0x259   :  { %4947 = vmatpush.msra.mxu1 %v21715_v2  ;;  %5047 = vmatpush.msrb.mxu2 %v21851_v60  ;;  %v14145_v2 = vld [vmem:[%s20949_s0 + $0x50] sm:$0xff]  ;;  %v14146_v60 = vld [vmem:[%s20949_s0 + $0x58] sm:$0xff] }
 0x25a   :  { %5067 = vmatpush.msrb.mxu3 %v21997_v56  ;;  %4928 = vmatpush.msra.mxu0 %v14143_v15  ;;  %v22100_v56 = vld [vmem:[#allocation37_spill] sm:$0xff]  ;;  %v14149_v15 = vld [vmem:[%s20949_s0 + $0x70] sm:$0xff] }
 0x25b   :  { %4948 = vmatpush.msra.mxu1 %v14144_v28  ;;  %12698 = vmatmul.msk.f32.vlgmr.msra.gmra.mxu0 %vm1300_vm4, %v16677_v63  ;;  %v16748_v31 = vpop.f32.mrf.mxu1  ;;  %v14150_v28 = vld [vmem:[%s20949_s0 + $0x78] sm:$0xff] }
 0x25c   :  { %12699 = vmatmul.msk.f32.vlgmr.msra.gmra.mxu1 %vm1300_vm4, %v16677_v63  ;;  %5004 = vmatpush.msrb.mxu0 %v21965_v46  ;;  %v22098_v46 = vld [vmem:[#allocation38_spill] sm:$0xff] }
 0x25d   :  { %5024 = vmatpush.msrb.mxu1 %v21720_v41  ;;  %5048 = vmatpush.msrb.mxu2 %v14145_v2  ;;  %v16744_v41 = vpop.f32.mrf.mxu0 }
 0x25e   :  { %5068 = vmatpush.msrb.mxu3 %v14146_v60  ;;  %12704 = vmatmul.msk.f32.vlgmr.msrb.gmra.mxu2 %vm1300_vm4, %v16677_v63  ;;  %v16772_v54 = vpop.f32.mrf.mxu3  ;;  %v22108_v60 = vld [vmem:[#allocation50_spill] sm:$0xff] }
 0x25f   :  { %12705 = vmatmul.msk.f32.vlgmr.msrb.gmra.mxu3 %vm1300_vm4, %v16677_v63  ;;  %5124 = vmatpush.msra.mxu2 %v21858_v49  ;;  %v22103_v49 = vld [vmem:[#allocation41_spill] sm:$0xff] }
 0x260   :  { %5144 = vmatpush.msra.mxu3 %v22004_v11  ;;  %5005 = vmatpush.msrb.mxu0 %v21969_v16  ;;  %v22102_v11 = vld [vmem:[#allocation40_spill] sm:$0xff]  ;;  %v22104_v16 = vld [vmem:[#allocation47_spill] sm:$0xff] }
 0x261   :  { %5025 = vmatpush.msrb.mxu1 %v22097_v40  ;;  %5125 = vmatpush.msra.mxu2 %v22098_v46  ;;  %v22109_v46 = vld [vmem:[#allocation51_spill] sm:$0xff] }
 0x262   :  { %5145 = vmatpush.msra.mxu3 %v22010_v20  ;;  %5006 = vmatpush.msrb.mxu0 %v22099_v59  ;;  %v14147_v20 = vld [vmem:[%s20949_s0 + $0x40] sm:$0xff] }
 0x263   :  { %5026 = vmatpush.msrb.mxu1 %v22100_v56  ;;  %5126 = vmatpush.msra.mxu2 %v22101_v62  ;;  %v16788_v40 = vpop.f32.mrf.mxu1  ;;  %v22110_v59 = vld [vmem:[#allocation48_spill] sm:$0xff]  ;;  %v22111_v56 = vld [vmem:[#allocation49_spill] sm:$0xff] }
 0x264   :  { %5146 = vmatpush.msra.mxu3 %v22014_v7  ;;  %5007 = vmatpush.msrb.mxu0 %v22102_v11  ;;  %v16767_v7 = vpop.f32.mrf.mxu2  ;;  %v22112_v62 = vld [vmem:[#allocation56_spill] sm:$0xff] }
 0x265   :  { %5027 = vmatpush.msrb.mxu1 %v22103_v49  ;;  %5127 = vmatpush.msra.mxu2 %v22104_v16  ;;  %v16783_v2 = vpop.f32.mrf.mxu0  ;;  %v22113_v11 = vld [vmem:[#allocation52_spill] sm:$0xff]  ;;  %v22114_v49 = vld [vmem:[#allocation53_spill] sm:$0xff] }
 0x266   :  { %5147 = vmatpush.msra.mxu3 %v22105_v33  ;;  %5008 = vmatpush.msrb.mxu0 %v14147_v20  ;;  %v22115_v16 = vld [vmem:[#allocation60_spill] sm:$0xff]  ;;  %v22116_v33 = vld [vmem:[#allocation54_spill] sm:$0xff]  ;;  %v22117_v20 = vld [vmem:[#allocation55_spill] sm:$0xff] }
 0x267   :  { %5028 = vmatpush.msrb.mxu1 %v14148_v17  ;;  %12702 = vmatmul.msk.f32.vlgmr.msrb.gmra.mxu0 %vm1300_vm4, %v16677_v63  ;;  %v22118_v17 = vld [vmem:[#allocation63_spill] sm:$0xff] }
 0x268   :  { %12703 = vmatmul.msk.f32.vlgmr.msrb.gmra.mxu1 %vm1300_vm4, %v16677_v63  ;;  %5084 = vmatpush.msra.mxu0 %v22106_v3 }
 0x269   :  { %5104 = vmatpush.msra.mxu1 %v22107_v14  ;;  %5128 = vmatpush.msra.mxu2 %v14149_v15  ;;  %v22120_v14 = vld [vmem:[#allocation25_spill] sm:$0xff] }
 0x26a   :  { %5148 = vmatpush.msra.mxu3 %v14150_v28  ;;  %12708 = vmatmul.msk.f32.vlgmr.msra.gmra.mxu2 %vm1300_vm4, %v16677_v63  ;;  %v14151_v15 = vld [vmem:[%s20949_s0 + $0x68] sm:$0xff] }
 0x26b   :  { %12709 = vmatmul.msk.f32.vlgmr.msra.gmra.mxu3 %vm1300_vm4, %v16677_v63  ;;  %5204 = vmatpush.msrb.mxu2 %v22108_v60  ;;  %v14152_v60 = vld [vmem:[%s20949_s0 + $0x90] sm:$0xff] }
 0x26c   :  { %5224 = vmatpush.msrb.mxu3 %v22109_v46  ;;  %5085 = vmatpush.msra.mxu0 %v22110_v59  ;;  %v16802_v3 = vpop.f32.mrf.mxu2  ;;  %v16822_v46 = vpop.f32.mrf.mxu1  ;;  %v14153_v59 = vld [vmem:[%s20949_s0 + $0x98] sm:$0xff] }
 0x26d   :  { %5105 = vmatpush.msra.mxu1 %v22111_v56  ;;  %5205 = vmatpush.msrb.mxu2 %v22112_v62  ;;  %22119 = vst [vmem:[#allocation123_spill] sm:$0xff] %v16802_v3  ;;  %v16816_v28 = vpop.f32.mrf.mxu0  ;;  %v22124_v56 = vld [vmem:[#allocation69_spill] sm:$0xff]  ;;  %v22194_v3 = vld [vmem:[#allocation163_spill] sm:$0xff] }
 0x26e   :  { %5225 = vmatpush.msrb.mxu3 %v22033_v58  ;;  %5086 = vmatpush.msra.mxu0 %v22113_v11  ;;  %v16806_v58 = vpop.f32.mrf.mxu3  ;;  %v22125_v62 = vld [vmem:[#allocation65_spill] sm:$0xff]  ;;  %v22126_v11 = vld [vmem:[#allocation66_spill] sm:$0xff] }
 0x26f   :  { %5106 = vmatpush.msra.mxu1 %v22114_v49  ;;  %5206 = vmatpush.msrb.mxu2 %v22115_v16  ;;  %22121 = vst [vmem:[#allocation125_spill] sm:$0xff] %v16806_v58  ;;  %v22127_v49 = vld [vmem:[#allocation72_spill] sm:$0xff]  ;;  %v22128_v16 = vld [vmem:[#allocation67_spill] sm:$0xff] }
 0x270   :  { %5226 = vmatpush.msrb.mxu3 %v22038_v51  ;;  %5087 = vmatpush.msra.mxu0 %v22116_v33  ;;  %v22122_v51 = vld [vmem:[#allocation61_spill] sm:$0xff]  ;;  %v22129_v33 = vld [vmem:[#allocation68_spill] sm:$0xff] }
 0x271   :  { %5107 = vmatpush.msra.mxu1 %v22117_v20  ;;  %5207 = vmatpush.msrb.mxu2 %v22118_v17  ;;  %v22130_v20 = vld [vmem:[#allocation76_spill] sm:$0xff] }
 0x272   :  { %5227 = vmatpush.msrb.mxu3 %v22041_v29  ;;  %5088 = vmatpush.msra.mxu0 %v22120_v14  ;;  %v22123_v29 = vld [vmem:[#allocation62_spill] sm:$0xff]  ;;  %v22132_v14 = vld [vmem:[#allocation73_spill] sm:$0xff] }
 0x273   :  { %5108 = vmatpush.msra.mxu1 %v14151_v15  ;;  %12706 = vmatmul.msk.f32.vlgmr.msra.gmra.mxu0 %vm1300_vm4, %v16677_v63  ;;  %v22134_v15 = vld [vmem:[#allocation74_spill] sm:$0xff] }
 0x274   :  { %12707 = vmatmul.msk.f32.vlgmr.msra.gmra.mxu1 %vm1300_vm4, %v16677_v63  ;;  %5164 = vmatpush.msrb.mxu0 %v22122_v51  ;;  %v16840_v17 = vpop.f32.mrf.mxu2  ;;  %v22135_v51 = vld [vmem:[#allocation79_spill] sm:$0xff] }
 0x275   :  { %5184 = vmatpush.msrb.mxu1 %v22123_v29  ;;  %5208 = vmatpush.msrb.mxu2 %v14152_v60  ;;  %22131 = vst [vmem:[#allocation102_spill] sm:$0xff] %v16840_v17  ;;  %v16850_v29 = vpop.f32.mrf.mxu0  ;;  %v14154_v60 = vld [vmem:[%s20949_s0 + $0x88] sm:$0xff] }
 0x276   :  { %5228 = vmatpush.msrb.mxu3 %v14153_v59  ;;  %12712 = vmatmul.msk.f32.vlgmr.msrb.gmra.mxu2 %vm1300_vm4, %v16677_v63  ;;  %22137 = vst [vmem:[#allocation109_spill] sm:$0xff] %v16850_v29  ;;  %v22139_v59 = vld [vmem:[#allocation82_spill] sm:$0xff]  ;;  %v22191_v29 = vld [vmem:[#allocation64_spill] sm:$0xff] }
 0x277   :  { %12713 = vmatmul.msk.f32.vlgmr.msrb.gmra.mxu3 %vm1300_vm4, %v16677_v63  ;;  %5284 = vmatpush.msra.mxu2 %v22124_v56  ;;  %v14155_v56 = vld [vmem:[%s20949_s0 + $0xb0] sm:$0xff] }
 0x278   :  { %5304 = vmatpush.msra.mxu3 %v22047_v39  ;;  %5165 = vmatpush.msrb.mxu0 %v22125_v62  ;;  %v16844_v39 = vpop.f32.mrf.mxu3  ;;  %v22141_v62 = vld [vmem:[#allocation84_spill] sm:$0xff] }
 0x279   :  { %5185 = vmatpush.msrb.mxu1 %v22126_v11  ;;  %5285 = vmatpush.msra.mxu2 %v22127_v49  ;;  %22133 = vst [vmem:[#allocation137_spill] sm:$0xff] %v16844_v39  ;;  %v22142_v11 = vld [vmem:[#allocation85_spill] sm:$0xff]  ;;  %v22143_v49 = vld [vmem:[#allocation86_spill] sm:$0xff] }
 0x27a   :  { %5305 = vmatpush.msra.mxu3 %v22054_v36  ;;  %5166 = vmatpush.msrb.mxu0 %v22128_v16  ;;  %v22136_v36 = vld [vmem:[#allocation28_spill] sm:$0xff]  ;;  %v22144_v16 = vld [vmem:[#allocation89_spill] sm:$0xff]  ;;  %v22189_v39 = vld [vmem:[#allocation142_spill] sm:$0xff] }
 0x27b   :  { %5186 = vmatpush.msrb.mxu1 %v22129_v33  ;;  %5286 = vmatpush.msra.mxu2 %v22130_v20 }
 0x27c   :  { %5306 = vmatpush.msra.mxu3 %v22057_v42  ;;  %5167 = vmatpush.msrb.mxu0 %v22132_v14  ;;  %v16857_v42 = vpop.f32.mrf.mxu1  ;;  %v16876_v33 = vpop.f32.mrf.mxu2  ;;  %v22146_v14 = vld [vmem:[#allocation88_spill] sm:$0xff] }
 0x27d   :  { %5187 = vmatpush.msrb.mxu1 %v22134_v15  ;;  %5287 = vmatpush.msra.mxu2 %v22135_v51  ;;  %22138 = vst [vmem:[#allocation138_spill] sm:$0xff] %v16857_v42  ;;  %v22147_v15 = vld [vmem:[#allocation96_spill] sm:$0xff]  ;;  %v16886_v51 = vpop.f32.mrf.mxu0 }
 0x27e   :  { %5307 = vmatpush.msra.mxu3 %v22060_v30  ;;  %5168 = vmatpush.msrb.mxu0 %v22136_v36  ;;  %v22140_v30 = vld [vmem:[#allocation83_spill] sm:$0xff]  ;;  %v22149_v36 = vld [vmem:[#allocation92_spill] sm:$0xff] }
 0x27f   :  { %5188 = vmatpush.msrb.mxu1 %v14154_v60  ;;  %12710 = vmatmul.msk.f32.vlgmr.msrb.gmra.mxu0 %vm1300_vm4, %v16677_v63  ;;  %v22150_v60 = vld [vmem:[#allocation98_spill] sm:$0xff] }
 0x280   :  { %12711 = vmatmul.msk.f32.vlgmr.msrb.gmra.mxu1 %vm1300_vm4, %v16677_v63  ;;  %5244 = vmatpush.msra.mxu0 %v22139_v59  ;;  %v16880_v20 = vpop.f32.mrf.mxu3 }
 0x281   :  { %5264 = vmatpush.msra.mxu1 %v22140_v30  ;;  %5288 = vmatpush.msra.mxu2 %v14155_v56  ;;  %v14156_v30 = vld [vmem:[%s20949_s0 + $0xa8] sm:$0xff]  ;;  %v22153_v56 = vld [vmem:[#allocation95_spill] sm:$0xff] }
 0x282   :  { %5308 = vmatpush.msra.mxu3 %v22064_v26  ;;  %12716 = vmatmul.msk.f32.vlgmr.msra.gmra.mxu2 %vm1300_vm4, %v16677_v63  ;;  %v22145_v26 = vld [vmem:[#allocation87_spill] sm:$0xff] }
 0x283   :  { %12717 = vmatmul.msk.f32.vlgmr.msra.gmra.mxu3 %vm1300_vm4, %v16677_v63  ;;  %5364 = vmatpush.msrb.mxu2 %v22141_v62  ;;  %v22154_v62 = vld [vmem:[#allocation99_spill] sm:$0xff] }
 0x284   :  { %5384 = vmatpush.msrb.mxu3 %v22068_v55  ;;  %5245 = vmatpush.msra.mxu0 %v22142_v11  ;;  %v22148_v55 = vld [vmem:[#allocation91_spill] sm:$0xff]  ;;  %v16890_v59 = vpop.f32.mrf.mxu1  ;;  %v16910_v11 = vpop.f32.mrf.mxu2 }
 0x285   :  { %5265 = vmatpush.msra.mxu1 %v22143_v49  ;;  %5365 = vmatpush.msrb.mxu2 %v22144_v16  ;;  %v22156_v49 = vld [vmem:[#allocation103_spill] sm:$0xff] }
 0x286   :  { %5385 = vmatpush.msrb.mxu3 %v21933_v43  ;;  %5246 = vmatpush.msra.mxu0 %v22145_v26  ;;  %v22151_v43 = vld [vmem:[#allocation45_spill] sm:$0xff]  ;;  %v22157_v26 = vld [vmem:[#allocation104_spill] sm:$0xff] }
 0x287   :  { %5266 = vmatpush.msra.mxu1 %v22146_v14  ;;  %5366 = vmatpush.msrb.mxu2 %v22147_v15  ;;  %v22158_v14 = vld [vmem:[#allocation110_spill] sm:$0xff]  ;;  %v16920_v15 = vpop.f32.mrf.mxu0 }
 0x288   :  { %5386 = vmatpush.msrb.mxu3 %v21940_v19  ;;  %5247 = vmatpush.msra.mxu0 %v22148_v55  ;;  %v22152_v19 = vld [vmem:[#allocation94_spill] sm:$0xff]  ;;  %v16914_v16 = vpop.f32.mrf.mxu3  ;;  %v22160_v55 = vld [vmem:[#allocation108_spill] sm:$0xff] }
 0x289   :  { %5267 = vmatpush.msra.mxu1 %v22149_v36  ;;  %5367 = vmatpush.msrb.mxu2 %v22150_v60  ;;  %v22161_v36 = vld [vmem:[#allocation117_spill] sm:$0xff] }
 0x28a   :  { %5387 = vmatpush.msrb.mxu3 %v21943_v21  ;;  %5248 = vmatpush.msra.mxu0 %v22151_v43  ;;  %v22155_v21 = vld [vmem:[#allocation105_spill] sm:$0xff]  ;;  %v22163_v43 = vld [vmem:[#allocation114_spill] sm:$0xff] }
 0x28b   :  { %5268 = vmatpush.msra.mxu1 %v14156_v30  ;;  %12714 = vmatmul.msk.f32.vlgmr.msra.gmra.mxu0 %vm1300_vm4, %v16677_v63  ;;  %v22164_v30 = vld [vmem:[#allocation120_spill] sm:$0xff] }
 0x28c   :  { %12715 = vmatmul.msk.f32.vlgmr.msra.gmra.mxu1 %vm1300_vm4, %v16677_v63  ;;  %5324 = vmatpush.msrb.mxu0 %v22152_v19  ;;  %v16924_v60 = vpop.f32.mrf.mxu1  ;;  %v22166_v19 = vld [vmem:[#allocation136_spill] sm:$0xff] }
 0x28d   :  { %5344 = vmatpush.msrb.mxu1 %v22153_v56  ;;  %5368 = vmatpush.msrb.mxu2 %v22154_v62  ;;  %v22167_v56 = vld [vmem:[#allocation118_spill] sm:$0xff] }
 0x28e   :  { %5388 = vmatpush.msrb.mxu3 %v16252_v52  ;;  %12720 = vmatmul.msk.f32.vlgmr.msrb.gmra.mxu2 %vm1300_vm4, %v16677_v63  ;;  %v22159_v52 = vld [vmem:[#allocation106_spill] sm:$0xff] }
 0x28f   :  { %12721 = vmatmul.msk.f32.vlgmr.msrb.gmra.mxu3 %vm1300_vm4, %v16677_v63  ;;  %5444 = vmatpush.msra.mxu2 %v22155_v21  ;;  %v22169_v62 = vld [vmem:[#allocation78_spill] sm:$0xff]  ;;  %v16940_v21 = vpop.f32.mrf.mxu2 }
 0x290   :  { %5464 = vmatpush.msra.mxu3 %v21947_v22  ;;  %5325 = vmatpush.msrb.mxu0 %v22156_v49  ;;  %v22162_v22 = vld [vmem:[#allocation113_spill] sm:$0xff]  ;;  %v16947_v49 = vpop.f32.mrf.mxu3 }
 0x291   :  { %5345 = vmatpush.msrb.mxu1 %v22157_v26  ;;  %5445 = vmatpush.msra.mxu2 %v22158_v14  ;;  %v22170_v26 = vld [vmem:[#allocation122_spill] sm:$0xff]  ;;  %v16954_v14 = vpop.f32.mrf.mxu0 }
 0x292   :  { %5465 = vmatpush.msra.mxu3 %v21951_v9  ;;  %5326 = vmatpush.msrb.mxu0 %v22159_v52  ;;  %v22165_v9 = vld [vmem:[#allocation70_spill] sm:$0xff] }
 0x293   :  { %5346 = vmatpush.msrb.mxu1 %v22160_v55  ;;  %5446 = vmatpush.msra.mxu2 %v22161_v36  ;;  %v22171_v55 = vld [vmem:[#allocation124_spill] sm:$0xff]  ;;  %v22172_v36 = vld [vmem:[#allocation126_spill] sm:$0xff] }
 0x294   :  { %5466 = vmatpush.msra.mxu3 %v21952_v4  ;;  %5327 = vmatpush.msrb.mxu0 %v22162_v22  ;;  %v22168_v4 = vld [vmem:[#allocation119_spill] sm:$0xff]  ;;  %v16957_v52 = vpop.f32.mrf.mxu1 }
 0x295   :  { %5347 = vmatpush.msrb.mxu1 %v22163_v43  ;;  %5447 = vmatpush.msra.mxu2 %v22164_v30 }
 0x296   :  { %5467 = vmatpush.msra.mxu3 %v15501_v10  ;;  %5328 = vmatpush.msrb.mxu0 %v22165_v9  ;;  %v14157_v10 = vld [vmem:[%s20949_s0 + $0xf8] sm:$0xff] }
 0x297   :  { %5348 = vmatpush.msrb.mxu1 %v22166_v19  ;;  %12718 = vmatmul.msk.f32.vlgmr.msrb.gmra.mxu0 %vm1300_vm4, %v16677_v63 }
 0x298   :  { %12719 = vmatmul.msk.f32.vlgmr.msrb.gmra.mxu1 %vm1300_vm4, %v16677_v63  ;;  %5404 = vmatpush.msra.mxu0 %v22167_v56  ;;  %v17024_v56 = vpop.permute.xlu1 %1946 }
 0x299   :  { %5424 = vmatpush.msra.mxu1 %v22168_v4  ;;  %5448 = vmatpush.msra.mxu2 %v22169_v62  ;;  %22180 = vst [vmem:[#allocation38_spill] sm:$0xff] %v17024_v56  ;;  %v1949_v42 = vadd.f32 %v17024_v56, %v22189_v39 }
 0x29a   :  { %5468 = vmatpush.msra.mxu3 %v14157_v10  ;;  %12724 = vmatmul.msk.f32.vlgmr.msra.gmra.mxu2 %vm1300_vm4, %v16677_v63  ;;  %v22183_v10 = vld [vmem:[#allocation140_spill] sm:$0xff] }
 0x29b   :  { %12725 = vmatmul.msk.f32.vlgmr.msra.gmra.mxu3 %vm1300_vm4, %v16677_v63  ;;  %5524 = vmatpush.msrb.mxu2 %v16579_v48  ;;  %v16973_v48 = vpop.f32.mrf.mxu2 }
 0x29c   :  { %5405 = vmatpush.msra.mxu0 %v22077_v53  ;;  %5425 = vmatpush.msra.mxu1 %v22170_v26  ;;  %v14158_v53 = vld [vmem:[%s20949_s0 + $0xe8] sm:$0xff]  ;;  %v1951_v26 = vadd.f32 %v17024_v56, %v22183_v10  ;;  %v22192_v10 = vld [vmem:[#allocation162_spill] sm:$0xff] }
 0x29d   :  { %5525 = vmatpush.msrb.mxu2 %v16591_v45  ;;  %v16983_v45 = vpop.f32.mrf.mxu0  ;;  %v2850_v58 = vadd.f32 %v22192_v10, %v1949_v42  ;;  %v22200_v10 = vld [vmem:[#allocation100_spill] sm:$0xff] }
 0x29e   :  { %5406 = vmatpush.msra.mxu0 %v22080_v57  ;;  %5426 = vmatpush.msra.mxu1 %v22171_v55  ;;  %v22174_v57 = vld [vmem:[#allocation90_spill] sm:$0xff] }
 0x29f   :  { %5526 = vmatpush.msrb.mxu2 %v16602_v12  ;;  %v22173_v12 = vld [vmem:[#allocation80_spill] sm:$0xff] }
 0x2a0   :  { %5407 = vmatpush.msra.mxu0 %v22085_v27  ;;  %5427 = vmatpush.msra.mxu1 %v22172_v36  ;;  %v16986_v27 = vpop.f32.mrf.mxu1  ;;  %v22185_v36 = vld [vmem:[#allocation141_spill] sm:$0xff] }
 0x2a1   :  { %5527 = vmatpush.msrb.mxu2 %v16617_v37  ;;  %v16977_v37 = vpop.f32.mrf.mxu3 }
 0x2a2   :  { %5408 = vmatpush.msra.mxu0 %v16626_v5  ;;  %5428 = vmatpush.msra.mxu1 %v14158_v53  ;;  %v14159_v5 = vld [vmem:[%s20949_s0 + $0x100] sm:$0xff]  ;;  %v1952_v53 = vadd.f32 %v17024_v56, %v22185_v36 }
 0x2a3   :  { %12722 = vmatmul.msk.f32.vlgmr.msra.gmra.mxu0 %vm1300_vm4, %v16677_v63  ;;  %12723 = vmatmul.msk.f32.vlgmr.msra.gmra.mxu1 %vm1300_vm4, %v16677_v63 }
 0x2a4   :  { %5484 = vmatpush.msrb.mxu0 %v22090_v18  ;;  %5504 = vmatpush.msrb.mxu1 %v22173_v12  ;;  %v22175_v18 = vld [vmem:[#allocation97_spill] sm:$0xff] }
 0x2a5   :  { %5528 = vmatpush.msrb.mxu2 %v16634_v0 }
 0x2a6   :  { %12728 = vmatmul.msk.f32.vlgmr.msrb.gmra.mxu2 %vm1300_vm4, %v16677_v63  ;;  %5485 = vmatpush.msrb.mxu0 %v22091_v25  ;;  %v16998_v25 = vpop.f32.mrf.mxu2 }
 0x2a7   :  { %5505 = vmatpush.msrb.mxu1 %v22174_v57  ;;  %v22187_v57 = vld [vmem:[#allocation161_spill] sm:$0xff] }
 0x2a8   :  { %5486 = vmatpush.msrb.mxu0 %v22092_v35  ;;  %v17004_v0 = vpop.f32.mrf.mxu0 }
 0x2a9   :  { %5506 = vmatpush.msrb.mxu1 %v22175_v18  ;;  %v17002_v35 = vpop.f32.mrf.mxu3  ;;  %v2852_v18 = vadd.f32 %v22187_v57, %v1951_v26 }
 0x2aa   :  { %5487 = vmatpush.msrb.mxu0 %v22093_v34 }
 0x2ab   :  { %5507 = vmatpush.msrb.mxu1 %v16240_v23  ;;  %v17006_v23 = vpop.f32.mrf.mxu1 }
 0x2ac   :  { %5488 = vmatpush.msrb.mxu0 %v14159_v5  ;;  %v22188_v5 = vld [vmem:[#allocation107_spill] sm:$0xff] }
 0x2ad   :  { %5508 = vmatpush.msrb.mxu1 %v16260_v44  ;;  %12726 = vmatmul.msk.f32.vlgmr.msrb.gmra.mxu0 %vm1300_vm4, %v16677_v63  ;;  %v2853_v17 = vadd.f32 %v22188_v5, %v1952_v53  ;;  %v22196_v5 = vld [vmem:[#allocation77_spill] sm:$0xff] }
 0x2ae   :  { %12727 = vmatmul.msk.f32.vlgmr.msrb.gmra.mxu1 %vm1300_vm4, %v16677_v63 }
 0x2b1   :  { %v17008_v34 = vpop.f32.mrf.mxu2 }
 0x2b2   :  { %v17010_v22 = vpop.f32.mrf.mxu3 }
 0x2b4   :  { %v17012_v43 = vpop.f32.mrf.mxu0 }
 0x2b5   :  { %v17014_v44 = vpop.f32.mrf.mxu1 }
 0x2bd   :  { %v17016_v30 = vpop.f32.mrf.mxu2 }
 0x2be   :  { %22176 = vst [vmem:[#allocation116_spill] sm:$0xff] %v17016_v30  ;;  %v17018_v9 = vpop.f32.mrf.mxu3 }
 0x2bf   :  { %22177 = vst [vmem:[#allocation18_spill] sm:$0xff] %v17018_v9  ;;  %v3753_v9 = vadd.f32 %v22191_v29, %v2852_v18 }
 0x2c0   :  { %v17020_v19 = vpop.f32.mrf.mxu0 }
 0x2c1   :  { %22178 = vst [vmem:[#allocation20_spill] sm:$0xff] %v17020_v19  ;;  %v17022_v63 = vpop.f32.mrf.mxu1 }
 0x2c2   :  { %22179 = vst [vmem:[#allocation35_spill] sm:$0xff] %v17022_v63  ;;  %v22195_v63 = vld [vmem:[#allocation71_spill] sm:$0xff] }
 0x2c3   :  { %v3751_v26 = vadd.f32 %v22195_v63, %v2850_v58  ;;  %v22198_v63 = vld [vmem:[#allocation144_spill] sm:$0xff] }
 0x2c5   :  { %v4652_v29 = vadd.f32 %v16886_v51, %v3751_v26  ;;  %v22201_v26 = vld [vmem:[#allocation111_spill] sm:$0xff] }
 0x2c9   :  { %v17026_v4 = vpop.f32.mrf.mxu2 }
 0x2ca   :  { %22181 = vst [vmem:[#allocation36_spill] sm:$0xff] %v17026_v4  ;;  %v17028_v62 = vpop.f32.mrf.mxu3  ;;  %v22190_v4 = vld [vmem:[#allocation143_spill] sm:$0xff] }
 0x2cb   :  { %22182 = vst [vmem:[#allocation37_spill] sm:$0xff] %v17028_v62  ;;  %v1950_v62 = vadd.f32 %v17024_v56, %v22190_v4 }
 0x2cc   :  { %v17032_v55 = vpop.f32.mrf.mxu0 }
 0x2cd   :  { %22184 = vst [vmem:[#allocation44_spill] sm:$0xff] %v17032_v55  ;;  %v17036_v12 = vpop.f32.mrf.mxu1  ;;  %v22193_v55 = vld [vmem:[#allocation132_spill] sm:$0xff]  ;;  %v2851_v36 = vadd.f32 %v22194_v3, %v1950_v62  ;;  %v1955_v62 = vadd.f32 %v17024_v56, %v22198_v63 }
 0x2ce   :  { %22186 = vst [vmem:[#allocation40_spill] sm:$0xff] %v17036_v12  ;;  %v3754_v30 = vadd.f32 %v22193_v55, %v2853_v17  ;;  %v4654_v12 = vadd.f32 %v16876_v33, %v3753_v9  ;;  %v22197_v9 = vld [vmem:[#allocation10_spill] sm:$0xff]  ;;  %v22199_v55 = vld [vmem:[#allocation13_spill] sm:$0xff] }
 0x2cf   :  { %v3752_v39 = vadd.f32 %v22196_v5, %v2851_v36 }
 0x2d0   :  { %v4655_v53 = vadd.f32 %v16880_v20, %v3754_v30 }
 0x2d1   :  { %v4653_v17 = vadd.f32 %v16890_v59, %v3752_v39  ;;  %v1953_v59 = vadd.f32 %v17024_v56, %v22197_v9  ;;  %v22203_v39 = vld [vmem:[#allocation139_spill] sm:$0xff] }
 0x2d3   :  { %v2854_v36 = vadd.f32 %v22200_v10, %v1953_v59 }
 0x2d5   :  { %v4970_v57 = vpop.f32.mrf.mxu2 }
 0x2d6   :  { %v17052_v19 = vadd.f32 %v4970_v57, %v4654_v12  ;;  %v4990_v4 = vpop.f32.mrf.mxu3  ;;  %v1954_v12 = vadd.f32 %v17024_v56, %v22199_v55  ;;  %v22202_v57 = vld [vmem:[#allocation164_spill] sm:$0xff] }
 0x2d7   :  { %v17055_v18 = vadd.f32 %v4990_v4, %v4655_v53  ;;  %v2856_v53 = vadd.f32 %v22201_v26, %v1955_v62  ;;  %v3755_v4 = vadd.f32 %v22203_v39, %v2854_v36  ;;  %v22207_v62 = vld [vmem:[#allocation112_spill] sm:$0xff] }
 0x2d8   :  { %v4930_v42 = vpop.f32.mrf.mxu0  ;;  %v2855_v5 = vadd.f32 %v22202_v57, %v1954_v12  ;;  %v22208_v57 = vld [vmem:[#allocation81_spill] sm:$0xff] }
 0x2d9   :  { %v17058_v3 = vadd.f32 %v4930_v42, %v4652_v29  ;;  %v4950_v33 = vpop.f32.mrf.mxu1  ;;  %v13342_v58 = vpack.i.bf16 %v17055_v18, %v17052_v19  ;;  %v22204_v29 = vld [vmem:[#allocation156_spill] sm:$0xff]  ;;  %v22205_v42 = vld [vmem:[#allocation121_spill] sm:$0xff]  ;;  %v4656_v63 = vadd.f32 %v16920_v15, %v3755_v4  ;;  %v22209_v4 = vld [vmem:[#allocation146_spill] sm:$0xff] }
 0x2da   :  { %v17062_v20 = vadd.f32 %v4950_v33, %v4653_v17  ;;  %v3757_v17 = vadd.f32 %v22204_v29, %v2856_v53  ;;  %v3756_v33 = vadd.f32 %v22205_v42, %v2855_v5  ;;  %v1957_v29 = vadd.f32 %v17024_v56, %v22209_v4  ;;  %v22210_v42 = vld [vmem:[#allocation24_spill] sm:$0xff]  ;;  %v22216_v4 = vld [vmem:[#allocation19_spill] sm:$0xff] }
 0x2db   :  { %13343 = vrot.lane.b32.xlu1 %v13342_v58, %s14164_s13  ;;  %v22206_v58 = vld [vmem:[#allocation145_spill] sm:$0xff] }
 0x2dc   :  { %v13337_v30 = vpack.i.bf16 %v17062_v20, %v17052_v19  ;;  %v13332_v51 = vpack.i.bf16 %v17062_v20, %v17058_v3  ;;  %v1956_v9 = vadd.f32 %v17024_v56, %v22206_v58  ;;  %v4657_v59 = vadd.f32 %v16924_v60, %v3756_v33  ;;  %v22211_v58 = vld [vmem:[#allocation165_spill] sm:$0xff] }
 0x2dd   :  { %v1958_v33 = vadd.f32 %v17024_v56, %v22210_v42 }
 0x2de   :  { %13338 = vrot.lane.b32.xlu0 %v13337_v30, %s14164_s13  ;;  %13333 = vrot.lane.b32.xlu2 %v13332_v51, %s14164_s13  ;;  %v4658_v51 = vadd.f32 %v16910_v11, %v3757_v17  ;;  %v2857_v10 = vadd.f32 %v22207_v62, %v1956_v9  ;;  %v2858_v9 = vadd.f32 %v22211_v58, %v1957_v29 }
 0x2e0   :  { %v3758_v5 = vadd.f32 %v22208_v57, %v2857_v10  ;;  %v22214_v10 = vld [vmem:[#allocation21_spill] sm:$0xff] }
 0x2e1   :  { %v5050_v30 = vpop.f32.mrf.mxu2  ;;  %v22215_v57 = vld [vmem:[#allocation17_spill] sm:$0xff] }
 0x2e2   :  { %v17091_v26 = vadd.f32 %v5050_v30, %v4658_v51  ;;  %v5070_v39 = vpop.f32.mrf.mxu3  ;;  %v4659_v17 = vadd.f32 %v16914_v16, %v3758_v5  ;;  %v22212_v30 = vld [vmem:[#allocation9_spill] sm:$0xff]  ;;  %v3759_v16 = vadd.f32 %v16663_v47, %v2858_v9 }
 0x2e3   :  { %v2859_v51 = vadd.f32 %v22212_v30, %v1958_v33 }
 0x2e4   :  { %v5010_v55 = vpop.f32.mrf.mxu0 }
 0x2e5   :  { %v17089_v12 = vadd.f32 %v5010_v55, %v4656_v63  ;;  %v5030_v36 = vpop.f32.mrf.mxu1  ;;  %v17111_v63 = vadd.f32 %v5070_v39, %v4659_v17  ;;  %v3760_v62 = vadd.f32 %v16667_v50, %v2859_v51 }
 0x2e6   :  { %v17093_v53 = vadd.f32 %v5030_v36, %v4657_v59  ;;  %v22213_v59 = vld [vmem:[#allocation15_spill] sm:$0xff]  ;;  %v1960_v36 = vadd.f32 %v17024_v56, %v22214_v10 }
 0x2e7   :  { %v13347_v15 = vpack.i.bf16 %v17089_v12, %v17055_v18  ;;  %v1959_v55 = vadd.f32 %v17024_v56, %v22213_v59  ;;  %v13362_v39 = vpack.i.bf16 %v17111_v63, %v17091_v26 }
 0x2e8   :  { %v13357_v11 = vpack.i.bf16 %v17091_v26, %v17093_v53  ;;  %v13352_v60 = vpack.i.bf16 %v17089_v12, %v17093_v53  ;;  %v2861_v29 = vadd.f32 %v22216_v4, %v1960_v36 }
 0x2e9   :  { %13348 = vrot.lane.b32.xlu2 %v13347_v15, %s14164_s13  ;;  %v2860_v5 = vadd.f32 %v22215_v57, %v1959_v55  ;;  %v4660_v15 = vadd.f32 %v16954_v14, %v3759_v16  ;;  %v22218_v16 = vld [vmem:[#allocation33_spill] sm:$0xff]  ;;  %v22220_v57 = vld [vmem:[#allocation34_spill] sm:$0xff] }
 0x2ea   :  { %13358 = vrot.lane.b32.xlu1 %v13357_v11, %s14164_s13  ;;  %13353 = vrot.lane.b32.xlu0 %v13352_v60, %s14164_s13  ;;  %v4661_v11 = vadd.f32 %v16957_v52, %v3760_v62  ;;  %v3762_v14 = vadd.f32 %v16657_v24, %v2861_v29  ;;  %v1962_v24 = vadd.f32 %v17024_v56, %v22218_v16 }
 0x2eb   :  { %v3761_v17 = vadd.f32 %v16653_v32, %v2860_v5  ;;  %v22217_v32 = vld [vmem:[#allocation128_spill] sm:$0xff] }
 0x2ec   :  { %v1961_v51 = vadd.f32 %v17024_v56, %v22217_v32  ;;  %v4663_v59 = vadd.f32 %v16947_v49, %v3762_v14  ;;  %v2863_v5 = vadd.f32 %v22220_v57, %v1962_v24  ;;  %v22226_v24 = vld [vmem:[#allocation131_spill] sm:$0xff] }
 0x2ed   :  { %v5130_v47 = vpop.f32.mrf.mxu2  ;;  %v4662_v58 = vadd.f32 %v16940_v21, %v3761_v17  ;;  %v22219_v21 = vld [vmem:[#allocation11_spill] sm:$0xff] }
 0x2ee   :  { %v5150_v9 = vpop.f32.mrf.mxu3  ;;  %v2862_v62 = vadd.f32 %v22219_v21, %v1961_v51  ;;  %v1965_v21 = vadd.f32 %v17024_v56, %v22226_v24 }
 0x2ef   :  { %v17141_v55 = vadd.f32 %v5130_v47, %v4662_v58  ;;  %v17148_v10 = vadd.f32 %v5150_v9, %v4663_v59  ;;  %v22223_v9 = vld [vmem:[#allocation75_spill] sm:$0xff]  ;;  %v22225_v59 = vld [vmem:[#allocation12_spill] sm:$0xff] }
 0x2f0   :  { %v5090_v60 = vpop.f32.mrf.mxu0 }
 0x2f1   :  { %v17127_v42 = vadd.f32 %v5090_v60, %v4660_v15  ;;  %v5110_v50 = vpop.f32.mrf.mxu1  ;;  %13363 = vrot.lane.b32.xlu2 %v13362_v39, %s14164_s13  ;;  %v22221_v15 = vld [vmem:[#allocation26_spill] sm:$0xff]  ;;  %v3763_v39 = vadd.f32 %v16704_v38, %v2862_v62  ;;  %v22222_v60 = vld [vmem:[#allocation31_spill] sm:$0xff]  ;;  %v13382_v47 = vpack.i.bf16 %v17148_v10, %v17141_v55 }
 0x2f2   :  { %v17130_v33 = vadd.f32 %v5110_v50, %v4661_v11  ;;  %v1963_v49 = vadd.f32 %v17024_v56, %v22221_v15  ;;  %v3764_v11 = vadd.f32 %v16708_v13, %v2863_v5  ;;  %v1967_v13 = vadd.f32 %v17024_v56, %v22223_v9  ;;  %v22227_v62 = vld [vmem:[#allocation58_spill] sm:$0xff]  ;;  %v22228_v5 = vld [vmem:[#allocation148_spill] sm:$0xff] }
 0x2f3   :  { %v13367_v52 = vpack.i.bf16 %v17127_v42, %v17111_v63  ;;  %v4664_v29 = vadd.f32 %v16983_v45, %v3763_v39  ;;  %v22224_v45 = vld [vmem:[#allocation29_spill] sm:$0xff] }
 0x2f4   :  { %v13372_v30 = vpack.i.bf16 %v17127_v42, %v17130_v33  ;;  %v13377_v36 = vpack.i.bf16 %v17141_v55, %v17130_v33  ;;  %v2864_v4 = vadd.f32 %v22222_v60, %v1963_v49  ;;  %v4665_v50 = vadd.f32 %v16986_v27, %v3764_v11  ;;  %v22229_v49 = vld [vmem:[#allocation14_spill] sm:$0xff] }
 0x2f5   :  { %13368 = vrot.lane.b32.xlu0 %v13367_v52, %s14164_s13  ;;  %v1964_v32 = vadd.f32 %v17024_v56, %v22224_v45  ;;  %v2866_v39 = vadd.f32 %v22229_v49, %v1965_v21 }
 0x2f6   :  { %13373 = vrot.lane.b32.xlu1 %v13372_v30, %s14164_s13  ;;  %v3765_v58 = vadd.f32 %v16694_v61, %v2864_v4  ;;  %v2868_v61 = vadd.f32 %v22225_v59, %v1967_v13  ;;  %v22231_v13 = vld [vmem:[#allocation147_spill] sm:$0xff]  ;;  %v22233_v59 = vld [vmem:[#allocation16_spill] sm:$0xff] }
 0x2f7   :  { %v1968_v45 = vadd.f32 %v17024_v56, %v22231_v13 }
 0x2f8   :  { %v4666_v51 = vadd.f32 %v16973_v48, %v3765_v58  ;;  %v1966_v48 = vadd.f32 %v17024_v56, %v22228_v5  ;;  %v3769_v15 = vadd.f32 %v16730_v6, %v2868_v61 }
 0x2f9   :  { %13378 = vrot.lane.b32.xlu2 %v13377_v36, %s14164_s13  ;;  %v5210_v17 = vpop.f32.mrf.mxu2  ;;  %v2865_v36 = vadd.f32 %v22227_v62, %v1964_v32  ;;  %v2869_v61 = vadd.f32 %v22233_v59, %v1968_v45 }
 0x2fa   :  { %v17182_v57 = vadd.f32 %v5210_v17, %v4666_v51  ;;  %v5230_v60 = vpop.f32.mrf.mxu3 }
 0x2fb   :  { %v3766_v11 = vadd.f32 %v16698_v1, %v2865_v36  ;;  %v3770_v21 = vadd.f32 %v16737_v8, %v2869_v61 }
 0x2fc   :  { %v5170_v14 = vpop.f32.mrf.mxu0 }
 0x2fd   :  { %v17164_v52 = vadd.f32 %v5170_v14, %v4664_v29  ;;  %v5190_v38 = vpop.f32.mrf.mxu1  ;;  %13383 = vrot.lane.b32.xlu0 %v13382_v47, %s14164_s13  ;;  %v22230_v29 = vld [vmem:[#allocation8_spill] sm:$0xff]  ;;  %v4670_v47 = vadd.f32 %v16998_v25, %v3769_v15  ;;  %v4667_v14 = vadd.f32 %v16977_v37, %v3766_v11  ;;  %v22235_v15 = vld [vmem:[#allocation150_spill] sm:$0xff] }
 0x2fe   :  { %v17169_v30 = vadd.f32 %v5190_v38, %v4665_v50  ;;  %v2867_v17 = vadd.f32 %v22230_v29, %v1966_v48  ;;  %v3767_v50 = vadd.f32 %v16744_v41, %v2866_v39  ;;  %v4671_v48 = vadd.f32 %v17002_v35, %v3770_v21  ;;  %v22236_v39 = vld [vmem:[#allocation134_spill] sm:$0xff]  ;;  %v22238_v35 = vld [vmem:[#allocation27_spill] sm:$0xff] }
 0x2ff   :  { %v13387_v27 = vpack.i.bf16 %v17164_v52, %v17148_v10  ;;  %v17202_v9 = vadd.f32 %v5230_v60, %v4667_v14  ;;  %v1969_v49 = vadd.f32 %v17024_v56, %v22235_v15  ;;  %v1970_v11 = vadd.f32 %v17024_v56, %v22236_v39 }
 0x300   :  { %v13392_v16 = vpack.i.bf16 %v17164_v52, %v17169_v30  ;;  %v13397_v4 = vpack.i.bf16 %v17182_v57, %v17169_v30  ;;  %v3768_v6 = vadd.f32 %v16748_v31, %v2867_v17  ;;  %v4668_v1 = vadd.f32 %v17004_v0, %v3767_v50 }
 0x301   :  { %13388 = vrot.lane.b32.xlu1 %v13387_v27, %s14164_s13  ;;  %v22232_v27 = vld [vmem:[#allocation93_spill] sm:$0xff] }
 0x302   :  { %13393 = vrot.lane.b32.xlu2 %v13392_v16, %s14164_s13  ;;  %v4669_v25 = vadd.f32 %v17006_v23, %v3768_v6  ;;  %v1971_v31 = vadd.f32 %v17024_v56, %v22232_v27  ;;  %v13402_v16 = vpack.i.bf16 %v17202_v9, %v17182_v57  ;;  %v22234_v23 = vld [vmem:[#allocation22_spill] sm:$0xff] }
 0x304   :  { %v2872_v24 = vadd.f32 %v22234_v23, %v1971_v31  ;;  %v22240_v31 = vld [vmem:[#allocation130_spill] sm:$0xff]  ;;  %v17271_v23 = vpop.permute.xlu2 %770 }
 0x305   :  { %v5290_v58 = vpop.f32.mrf.mxu2  ;;  %13398 = vrot.lane.b32.xlu0 %v13397_v4, %s14164_s13  ;;  %v146_v4 = vld [vmem:[%s20949_s0 + $0x120] sm:$0xff] }
 0x306   :  { %v17199_v38 = vadd.f32 %v5290_v58, %v4670_v47  ;;  %v5310_v36 = vpop.f32.mrf.mxu3  ;;  %v3773_v5 = vadd.f32 %v16767_v7, %v2872_v24  ;;  %v22237_v7 = vld [vmem:[#allocation23_spill] sm:$0xff]  ;;  %v2871_v47 = vadd.f32 %v22238_v35, %v1970_v11  ;;  %v13407_v14 = vpack.i.bf16 %v17202_v9, %v146_v4 }
 0x307   :  { %v17232_v60 = vadd.f32 %v5310_v36, %v4671_v48  ;;  %v2870_v17 = vadd.f32 %v22237_v7, %v1969_v49 }
 0x308   :  { %v5250_v32 = vpop.f32.mrf.mxu0  ;;  %v13422_v41 = vpack.i.bf16 %v17199_v38, %v17199_v38  ;;  %v4674_v8 = vadd.f32 %v17008_v34, %v3773_v5  ;;  %v3772_v6 = vadd.f32 %v16788_v40, %v2871_v47 }
 0x309   :  { %v17209_v37 = vadd.f32 %v5250_v32, %v4668_v1  ;;  %v5270_v51 = vpop.f32.mrf.mxu1  ;;  %v3771_v58 = vadd.f32 %v16783_v2, %v2870_v17  ;;  %v13427_v34 = vpack.i.bf16 %v17232_v60, %v17232_v60 }
 0x30a   :  { %v17214_v0 = vadd.f32 %v5270_v51, %v4669_v25  ;;  %13423 = vrot.lane.b32.xlu2 %v13422_v41, %s14164_s13  ;;  %v4673_v32 = vadd.f32 %v17014_v44, %v3772_v6  ;;  %v22239_v41 = vld [vmem:[#allocation149_spill] sm:$0xff] }
 0x30b   :  { %v4672_v25 = vadd.f32 %v17012_v43, %v3771_v58  ;;  %v1972_v51 = vadd.f32 %v17024_v56, %v22239_v41 }
 0x30c   :  { %v13417_v62 = vpack.i.bf16 %v17214_v0, %v17209_v37 }
 0x30d   :  { %13403 = vrot.lane.b32.xlu0 %v13402_v16, %s14164_s13  ;;  %v2873_v43 = vadd.f32 %v22240_v31, %v1972_v51 }
 0x30e   :  { %13418 = vrot.lane.b32.xlu1 %v13417_v62, %s14164_s13 }
 0x30f   :  { %v3774_v44 = vadd.f32 %v16772_v54, %v2873_v43 }
 0x311   :  { %v5370_v29 = vpop.f32.mrf.mxu2  ;;  %v4675_v61 = vadd.f32 %v17010_v22, %v3774_v44 }
 0x312   :  { %v17239_v50 = vadd.f32 %v5370_v29, %v4674_v8  ;;  %v5390_v59 = vpop.f32.mrf.mxu3 }
 0x313   :  { %v17266_v16 = vadd.f32 %v5390_v59, %v4675_v61 }
 0x314   :  { %v13442_v1 = vpack.i.bf16 %v17239_v50, %v17239_v50  ;;  %v5330_v13 = vpop.f32.mrf.mxu0 }
 0x315   :  { %v5350_v45 = vpop.f32.mrf.mxu1  ;;  %13408 = vrot.lane.b32.xlu0 %v13407_v14, %s14164_s13  ;;  %v17253_v2 = vadd.f32 %v5330_v13, %v4672_v25 }
 0x316   :  { %13428 = vrot.lane.b32.xlu1 %v13427_v34, %s14164_s13  ;;  %13443 = vrot.lane.b32.xlu2 %v13442_v1, %s14164_s13  ;;  %v17255_v40 = vadd.f32 %v5350_v45, %v4673_v32 }
 0x318   :  { %v13437_v27 = vpack.i.bf16 %v17255_v40, %v17253_v2 }
 0x31d   :  { %13413 = vrot.lane.b32.xlu0 %v13417_v62, %s14164_s13 }
 0x31e   :  { %13438 = vrot.lane.b32.xlu1 %v13437_v27, %s14164_s13 }
 0x325   :  { %13433 = vrot.lane.b32.xlu0 %v13437_v27, %s14164_s13 }
 0x326   :  { %5937 = vrot.lane.b32.xlu1 %v17266_v16, %s14164_s13 }
 0x338   :  { %v13334_v24 = vpop.permute.xlu2 %13333 }
 0x339   :  { %v13336_v21 = vunpack.i.h.bf16 %v13334_v24  ;;  %v13335_v62 = vunpack.i.l.bf16 %v13334_v24 }
 0x33b   :  { %v5741_v54 = vsel %vm258_vm3, %v13335_v62, %v13336_v21 }
 0x33c   :  { %v5801_v7 = vmax.f32 %v17058_v3, %v5741_v54 }
 0x343   :  { %v13349_v49 = vpop.permute.xlu2 %13348 }
 0x344   :  { %v13350_v1 = vunpack.i.l.bf16 %v13349_v49  ;;  %v13351_v3 = vunpack.i.h.bf16 %v13349_v49 }
 0x34b   :  { %v13364_v25 = vpop.permute.xlu2 %13363 }
 0x34c   :  { %v13366_v44 = vunpack.i.h.bf16 %v13364_v25 }
 0x34d   :  { %v13344_v36 = vpop.permute.xlu1 %13343 }
 0x34e   :  { %v13346_v5 = vunpack.i.h.bf16 %v13344_v36  ;;  %v13345_v48 = vunpack.i.l.bf16 %v13344_v36 }
 0x350   :  { %v13339_v15 = vpop.permute.xlu0 %13338  ;;  %v5956_v22 = vsel %vm258_vm3, %v13345_v48, %v13346_v5 }
 0x351   :  { %v13341_v39 = vunpack.i.h.bf16 %v13339_v15  ;;  %v13340_v11 = vunpack.i.l.bf16 %v13339_v15  ;;  %v6016_v17 = vmax.f32 %v17052_v19, %v5956_v22 }
 0x353   :  { %v5955_v8 = vsel %vm258_vm3, %v13341_v39, %v13345_v48  ;;  %v5742_v29 = vsel %vm258_vm3, %v13336_v21, %v13340_v11  ;;  %v5743_v32 = vsel %vm258_vm3, %v13340_v11, %v13350_v1  ;;  %v5744_v48 = vsel %vm258_vm3, %v13350_v1, %v13351_v3 }
 0x354   :  { %v6015_v35 = vmax.f32 %v17062_v20, %v5955_v8  ;;  %v5802_v47 = vmax.f32 %v17062_v20, %v5742_v29  ;;  %v5803_v24 = vmax.f32 %v17052_v19, %v5743_v32  ;;  %v5804_v8 = vmax.f32 %v17055_v18, %v5744_v48 }
 0x356   :  { %v6045_v14 = vmax.f32 %v5801_v7, %v6015_v35  ;;  %v6046_v58 = vmax.f32 %v5802_v47, %v6016_v17 }
 0x358   :  { %v17281_v6 = vmax.f32 %v6045_v14, 0.0  ;;  %v17283_v34 = vmax.f32 %v6046_v58, 0.0 }
 0x35a   :  { %v13452_v13 = vpack.i.bf16 %v17281_v6, %v146_v4  ;;  %v13447_v45 = vpack.i.bf16 %v17283_v34, %v17281_v6  ;;  %v13365_v4 = vunpack.i.l.bf16 %v13364_v25  ;;  %v13379_v25 = vpop.permute.xlu2 %13378 }
 0x35c   :  { %v13359_v41 = vpop.permute.xlu1 %13358  ;;  %v13354_v51 = vpop.permute.xlu0 %13353  ;;  %13453 = vrot.lane.b32.xlu2 %v13452_v13, %s14161_s21  ;;  %13448 = vrot.lane.b32.xlu1 %v13447_v45, %s14166_s27 }
 0x35d   :  { %v13361_v20 = vunpack.i.h.bf16 %v13359_v41  ;;  %v13360_v27 = vunpack.i.l.bf16 %v13359_v41  ;;  %v13356_v31 = vunpack.i.h.bf16 %v13354_v51  ;;  %v13355_v43 = vunpack.i.l.bf16 %v13354_v51 }
 0x35f   :  { %v5957_v59 = vsel %vm258_vm3, %v13346_v5, %v13356_v31  ;;  %v5958_v61 = vsel %vm258_vm3, %v13356_v31, %v13360_v27  ;;  %v5959_v21 = vsel %vm258_vm3, %v13360_v27, %v13361_v20  ;;  %v5960_v62 = vsel %vm258_vm3, %v13361_v20, %v13366_v44 }
 0x360   :  { %v6017_v36 = vmax.f32 %v17055_v18, %v5957_v59  ;;  %v5745_v15 = vsel %vm258_vm3, %v13351_v3, %v13355_v43  ;;  %v5746_v54 = vsel %vm258_vm3, %v13355_v43, %v13365_v4  ;;  %v6018_v49 = vmax.f32 %v17089_v12, %v5958_v61 }
 0x361   :  { %v6019_v5 = vmax.f32 %v17093_v53, %v5959_v21  ;;  %v6020_v39 = vmax.f32 %v17091_v26, %v5960_v62  ;;  %v5805_v19 = vmax.f32 %v17089_v12, %v5745_v15  ;;  %v5806_v11 = vmax.f32 %v17093_v53, %v5746_v54 }
 0x362   :  { %v6047_v22 = vmax.f32 %v5803_v24, %v6017_v36  ;;  %v6048_v7 = vmax.f32 %v5804_v8, %v6018_v49  ;;  %v13380_v31 = vunpack.i.l.bf16 %v13379_v25 }
 0x363   :  { %v6049_v17 = vmax.f32 %v5805_v19, %v6019_v5  ;;  %v6050_v35 = vmax.f32 %v5806_v11, %v6020_v39 }
 0x364   :  { %v17306_v29 = vmax.f32 %v6047_v22, 0.0  ;;  %13458 = vrot.lane.b32.xlu1 %v13447_v45, %s14167_s28  ;;  %v17313_v12 = vmax.f32 %v6048_v7, 0.0 }
 0x365   :  { %v17315_v18 = vmax.f32 %v6049_v17, 0.0  ;;  %v17317_v53 = vmax.f32 %v6050_v35, 0.0  ;;  %v13394_v17 = vpop.permute.xlu2 %13393 }
 0x366   :  { %v13472_v14 = vpack.i.bf16 %v17306_v29, %v17283_v34  ;;  %v13482_v51 = vpack.i.bf16 %v17313_v12, %v17306_v29 }
 0x367   :  { %v13369_v47 = vpop.permute.xlu0 %13368  ;;  %22241 = vst [vmem:[#allocation41_spill] sm:$0xff] %v17317_v53  ;;  %v13487_v41 = vpack.i.bf16 %v17317_v53, %v17315_v18  ;;  %v13497_v54 = vpack.i.bf16 %v17315_v18, %v17313_v12 }
 0x368   :  { %v13374_v58 = vpop.permute.xlu1 %13373  ;;  %13473 = vrot.lane.b32.xlu2 %v13472_v14, %s14163_s23  ;;  %13468 = vrot.lane.b32.xlu0 %v13472_v14, %s14161_s21  ;;  %v13370_v45 = vunpack.i.l.bf16 %v13369_v47  ;;  %v13371_v3 = vunpack.i.h.bf16 %v13369_v47 }
 0x369   :  { %v13376_v1 = vunpack.i.h.bf16 %v13374_v58  ;;  %v13375_v62 = vunpack.i.l.bf16 %v13374_v58 }
 0x36a   :  { %v5747_v27 = vsel %vm258_vm3, %v13365_v4, %v13370_v45  ;;  %v5748_v59 = vsel %vm258_vm3, %v13370_v45, %v13371_v3 }
 0x36b   :  { %v5961_v20 = vsel %vm258_vm3, %v13366_v44, %v13376_v1  ;;  %v5807_v61 = vmax.f32 %v17091_v26, %v5747_v27  ;;  %v13381_v44 = vunpack.i.h.bf16 %v13379_v25  ;;  %v5808_v36 = vmax.f32 %v17111_v63, %v5748_v59 }
 0x36c   :  { %13463 = vrot.lane.b32.xlu1 %v13452_v13, %s14163_s23  ;;  %v5962_v13 = vsel %vm258_vm3, %v13376_v1, %v13380_v31  ;;  %v6021_v43 = vmax.f32 %v17111_v63, %v5961_v20  ;;  %v5749_v26 = vsel %vm258_vm3, %v13371_v3, %v13375_v62  ;;  %v13396_v25 = vunpack.i.h.bf16 %v13394_v17 }
 0x36d   :  { %v6022_v4 = vmax.f32 %v17127_v42, %v5962_v13  ;;  %v5963_v39 = vsel %vm258_vm3, %v13380_v31, %v13381_v44  ;;  %v5809_v8 = vmax.f32 %v17127_v42, %v5749_v26 }
 0x36e   :  { %v6051_v48 = vmax.f32 %v5807_v61, %v6021_v43  ;;  %v6023_v7 = vmax.f32 %v17130_v33, %v5963_v39 }
 0x36f   :  { %v13384_v32 = vpop.permute.xlu0 %13383  ;;  %v6052_v5 = vmax.f32 %v5808_v36, %v6022_v4 }
 0x370   :  { %13488 = vrot.lane.b32.xlu2 %v13487_v41, %s14166_s27  ;;  %13483 = vrot.lane.b32.xlu0 %v13482_v51, %s14167_s28  ;;  %v13386_v24 = vunpack.i.h.bf16 %v13384_v32  ;;  %v13385_v21 = vunpack.i.l.bf16 %v13384_v32  ;;  %v17343_v19 = vmax.f32 %v6051_v48, 0.0  ;;  %v6053_v3 = vmax.f32 %v5809_v8, %v6023_v7 }
 0x371   :  { %v17350_v35 = vmax.f32 %v6052_v5, 0.0  ;;  %v13395_v48 = vunpack.i.l.bf16 %v13394_v17 }
 0x372   :  { %v5964_v49 = vsel %vm258_vm3, %v13381_v44, %v13386_v24  ;;  %v5750_v22 = vsel %vm258_vm3, %v13375_v62, %v13385_v21  ;;  %22242 = vst [vmem:[#allocation47_spill] sm:$0xff] %v17343_v19  ;;  %v13507_v1 = vpack.i.bf16 %v17343_v19, %v17317_v53  ;;  %v17362_v20 = vmax.f32 %v6053_v3, 0.0 }
 0x373   :  { %v6024_v63 = vmax.f32 %v17141_v55, %v5964_v49  ;;  %v5810_v11 = vmax.f32 %v17130_v33, %v5750_v22  ;;  %22243 = vst [vmem:[#allocation46_spill] sm:$0xff] %v17350_v35  ;;  %v13389_v47 = vpop.permute.xlu1 %13388  ;;  %v13517_v42 = vpack.i.bf16 %v17350_v35, %v17343_v19  ;;  %v5965_v27 = vsel %vm258_vm3, %v13386_v24, %v13396_v25 }
 0x374   :  { %13478 = vrot.lane.b32.xlu1 %v13482_v51, %s14166_s27  ;;  %v13391_v32 = vunpack.i.h.bf16 %v13389_v47  ;;  %v13390_v51 = vunpack.i.l.bf16 %v13389_v47  ;;  %22245 = vst [vmem:[#allocation43_spill] sm:$0xff] %v17362_v20  ;;  %v6025_v4 = vmax.f32 %v17148_v10, %v5965_v27  ;;  %v13537_v8 = vpack.i.bf16 %v17362_v20, %v17350_v35 }
 0x375   :  { %v6054_v14 = vmax.f32 %v5810_v11, %v6024_v63 }
 0x376   :  { %v5751_v31 = vsel %vm258_vm3, %v13385_v21, %v13390_v51  ;;  %v5752_v13 = vsel %vm258_vm3, %v13390_v51, %v13391_v32  ;;  %v5753_v63 = vsel %vm258_vm3, %v13391_v32, %v13395_v48 }
 0x377   :  { %v13399_v15 = vpop.permute.xlu0 %13398  ;;  %v17358_v33 = vmax.f32 %v6054_v14, 0.0  ;;  %v5811_v62 = vmax.f32 %v17141_v55, %v5751_v31  ;;  %v5812_v36 = vmax.f32 %v17148_v10, %v5752_v13  ;;  %v5813_v47 = vmax.f32 %v17164_v52, %v5753_v63 }
 0x378   :  { %13498 = vrot.lane.b32.xlu2 %v13497_v54, %s14161_s21  ;;  %13503 = vrot.lane.b32.xlu0 %v13497_v54, %s14163_s23  ;;  %v13400_v58 = vunpack.i.l.bf16 %v13399_v15  ;;  %v13401_v54 = vunpack.i.h.bf16 %v13399_v15 }
 0x379   :  { %22244 = vst [vmem:[#allocation42_spill] sm:$0xff] %v17358_v33  ;;  %v13527_v44 = vpack.i.bf16 %v17358_v33, %v17362_v20  ;;  %v6055_v26 = vmax.f32 %v5811_v62, %v6025_v4 }
 0x37a   :  { %v5967_v55 = vsel %vm258_vm3, %v13400_v58, %v13401_v54 }
 0x37b   :  { %v17389_v7 = vmax.f32 %v6055_v26, 0.0  ;;  %v6027_v17 = vmax.f32 %v17169_v30, %v5967_v55 }
 0x37c   :  { %13493 = vrot.lane.b32.xlu1 %v13487_v41, %s14167_s28  ;;  %v5966_v41 = vsel %vm258_vm3, %v13396_v25, %v13400_v58 }
 0x37d   :  { %v6026_v43 = vmax.f32 %v17164_v52, %v5966_v41  ;;  %22247 = vst [vmem:[#allocation51_spill] sm:$0xff] %v17389_v7  ;;  %v6057_v25 = vmax.f32 %v5813_v47, %v6027_v17  ;;  %v13547_v31 = vpack.i.bf16 %v17389_v7, %v17358_v33 }
 0x37f   :  { %v13404_v45 = vpop.permute.xlu0 %13403  ;;  %v6056_v24 = vmax.f32 %v5812_v36, %v6026_v43  ;;  %v17405_v13 = vmax.f32 %v6057_v25, 0.0 }
 0x380   :  { %13508 = vrot.lane.b32.xlu2 %v13507_v1, %s14161_s21  ;;  %13513 = vrot.lane.b32.xlu0 %v13507_v1, %s14163_s23  ;;  %v13406_v59 = vunpack.i.h.bf16 %v13404_v45  ;;  %v13405_v61 = vunpack.i.l.bf16 %v13404_v45  ;;  %v13419_v5 = vpop.permute.xlu1 %13418 }
 0x381   :  { %v17381_v10 = vmax.f32 %v6056_v24, 0.0  ;;  %v13420_v1 = vunpack.i.l.bf16 %v13419_v5  ;;  %22249 = vst [vmem:[#allocation49_spill] sm:$0xff] %v17405_v13 }
 0x382   :  { %v5754_v49 = vsel %vm258_vm3, %v13395_v48, %v13405_v61  ;;  %v5968_v22 = vsel %vm258_vm3, %v13401_v54, %v13406_v59 }
 0x383   :  { %22246 = vst [vmem:[#allocation50_spill] sm:$0xff] %v17381_v10  ;;  %v5814_v15 = vmax.f32 %v17169_v30, %v5754_v49  ;;  %v6028_v39 = vmax.f32 %v17182_v57, %v5968_v22  ;;  %v13557_v58 = vpack.i.bf16 %v17381_v10, %v17389_v7  ;;  %v5969_v32 = vsel %vm258_vm3, %v13406_v59, %v13420_v1  ;;  %v13424_v30 = vpop.permute.xlu2 %13423 }
 0x384   :  { %13518 = vrot.lane.b32.xlu1 %v13517_v42, %s14166_s27  ;;  %v6029_v43 = vmax.f32 %v17202_v9, %v5969_v32  ;;  %v13425_v62 = vunpack.i.l.bf16 %v13424_v30 }
 0x385   :  { %v6058_v14 = vmax.f32 %v5814_v15, %v6028_v39 }
 0x387   :  { %v17375_v21 = vpop.permute.xlu0 %13408  ;;  %v17400_v51 = vmax.f32 %v6058_v14, 0.0 }
 0x388   :  { %13528 = vrot.lane.b32.xlu2 %v13527_v44, %s14166_s27  ;;  %13523 = vrot.lane.b32.xlu0 %v13517_v42, %s14167_s28  ;;  %v13411_v11 = vunpack.i.h.bf16 %v17375_v21  ;;  %v13429_v42 = vpop.permute.xlu1 %13428 }
 0x389   :  { %22248 = vst [vmem:[#allocation48_spill] sm:$0xff] %v17400_v51  ;;  %v13430_v4 = vunpack.i.l.bf16 %v13429_v42 }
 0x38a   :  { %v5755_v45 = vsel %vm258_vm3, %v13405_v61, %v13411_v11  ;;  %v13426_v61 = vunpack.i.h.bf16 %v13424_v30 }
 0x38b   :  { %v5815_v41 = vmax.f32 %v17182_v57, %v5755_v45  ;;  %v13572_v57 = vpack.i.bf16 %v17400_v51, %v17405_v13  ;;  %v5972_v24 = vsel %vm258_vm3, %v13425_v62, %v13430_v4 }
 0x38c   :  { %13533 = vrot.lane.b32.xlu1 %v13527_v44, %s14167_s28  ;;  %v13421_v44 = vunpack.i.h.bf16 %v13419_v5  ;;  %v6032_v55 = vmax.f32 %v17199_v38, %v5972_v24 }
 0x38d   :  { %v6059_v59 = vmax.f32 %v5815_v41, %v6029_v43  ;;  %v17446_v41 = vpop.permute.xlu2 %13443 }
 0x38e   :  { %v5971_v54 = vsel %vm258_vm3, %v13421_v44, %v13425_v62  ;;  %v5970_v39 = vsel %vm258_vm3, %v13420_v1, %v13421_v44 }
 0x38f   :  { %v13414_v3 = vpop.permute.xlu0 %13413  ;;  %v17417_v49 = vmax.f32 %v6059_v59, 0.0  ;;  %v6031_v5 = vmax.f32 %v17214_v0, %v5971_v54 }
 0x390   :  { %13538 = vrot.lane.b32.xlu2 %v13537_v8, %s14161_s21  ;;  %13543 = vrot.lane.b32.xlu0 %v13537_v8, %s14163_s23  ;;  %v13416_v52 = vunpack.i.h.bf16 %v13414_v3  ;;  %v13415_v27 = vunpack.i.l.bf16 %v13414_v3  ;;  %v13439_v14 = vpop.permute.xlu1 %13438  ;;  %v13431_v3 = vunpack.i.h.bf16 %v13429_v42 }
 0x391   :  { %22250 = vst [vmem:[#allocation56_spill] sm:$0xff] %v17417_v49  ;;  %v13587_v17 = vpack.i.bf16 %v17417_v49, %v17400_v51  ;;  %v13440_v1 = vunpack.i.l.bf16 %v13439_v14  ;;  %v13441_v44 = vunpack.i.h.bf16 %v13439_v14 }
 0x392   :  { %v5758_v36 = vsel %vm258_vm3, %v13416_v52, %v13426_v61  ;;  %v5757_v48 = vsel %vm258_vm3, %v13415_v27, %v13416_v52  ;;  %v5756_v15 = vsel %vm258_vm3, %v13411_v11, %v13415_v27  ;;  %v5759_v52 = vsel %vm258_vm3, %v13426_v61, %v13431_v3 }
 0x393   :  { %v5818_v22 = vmax.f32 %v17214_v0, %v5758_v36  ;;  %v5817_v26 = vmax.f32 %v17209_v37, %v5757_v48  ;;  %v5816_v47 = vmax.f32 %v17202_v9, %v5756_v15  ;;  %v6030_v0 = vmax.f32 %v17209_v37, %v5970_v39 }
 0x394   :  { %13558 = vrot.lane.b32.xlu1 %v13557_v58, %s14166_s27  ;;  %v5973_v30 = vsel %vm258_vm3, %v13430_v4, %v13440_v1  ;;  %v5819_v42 = vmax.f32 %v17199_v38, %v5759_v52  ;;  %v5974_v61 = vsel %vm258_vm3, %v13440_v1, %v13441_v44  ;;  %v13445_v15 = vunpack.i.l.bf16 %v17446_v41 }
 0x395   :  { %v6062_v63 = vmax.f32 %v5818_v22, %v6032_v55  ;;  %v6061_v8 = vmax.f32 %v5817_v26, %v6031_v5  ;;  %v6060_v25 = vmax.f32 %v5816_v47, %v6030_v0  ;;  %v6033_v43 = vmax.f32 %v17232_v60, %v5973_v30  ;;  %v22255_v22 = vld [vmem:[#allocation115_spill] sm:$0xff] }
 0x396   :  { %v6034_v24 = vmax.f32 %v17253_v2, %v5974_v61  ;;  %v22256_v26 = vunpack.i.h.bf16 %v22255_v22  ;;  %v5975_v47 = vsel %vm258_vm3, %v13441_v44, %v13445_v15  ;;  %v22261_v44 = vld [vmem:[#allocation153_spill] sm:$0xff] }
 0x397   :  { %v17432_v45 = vmax.f32 %v6062_v63, 0.0  ;;  %v17434_v11 = vmax.f32 %v6061_v8, 0.0  ;;  %v17442_v32 = vmax.f32 %v6060_v25, 0.0  ;;  %v13434_v37 = vpop.permute.xlu0 %13433  ;;  %v22257_v63 = vld [vmem:[#allocation155_spill] sm:$0xff]  ;;  %v6035_v25 = vmax.f32 %v17255_v40, %v5975_v47 }
 0x398   :  { %13548 = vrot.lane.b32.xlu2 %v13547_v31, %s14161_s21  ;;  %13553 = vrot.lane.b32.xlu0 %v13547_v31, %s14163_s23  ;;  %v13435_v27 = vunpack.i.l.bf16 %v13434_v37  ;;  %v13436_v48 = vunpack.i.h.bf16 %v13434_v37  ;;  %v22258_v8 = vunpack.i.h.bf16 %v22257_v63  ;;  %v22267_v47 = vld [vmem:[#allocation35_spill] sm:$0xff] }
 0x399   :  { %22251 = vst [vmem:[#allocation52_spill] sm:$0xff] %v17432_v45  ;;  %v13607_v9 = vpack.i.bf16 %v17432_v45, %v17434_v11  ;;  %v13597_v31 = vpack.i.bf16 %v17442_v32, %v17417_v49  ;;  %v13617_v4 = vpack.i.bf16 %v17434_v11, %v17442_v32 }
 0x39a   :  { %22252 = vst [vmem:[#allocation53_spill] sm:$0xff] %v17434_v11  ;;  %v5760_v59 = vsel %vm258_vm3, %v13431_v3, %v13435_v27  ;;  %v5761_v39 = vsel %vm258_vm3, %v13435_v27, %v13436_v48  ;;  %v17494_v3 = vpop.permute.xlu1 %5937 }
 0x39b   :  { %22253 = vst [vmem:[#allocation60_spill] sm:$0xff] %v17442_v32  ;;  %v5820_v62 = vmax.f32 %v17232_v60, %v5760_v59  ;;  %v5821_v0 = vmax.f32 %v17253_v2, %v5761_v39  ;;  %v5976_v30 = vsel %vm258_vm3, %v13445_v15, %v17494_v3  ;;  %v5410_v39 = vpop.f32.mrf.mxu0 }
 0x39c   :  { %13573 = vrot.lane.b32.xlu1 %v13572_v57, %s14167_s28 }
 0x39d   :  { %v6064_v55 = vmax.f32 %v5820_v62, %v6034_v24  ;;  %v22264_v24 = vld [vmem:[#allocation39_spill] sm:$0xff] }
 0x39f   :  { %v17483_v14 = vmax.f32 %v6064_v55, 0.0 }
 0x3a0   :  { %13568 = vrot.lane.b32.xlu2 %v13572_v57, %s14166_s27  ;;  %13563 = vrot.lane.b32.xlu0 %v13557_v58, %s14167_s28  ;;  %v13577_v58 = vpack.i.bf16 %v17405_v13, %v17381_v10  ;;  %v6063_v57 = vmax.f32 %v5819_v42, %v6033_v43  ;;  %v6036_v43 = vmax.f32 %v17239_v50, %v5976_v30 }
 0x3a1   :  { %22259 = vst [vmem:[#allocation55_spill] sm:$0xff] %v17483_v14  ;;  %v1973_v42 = vadd.f32 %v17024_v56, %v22261_v44 }
 0x3a2   :  { %v17465_v38 = vmax.f32 %v6063_v57, 0.0 }
 0x3a4   :  { %13588 = vrot.lane.b32.xlu1 %v13587_v17, %s14161_s21  ;;  %22254 = vst [vmem:[#allocation54_spill] sm:$0xff] %v17465_v38  ;;  %v13632_v60 = vpack.i.bf16 %v17465_v38, %v17432_v45  ;;  %v13642_v1 = vpack.i.bf16 %v17483_v14, %v17465_v38 }
 0x3a8   :  { %13578 = vrot.lane.b32.xlu2 %v13577_v58, %s14161_s21  ;;  %13583 = vrot.lane.b32.xlu0 %v13577_v58, %s14163_s23  ;;  %v6065_v58 = vmax.f32 %v5821_v0, %v6035_v25 }
 0x3aa   :  { %v17496_v2 = vmax.f32 %v6065_v58, 0.0 }
 0x3ac   :  { %13608 = vrot.lane.b32.xlu1 %v13607_v9, %s14166_s27  ;;  %22260 = vst [vmem:[#allocation63_spill] sm:$0xff] %v17496_v2  ;;  %v13652_v27 = vpack.i.bf16 %v17496_v2, %v17483_v14 }
 0x3b0   :  { %13593 = vrot.lane.b32.xlu2 %v13587_v17, %s14163_s23  ;;  %13598 = vrot.lane.b32.xlu0 %v13597_v31, %s14166_s27  ;;  %v808_v17 = vsel %vm772_vm1, %v22258_v8, %v17271_v23  ;;  %v22266_v8 = vld [vmem:[#allocation20_spill] sm:$0xff] }
 0x3b4   :  { %13618 = vrot.lane.b32.xlu1 %v13617_v4, %s14161_s21 }
 0x3b6   :  { %v17461_v36 = vpop.permute.xlu2 %13453 }
 0x3b7   :  { %v13455_v54 = vunpack.i.l.bf16 %v17461_v36 }
 0x3b8   :  { %13603 = vrot.lane.b32.xlu2 %v13597_v31, %s14167_s28  ;;  %13613 = vrot.lane.b32.xlu0 %v13607_v9, %s14167_s28  ;;  %v21301_v9 = vunpack.i.h.bf16 %v17446_v41 }
 0x3b9   :  { %v1065_v5 = vsel %vm1029_vm0, %v22256_v26, %v13455_v54 }
 0x3ba   :  { %5544 = vmatpush.msrb.mxu3 %v1065_v5  ;;  %v5762_v37 = vsel %vm258_vm3, %v13436_v48, %v21301_v9  ;;  %v22263_v48 = vld [vmem:[#allocation133_spill] sm:$0xff] }
 0x3bb   :  { %v5822_v52 = vmax.f32 %v17255_v40, %v5762_v37  ;;  %v2874_v54 = vadd.f32 %v22263_v48, %v1973_v42 }
 0x3bc   :  { %5545 = vmatpush.msrb.mxu3 %v808_v17  ;;  %13633 = vrot.lane.b32.xlu1 %v13632_v60, %s14163_s23 }
 0x3bd   :  { %v6066_v57 = vmax.f32 %v5822_v52, %v6036_v43  ;;  %v3775_v5 = vadd.f32 %v16816_v28, %v2874_v54  ;;  %v13456_v43 = vunpack.i.h.bf16 %v17461_v36 }
 0x3bf   :  { %v17531_v15 = vmax.f32 %v6066_v57, 0.0  ;;  %v4676_v17 = vadd.f32 %v22266_v8, %v3775_v5  ;;  %v13410_v57 = vunpack.i.l.bf16 %v17375_v21 }
 0x3c0   :  { %13623 = vrot.lane.b32.xlu2 %v13617_v4, %s14163_s23  ;;  %13628 = vrot.lane.b32.xlu0 %v13632_v60, %s14161_s21  ;;  %v22262_v4 = vld [vmem:[#allocation154_spill] sm:$0xff]  ;;  %v5430_v60 = vpop.f32.mrf.mxu1 }
 0x3c1   :  { %v1974_v59 = vadd.f32 %v17024_v56, %v22262_v4  ;;  %22265 = vst [vmem:[#allocation25_spill] sm:$0xff] %v17531_v15  ;;  %v17541_v58 = vadd.f32 %v5410_v39, %v4676_v17  ;;  %v22272_v39 = vld [vmem:[#allocation127_spill] sm:$0xff] }
 0x3c2   :  { %v17490_v23 = vpop.permute.xlu2 %13473  ;;  %v22273_v8 = vunpack.i.h.bf16 %v22272_v39 }
 0x3c3   :  { %v2875_v22 = vadd.f32 %v22264_v24, %v1974_v59  ;;  %22269 = vst [vmem:[#allocation62_spill] sm:$0xff] %v17541_v58  ;;  %v13657_v4 = vpack.i.bf16 %v17541_v58, %v17266_v16 }
 0x3c4   :  { %13643 = vrot.lane.b32.xlu1 %v13642_v1, %s14167_s28  ;;  %v294_v17 = vsel %vm258_vm3, %v22273_v8, %v13410_v57 }
 0x3c5   :  { %v3776_v55 = vadd.f32 %v16822_v46, %v2875_v22  ;;  %v22270_v22 = vld [vmem:[#allocation157_spill] sm:$0xff] }
 0x3c7   :  { %v4677_v0 = vadd.f32 %v22267_v47, %v3776_v55  ;;  %v73_v47 = vld [vmem:[%s20949_s0 + $0x118] sm:$0xff] }
 0x3c8   :  { %6857 = vrot.lane.b32.xlu0 %v17496_v2, %s14166_s27  ;;  %13638 = vrot.lane.b32.xlu2 %v13642_v1, %s14166_s27 }
 0x3c9   :  { %v17539_v25 = vadd.f32 %v5430_v60, %v4677_v0  ;;  %v17579_v0 = vld [vmem:[%s20952_s3] sm:$0xff] }
 0x3ca   :  { %v17509_v31 = vpop.permute.xlu2 %13488 }
 0x3cb   :  { %22268 = vst [vmem:[#allocation61_spill] sm:$0xff] %v17539_v25  ;;  %v13662_v30 = vpack.i.bf16 %v17539_v25, %v17541_v58  ;;  %v13491_v24 = vunpack.i.h.bf16 %v17509_v31  ;;  %v13490_v36 = vunpack.i.l.bf16 %v17509_v31 }
 0x3cc   :  { %13653 = vrot.lane.b32.xlu1 %v13652_v27, %s14163_s23 }
 0x3ce   :  { %v17517_v61 = vpop.permute.xlu1 %13448 }
 0x3cf   :  { %v13451_v40 = vunpack.i.h.bf16 %v17517_v61  ;;  %v13450_v62 = vunpack.i.l.bf16 %v17517_v61 }
 0x3d0   :  { %13648 = vrot.lane.b32.xlu0 %v13652_v27, %s14161_s21  ;;  %6649 = vrot.lane.b32.xlu2 %v17496_v2, %s14167_s28 }
 0x3d1   :  { %v6878_v26 = vsel %vm6877_vm5, %v13450_v62, %v13451_v40  ;;  %v13475_v62 = vunpack.i.l.bf16 %v17490_v23 }
 0x3d2   :  { %7091 = vmatpush.msra.mxu0 %v6878_v26  ;;  %v17533_v63 = vpop.permute.xlu2 %13498  ;;  %v22271_v26 = vunpack.i.h.bf16 %v22270_v22 }
 0x3d3   :  { %v13500_v22 = vunpack.i.l.bf16 %v17533_v63  ;;  %v13501_v39 = vunpack.i.h.bf16 %v17533_v63 }
 0x3d4   :  { %6444 = vrot.lane.b32.xlu1 %v17531_v15, %s14161_s21 }
 0x3d6   :  { %v13459_v28 = vpop.permute.xlu1 %13458 }
 0x3d7   :  { %v13461_v46 = vunpack.i.h.bf16 %v13459_v28  ;;  %v13460_v1 = vunpack.i.l.bf16 %v13459_v28  ;;  %v17585_v28 = vsel %vm6877_vm5, %v13490_v36, %v13491_v24 }
 0x3d8   :  { %6651 = vrot.lane.b32.xlu0 %v17531_v15, %s14167_s28  ;;  %6859 = vrot.lane.b32.xlu2 %v17531_v15, %s14166_s27 }
 0x3d9   :  { %v6670_v37 = vsel %vm6669_vm6, %v13460_v1, %v13461_v46 }
 0x3da   :  { %7092 = vmatpush.msra.mxu0 %v6670_v37  ;;  %v17550_v52 = vpop.permute.xlu2 %13508  ;;  %v13469_v27 = vpop.permute.xlu0 %13468 }
 0x3db   :  { %v13470_v44 = vunpack.i.l.bf16 %v13469_v27  ;;  %v13511_v31 = vunpack.i.h.bf16 %v17550_v52 }
 0x3dc   :  { %13663 = vrot.lane.b32.xlu1 %v13662_v30, %s14164_s13 }
 0x3dd   :  { %v6462_v42 = vsel %vm1029_vm0, %v13456_v43, %v13470_v44 }
 0x3de   :  { %v13464_v59 = vpop.permute.xlu1 %13463  ;;  %7093 = vmatpush.msra.mxu0 %v6462_v42 }
 0x3df   :  { %v13466_v48 = vunpack.i.h.bf16 %v13464_v59  ;;  %v13465_v54 = vunpack.i.l.bf16 %v13464_v59 }
 0x3e0   :  { %6237 = vrot.lane.b32.xlu2 %v17531_v15, %s14163_s23  ;;  %13658 = vrot.lane.b32.xlu0 %v13657_v4, %s14164_s13  ;;  %v13471_v4 = vunpack.i.h.bf16 %v13469_v27 }
 0x3e1   :  { %v551_v5 = vsel %vm515_vm2, %v22271_v26, %v13465_v54  ;;  %v6255_v21 = vsel %vm515_vm2, %v13466_v48, %v13475_v62  ;;  %v13476_v54 = vunpack.i.h.bf16 %v17490_v23  ;;  %v17617_v23 = vld [vmem:[%s20952_s3 + $0x8] sm:$0xff] }
 0x3e2   :  { %5546 = vmatpush.msrb.mxu3 %v551_v5  ;;  %7094 = vmatpush.msra.mxu0 %v6255_v21  ;;  %v17568_v55 = vpop.permute.xlu2 %13528  ;;  %v13484_v60 = vpop.permute.xlu0 %13483  ;;  %v17621_v21 = vsel %vm1029_vm0, %v13471_v4, %v13500_v22 }
 0x3e3   :  { %v13486_v37 = vunpack.i.h.bf16 %v13484_v60  ;;  %v13485_v30 = vunpack.i.l.bf16 %v13484_v60 }
 0x3e4   :  { %5547 = vmatpush.msrb.mxu3 %v294_v17  ;;  %7095 = vmatpush.msra.mxu0 %v17281_v6  ;;  %v14160_v6 = vld [vmem:[%s20950_s1 + $0x20] sm:$0xff] }
 0x3e5   :  { %12730 = vmatmul.msk.f32.vlgmr.msra.gmra.mxu0 %vm1300_vm4, %v17579_v0  ;;  %v6671_v61 = vsel %vm6669_vm6, %v13461_v46, %v13485_v30  ;;  %v6256_v46 = vsel %vm515_vm2, %v13475_v62, %v13476_v54 }
 0x3e6   :  { %7183 = vmatpush.msrb.mxu0 %v17585_v28  ;;  %v13479_v1 = vpop.permute.xlu1 %13478  ;;  %5548 = vmatpush.msrb.mxu3 %v73_v47 }
 0x3e7   :  { %v13481_v43 = vunpack.i.h.bf16 %v13479_v1  ;;  %v13480_v42 = vunpack.i.l.bf16 %v13479_v1  ;;  %12729 = vmatmul.msk.f32.vlgmr.msrb.gmra.mxu3 %vm1300_vm4, %v14160_v6  ;;  %v13530_v6 = vunpack.i.l.bf16 %v17568_v55 }
 0x3e9   :  { %v6879_v59 = vsel %vm6877_vm5, %v13451_v40, %v13480_v42  ;;  %v17598_v57 = vsel %vm6877_vm5, %v13480_v42, %v13481_v43  ;;  %v17601_v48 = vsel %vm6877_vm5, %v13481_v43, %v13490_v36  ;;  %v17611_v40 = vsel %vm6669_vm6, %v13485_v30, %v13486_v37 }
 0x3ea   :  { %7114 = vmatpush.msra.mxu1 %v6879_v59  ;;  %7137 = vmatpush.msra.mxu2 %v17598_v57  ;;  %v17606_v26 = vpop.permute.xlu2 %13538  ;;  %v13504_v27 = vpop.permute.xlu0 %13503  ;;  %v6463_v36 = vsel %vm1029_vm0, %v13470_v44, %v13471_v4  ;;  %v13510_v44 = vunpack.i.l.bf16 %v17550_v52  ;;  %v17648_v42 = vsel %vm1029_vm0, %v13500_v22, %v13501_v39 }
 0x3eb   :  { %7160 = vmatpush.msra.mxu3 %v17601_v48  ;;  %v13505_v5 = vunpack.i.l.bf16 %v13504_v27  ;;  %v13506_v63 = vunpack.i.h.bf16 %v13504_v27 }
 0x3ec   :  { %7115 = vmatpush.msra.mxu1 %v6671_v61  ;;  %7138 = vmatpush.msra.mxu2 %v17611_v40 }
 0x3ed   :  { %v17627_v47 = vsel %vm515_vm2, %v13476_v54, %v13505_v5  ;;  %12731 = vmatmul.msk.f32.gmra.mxu0 %vm1300_vm4, %v17617_v23  ;;  %v17663_v54 = vsel %vm515_vm2, %v13505_v5, %v13506_v63 }
 0x3ee   :  { %v13494_v60 = vpop.permute.xlu1 %13493  ;;  %7116 = vmatpush.msra.mxu1 %v6463_v36  ;;  %7139 = vmatpush.msra.mxu2 %v17621_v21 }
 0x3ef   :  { %v13496_v8 = vunpack.i.h.bf16 %v13494_v60  ;;  %v13495_v17 = vunpack.i.l.bf16 %v13494_v60 }
 0x3f0   :  { %7117 = vmatpush.msra.mxu1 %v6256_v46  ;;  %7140 = vmatpush.msra.mxu2 %v17627_v47 }
 0x3f1   :  { %v17634_v1 = vsel %vm6669_vm6, %v13486_v37, %v13495_v17  ;;  %v17637_v62 = vsel %vm6669_vm6, %v13495_v17, %v13496_v8  ;;  %v21302_v37 = vunpack.i.h.bf16 %v17568_v55 }
 0x3f2   :  { %7118 = vmatpush.msra.mxu1 %v17283_v34  ;;  %7141 = vmatpush.msra.mxu2 %v17306_v29  ;;  %v17641_v30 = vpop.permute.xlu2 %13548  ;;  %v17643_v43 = vpop.permute.xlu0 %13513  ;;  %v17654_v34 = vsel %vm1029_vm0, %v13501_v39, %v13510_v44 }
 0x3f3   :  { %7161 = vmatpush.msra.mxu3 %v17634_v1  ;;  %7184 = vmatpush.msrb.mxu0 %v17637_v62  ;;  %v13515_v4 = vunpack.i.l.bf16 %v17643_v43  ;;  %v17673_v36 = vsel %vm6877_vm5, %v13530_v6, %v21302_v37  ;;  %v22283_v25 = vunpack.i.l.bf16 %v17641_v30 }
 0x3f4   :  { %12732 = vmatmul.msk.f32.vlgmr.msra.gmra.mxu1 %vm1300_vm4, %v17579_v0  ;;  %12734 = vmatmul.msk.f32.vlgmr.msra.gmra.mxu2 %vm1300_vm4, %v17579_v0 }
 0x3f5   :  { %7162 = vmatpush.msra.mxu3 %v17648_v42  ;;  %7185 = vmatpush.msrb.mxu0 %v17654_v34  ;;  %v17666_v22 = vsel %vm515_vm2, %v13506_v63, %v13515_v4 }
 0x3f6   :  { %v13519_v59 = vpop.permute.xlu1 %13518 }
 0x3f7   :  { %v13521_v27 = vunpack.i.h.bf16 %v13519_v59  ;;  %v13520_v61 = vunpack.i.l.bf16 %v13519_v59  ;;  %7163 = vmatpush.msra.mxu3 %v17663_v54  ;;  %7186 = vmatpush.msrb.mxu0 %v17666_v22 }
 0x3f9   :  { %7164 = vmatpush.msra.mxu3 %v17313_v12  ;;  %7187 = vmatpush.msrb.mxu0 %v17315_v18  ;;  %v17680_v5 = vsel %vm6877_vm5, %v13491_v24, %v13520_v61  ;;  %v17683_v60 = vsel %vm6877_vm5, %v13520_v61, %v13521_v27  ;;  %v17686_v46 = vsel %vm6877_vm5, %v13521_v27, %v13530_v6  ;;  %v13540_v24 = vunpack.i.l.bf16 %v17606_v26 }
 0x3fa   :  { %22274 = vst [vmem:[#allocation69_spill] sm:$0xff] %v17683_v60  ;;  %7206 = vmatpush.msrb.mxu1 %v17680_v5  ;;  %v17690_v39 = vpop.permute.xlu2 %13568  ;;  %v13524_v17 = vpop.permute.xlu0 %13523  ;;  %7229 = vmatpush.msrb.mxu2 %v17683_v60  ;;  %v13516_v6 = vunpack.i.h.bf16 %v17643_v43 }
 0x3fb   :  { %22275 = vst [vmem:[#allocation65_spill] sm:$0xff] %v17686_v46  ;;  %7275 = vmatpush.msra.mxu0 %v17673_v36  ;;  %7252 = vmatpush.msrb.mxu3 %v17686_v46  ;;  %v13526_v63 = vunpack.i.h.bf16 %v13524_v17  ;;  %v13525_v59 = vunpack.i.l.bf16 %v13524_v17  ;;  %v13541_v17 = vunpack.i.h.bf16 %v17606_v26 }
 0x3fc   :  { %12736 = vmatmul.msk.f32.vlgmr.msra.gmra.mxu3 %vm1300_vm4, %v17579_v0  ;;  %12733 = vmatmul.msk.f32.gmra.mxu1 %vm1300_vm4, %v17617_v23  ;;  %v17736_v15 = vsel %vm515_vm2, %v13515_v4, %v13516_v6 }
 0x3fd   :  { %12738 = vmatmul.msk.f32.vlgmr.msrb.gmra.mxu0 %vm1300_vm4, %v17579_v0  ;;  %12735 = vmatmul.msk.f32.gmra.mxu2 %vm1300_vm4, %v17617_v23  ;;  %v17706_v52 = vsel %vm6669_vm6, %v13496_v8, %v13525_v59  ;;  %v17709_v27 = vsel %vm6669_vm6, %v13525_v59, %v13526_v63  ;;  %v17720_v8 = vsel %vm1029_vm0, %v13510_v44, %v13511_v31 }
 0x3fe   :  { %22276 = vst [vmem:[#allocation66_spill] sm:$0xff] %v17709_v27  ;;  %v17711_v61 = vpop.permute.xlu1 %13533  ;;  %7207 = vmatpush.msrb.mxu1 %v17706_v52  ;;  %7230 = vmatpush.msrb.mxu2 %v17709_v27  ;;  %v17723_v59 = vsel %vm1029_vm0, %v13511_v31, %v13540_v24 }
 0x3ff   :  { %v21307_v37 = vunpack.i.h.bf16 %v17711_v61  ;;  %v13535_v43 = vunpack.i.l.bf16 %v17711_v61  ;;  %22277 = vst [vmem:[#allocation72_spill] sm:$0xff] %v17720_v8 }
 0x400   :  { %22278 = vst [vmem:[#allocation67_spill] sm:$0xff] %v17723_v59  ;;  %7208 = vmatpush.msrb.mxu1 %v17720_v8  ;;  %7231 = vmatpush.msrb.mxu2 %v17723_v59  ;;  %v22294_v8 = vunpack.i.h.bf16 %v17711_v61 }
 0x401   :  { %v17728_v26 = vsel %vm6669_vm6, %v13526_v63, %v13535_v43  ;;  %v17733_v9 = vsel %vm6669_vm6, %v13535_v43, %v21307_v37  ;;  %22281 = vst [vmem:[#allocation73_spill] sm:$0xff] %v17736_v15  ;;  %v17744_v63 = vsel %vm1029_vm0, %v13540_v24, %v13541_v17  ;;  %v17749_v43 = vsel %vm1029_vm0, %v13541_v17, %v22283_v25 }
 0x402   :  { %22279 = vst [vmem:[#allocation68_spill] sm:$0xff] %v17728_v26  ;;  %7253 = vmatpush.msrb.mxu3 %v17728_v26  ;;  %7276 = vmatpush.msra.mxu0 %v17733_v9  ;;  %v17740_v44 = vpop.permute.xlu2 %13578  ;;  %v13544_v31 = vpop.permute.xlu0 %13543  ;;  %v13570_v25 = vunpack.i.l.bf16 %v17690_v39 }
 0x403   :  { %22280 = vst [vmem:[#allocation76_spill] sm:$0xff] %v17733_v9  ;;  %7209 = vmatpush.msrb.mxu1 %v17736_v15  ;;  %v13546_v37 = vunpack.i.h.bf16 %v13544_v31  ;;  %v13545_v4 = vunpack.i.l.bf16 %v13544_v31 }
 0x404   :  { %22282 = vst [vmem:[#allocation74_spill] sm:$0xff] %v17744_v63  ;;  %7254 = vmatpush.msrb.mxu3 %v17744_v63  ;;  %7277 = vmatpush.msra.mxu0 %v17749_v43 }
 0x405   :  { %22284 = vst [vmem:[#allocation79_spill] sm:$0xff] %v17749_v43  ;;  %7210 = vmatpush.msrb.mxu1 %v17317_v53  ;;  %12737 = vmatmul.msk.f32.gmra.mxu3 %vm1300_vm4, %v17617_v23  ;;  %v17757_v56 = vsel %vm515_vm2, %v13516_v6, %v13545_v4  ;;  %v17760_v58 = vsel %vm515_vm2, %v13545_v4, %v13546_v37  ;;  %v22287_v6 = vunpack.i.h.bf16 %v17568_v55 }
 0x406   :  { %22285 = vst [vmem:[#allocation28_spill] sm:$0xff] %v17757_v56  ;;  %v13559_v24 = vpop.permute.xlu1 %13558  ;;  %12740 = vmatmul.msk.f32.vlgmr.msrb.gmra.mxu1 %vm1300_vm4, %v17579_v0  ;;  %7232 = vmatpush.msrb.mxu2 %v17757_v56 }
 0x407   :  { %22286 = vst [vmem:[#allocation82_spill] sm:$0xff] %v17760_v58  ;;  %v13561_v17 = vunpack.i.h.bf16 %v13559_v24  ;;  %v13560_v31 = vunpack.i.l.bf16 %v13559_v24  ;;  %7255 = vmatpush.msrb.mxu3 %v17760_v58  ;;  %12739 = vmatmul.msk.f32.gmra.mxu0 %vm1300_vm4, %v17617_v23 }
 0x408   :  { %7233 = vmatpush.msrb.mxu2 %v17343_v19 }
 0x409   :  { %7256 = vmatpush.msrb.mxu3 %v17350_v35  ;;  %v17774_v4 = vsel %vm6877_vm5, %v22287_v6, %v13560_v31  ;;  %v17777_v53 = vsel %vm6877_vm5, %v13560_v31, %v13561_v17  ;;  %v17780_v15 = vsel %vm6877_vm5, %v13561_v17, %v13570_v25  ;;  %12742 = vmatmul.msk.f32.vlgmr.msrb.gmra.mxu2 %vm1300_vm4, %v17579_v0  ;;  %v21330_v6 = vunpack.i.h.bf16 %v17690_v39 }
 0x40a   :  { %22288 = vst [vmem:[#allocation83_spill] sm:$0xff] %v17774_v4  ;;  %7298 = vmatpush.msra.mxu1 %v17774_v4  ;;  %7321 = vmatpush.msra.mxu2 %v17777_v53  ;;  %v17784_v24 = vpop.permute.xlu2 %13593  ;;  %v13554_v58 = vpop.permute.xlu0 %13553 }
 0x40b   :  { %22289 = vst [vmem:[#allocation84_spill] sm:$0xff] %v17777_v53  ;;  %7344 = vmatpush.msra.mxu3 %v17780_v15  ;;  %v13555_v55 = vunpack.i.l.bf16 %v13554_v58  ;;  %v17806_v35 = vsel %vm6877_vm5, %v13570_v25, %v21330_v6  ;;  %v13580_v25 = vunpack.i.l.bf16 %v17740_v44 }
 0x40c   :  { %22290 = vst [vmem:[#allocation85_spill] sm:$0xff] %v17780_v15 }
 0x40d   :  { %12744 = vmatmul.msk.f32.vlgmr.msrb.gmra.mxu3 %vm1300_vm4, %v17579_v0  ;;  %v17793_v17 = vsel %vm515_vm2, %v13546_v37, %v13555_v55  ;;  %22292 = vst [vmem:[#allocation89_spill] sm:$0xff] %v17806_v35 }
 0x40e   :  { %22291 = vst [vmem:[#allocation86_spill] sm:$0xff] %v17793_v17  ;;  %v17795_v31 = vpop.permute.xlu1 %13573  ;;  %12741 = vmatmul.msk.f32.gmra.mxu1 %vm1300_vm4, %v17617_v23  ;;  %7278 = vmatpush.msra.mxu0 %v17793_v17 }
 0x40f   :  { %v21333_v15 = vunpack.i.h.bf16 %v17795_v31  ;;  %v13575_v4 = vunpack.i.l.bf16 %v17795_v31 }
 0x410   :  { %7279 = vmatpush.msra.mxu0 %v17362_v20  ;;  %v13551_v20 = vunpack.i.h.bf16 %v17641_v30 }
 0x411   :  { %v17811_v37 = vsel %vm6669_vm6, %v13575_v4, %v21333_v15  ;;  %12743 = vmatmul.msk.f32.gmra.mxu2 %vm1300_vm4, %v17617_v23  ;;  %12746 = vmatmul.msk.f32.vlgmr.msra.gmra.mxu0 %vm1300_vm4, %v17579_v0  ;;  %v13581_v15 = vunpack.i.h.bf16 %v17740_v44 }
 0x412   :  { %22293 = vst [vmem:[#allocation87_spill] sm:$0xff] %v17811_v37  ;;  %7367 = vmatpush.msrb.mxu0 %v17806_v35  ;;  %v17814_v43 = vpop.permute.xlu2 %13603  ;;  %v13564_v17 = vpop.permute.xlu0 %13563  ;;  %v13556_v35 = vunpack.i.h.bf16 %v13554_v58  ;;  %v22297_v58 = vunpack.i.l.bf16 %v17641_v30 }
 0x413   :  { %v13566_v6 = vunpack.i.h.bf16 %v13564_v17  ;;  %v13565_v63 = vunpack.i.l.bf16 %v13564_v17 }
 0x414   :  { %7368 = vmatpush.msrb.mxu0 %v17811_v37  ;;  %v17846_v61 = vsel %vm1029_vm0, %v22297_v58, %v13551_v20  ;;  %v17861_v30 = vsel %vm515_vm2, %v13555_v55, %v13556_v35 }
 0x415   :  { %12745 = vmatmul.msk.f32.gmra.mxu3 %vm1300_vm4, %v17617_v23  ;;  %v17829_v53 = vsel %vm6669_vm6, %v22294_v8, %v13565_v63  ;;  %v17832_v9 = vsel %vm6669_vm6, %v13565_v63, %v13566_v6  ;;  %v17835_v26 = vsel %vm6669_vm6, %v13566_v6, %v13575_v4  ;;  %22298 = vst [vmem:[#allocation91_spill] sm:$0xff] %v17846_v61 }
 0x416   :  { %22295 = vst [vmem:[#allocation88_spill] sm:$0xff] %v17832_v9  ;;  %v17837_v17 = vpop.permute.xlu1 %13588  ;;  %7299 = vmatpush.msra.mxu1 %v17829_v53  ;;  %7322 = vmatpush.msra.mxu2 %v17832_v9  ;;  %v17849_v8 = vsel %vm1029_vm0, %v13551_v20, %v13580_v25  ;;  %v17854_v63 = vsel %vm1029_vm0, %v13580_v25, %v13581_v15  ;;  %v13595_v20 = vunpack.i.l.bf16 %v17784_v24 }
 0x417   :  { %22296 = vst [vmem:[#allocation96_spill] sm:$0xff] %v17835_v26  ;;  %v13590_v44 = vunpack.i.l.bf16 %v17837_v17  ;;  %7345 = vmatpush.msra.mxu3 %v17835_v26 }
 0x418   :  { %22299 = vst [vmem:[#allocation92_spill] sm:$0xff] %v17849_v8  ;;  %7300 = vmatpush.msra.mxu1 %v17846_v61  ;;  %7323 = vmatpush.msra.mxu2 %v17849_v8 }
 0x419   :  { %22300 = vst [vmem:[#allocation98_spill] sm:$0xff] %v17854_v63  ;;  %v17857_v4 = vsel %vm1029_vm0, %v13581_v15, %v13590_v44  ;;  %7346 = vmatpush.msra.mxu3 %v17854_v63  ;;  %12747 = vmatmul.msk.f32.gmra.mxu0 %vm1300_vm4, %v17617_v23 }
 0x41a   :  { %22301 = vst [vmem:[#allocation45_spill] sm:$0xff] %v17857_v4  ;;  %7369 = vmatpush.msrb.mxu0 %v17857_v4  ;;  %v13584_v6 = vpop.permute.xlu0 %13583  ;;  %7301 = vmatpush.msra.mxu1 %v17861_v30  ;;  %v17868_v61 = vpop.permute.xlu2 %13623 }
 0x41b   :  { %22302 = vst [vmem:[#allocation94_spill] sm:$0xff] %v17861_v30  ;;  %v13586_v25 = vunpack.i.h.bf16 %v13584_v6  ;;  %v13585_v58 = vunpack.i.l.bf16 %v13584_v6 }
 0x41c   :  { %7302 = vmatpush.msra.mxu1 %v17358_v33 }
 0x41d   :  { %v17872_v15 = vsel %vm515_vm2, %v13556_v35, %v13585_v58  ;;  %v17875_v55 = vsel %vm515_vm2, %v13585_v58, %v13586_v25  ;;  %v17878_v4 = vsel %vm515_vm2, %v13586_v25, %v13595_v20  ;;  %12748 = vmatmul.msk.f32.vlgmr.msra.gmra.mxu1 %vm1300_vm4, %v17579_v0  ;;  %v13605_v58 = vunpack.i.l.bf16 %v17814_v43 }
 0x41e   :  { %22303 = vst [vmem:[#allocation95_spill] sm:$0xff] %v17872_v15  ;;  %v13609_v30 = vpop.permute.xlu1 %13608  ;;  %7324 = vmatpush.msra.mxu2 %v17872_v15  ;;  %7347 = vmatpush.msra.mxu3 %v17875_v55 }
 0x41f   :  { %22304 = vst [vmem:[#allocation99_spill] sm:$0xff] %v17875_v55  ;;  %v13611_v6 = vunpack.i.h.bf16 %v13609_v30  ;;  %v13610_v63 = vunpack.i.l.bf16 %v13609_v30  ;;  %7370 = vmatpush.msrb.mxu0 %v17878_v4  ;;  %v13606_v30 = vunpack.i.h.bf16 %v17814_v43  ;;  %v13596_v43 = vunpack.i.h.bf16 %v17784_v24 }
 0x420   :  { %22305 = vst [vmem:[#allocation105_spill] sm:$0xff] %v17878_v4  ;;  %7325 = vmatpush.msra.mxu2 %v17389_v7  ;;  %7348 = vmatpush.msra.mxu3 %v17381_v10  ;;  %v22307_v4 = vunpack.i.h.bf16 %v17690_v39 }
 0x421   :  { %v17888_v35 = vsel %vm6877_vm5, %v13610_v63, %v13611_v6  ;;  %7371 = vmatpush.msrb.mxu0 %v17405_v13  ;;  %12750 = vmatmul.msk.f32.vlgmr.msra.gmra.mxu2 %vm1300_vm4, %v17579_v0  ;;  %v13591_v13 = vunpack.i.h.bf16 %v17837_v17  ;;  %v13625_v17 = vunpack.i.l.bf16 %v17868_v61 }
 0x422   :  { %22306 = vst [vmem:[#allocation103_spill] sm:$0xff] %v17888_v35  ;;  %v13599_v25 = vpop.permute.xlu0 %13598  ;;  %12752 = vmatmul.msk.f32.vlgmr.msra.gmra.mxu3 %vm1300_vm4, %v17579_v0  ;;  %12754 = vmatmul.msk.f32.vlgmr.msrb.gmra.mxu0 %vm1300_vm4, %v17579_v0 }
 0x423   :  { %7459 = vmatpush.msra.mxu0 %v17888_v35  ;;  %v13601_v33 = vunpack.i.h.bf16 %v13599_v25  ;;  %v13600_v10 = vunpack.i.l.bf16 %v13599_v25  ;;  %v17915_v25 = vpop.permute.xlu2 %13638 }
 0x425   :  { %v17904_v55 = vsel %vm6877_vm5, %v22307_v4, %v13600_v10  ;;  %v17907_v35 = vsel %vm6877_vm5, %v13600_v10, %v13601_v33  ;;  %v17910_v37 = vsel %vm6877_vm5, %v13601_v33, %v13610_v63  ;;  %12749 = vmatmul.msk.f32.gmra.mxu1 %vm1300_vm4, %v17617_v23  ;;  %v22311_v33 = vunpack.i.h.bf16 %v17795_v31 }
 0x426   :  { %22308 = vst [vmem:[#allocation104_spill] sm:$0xff] %v17904_v55  ;;  %v13619_v26 = vpop.permute.xlu1 %13618  ;;  %7390 = vmatpush.msrb.mxu1 %v17904_v55  ;;  %7413 = vmatpush.msrb.mxu2 %v17907_v35  ;;  %v17927_v63 = vsel %vm6669_vm6, %v13605_v58, %v13606_v30  ;;  %v17935_v4 = vsel %vm1029_vm0, %v13590_v44, %v13591_v13  ;;  %v13640_v31 = vunpack.i.l.bf16 %v17915_v25  ;;  %v13626_v44 = vunpack.i.h.bf16 %v17868_v61 }
 0x427   :  { %22309 = vst [vmem:[#allocation110_spill] sm:$0xff] %v17907_v35  ;;  %v13620_v39 = vunpack.i.l.bf16 %v13619_v26  ;;  %7436 = vmatpush.msrb.mxu3 %v17910_v37  ;;  %v17924_v10 = vsel %vm6669_vm6, %v22311_v33, %v13605_v58  ;;  %v17942_v58 = vsel %vm515_vm2, %v13595_v20, %v13596_v43  ;;  %v17946_v55 = vsel %vm515_vm2, %v13596_v43, %v13625_v17 }
 0x428   :  { %22310 = vst [vmem:[#allocation106_spill] sm:$0xff] %v17910_v37  ;;  %7391 = vmatpush.msrb.mxu1 %v17924_v10  ;;  %7414 = vmatpush.msrb.mxu2 %v17927_v63  ;;  %v13621_v37 = vunpack.i.h.bf16 %v13619_v26 }
 0x429   :  { %22312 = vst [vmem:[#allocation108_spill] sm:$0xff] %v17924_v10  ;;  %v17932_v24 = vsel %vm1029_vm0, %v13591_v13, %v13620_v39  ;;  %12751 = vmatmul.msk.f32.gmra.mxu2 %vm1300_vm4, %v17617_v23  ;;  %v13641_v13 = vunpack.i.h.bf16 %v17915_v25  ;;  %v17967_v25 = vsel %vm6877_vm5, %v13611_v6, %v13640_v31 }
 0x42a   :  { %22313 = vst [vmem:[#allocation117_spill] sm:$0xff] %v17927_v63  ;;  %v13614_v33 = vpop.permute.xlu0 %13613  ;;  %7392 = vmatpush.msrb.mxu1 %v17935_v4  ;;  %7415 = vmatpush.msrb.mxu2 %v17932_v24  ;;  %v17972_v61 = vsel %vm1029_vm0, %v13620_v39, %v13621_v37 }
 0x42b   :  { %22314 = vst [vmem:[#allocation113_spill] sm:$0xff] %v17932_v24  ;;  %v13616_v10 = vunpack.i.h.bf16 %v13614_v33  ;;  %v13615_v63 = vunpack.i.l.bf16 %v13614_v33  ;;  %12753 = vmatmul.msk.f32.gmra.mxu3 %vm1300_vm4, %v17617_v23  ;;  %12755 = vmatmul.msk.f32.gmra.mxu0 %vm1300_vm4, %v17617_v23  ;;  %v17982_v33 = vsel %vm515_vm2, %v13625_v17, %v13626_v44 }
 0x42c   :  { %22315 = vst [vmem:[#allocation114_spill] sm:$0xff] %v17935_v4  ;;  %7393 = vmatpush.msrb.mxu1 %v17942_v58  ;;  %7416 = vmatpush.msrb.mxu2 %v17946_v55 }
 0x42d   :  { %22316 = vst [vmem:[#allocation120_spill] sm:$0xff] %v17942_v58  ;;  %v17957_v26 = vsel %vm6669_vm6, %v13606_v30, %v13615_v63  ;;  %v17960_v20 = vsel %vm6669_vm6, %v13615_v63, %v13616_v10  ;;  %v17974_v30 = vpop.permute.xlu2 %6649  ;;  %v17979_v63 = vsel %vm6877_vm5, %v13640_v31, %v13641_v13 }
 0x42e   :  { %22317 = vst [vmem:[#allocation70_spill] sm:$0xff] %v17946_v55  ;;  %v17962_v43 = vpop.permute.xlu1 %13633  ;;  %7394 = vmatpush.msrb.mxu1 %v17400_v51  ;;  %7437 = vmatpush.msrb.mxu3 %v17957_v26 }
 0x42f   :  { %22318 = vst [vmem:[#allocation136_spill] sm:$0xff] %v17957_v26  ;;  %7460 = vmatpush.msra.mxu0 %v17960_v20  ;;  %7417 = vmatpush.msrb.mxu2 %v17417_v49  ;;  %v13635_v39 = vunpack.i.l.bf16 %v17962_v43 }
 0x430   :  { %22319 = vst [vmem:[#allocation118_spill] sm:$0xff] %v17960_v20  ;;  %7482 = vmatpush.msra.mxu1 %v17967_v25  ;;  %7438 = vmatpush.msrb.mxu3 %v17972_v61 }
 0x431   :  { %22320 = vst [vmem:[#allocation119_spill] sm:$0xff] %v17967_v25  ;;  %7505 = vmatpush.msra.mxu2 %v17979_v63  ;;  %12756 = vmatmul.msk.f32.vlgmr.msrb.gmra.mxu1 %vm1300_vm4, %v17579_v0 }
 0x432   :  { %22321 = vst [vmem:[#allocation78_spill] sm:$0xff] %v17972_v61  ;;  %v13629_v6 = vpop.permute.xlu0 %13628  ;;  %7439 = vmatpush.msrb.mxu3 %v17982_v33  ;;  %12758 = vmatmul.msk.f32.vlgmr.msrb.gmra.mxu2 %vm1300_vm4, %v17579_v0 }
 0x433   :  { %22322 = vst [vmem:[#allocation122_spill] sm:$0xff] %v17979_v63  ;;  %v13630_v25 = vunpack.i.l.bf16 %v13629_v6  ;;  %v13631_v20 = vunpack.i.h.bf16 %v13629_v6 }
 0x434   :  { %22323 = vst [vmem:[#allocation124_spill] sm:$0xff] %v17982_v33  ;;  %7440 = vmatpush.msrb.mxu3 %v17442_v32  ;;  %v17999_v33 = vsel %vm515_vm2, %v13626_v44, %v13635_v39  ;;  %v13636_v32 = vunpack.i.h.bf16 %v17962_v43 }
 0x435   :  { %v17993_v31 = vsel %vm1029_vm0, %v13621_v37, %v13630_v25  ;;  %12760 = vmatmul.msk.f32.vlgmr.msrb.gmra.mxu3 %vm1300_vm4, %v17579_v0  ;;  %22325 = vst [vmem:[#allocation80_spill] sm:$0xff] %v17999_v33 }
 0x436   :  { %22324 = vst [vmem:[#allocation126_spill] sm:$0xff] %v17993_v31  ;;  %v13644_v17 = vpop.permute.xlu1 %13643  ;;  %7461 = vmatpush.msra.mxu0 %v17993_v31  ;;  %v18041_v43 = vsel %vm515_vm2, %v13635_v39, %v13636_v32 }
 0x437   :  { %v13646_v63 = vunpack.i.h.bf16 %v13644_v17  ;;  %v13645_v61 = vunpack.i.l.bf16 %v13644_v17  ;;  %v18012_v17 = vpop.permute.xlu2 %6859  ;;  %22333 = vst [vmem:[#allocation143_spill] sm:$0xff] %v18041_v43 }
 0x438   :  { %7462 = vmatpush.msra.mxu0 %v17999_v33  ;;  %22328 = vst [vmem:[#allocation140_spill] sm:$0xff] %v18012_v17 }
 0x439   :  { %v18003_v26 = vsel %vm6669_vm6, %v13616_v10, %v13645_v61  ;;  %v18006_v37 = vsel %vm6669_vm6, %v13645_v61, %v13646_v63  ;;  %12757 = vmatmul.msk.f32.gmra.mxu1 %vm1300_vm4, %v17617_v23  ;;  %v18025_v6 = vsel %vm6669_vm6, %v13646_v63, %v17974_v30 }
 0x43a   :  { %22326 = vst [vmem:[#allocation90_spill] sm:$0xff] %v18003_v26  ;;  %7506 = vmatpush.msra.mxu2 %v18006_v37  ;;  %7463 = vmatpush.msra.mxu0 %v17434_v11  ;;  %v6858_v44 = vpop.permute.xlu0 %6857 }
 0x43b   :  { %22327 = vst [vmem:[#allocation97_spill] sm:$0xff] %v18006_v37  ;;  %7483 = vmatpush.msra.mxu1 %v18003_v26  ;;  %v18017_v10 = vsel %vm6877_vm5, %v13641_v13, %v6858_v44  ;;  %v18021_v61 = vsel %vm6877_vm5, %v6858_v44, %v18012_v17  ;;  %12759 = vmatmul.msk.f32.gmra.mxu2 %vm1300_vm4, %v17617_v23 }
 0x43c   :  { %22329 = vst [vmem:[#allocation141_spill] sm:$0xff] %v18017_v10  ;;  %12762 = vmatmul.msk.f32.vlgmr.msra.gmra.mxu0 %vm1300_vm4, %v17579_v0  ;;  %7528 = vmatpush.msra.mxu3 %v18017_v10  ;;  %v18034_v13 = vsel %vm1029_vm0, %v13630_v25, %v13631_v20 }
 0x43d   :  { %22330 = vst [vmem:[#allocation161_spill] sm:$0xff] %v18021_v61  ;;  %7551 = vmatpush.msrb.mxu0 %v18021_v61  ;;  %7484 = vmatpush.msra.mxu1 %v18034_v13 }
 0x43e   :  { %22331 = vst [vmem:[#allocation107_spill] sm:$0xff] %v18025_v6  ;;  %12761 = vmatmul.msk.f32.gmra.mxu3 %vm1300_vm4, %v17617_v23  ;;  %v13654_v63 = vpop.permute.xlu1 %13653 }
 0x43f   :  { %22332 = vst [vmem:[#allocation142_spill] sm:$0xff] %v18034_v13  ;;  %7529 = vmatpush.msra.mxu3 %v18025_v6  ;;  %7485 = vmatpush.msra.mxu1 %v18041_v43  ;;  %v13656_v25 = vunpack.i.h.bf16 %v13654_v63  ;;  %v13655_v17 = vunpack.i.l.bf16 %v13654_v63 }
 0x441   :  { %7486 = vmatpush.msra.mxu1 %v17432_v45  ;;  %v18060_v63 = vsel %vm515_vm2, %v13636_v32, %v13655_v17 }
 0x442   :  { %v13649_v44 = vpop.permute.xlu0 %13648  ;;  %12764 = vmatmul.msk.f32.vlgmr.msra.gmra.mxu1 %vm1300_vm4, %v17579_v0  ;;  %22336 = vst [vmem:[#allocation132_spill] sm:$0xff] %v18060_v63 }
 0x443   :  { %v13651_v61 = vunpack.i.h.bf16 %v13649_v44  ;;  %v13650_v10 = vunpack.i.l.bf16 %v13649_v44  ;;  %7824 = vmatpush.msrb.mxu1 %v17598_v57  ;;  %v18063_v57 = vsel %vm515_vm2, %v13655_v17, %v13656_v25  ;;  %v22348_v44 = vld [vmem:[#allocation84_spill] sm:$0xff] }
 0x444   :  { %12763 = vmatmul.msk.f32.gmra.mxu0 %vm1300_vm4, %v17617_v23  ;;  %22337 = vst [vmem:[#allocation163_spill] sm:$0xff] %v18063_v57 }
 0x445   :  { %v18051_v39 = vsel %vm1029_vm0, %v13631_v20, %v13650_v10  ;;  %v18054_v6 = vsel %vm1029_vm0, %v13650_v10, %v13651_v61  ;;  %7825 = vmatpush.msrb.mxu1 %v17611_v40  ;;  %v18126_v10 = vld [vmem:[%s20952_s3 + $0x10] sm:$0xff] }
 0x446   :  { %22334 = vst [vmem:[#allocation64_spill] sm:$0xff] %v18051_v39  ;;  %7507 = vmatpush.msra.mxu2 %v18051_v39  ;;  %7530 = vmatpush.msra.mxu3 %v18054_v6  ;;  %v18082_v40 = vpop.permute.xlu1 %6444 }
 0x447   :  { %22335 = vst [vmem:[#allocation162_spill] sm:$0xff] %v18054_v6  ;;  %7826 = vmatpush.msrb.mxu1 %v17621_v21  ;;  %v18093_v21 = vsel %vm1029_vm0, %v13651_v61, %v18082_v40  ;;  %v22347_v61 = vld [vmem:[#allocation76_spill] sm:$0xff] }
 0x448   :  { %7508 = vmatpush.msra.mxu2 %v18060_v63  ;;  %7531 = vmatpush.msra.mxu3 %v18063_v57  ;;  %22340 = vst [vmem:[#allocation10_spill] sm:$0xff] %v18082_v40  ;;  %v22382_v40 = vld [vmem:[#allocation117_spill] sm:$0xff] }
 0x449   :  { %7827 = vmatpush.msrb.mxu1 %v17627_v47  ;;  %22341 = vst [vmem:[#allocation144_spill] sm:$0xff] %v18093_v21 }
 0x44a   :  { %v18069_v20 = vpop.permute.xlu0 %6651  ;;  %7509 = vmatpush.msra.mxu2 %v17465_v38  ;;  %7532 = vmatpush.msra.mxu3 %v17483_v14 }
 0x44b   :  { %22338 = vst [vmem:[#allocation71_spill] sm:$0xff] %v18069_v20  ;;  %v18076_v32 = vsel %vm6669_vm6, %v17974_v30, %v18069_v20  ;;  %12766 = vmatmul.msk.f32.vlgmr.msra.gmra.mxu2 %vm1300_vm4, %v17579_v0  ;;  %12768 = vmatmul.msk.f32.vlgmr.msra.gmra.mxu3 %vm1300_vm4, %v17579_v0  ;;  %v22383_v20 = vld [vmem:[#allocation152_spill] sm:$0xff] }
 0x44c   :  { %22339 = vst [vmem:[#allocation77_spill] sm:$0xff] %v18076_v32  ;;  %7847 = vmatpush.msrb.mxu2 %v17601_v48  ;;  %7870 = vmatpush.msrb.mxu3 %v17585_v28  ;;  %v18097_v48 = vpop.permute.xlu2 %6237 }
 0x44d   :  { %12765 = vmatmul.msk.f32.gmra.mxu1 %vm1300_vm4, %v17617_v23  ;;  %7552 = vmatpush.msrb.mxu0 %v18076_v32  ;;  %22342 = vst [vmem:[#allocation13_spill] sm:$0xff] %v18097_v48 }
 0x44e   :  { %7828 = vmatpush.msrb.mxu1 %v17306_v29  ;;  %7848 = vmatpush.msrb.mxu2 %v17634_v1  ;;  %v18105_v29 = vsel %vm515_vm2, %v13656_v25, %v18097_v48  ;;  %v22349_v25 = vld [vmem:[#allocation72_spill] sm:$0xff]  ;;  %v22379_v48 = vld [vmem:[#allocation49_spill] sm:$0xff] }
 0x44f   :  { %7871 = vmatpush.msrb.mxu3 %v17637_v62  ;;  %7553 = vmatpush.msrb.mxu0 %v18093_v21  ;;  %22343 = vst [vmem:[#allocation100_spill] sm:$0xff] %v18105_v29 }
 0x450   :  { %7916 = vmatpush.msra.mxu1 %v17683_v60  ;;  %7849 = vmatpush.msrb.mxu2 %v17648_v42  ;;  %v5450_v60 = vpop.f32.mrf.mxu2 }
 0x451   :  { %7872 = vmatpush.msrb.mxu3 %v17654_v34  ;;  %7554 = vmatpush.msrb.mxu0 %v18105_v29 }
 0x452   :  { %7917 = vmatpush.msra.mxu1 %v17709_v27  ;;  %7850 = vmatpush.msrb.mxu2 %v17663_v54  ;;  %v13659_v47 = vpop.permute.xlu0 %13658  ;;  %v22344_v54 = vunpack.i.h.bf16 %v17446_v41  ;;  %v22376_v27 = vld [vmem:[#allocation42_spill] sm:$0xff] }
 0x453   :  { %7873 = vmatpush.msrb.mxu3 %v17666_v22  ;;  %v13661_v1 = vunpack.i.h.bf16 %v13659_v47  ;;  %v13660_v30 = vunpack.i.l.bf16 %v13659_v47  ;;  %7555 = vmatpush.msrb.mxu0 %v17496_v2  ;;  %v22350_v47 = vld [vmem:[#allocation74_spill] sm:$0xff] }
 0x454   :  { %7918 = vmatpush.msra.mxu1 %v17723_v59  ;;  %12767 = vmatmul.msk.f32.gmra.mxu2 %vm1300_vm4, %v17617_v23 }
 0x455   :  { %12769 = vmatmul.msk.f32.gmra.mxu3 %vm1300_vm4, %v17617_v23  ;;  %v5977_v42 = vsel %vm258_vm3, %v17494_v3, %v13661_v1  ;;  %v5763_v17 = vsel %vm258_vm3, %v22344_v54, %v13660_v30  ;;  %12770 = vmatmul.msk.f32.vlgmr.msrb.gmra.mxu0 %vm1300_vm4, %v17579_v0  ;;  %v18141_v0 = vpop.permute.xlu1 %13663 }
 0x456   :  { %7851 = vmatpush.msrb.mxu2 %v17313_v12  ;;  %7874 = vmatpush.msrb.mxu3 %v17315_v18  ;;  %v6037_v41 = vmax.f32 %v17266_v16, %v5977_v42  ;;  %v5823_v3 = vmax.f32 %v17239_v50, %v5763_v17  ;;  %v22345_v12 = vld [vmem:[#allocation68_spill] sm:$0xff]  ;;  %22346 = vst [vmem:[#allocation111_spill] sm:$0xff] %v18141_v0  ;;  %v22351_v42 = vld [vmem:[#allocation79_spill] sm:$0xff]  ;;  %v21405_v54 = vunpack.i.h.bf16 %v18141_v0  ;;  %v22356_v17 = vld [vmem:[#allocation41_spill] sm:$0xff] }
 0x457   :  { %7893 = vmatpush.msra.mxu0 %v17680_v5  ;;  %7919 = vmatpush.msra.mxu1 %v17757_v56  ;;  %v22374_v56 = vld [vmem:[#allocation105_spill] sm:$0xff] }
 0x458   :  { %12774 = vmatmul.msk.f32.vlgmr.msrb.gmra.mxu1 %vm1300_vm4, %v18126_v10  ;;  %7939 = vmatpush.msra.mxu2 %v17686_v46  ;;  %v6067_v50 = vmax.f32 %v5823_v3, %v6037_v41  ;;  %v22353_v46 = vld [vmem:[#allocation82_spill] sm:$0xff]  ;;  %v18158_v41 = vld [vmem:[%s20952_s3 + $0x18] sm:$0xff] }
 0x459   :  { %7962 = vmatpush.msra.mxu3 %v17673_v36  ;;  %7894 = vmatpush.msra.mxu0 %v17706_v52 }
 0x45a   :  { %7920 = vmatpush.msra.mxu1 %v17343_v19  ;;  %7940 = vmatpush.msra.mxu2 %v22345_v12  ;;  %v22352_v12 = vld [vmem:[#allocation73_spill] sm:$0xff]  ;;  %v22354_v19 = vld [vmem:[#allocation86_spill] sm:$0xff]  ;;  %v18160_v3 = vmax.f32 %v6067_v50, 0.0 }
 0x45b   :  { %7963 = vmatpush.msra.mxu3 %v22347_v61  ;;  %7895 = vmatpush.msra.mxu0 %v22349_v25 }
 0x45c   :  { %8008 = vmatpush.msrb.mxu1 %v22348_v44  ;;  %7941 = vmatpush.msra.mxu2 %v22350_v47  ;;  %22355 = vst [vmem:[#allocation164_spill] sm:$0xff] %v18160_v3  ;;  %v22357_v47 = vunpack.i.l.bf16 %v18141_v0  ;;  %v22361_v44 = vld [vmem:[#allocation62_spill] sm:$0xff] }
 0x45d   :  { %7964 = vmatpush.msra.mxu3 %v22351_v42  ;;  %7896 = vmatpush.msra.mxu0 %v22352_v12  ;;  %v22371_v0 = vld [vmem:[#allocation38_spill] sm:$0xff] }
 0x45e   :  { %8009 = vmatpush.msrb.mxu1 %v17832_v9  ;;  %7942 = vmatpush.msra.mxu2 %v22353_v46  ;;  %v5978_v46 = vsel %vm258_vm3, %v13661_v1, %v21405_v54  ;;  %v5764_v50 = vsel %vm258_vm3, %v13660_v30, %v22357_v47  ;;  %v22360_v9 = vld [vmem:[#allocation83_spill] sm:$0xff]  ;;  %v22362_v30 = vld [vmem:[#allocation85_spill] sm:$0xff] }
 0x45f   :  { %7965 = vmatpush.msra.mxu3 %v22354_v19  ;;  %12771 = vmatmul.msk.f32.gmra.mxu0 %vm1300_vm4, %v17617_v23  ;;  %v22358_v23 = vld [vmem:[#allocation46_spill] sm:$0xff]  ;;  %v6038_v1 = vmax.f32 %v22361_v44, %v5978_v46  ;;  %v5824_v54 = vmax.f32 %v17266_v16, %v5764_v50  ;;  %v22363_v47 = vld [vmem:[#allocation89_spill] sm:$0xff]  ;;  %v22366_v16 = vld [vmem:[#allocation91_spill] sm:$0xff] }
 0x460   :  { %8010 = vmatpush.msrb.mxu1 %v17849_v8  ;;  %12776 = vmatmul.msk.f32.vlgmr.msrb.gmra.mxu2 %vm1300_vm4, %v18126_v10  ;;  %v22359_v8 = vld [vmem:[#allocation43_spill] sm:$0xff]  ;;  %v22367_v50 = vld [vmem:[#allocation98_spill] sm:$0xff]  ;;  %v22368_v44 = vld [vmem:[#allocation45_spill] sm:$0xff] }
 0x461   :  { %12778 = vmatmul.msk.f32.vlgmr.msrb.gmra.mxu3 %vm1300_vm4, %v18126_v10  ;;  %7897 = vmatpush.msra.mxu0 %v22356_v17  ;;  %v6068_v46 = vmax.f32 %v5824_v54, %v6038_v1  ;;  %v22372_v54 = vld [vmem:[#allocation99_spill] sm:$0xff] }
 0x462   :  { %12775 = vmatmul.msk.f32.gmra.mxu1 %vm1300_vm4, %v18158_v41  ;;  %7943 = vmatpush.msra.mxu2 %v22358_v23  ;;  %v22364_v23 = vld [vmem:[#allocation96_spill] sm:$0xff] }
 0x463   :  { %7966 = vmatpush.msra.mxu3 %v22359_v8  ;;  %7985 = vmatpush.msrb.mxu0 %v22360_v9  ;;  %v18208_v1 = vmax.f32 %v6068_v46, 0.0 }
 0x464   :  { %8011 = vmatpush.msrb.mxu1 %v17872_v15  ;;  %6446 = vrot.lane.b32.xlu1 %v18160_v3, %s14161_s21  ;;  %v22365_v15 = vld [vmem:[#allocation87_spill] sm:$0xff] }
 0x465   :  { %6653 = vrot.lane.b32.xlu0 %v18160_v3, %s14167_s28  ;;  %6861 = vrot.lane.b32.xlu2 %v18160_v3, %s14166_s27  ;;  %22373 = vst [vmem:[#allocation139_spill] sm:$0xff] %v18208_v1 }
 0x466   :  { %8031 = vmatpush.msrb.mxu2 %v22362_v30  ;;  %8054 = vmatpush.msrb.mxu3 %v22363_v47  ;;  %v22369_v30 = vld [vmem:[#allocation94_spill] sm:$0xff] }
 0x467   :  { %7986 = vmatpush.msrb.mxu0 %v17829_v53  ;;  %8012 = vmatpush.msrb.mxu1 %v17389_v7  ;;  %v22370_v7 = vld [vmem:[#allocation151_spill] sm:$0xff] }
 0x468   :  { %8032 = vmatpush.msrb.mxu2 %v22364_v23  ;;  %8055 = vmatpush.msrb.mxu3 %v22365_v15  ;;  %v1975_v23 = vadd.f32 %v22371_v0, %v22370_v7  ;;  %v22377_v7 = vld [vmem:[#allocation123_spill] sm:$0xff] }
 0x469   :  { %7987 = vmatpush.msrb.mxu0 %v22366_v16  ;;  %12777 = vmatmul.msk.f32.gmra.mxu2 %vm1300_vm4, %v18158_v41 }
 0x46a   :  { %8033 = vmatpush.msrb.mxu2 %v22367_v50  ;;  %8056 = vmatpush.msrb.mxu3 %v22368_v44  ;;  %v22375_v50 = vld [vmem:[#allocation32_spill] sm:$0xff] }
 0x46b   :  { %7988 = vmatpush.msrb.mxu0 %v22369_v30  ;;  %12779 = vmatmul.msk.f32.gmra.mxu3 %vm1300_vm4, %v18158_v41  ;;  %v2876_v59 = vadd.f32 %v22375_v50, %v1975_v23  ;;  %v22380_v23 = vld [vmem:[#allocation104_spill] sm:$0xff] }
 0x46c   :  { %12780 = vmatmul.msk.f32.vlgmr.msra.gmra.mxu0 %vm1300_vm4, %v18126_v10  ;;  %8034 = vmatpush.msrb.mxu2 %v22372_v54  ;;  %v22378_v54 = vld [vmem:[#allocation50_spill] sm:$0xff]  ;;  %v22381_v50 = vld [vmem:[#allocation116_spill] sm:$0xff] }
 0x46d   :  { %8057 = vmatpush.msrb.mxu3 %v22374_v56  ;;  %12782 = vmatmul.msk.f32.vlgmr.msra.gmra.mxu1 %vm1300_vm4, %v18126_v10  ;;  %v3777_v46 = vadd.f32 %v22377_v7, %v2876_v59  ;;  %v1976_v59 = vadd.f32 %v22371_v0, %v22383_v20  ;;  %v22384_v7 = vld [vmem:[#allocation108_spill] sm:$0xff]  ;;  %v22387_v20 = vld [vmem:[#allocation103_spill] sm:$0xff]  ;;  %v22388_v0 = vld [vmem:[#allocation61_spill] sm:$0xff] }
 0x46e   :  { %7989 = vmatpush.msrb.mxu0 %v22376_v27  ;;  %8100 = vmatpush.msra.mxu1 %v17907_v35 }
 0x46f   :  { %6655 = vrot.lane.b32.xlu1 %v18208_v1, %s14167_s28  ;;  %6863 = vrot.lane.b32.xlu0 %v18208_v1, %s14166_s27  ;;  %v4678_v35 = vadd.f32 %v22381_v50, %v3777_v46  ;;  %v22385_v46 = vld [vmem:[#allocation30_spill] sm:$0xff] }
 0x470   :  { %6239 = vrot.lane.b32.xlu2 %v18160_v3, %s14163_s23  ;;  %8035 = vmatpush.msrb.mxu2 %v22378_v54  ;;  %v2877_v50 = vadd.f32 %v22385_v46, %v1976_v59  ;;  %v22390_v59 = vld [vmem:[#allocation18_spill] sm:$0xff] }
 0x471   :  { %8058 = vmatpush.msrb.mxu3 %v22379_v48  ;;  %8077 = vmatpush.msra.mxu0 %v22380_v23  ;;  %v18235_v54 = vadd.f32 %v5450_v60, %v4678_v35  ;;  %v22389_v60 = vld [vmem:[#allocation125_spill] sm:$0xff] }
 0x472   :  { %8101 = vmatpush.msra.mxu1 %v22382_v40  ;;  %12784 = vmatmul.msk.f32.vlgmr.msra.gmra.mxu2 %vm1300_vm4, %v18126_v10  ;;  %v22386_v40 = vld [vmem:[#allocation106_spill] sm:$0xff]  ;;  %v3778_v35 = vadd.f32 %v22389_v60, %v2877_v50  ;;  %v22391_v50 = vld [vmem:[#allocation136_spill] sm:$0xff] }
 0x473   :  { %8078 = vmatpush.msra.mxu0 %v22384_v7  ;;  %12786 = vmatmul.msk.f32.vlgmr.msra.gmra.mxu3 %vm1300_vm4, %v18126_v10  ;;  %v13667_v3 = vpack.i.bf16 %v18235_v54, %v22388_v0 }
 0x474   :  { %8102 = vmatpush.msra.mxu1 %v17932_v24  ;;  %12781 = vmatmul.msk.f32.gmra.mxu0 %vm1300_vm4, %v18158_v41  ;;  %v5470_v24 = vpop.f32.mrf.mxu3  ;;  %v4679_v46 = vadd.f32 %v22390_v59, %v3778_v35  ;;  %v22394_v35 = vld [vmem:[#allocation124_spill] sm:$0xff]  ;;  %v22395_v59 = vld [vmem:[#allocation119_spill] sm:$0xff] }
 0x475   :  { %8079 = vmatpush.msra.mxu0 %v17935_v4  ;;  %8123 = vmatpush.msra.mxu2 %v22386_v40  ;;  %v22392_v40 = vld [vmem:[#allocation118_spill] sm:$0xff] }
 0x476   :  { %8103 = vmatpush.msra.mxu1 %v17946_v55  ;;  %8146 = vmatpush.msra.mxu3 %v22387_v20  ;;  %v18260_v60 = vadd.f32 %v5470_v24, %v4679_v46  ;;  %v22396_v46 = vld [vmem:[#allocation60_spill] sm:$0xff] }
 0x477   :  { %8080 = vmatpush.msra.mxu0 %v17942_v58  ;;  %12783 = vmatmul.msk.f32.gmra.mxu1 %vm1300_vm4, %v18158_v41 }
 0x478   :  { %8104 = vmatpush.msra.mxu1 %v17417_v49  ;;  %13668 = vrot.lane.b32.xlu1 %v13667_v3, %s14164_s13  ;;  %v22393_v3 = vld [vmem:[#allocation78_spill] sm:$0xff]  ;;  %v13672_v24 = vpack.i.bf16 %v18260_v60, %v18235_v54 }
 0x479   :  { %6241 = vrot.lane.b32.xlu0 %v18208_v1, %s14163_s23  ;;  %6448 = vrot.lane.b32.xlu2 %v18208_v1, %s14161_s21  ;;  %v22397_v1 = vld [vmem:[#allocation122_spill] sm:$0xff] }
 0x47a   :  { %8081 = vmatpush.msra.mxu0 %v17400_v51  ;;  %8124 = vmatpush.msra.mxu2 %v22391_v50 }
 0x47b   :  { %8147 = vmatpush.msra.mxu3 %v22392_v40  ;;  %12785 = vmatmul.msk.f32.gmra.mxu2 %vm1300_vm4, %v18158_v41 }
 0x47c   :  { %8125 = vmatpush.msra.mxu2 %v22393_v3  ;;  %12787 = vmatmul.msk.f32.gmra.mxu3 %vm1300_vm4, %v18158_v41 }
 0x47d   :  { %8148 = vmatpush.msra.mxu3 %v17993_v31  ;;  %12788 = vmatmul.msk.f32.vlgmr.msrb.gmra.mxu0 %vm1300_vm4, %v18126_v10 }
 0x47e   :  { %8126 = vmatpush.msra.mxu2 %v22394_v35  ;;  %8169 = vmatpush.msrb.mxu0 %v22395_v59  ;;  %v22400_v35 = vld [vmem:[#allocation107_spill] sm:$0xff] }
 0x47f   :  { %8149 = vmatpush.msra.mxu3 %v17999_v33  ;;  %12790 = vmatmul.msk.f32.vlgmr.msrb.gmra.mxu1 %vm1300_vm4, %v18126_v10 }
 0x480   :  { %8127 = vmatpush.msra.mxu2 %v22396_v46  ;;  %8192 = vmatpush.msrb.mxu1 %v22397_v1  ;;  %v22398_v46 = vld [vmem:[#allocation141_spill] sm:$0xff] }
 0x481   :  { %8150 = vmatpush.msra.mxu3 %v17434_v11  ;;  %13673 = vrot.lane.b32.xlu2 %v13672_v24, %s14164_s13  ;;  %v22399_v24 = vld [vmem:[#allocation161_spill] sm:$0xff] }
 0x482   :  { %8170 = vmatpush.msrb.mxu0 %v18003_v26  ;;  %8193 = vmatpush.msrb.mxu1 %v18006_v37 }
 0x483   :  { %12792 = vmatmul.msk.f32.vlgmr.msrb.gmra.mxu2 %vm1300_vm4, %v18126_v10 }
 0x484   :  { %8171 = vmatpush.msrb.mxu0 %v18034_v13  ;;  %8194 = vmatpush.msrb.mxu1 %v18051_v39 }
 0x485   :  { %12794 = vmatmul.msk.f32.vlgmr.msrb.gmra.mxu3 %vm1300_vm4, %v18126_v10  ;;  %8215 = vmatpush.msrb.mxu2 %v22398_v46 }
 0x486   :  { %8172 = vmatpush.msrb.mxu0 %v18041_v43  ;;  %8195 = vmatpush.msrb.mxu1 %v18060_v63 }
 0x487   :  { %8238 = vmatpush.msrb.mxu3 %v22399_v24  ;;  %8216 = vmatpush.msrb.mxu2 %v22400_v35 }
 0x488   :  { %8173 = vmatpush.msrb.mxu0 %v17432_v45  ;;  %8196 = vmatpush.msrb.mxu1 %v17465_v38 }
 0x489   :  { %8239 = vmatpush.msrb.mxu3 %v18076_v32  ;;  %8217 = vmatpush.msrb.mxu2 %v18054_v6 }
 0x48a   :  { %12789 = vmatmul.msk.f32.gmra.mxu0 %vm1300_vm4, %v18158_v41  ;;  %12791 = vmatmul.msk.f32.gmra.mxu1 %vm1300_vm4, %v18158_v41 }
 0x48b   :  { %8240 = vmatpush.msrb.mxu3 %v18093_v21  ;;  %8218 = vmatpush.msrb.mxu2 %v18063_v57 }
 0x48c   :  { %12793 = vmatmul.msk.f32.gmra.mxu2 %vm1300_vm4, %v18158_v41 }
 0x48d   :  { %8241 = vmatpush.msrb.mxu3 %v18105_v29  ;;  %8219 = vmatpush.msrb.mxu2 %v17483_v14 }
 0x48e   :  { %12795 = vmatmul.msk.f32.gmra.mxu3 %vm1300_vm4, %v18158_v41 }
 0x48f   :  { %8242 = vmatpush.msrb.mxu3 %v17496_v2 }
 0x492   :  { %12796 = vmatmul.msk.f32.vlgmr.msra.gmra.mxu0 %vm1300_vm4, %v18126_v10  ;;  %12798 = vmatmul.msk.f32.vlgmr.msra.gmra.mxu1 %vm1300_vm4, %v18126_v10 }
 0x494   :  { %12800 = vmatmul.msk.f32.vlgmr.msra.gmra.mxu2 %vm1300_vm4, %v18126_v10 }
 0x495   :  { %8547 = vmatpush.msra.mxu2 %v17585_v28  ;;  %v18381_v28 = vld [vmem:[%s20952_s3 + $0x28] sm:$0xff] }
 0x496   :  { %12802 = vmatmul.msk.f32.vlgmr.msra.gmra.mxu3 %vm1300_vm4, %v18126_v10 }
 0x497   :  { %8570 = vmatpush.msra.mxu3 %v17680_v5  ;;  %8548 = vmatpush.msra.mxu2 %v17637_v62  ;;  %v18387_v62 = vpop.f32.mrf.mxu3 }
 0x498   :  { %22401 = vst [vmem:[#allocation156_spill] sm:$0xff] %v18387_v62 }
 0x499   :  { %8571 = vmatpush.msra.mxu3 %v17706_v52  ;;  %8549 = vmatpush.msra.mxu2 %v17654_v34  ;;  %v18399_v52 = vpop.f32.mrf.mxu0 }
 0x49a   :  { %12797 = vmatmul.msk.f32.gmra.mxu0 %vm1300_vm4, %v18158_v41  ;;  %12799 = vmatmul.msk.f32.gmra.mxu1 %vm1300_vm4, %v18158_v41 }
 0x49b   :  { %8572 = vmatpush.msra.mxu3 %v22349_v25  ;;  %8550 = vmatpush.msra.mxu2 %v17666_v22  ;;  %v22402_v22 = vld [vmem:[#allocation140_spill] sm:$0xff]  ;;  %v18412_v25 = vpop.f32.mrf.mxu2 }
 0x49c   :  { %12801 = vmatmul.msk.f32.gmra.mxu2 %vm1300_vm4, %v18158_v41  ;;  %22405 = vst [vmem:[#allocation112_spill] sm:$0xff] %v18412_v25 }
 0x49d   :  { %8573 = vmatpush.msra.mxu3 %v22352_v12  ;;  %8551 = vmatpush.msra.mxu2 %v17315_v18  ;;  %v18367_v18 = vld [vmem:[%s20952_s3 + $0x20] sm:$0xff] }
 0x49e   :  { %12803 = vmatmul.msk.f32.gmra.mxu3 %vm1300_vm4, %v18158_v41 }
 0x49f   :  { %8574 = vmatpush.msra.mxu3 %v22356_v17  ;;  %v18404_v12 = vpop.f32.mrf.mxu3 }
 0x4a0   :  { %22404 = vst [vmem:[#allocation145_spill] sm:$0xff] %v18404_v12 }
 0x4a1   :  { %v18418_v17 = vpop.f32.mrf.mxu0 }
 0x4a2   :  { %12804 = vmatmul.msk.f32.vlgmr.msrb.gmra.mxu0 %vm1300_vm4, %v18126_v10  ;;  %12806 = vmatmul.msk.f32.vlgmr.msrb.gmra.mxu1 %vm1300_vm4, %v18126_v10  ;;  %22406 = vst [vmem:[#allocation81_spill] sm:$0xff] %v18418_v17 }
 0x4a4   :  { %12808 = vmatmul.msk.f32.vlgmr.msrb.gmra.mxu2 %vm1300_vm4, %v18126_v10 }
 0x4a5   :  { %8639 = vmatpush.msrb.mxu2 %v17673_v36 }
 0x4a6   :  { %12810 = vmatmul.msk.f32.vlgmr.msrb.gmra.mxu3 %vm1300_vm4, %v18126_v10 }
 0x4a7   :  { %8662 = vmatpush.msrb.mxu3 %v22360_v9  ;;  %8640 = vmatpush.msrb.mxu2 %v22347_v61  ;;  %v18427_v12 = vpop.f32.mrf.mxu3 }
 0x4a8   :  { %22407 = vst [vmem:[#allocation146_spill] sm:$0xff] %v18427_v12 }
 0x4a9   :  { %8663 = vmatpush.msrb.mxu3 %v17829_v53  ;;  %8641 = vmatpush.msrb.mxu2 %v22351_v42  ;;  %v18436_v17 = vpop.f32.mrf.mxu0 }
 0x4aa   :  { %12805 = vmatmul.msk.f32.gmra.mxu0 %vm1300_vm4, %v18158_v41  ;;  %12807 = vmatmul.msk.f32.gmra.mxu1 %vm1300_vm4, %v18158_v41  ;;  %22409 = vst [vmem:[#allocation165_spill] sm:$0xff] %v18436_v17 }
 0x4ab   :  { %8664 = vmatpush.msrb.mxu3 %v22366_v16  ;;  %8642 = vmatpush.msrb.mxu2 %v22354_v19 }
 0x4ac   :  { %12809 = vmatmul.msk.f32.gmra.mxu2 %vm1300_vm4, %v18158_v41 }
 0x4ad   :  { %8665 = vmatpush.msrb.mxu3 %v22369_v30  ;;  %8643 = vmatpush.msrb.mxu2 %v22359_v8  ;;  %v22455_v8 = vld [vmem:[#allocation138_spill] sm:$0xff] }
 0x4ae   :  { %12811 = vmatmul.msk.f32.gmra.mxu3 %vm1300_vm4, %v18158_v41  ;;  %v22456_v30 = vld [vmem:[#allocation82_spill] sm:$0xff] }
 0x4af   :  { %8666 = vmatpush.msrb.mxu3 %v22376_v27  ;;  %v22452_v27 = vld [vmem:[#allocation110_spill] sm:$0xff] }
 0x4b4   :  { %12818 = vmatmul.msk.f32.vlgmr.msra.gmra.mxu2 %vm1300_vm4, %v18367_v18 }
 0x4b5   :  { %8731 = vmatpush.msra.mxu2 %v22363_v47  ;;  %v22451_v47 = vld [vmem:[#allocation74_spill] sm:$0xff] }
 0x4b6   :  { %12820 = vmatmul.msk.f32.vlgmr.msra.gmra.mxu3 %vm1300_vm4, %v18367_v18 }
 0x4b7   :  { %8754 = vmatpush.msra.mxu3 %v22380_v23  ;;  %8732 = vmatpush.msra.mxu2 %v22365_v15  ;;  %v22437_v15 = vld [vmem:[#allocation88_spill] sm:$0xff]  ;;  %v22450_v23 = vld [vmem:[#allocation59_spill] sm:$0xff] }
 0x4b9   :  { %8755 = vmatpush.msra.mxu3 %v22384_v7  ;;  %8733 = vmatpush.msra.mxu2 %v22368_v44 }
 0x4bb   :  { %8756 = vmatpush.msra.mxu3 %v17935_v4  ;;  %8734 = vmatpush.msra.mxu2 %v22374_v56 }
 0x4bc   :  { %12819 = vmatmul.msk.f32.gmra.mxu2 %vm1300_vm4, %v18381_v28 }
 0x4bd   :  { %8757 = vmatpush.msra.mxu3 %v17942_v58  ;;  %8735 = vmatpush.msra.mxu2 %v22379_v48  ;;  %v22431_v58 = vld [vmem:[#allocation84_spill] sm:$0xff] }
 0x4be   :  { %12821 = vmatmul.msk.f32.gmra.mxu3 %vm1300_vm4, %v18381_v28 }
 0x4bf   :  { %8758 = vmatpush.msra.mxu3 %v17400_v51  ;;  %v6862_v34 = vpop.permute.xlu2 %6861 }
 0x4c0   :  { %v18396_v5 = vsel %vm6877_vm5, %v22402_v22, %v6862_v34 }
 0x4c1   :  { %22403 = vst [vmem:[#allocation121_spill] sm:$0xff] %v18396_v5  ;;  %8261 = vmatpush.msra.mxu0 %v18396_v5 }
 0x4c4   :  { %12826 = vmatmul.msk.f32.vlgmr.msrb.gmra.mxu2 %vm1300_vm4, %v18367_v18 }
 0x4c5   :  { %8823 = vmatpush.msrb.mxu2 %v22387_v20 }
 0x4c6   :  { %12828 = vmatmul.msk.f32.vlgmr.msrb.gmra.mxu3 %vm1300_vm4, %v18367_v18 }
 0x4c7   :  { %8846 = vmatpush.msrb.mxu3 %v22395_v59  ;;  %8824 = vmatpush.msrb.mxu2 %v22392_v40 }
 0x4c9   :  { %8847 = vmatpush.msrb.mxu3 %v18003_v26  ;;  %8825 = vmatpush.msrb.mxu2 %v17993_v31 }
 0x4ca   :  { %v18424_v22 = vpop.permute.xlu2 %6239 }
 0x4cb   :  { %8848 = vmatpush.msrb.mxu3 %v18034_v13  ;;  %8826 = vmatpush.msrb.mxu2 %v17999_v33  ;;  %v18429_v13 = vpop.f32.mrf.mxu2  ;;  %v22413_v33 = vld [vmem:[#allocation10_spill] sm:$0xff] }
 0x4cc   :  { %12827 = vmatmul.msk.f32.gmra.mxu2 %vm1300_vm4, %v18381_v28  ;;  %22408 = vst [vmem:[#allocation24_spill] sm:$0xff] %v18429_v13 }
 0x4cd   :  { %8849 = vmatpush.msrb.mxu3 %v18041_v43  ;;  %8827 = vmatpush.msrb.mxu2 %v17434_v11  ;;  %v22410_v43 = vld [vmem:[#allocation71_spill] sm:$0xff] }
 0x4ce   :  { %12829 = vmatmul.msk.f32.gmra.mxu3 %vm1300_vm4, %v18381_v28 }
 0x4cf   :  { %8850 = vmatpush.msrb.mxu3 %v17432_v45 }
 0x4d3   :  { %v18444_v13 = vpop.permute.xlu2 %6448 }
 0x4d4   :  { %12834 = vmatmul.msk.f32.vlgmr.msra.gmra.mxu2 %vm1300_vm4, %v18367_v18 }
 0x4d5   :  { %8915 = vmatpush.msra.mxu2 %v22399_v24  ;;  %v18448_v24 = vpop.f32.mrf.mxu3 }
 0x4d6   :  { %12836 = vmatmul.msk.f32.vlgmr.msra.gmra.mxu3 %vm1300_vm4, %v18367_v18  ;;  %v6447_v11 = vpop.permute.xlu1 %6446  ;;  %22412 = vst [vmem:[#allocation15_spill] sm:$0xff] %v18448_v24  ;;  %v18465_v24 = vpop.f32.mrf.mxu1 }
 0x4d7   :  { %8938 = vmatpush.msra.mxu3 %v18396_v5  ;;  %8916 = vmatpush.msra.mxu2 %v18076_v32  ;;  %v6654_v45 = vpop.permute.xlu0 %6653  ;;  %v18452_v17 = vsel %vm1029_vm0, %v22413_v33, %v6447_v11  ;;  %v22417_v33 = vld [vmem:[#allocation25_spill] sm:$0xff] }
 0x4d8   :  { %v18442_v12 = vsel %vm6669_vm6, %v22410_v43, %v6654_v45  ;;  %22414 = vst [vmem:[#allocation21_spill] sm:$0xff] %v18452_v17  ;;  %v22415_v43 = vld [vmem:[#allocation13_spill] sm:$0xff] }
 0x4d9   :  { %22411 = vst [vmem:[#allocation9_spill] sm:$0xff] %v18442_v12  ;;  %8917 = vmatpush.msra.mxu2 %v18093_v21  ;;  %8262 = vmatpush.msra.mxu0 %v18442_v12  ;;  %v18460_v32 = vsel %vm515_vm2, %v22415_v43, %v18424_v22  ;;  %v18473_v43 = vpop.f32.mrf.mxu0 }
 0x4da   :  { %8939 = vmatpush.msra.mxu3 %v18442_v12  ;;  %22416 = vst [vmem:[#allocation17_spill] sm:$0xff] %v18460_v32  ;;  %v22421_v12 = vld [vmem:[#allocation66_spill] sm:$0xff] }
 0x4db   :  { %8918 = vmatpush.msra.mxu2 %v18105_v29  ;;  %8263 = vmatpush.msra.mxu0 %v18452_v17  ;;  %22418 = vst [vmem:[#allocation19_spill] sm:$0xff] %v18473_v43 }
 0x4dc   :  { %8940 = vmatpush.msra.mxu3 %v18452_v17 }
 0x4dd   :  { %8919 = vmatpush.msra.mxu2 %v17496_v2  ;;  %8264 = vmatpush.msra.mxu0 %v18460_v32  ;;  %v22419_v2 = vld [vmem:[#allocation69_spill] sm:$0xff]  ;;  %v18489_v5 = vpop.f32.mrf.mxu3 }
 0x4de   :  { %12837 = vmatmul.msk.f32.gmra.mxu3 %vm1300_vm4, %v18381_v28  ;;  %22422 = vst [vmem:[#allocation33_spill] sm:$0xff] %v18489_v5  ;;  %v18504_v26 = vpop.f32.mrf.mxu1 }
 0x4df   :  { %8941 = vmatpush.msra.mxu3 %v18460_v32  ;;  %8265 = vmatpush.msra.mxu0 %v22417_v33  ;;  %v18485_v32 = vpop.permute.xlu2 %13673  ;;  %22426 = vst [vmem:[#allocation26_spill] sm:$0xff] %v18504_v26  ;;  %v22430_v26 = vld [vmem:[#allocation47_spill] sm:$0xff] }
 0x4e0   :  { %12812 = vmatmul.msk.f32.vlgmr.msra.gmra.mxu0 %vm1300_vm4, %v18126_v10  ;;  %v13675_v31 = vunpack.i.l.bf16 %v18485_v32  ;;  %v21475_v5 = vunpack.i.h.bf16 %v18485_v32 }
 0x4e1   :  { %v18475_v29 = vpop.permute.xlu1 %6655  ;;  %v18477_v17 = vpop.permute.xlu0 %6863  ;;  %8942 = vmatpush.msra.mxu3 %v22417_v33  ;;  %8593 = vmatpush.msrb.mxu0 %v22419_v2  ;;  %v22424_v33 = vld [vmem:[#allocation67_spill] sm:$0xff] }
 0x4e2   :  { %v18483_v21 = vsel %vm6877_vm5, %v6862_v34, %v18477_v17  ;;  %v18493_v43 = vsel %vm6669_vm6, %v6654_v45, %v18475_v29  ;;  %v18499_v34 = vsel %vm1029_vm0, %v6447_v11, %v18444_v13  ;;  %v22427_v45 = vld [vmem:[#allocation28_spill] sm:$0xff]  ;;  %v22428_v11 = vld [vmem:[#allocation111_spill] sm:$0xff]  ;;  %v18528_v56 = vpop.f32.mrf.mxu0 }
 0x4e3   :  { %22420 = vst [vmem:[#allocation128_spill] sm:$0xff] %v18483_v21  ;;  %8284 = vmatpush.msra.mxu1 %v18483_v21  ;;  %8594 = vmatpush.msrb.mxu0 %v22421_v12  ;;  %v22429_v40 = vunpack.i.h.bf16 %v22428_v11 }
 0x4e4   :  { %22423 = vst [vmem:[#allocation11_spill] sm:$0xff] %v18493_v43 }
 0x4e5   :  { %8285 = vmatpush.msra.mxu1 %v18493_v43  ;;  %8595 = vmatpush.msrb.mxu0 %v22424_v33  ;;  %22425 = vst [vmem:[#allocation34_spill] sm:$0xff] %v18499_v34  ;;  %v5979_v59 = vsel %vm258_vm3, %v22429_v40, %v13675_v31 }
 0x4e6   :  { %12844 = vmatmul.msk.f32.vlgmr.msrb.gmra.mxu3 %vm1300_vm4, %v18367_v18  ;;  %22432 = vst [vmem:[#allocation31_spill] sm:$0xff] %v18528_v56  ;;  %v6039_v4 = vmax.f32 %v22388_v0, %v5979_v59 }
 0x4e7   :  { %9270 = vmatpush.msrb.mxu3 %v22419_v2  ;;  %8286 = vmatpush.msra.mxu1 %v18499_v34  ;;  %v5980_v2 = vsel %vm258_vm3, %v13675_v31, %v21475_v5  ;;  %v22434_v31 = vunpack.i.l.bf16 %v22428_v11  ;;  %v22438_v11 = vld [vmem:[#allocation164_spill] sm:$0xff] }
 0x4e8   :  { %8596 = vmatpush.msrb.mxu0 %v22427_v45  ;;  %v6040_v56 = vmax.f32 %v18235_v54, %v5980_v2  ;;  %v18557_v2 = vpop.f32.mrf.mxu1 }
 0x4e9   :  { %9271 = vmatpush.msrb.mxu3 %v22421_v12  ;;  %12813 = vmatmul.msk.f32.gmra.mxu0 %vm1300_vm4, %v18158_v41  ;;  %22440 = vst [vmem:[#allocation12_spill] sm:$0xff] %v18557_v2  ;;  %v22449_v2 = vld [vmem:[#allocation57_spill] sm:$0xff] }
 0x4ea   :  { %v18516_v20 = vpop.permute.xlu1 %13668  ;;  %8597 = vmatpush.msrb.mxu0 %v22430_v26  ;;  %v18579_v25 = vpop.f32.mrf.mxu0 }
 0x4eb   :  { %v21479_v51 = vunpack.i.h.bf16 %v18516_v20  ;;  %v13670_v48 = vunpack.i.l.bf16 %v18516_v20  ;;  %v18524_v12 = vpop.permute.xlu0 %6241  ;;  %9272 = vmatpush.msrb.mxu3 %v22424_v33  ;;  %v18544_v33 = vpop.f32.mrf.mxu3  ;;  %22453 = vst [vmem:[#allocation58_spill] sm:$0xff] %v18579_v25 }
 0x4ec   :  { %8685 = vmatpush.msra.mxu0 %v22431_v58  ;;  %v18533_v40 = vsel %vm515_vm2, %v18424_v22, %v18524_v12  ;;  %22435 = vst [vmem:[#allocation29_spill] sm:$0xff] %v18544_v33  ;;  %v22436_v22 = vld [vmem:[#allocation62_spill] sm:$0xff] }
 0x4ed   :  { %22433 = vst [vmem:[#allocation75_spill] sm:$0xff] %v18533_v40  ;;  %v5765_v5 = vsel %vm258_vm3, %v22434_v31, %v13670_v48  ;;  %v5766_v44 = vsel %vm258_vm3, %v13670_v48, %v21479_v51  ;;  %8287 = vmatpush.msra.mxu1 %v18533_v40  ;;  %9273 = vmatpush.msrb.mxu3 %v22427_v45  ;;  %v22439_v45 = vld [vmem:[#allocation92_spill] sm:$0xff]  ;;  %v22448_v51 = vld [vmem:[#allocation51_spill] sm:$0xff] }
 0x4ee   :  { %v5825_v7 = vmax.f32 %v22436_v22, %v5765_v5  ;;  %v5826_v59 = vmax.f32 %v22388_v0, %v5766_v44  ;;  %8686 = vmatpush.msra.mxu0 %v22437_v15  ;;  %12845 = vmatmul.msk.f32.gmra.mxu3 %vm1300_vm4, %v18381_v28  ;;  %v22441_v5 = vld [vmem:[#allocation65_spill] sm:$0xff]  ;;  %v22443_v22 = vld [vmem:[#allocation95_spill] sm:$0xff] }
 0x4ef   :  { %8288 = vmatpush.msra.mxu1 %v22438_v11  ;;  %9274 = vmatpush.msrb.mxu3 %v22430_v26 }
 0x4f0   :  { %v6069_v48 = vmax.f32 %v5825_v7, %v6039_v4  ;;  %v6070_v31 = vmax.f32 %v5826_v59, %v6040_v56  ;;  %12814 = vmatmul.msk.f32.vlgmr.msra.gmra.mxu1 %vm1300_vm4, %v18126_v10  ;;  %8687 = vmatpush.msra.mxu0 %v22439_v45  ;;  %v22444_v4 = vld [vmem:[#allocation101_spill] sm:$0xff]  ;;  %v22445_v56 = vld [vmem:[#allocation38_spill] sm:$0xff]  ;;  %v22446_v7 = vld [vmem:[#allocation160_spill] sm:$0xff] }
 0x4f1   :  { %8616 = vmatpush.msrb.mxu1 %v22441_v5  ;;  %12822 = vmatmul.msk.f32.vlgmr.msrb.gmra.mxu0 %vm1300_vm4, %v18367_v18  ;;  %v1977_v26 = vadd.f32 %v22445_v56, %v22444_v4  ;;  %v1978_v10 = vadd.f32 %v22445_v56, %v22446_v7  ;;  %v22447_v59 = vld [vmem:[#allocation68_spill] sm:$0xff]  ;;  %v22454_v4 = vld [vmem:[#allocation109_spill] sm:$0xff] }
 0x4f2   :  { %v18562_v0 = vmax.f32 %v6069_v48, 0.0  ;;  %v18564_v44 = vmax.f32 %v6070_v31, 0.0  ;;  %8688 = vmatpush.msra.mxu0 %v22443_v22 }
 0x4f3   :  { %8617 = vmatpush.msrb.mxu1 %v22447_v59  ;;  %v2878_v48 = vadd.f32 %v22449_v2, %v1977_v26  ;;  %v2879_v31 = vadd.f32 %v22450_v23, %v1978_v10  ;;  %v18587_v2 = vpop.f32.mrf.mxu3  ;;  %v22458_v23 = vld [vmem:[#allocation117_spill] sm:$0xff]  ;;  %v18592_v26 = vpop.f32.mrf.mxu1  ;;  %v22460_v10 = vld [vmem:[#allocation44_spill] sm:$0xff] }
 0x4f4   :  { %22442 = vst [vmem:[#allocation131_spill] sm:$0xff] %v18564_v44  ;;  %8689 = vmatpush.msra.mxu0 %v22448_v51  ;;  %v13687_v33 = vpack.i.bf16 %v18564_v44, %v18562_v0  ;;  %v22461_v44 = vld [vmem:[#allocation40_spill] sm:$0xff] }
 0x4f5   :  { %8618 = vmatpush.msrb.mxu1 %v22451_v47  ;;  %v3779_v7 = vadd.f32 %v22454_v4, %v2878_v48  ;;  %v3780_v62 = vadd.f32 %v22455_v8, %v2879_v31  ;;  %22457 = vst [vmem:[#allocation148_spill] sm:$0xff] %v18587_v2  ;;  %v22462_v48 = vld [vmem:[#allocation46_spill] sm:$0xff]  ;;  %v22463_v8 = vld [vmem:[#allocation85_spill] sm:$0xff] }
 0x4f6   :  { %8777 = vmatpush.msrb.mxu0 %v22452_v27  ;;  %13688 = vrot.lane.b32.xlu2 %v13687_v33, %s14161_s21  ;;  %22459 = vst [vmem:[#allocation14_spill] sm:$0xff] %v18592_v26  ;;  %v22464_v4 = vld [vmem:[#allocation113_spill] sm:$0xff]  ;;  %v22472_v2 = vld [vmem:[#allocation106_spill] sm:$0xff]  ;;  %v22477_v26 = vld [vmem:[#allocation60_spill] sm:$0xff] }
 0x4f7   :  { %13683 = vrot.lane.b32.xlu1 %v13687_v33, %s14167_s28  ;;  %8619 = vmatpush.msrb.mxu1 %v22456_v30  ;;  %v4680_v25 = vadd.f32 %v22460_v10, %v3779_v7  ;;  %v4681_v19 = vadd.f32 %v22461_v44, %v3780_v62  ;;  %v22465_v62 = vld [vmem:[#allocation96_spill] sm:$0xff]  ;;  %v22466_v44 = vld [vmem:[#allocation98_spill] sm:$0xff]  ;;  %v22469_v7 = vld [vmem:[#allocation99_spill] sm:$0xff] }
 0x4f8   :  { %13678 = vrot.lane.b32.xlu0 %v13687_v33, %s14166_s27  ;;  %12815 = vmatmul.msk.f32.gmra.mxu1 %vm1300_vm4, %v18158_v41 }
 0x4f9   :  { %8778 = vmatpush.msrb.mxu0 %v22458_v23  ;;  %8620 = vmatpush.msrb.mxu1 %v22462_v48  ;;  %v18602_v31 = vadd.f32 %v18465_v24, %v4681_v19  ;;  %v18605_v41 = vadd.f32 %v18399_v52, %v4680_v25  ;;  %v18618_v24 = vpop.f32.mrf.mxu0 }
 0x4fa   :  { %12852 = vmatmul.msk.f32.vlgmr.msra.gmra.mxu3 %vm1300_vm4, %v18367_v18  ;;  %12823 = vmatmul.msk.f32.gmra.mxu0 %vm1300_vm4, %v18381_v28  ;;  %22467 = vst [vmem:[#allocation8_spill] sm:$0xff] %v18618_v24  ;;  %v22475_v24 = vld [vmem:[#allocation124_spill] sm:$0xff] }
 0x4fb   :  { %9362 = vmatpush.msra.mxu3 %v22431_v58  ;;  %8708 = vmatpush.msra.mxu1 %v22463_v8  ;;  %v13702_v19 = vpack.i.bf16 %v18602_v31, %v18605_v41  ;;  %v13697_v52 = vpack.i.bf16 %v18605_v41, %v18260_v60  ;;  %v18624_v25 = vpop.f32.mrf.mxu1  ;;  %v18628_v10 = vpop.f32.mrf.mxu3 }
 0x4fc   :  { %8779 = vmatpush.msrb.mxu0 %v22464_v4  ;;  %22468 = vst [vmem:[#allocation147_spill] sm:$0xff] %v18624_v25 }
 0x4fd   :  { %9363 = vmatpush.msra.mxu3 %v22437_v15  ;;  %8709 = vmatpush.msra.mxu1 %v22465_v62  ;;  %22470 = vst [vmem:[#allocation93_spill] sm:$0xff] %v18628_v10 }
 0x4fe   :  { %8780 = vmatpush.msrb.mxu0 %v17946_v55  ;;  %13703 = vrot.lane.b32.xlu2 %v13702_v19, %s14164_s13  ;;  %v18647_v19 = vld [vmem:[%s20952_s3 + $0x30] sm:$0xff] }
 0x4ff   :  { %9364 = vmatpush.msra.mxu3 %v22439_v45  ;;  %8710 = vmatpush.msra.mxu1 %v22466_v44 }
 0x500   :  { %13693 = vrot.lane.b32.xlu0 %v13687_v33, %s14163_s23  ;;  %8781 = vmatpush.msrb.mxu0 %v17417_v49  ;;  %v22471_v33 = vld [vmem:[#allocation50_spill] sm:$0xff] }
 0x501   :  { %9365 = vmatpush.msra.mxu3 %v22443_v22  ;;  %8711 = vmatpush.msra.mxu1 %v22469_v7  ;;  %v18651_v10 = vpop.f32.mrf.mxu0 }
 0x502   :  { %13698 = vrot.lane.b32.xlu1 %v13697_v52, %s14164_s13  ;;  %12824 = vmatmul.msk.f32.vlgmr.msrb.gmra.mxu1 %vm1300_vm4, %v18367_v18  ;;  %22474 = vst [vmem:[#allocation22_spill] sm:$0xff] %v18651_v10  ;;  %v18672_v10 = vld [vmem:[%s20952_s3 + $0x38] sm:$0xff] }
 0x503   :  { %12853 = vmatmul.msk.f32.gmra.mxu3 %vm1300_vm4, %v18381_v28  ;;  %8712 = vmatpush.msra.mxu1 %v22471_v33  ;;  %v18649_v52 = vpop.f32.mrf.mxu1  ;;  %v18659_v25 = vpop.f32.mrf.mxu3 }
 0x504   :  { %9366 = vmatpush.msra.mxu3 %v22448_v51  ;;  %12830 = vmatmul.msk.f32.vlgmr.msra.gmra.mxu0 %vm1300_vm4, %v18367_v18  ;;  %22473 = vst [vmem:[#allocation16_spill] sm:$0xff] %v18649_v52 }
 0x505   :  { %8800 = vmatpush.msrb.mxu1 %v22472_v2  ;;  %8869 = vmatpush.msra.mxu0 %v22397_v1  ;;  %22476 = vst [vmem:[#allocation150_spill] sm:$0xff] %v18659_v25 }
 0x507   :  { %8801 = vmatpush.msrb.mxu1 %v22391_v50  ;;  %8870 = vmatpush.msra.mxu0 %v18006_v37 }
 0x509   :  { %8802 = vmatpush.msrb.mxu1 %v22393_v3  ;;  %8871 = vmatpush.msra.mxu0 %v18051_v39  ;;  %v18682_v52 = vpop.f32.mrf.mxu0 }
 0x50a   :  { %12825 = vmatmul.msk.f32.gmra.mxu1 %vm1300_vm4, %v18381_v28  ;;  %22479 = vst [vmem:[#allocation23_spill] sm:$0xff] %v18682_v52  ;;  %v18712_v52 = vpop.f32.mrf.mxu2  ;;  %12835 = vmatmul.msk.f32.gmra.mxu2 %vm1300_vm4, %v18381_v28 }
 0x50b   :  { %8803 = vmatpush.msrb.mxu1 %v22475_v24  ;;  %12862 = vmatmul.msk.f32.vlgmr.msrb.gmra.mxu3 %vm1300_vm4, %v18647_v19  ;;  %v18674_v25 = vpop.f32.mrf.mxu1  ;;  %22484 = vst [vmem:[#allocation155_spill] sm:$0xff] %v18712_v52 }
 0x50c   :  { %9454 = vmatpush.msrb.mxu3 %v22452_v27  ;;  %8872 = vmatpush.msra.mxu0 %v18060_v63  ;;  %22478 = vst [vmem:[#allocation134_spill] sm:$0xff] %v18674_v25  ;;  %v18688_v25 = vpop.f32.mrf.mxu3 }
 0x50d   :  { %8804 = vmatpush.msrb.mxu1 %v22477_v26  ;;  %12831 = vmatmul.msk.f32.gmra.mxu0 %vm1300_vm4, %v18381_v28  ;;  %22480 = vst [vmem:[#allocation27_spill] sm:$0xff] %v18688_v25 }
 0x50e   :  { %9455 = vmatpush.msrb.mxu3 %v22458_v23  ;;  %8873 = vmatpush.msra.mxu0 %v17465_v38 }
 0x510   :  { %9456 = vmatpush.msrb.mxu3 %v22464_v4 }
 0x511   :  { %v18706_v25 = vpop.f32.mrf.mxu0 }
 0x512   :  { %9457 = vmatpush.msrb.mxu3 %v17946_v55  ;;  %12832 = vmatmul.msk.f32.vlgmr.msra.gmra.mxu1 %vm1300_vm4, %v18367_v18  ;;  %22482 = vst [vmem:[#allocation130_spill] sm:$0xff] %v18706_v25 }
 0x513   :  { %8892 = vmatpush.msra.mxu1 %v22398_v46  ;;  %12863 = vmatmul.msk.f32.gmra.mxu3 %vm1300_vm4, %v18672_v10  ;;  %v18693_v55 = vpop.f32.mrf.mxu1 }
 0x514   :  { %9458 = vmatpush.msrb.mxu3 %v17417_v49  ;;  %22481 = vst [vmem:[#allocation149_spill] sm:$0xff] %v18693_v55  ;;  %v18710_v55 = vpop.f32.mrf.mxu3  ;;  %v22588_v49 = vld [vmem:[#allocation63_spill] sm:$0xff] }
 0x515   :  { %8893 = vmatpush.msra.mxu1 %v22400_v35  ;;  %12838 = vmatmul.msk.f32.vlgmr.msrb.gmra.mxu0 %vm1300_vm4, %v18367_v18  ;;  %22483 = vst [vmem:[#allocation115_spill] sm:$0xff] %v18710_v55 }
 0x516   :  { %8961 = vmatpush.msrb.mxu0 %v18483_v21 }
 0x517   :  { %8894 = vmatpush.msra.mxu1 %v18054_v6 }
 0x518   :  { %8962 = vmatpush.msrb.mxu0 %v18493_v43 }
 0x519   :  { %8895 = vmatpush.msra.mxu1 %v18063_v57  ;;  %v18728_v55 = vpop.f32.mrf.mxu0 }
 0x51a   :  { %8963 = vmatpush.msrb.mxu0 %v18499_v34  ;;  %12833 = vmatmul.msk.f32.gmra.mxu1 %vm1300_vm4, %v18381_v28  ;;  %22486 = vst [vmem:[#allocation154_spill] sm:$0xff] %v18728_v55 }
 0x51b   :  { %8896 = vmatpush.msra.mxu1 %v17483_v14  ;;  %12870 = vmatmul.msk.f32.vlgmr.msra.gmra.mxu3 %vm1300_vm4, %v18647_v19 }
 0x51c   :  { %9546 = vmatpush.msra.mxu3 %v22397_v1  ;;  %8964 = vmatpush.msrb.mxu0 %v18533_v40  ;;  %v18717_v1 = vpop.f32.mrf.mxu1 }
 0x51d   :  { %12839 = vmatmul.msk.f32.gmra.mxu0 %vm1300_vm4, %v18381_v28  ;;  %22485 = vst [vmem:[#allocation153_spill] sm:$0xff] %v18717_v1  ;;  %v18733_v1 = vpop.f32.mrf.mxu3 }
 0x51e   :  { %9547 = vmatpush.msra.mxu3 %v18006_v37  ;;  %8965 = vmatpush.msrb.mxu0 %v22438_v11  ;;  %22488 = vst [vmem:[#allocation39_spill] sm:$0xff] %v18733_v1 }
 0x520   :  { %9548 = vmatpush.msra.mxu3 %v18051_v39  ;;  %v22576_v39 = vld [vmem:[#allocation161_spill] sm:$0xff] }
 0x522   :  { %9549 = vmatpush.msra.mxu3 %v18060_v63  ;;  %12840 = vmatmul.msk.f32.vlgmr.msrb.gmra.mxu1 %vm1300_vm4, %v18367_v18 }
 0x523   :  { %12871 = vmatmul.msk.f32.gmra.mxu3 %vm1300_vm4, %v18672_v10 }
 0x524   :  { %9550 = vmatpush.msra.mxu3 %v17465_v38  ;;  %v18731_v25 = vpop.f32.mrf.mxu1 }
 0x525   :  { %12846 = vmatmul.msk.f32.vlgmr.msra.gmra.mxu0 %vm1300_vm4, %v18367_v18  ;;  %22487 = vst [vmem:[#allocation133_spill] sm:$0xff] %v18731_v25 }
 0x526   :  { %9293 = vmatpush.msra.mxu0 %v22441_v5  ;;  %v18742_v5 = vpop.f32.mrf.mxu2  ;;  %12842 = vmatmul.msk.f32.vlgmr.msrb.gmra.mxu2 %vm1300_vm4, %v18367_v18 }
 0x527   :  { %22489 = vst [vmem:[#allocation20_spill] sm:$0xff] %v18742_v5 }
 0x528   :  { %9294 = vmatpush.msra.mxu0 %v22447_v59  ;;  %v18753_v59 = vpop.f32.mrf.mxu0 }
 0x529   :  { %22491 = vst [vmem:[#allocation157_spill] sm:$0xff] %v18753_v59 }
 0x52a   :  { %9295 = vmatpush.msra.mxu0 %v22451_v47  ;;  %12841 = vmatmul.msk.f32.gmra.mxu1 %vm1300_vm4, %v18381_v28 }
 0x52b   :  { %12878 = vmatmul.msk.f32.vlgmr.msrb.gmra.mxu3 %vm1300_vm4, %v18647_v19 }
 0x52c   :  { %9638 = vmatpush.msrb.mxu3 %v18483_v21  ;;  %9296 = vmatpush.msra.mxu0 %v22456_v30  ;;  %v18751_v47 = vpop.f32.mrf.mxu1 }
 0x52d   :  { %12847 = vmatmul.msk.f32.gmra.mxu0 %vm1300_vm4, %v18381_v28  ;;  %22490 = vst [vmem:[#allocation35_spill] sm:$0xff] %v18751_v47 }
 0x52e   :  { %9639 = vmatpush.msrb.mxu3 %v18493_v43  ;;  %9297 = vmatpush.msra.mxu0 %v22462_v48  ;;  %v18761_v30 = vpop.f32.mrf.mxu2 }
 0x52f   :  { %22492 = vst [vmem:[#allocation127_spill] sm:$0xff] %v18761_v30  ;;  %12843 = vmatmul.msk.f32.gmra.mxu2 %vm1300_vm4, %v18381_v28 }
 0x530   :  { %9640 = vmatpush.msrb.mxu3 %v18499_v34  ;;  %v18772_v59 = vpop.f32.mrf.mxu0 }
 0x531   :  { %22494 = vst [vmem:[#allocation72_spill] sm:$0xff] %v18772_v59 }
 0x532   :  { %9641 = vmatpush.msrb.mxu3 %v18533_v40  ;;  %12848 = vmatmul.msk.f32.vlgmr.msra.gmra.mxu1 %vm1300_vm4, %v18367_v18 }
 0x534   :  { %9642 = vmatpush.msrb.mxu3 %v22438_v11  ;;  %v18767_v48 = vpop.f32.mrf.mxu1 }
 0x535   :  { %12854 = vmatmul.msk.f32.vlgmr.msrb.gmra.mxu0 %vm1300_vm4, %v18367_v18  ;;  %22493 = vst [vmem:[#allocation76_spill] sm:$0xff] %v18767_v48 }
 0x536   :  { %9385 = vmatpush.msrb.mxu0 %v22463_v8  ;;  %v18778_v47 = vpop.f32.mrf.mxu2 }
 0x537   :  { %22495 = vst [vmem:[#allocation79_spill] sm:$0xff] %v18778_v47  ;;  %12850 = vmatmul.msk.f32.vlgmr.msra.gmra.mxu2 %vm1300_vm4, %v18367_v18 }
 0x538   :  { %9386 = vmatpush.msrb.mxu0 %v22465_v62  ;;  %v18784_v25 = vpop.f32.mrf.mxu0 }
 0x539   :  { %22497 = vst [vmem:[#allocation41_spill] sm:$0xff] %v18784_v25 }
 0x53a   :  { %9387 = vmatpush.msrb.mxu0 %v22466_v44  ;;  %12849 = vmatmul.msk.f32.gmra.mxu1 %vm1300_vm4, %v18381_v28 }
 0x53c   :  { %9388 = vmatpush.msrb.mxu0 %v22469_v7  ;;  %v18782_v55 = vpop.f32.mrf.mxu1 }
 0x53d   :  { %12855 = vmatmul.msk.f32.gmra.mxu0 %vm1300_vm4, %v18381_v28  ;;  %22496 = vst [vmem:[#allocation73_spill] sm:$0xff] %v18782_v55 }
 0x53e   :  { %9389 = vmatpush.msrb.mxu0 %v22471_v33  ;;  %v18789_v59 = vpop.f32.mrf.mxu2 }
 0x53f   :  { %22498 = vst [vmem:[#allocation83_spill] sm:$0xff] %v18789_v59  ;;  %12851 = vmatmul.msk.f32.gmra.mxu2 %vm1300_vm4, %v18381_v28 }
 0x540   :  { %v18801_v30 = vpop.f32.mrf.mxu0 }
 0x541   :  { %22500 = vst [vmem:[#allocation151_spill] sm:$0xff] %v18801_v30 }
 0x544   :  { %v18794_v47 = vpop.f32.mrf.mxu1 }
 0x545   :  { %12864 = vmatmul.msk.f32.vlgmr.msra.gmra.mxu0 %vm1300_vm4, %v18647_v19  ;;  %22499 = vst [vmem:[#allocation91_spill] sm:$0xff] %v18794_v47 }
 0x546   :  { %9477 = vmatpush.msra.mxu0 %v22472_v2  ;;  %v18803_v5 = vpop.f32.mrf.mxu2 }
 0x547   :  { %22501 = vst [vmem:[#allocation32_spill] sm:$0xff] %v18803_v5 }
 0x548   :  { %9478 = vmatpush.msra.mxu0 %v22391_v50  ;;  %v18813_v25 = vpop.f32.mrf.mxu0 }
 0x549   :  { %22504 = vst [vmem:[#allocation152_spill] sm:$0xff] %v18813_v25 }
 0x54a   :  { %9479 = vmatpush.msra.mxu0 %v22393_v3 }
 0x54c   :  { %9480 = vmatpush.msra.mxu0 %v22475_v24  ;;  %v18805_v59 = vpop.f32.mrf.mxu1 }
 0x54d   :  { %12865 = vmatmul.msk.f32.gmra.mxu0 %vm1300_vm4, %v18672_v10  ;;  %22502 = vst [vmem:[#allocation123_spill] sm:$0xff] %v18805_v59 }
 0x54e   :  { %9481 = vmatpush.msra.mxu0 %v22477_v26  ;;  %v18810_v52 = vpop.f32.mrf.mxu2  ;;  %v22586_v26 = vld [vmem:[#allocation17_spill] sm:$0xff] }
 0x54f   :  { %22503 = vst [vmem:[#allocation116_spill] sm:$0xff] %v18810_v52 }
 0x550   :  { %v18826_v52 = vpop.permute.xlu2 %13688  ;;  %v18828_v59 = vpop.f32.mrf.mxu0 }
 0x551   :  { %22508 = vst [vmem:[#allocation18_spill] sm:$0xff] %v18828_v59  ;;  %v13690_v59 = vunpack.i.l.bf16 %v18826_v52 }
 0x553   :  { %v18879_v34 = vsel %vm1029_vm0, %v18444_v13, %v13690_v59  ;;  %v22517_v13 = vunpack.i.h.bf16 %v18485_v32 }
 0x554   :  { %v18815_v1 = vpop.f32.mrf.mxu1  ;;  %22514 = vst [vmem:[#allocation13_spill] sm:$0xff] %v18879_v34 }
 0x555   :  { %12872 = vmatmul.msk.f32.vlgmr.msrb.gmra.mxu0 %vm1300_vm4, %v18647_v19  ;;  %22505 = vst [vmem:[#allocation30_spill] sm:$0xff] %v18815_v1 }
 0x556   :  { %9569 = vmatpush.msrb.mxu0 %v22398_v46  ;;  %v18822_v5 = vpop.f32.mrf.mxu2  ;;  %v22585_v46 = vld [vmem:[#allocation100_spill] sm:$0xff] }
 0x557   :  { %22506 = vst [vmem:[#allocation61_spill] sm:$0xff] %v18822_v5 }
 0x558   :  { %9570 = vmatpush.msrb.mxu0 %v22400_v35  ;;  %v18855_v43 = vpop.permute.xlu2 %13703  ;;  %v18857_v21 = vpop.f32.mrf.mxu0  ;;  %v22577_v35 = vld [vmem:[#allocation121_spill] sm:$0xff] }
 0x559   :  { %22512 = vst [vmem:[#allocation71_spill] sm:$0xff] %v18857_v21  ;;  %v22520_v38 = vunpack.i.h.bf16 %v18855_v43 }
 0x55a   :  { %9571 = vmatpush.msrb.mxu0 %v18054_v6 }
 0x55c   :  { %9572 = vmatpush.msrb.mxu0 %v18063_v57  ;;  %v18824_v30 = vpop.f32.mrf.mxu1 }
 0x55d   :  { %12873 = vmatmul.msk.f32.gmra.mxu0 %vm1300_vm4, %v18672_v10  ;;  %22507 = vst [vmem:[#allocation125_spill] sm:$0xff] %v18824_v30 }
 0x55e   :  { %9573 = vmatpush.msrb.mxu0 %v17483_v14  ;;  %v18832_v25 = vpop.f32.mrf.mxu2 }
 0x55f   :  { %22509 = vst [vmem:[#allocation136_spill] sm:$0xff] %v18832_v25 }
 0x564   :  { %v18841_v30 = vpop.f32.mrf.mxu1 }
 0x565   :  { %12880 = vmatmul.msk.f32.vlgmr.msra.gmra.mxu0 %vm1300_vm4, %v18647_v19  ;;  %22510 = vst [vmem:[#allocation78_spill] sm:$0xff] %v18841_v30  ;;  %v22515_v30 = vunpack.i.h.bf16 %v18826_v52 }
 0x569   :  { %v18834_v1 = vpop.permute.xlu1 %13683 }
 0x56a   :  { %v18836_v55 = vpop.permute.xlu0 %13678  ;;  %v13685_v47 = vunpack.i.l.bf16 %v18834_v1  ;;  %v21496_v11 = vunpack.i.h.bf16 %v18834_v1 }
 0x56b   :  { %v21495_v48 = vunpack.i.h.bf16 %v18836_v55  ;;  %v13680_v5 = vunpack.i.l.bf16 %v18836_v55 }
 0x56d   :  { %v18847_v40 = vsel %vm6877_vm5, %v18477_v17, %v13680_v5  ;;  %v18852_v25 = vsel %vm6877_vm5, %v13680_v5, %v21495_v48  ;;  %12881 = vmatmul.msk.f32.gmra.mxu0 %vm1300_vm4, %v18672_v10  ;;  %v18866_v17 = vsel %vm6669_vm6, %v18475_v29, %v13685_v47  ;;  %v18872_v5 = vsel %vm6669_vm6, %v13685_v47, %v21496_v11  ;;  %v18890_v11 = vpop.f32.mrf.mxu2 }
 0x56e   :  { %22511 = vst [vmem:[#allocation140_spill] sm:$0xff] %v18847_v40  ;;  %8984 = vmatpush.msrb.mxu1 %v18847_v40  ;;  %9007 = vmatpush.msrb.mxu2 %v18852_v25  ;;  %v13705_v48 = vunpack.i.l.bf16 %v18855_v43  ;;  %v18888_v47 = vsel %vm1029_vm0, %v13690_v59, %v22515_v30 }
 0x56f   :  { %9661 = vmatpush.msra.mxu0 %v18847_v40  ;;  %22513 = vst [vmem:[#allocation10_spill] sm:$0xff] %v18866_v17 }
 0x570   :  { %8985 = vmatpush.msrb.mxu1 %v18866_v17  ;;  %9008 = vmatpush.msrb.mxu2 %v18872_v5  ;;  %22516 = vst [vmem:[#allocation69_spill] sm:$0xff] %v18890_v11  ;;  %v5981_v29 = vsel %vm258_vm3, %v22517_v13, %v13705_v48  ;;  %v18910_v11 = vpop.f32.mrf.mxu1 }
 0x571   :  { %9662 = vmatpush.msra.mxu0 %v18866_v17  ;;  %22519 = vst [vmem:[#allocation67_spill] sm:$0xff] %v18910_v11  ;;  %v22523_v11 = vld [vmem:[#allocation139_spill] sm:$0xff] }
 0x572   :  { %v18882_v21 = vpop.permute.xlu0 %13693  ;;  %8986 = vmatpush.msrb.mxu1 %v18879_v34  ;;  %9009 = vmatpush.msrb.mxu2 %v18888_v47 }
 0x573   :  { %v21502_v40 = vunpack.i.h.bf16 %v18882_v21  ;;  %v13695_v17 = vunpack.i.l.bf16 %v18882_v21  ;;  %9663 = vmatpush.msra.mxu0 %v18879_v34  ;;  %v5982_v34 = vsel %vm258_vm3, %v13705_v48, %v22520_v38 }
 0x574   :  { %v18899_v14 = vpop.permute.xlu1 %13698  ;;  %v6042_v57 = vmax.f32 %v18605_v41, %v5982_v34 }
 0x575   :  { %v18903_v59 = vsel %vm515_vm2, %v18524_v12, %v13695_v17  ;;  %v18908_v30 = vsel %vm515_vm2, %v13695_v17, %v21502_v40  ;;  %v21506_v32 = vunpack.i.h.bf16 %v18899_v14  ;;  %v13700_v13 = vunpack.i.l.bf16 %v18899_v14  ;;  %12888 = vmatmul.msk.f32.vlgmr.msrb.gmra.mxu0 %vm1300_vm4, %v18647_v19  ;;  %v18923_v17 = vpop.f32.mrf.mxu0 }
 0x576   :  { %22518 = vst [vmem:[#allocation66_spill] sm:$0xff] %v18903_v59  ;;  %8987 = vmatpush.msrb.mxu1 %v18903_v59  ;;  %9010 = vmatpush.msrb.mxu2 %v18908_v30  ;;  %v6041_v12 = vmax.f32 %v18260_v60, %v5981_v29  ;;  %v22522_v40 = vunpack.i.h.bf16 %v18516_v20  ;;  %v18941_v20 = vpop.f32.mrf.mxu2 }
 0x577   :  { %9664 = vmatpush.msra.mxu0 %v18903_v59  ;;  %22521 = vst [vmem:[#allocation28_spill] sm:$0xff] %v18923_v17  ;;  %v5768_v48 = vsel %vm258_vm3, %v13700_v13, %v21506_v32  ;;  %v22541_v17 = vld [vmem:[#allocation156_spill] sm:$0xff] }
 0x578   :  { %v5767_v38 = vsel %vm258_vm3, %v22522_v40, %v13700_v13  ;;  %8988 = vmatpush.msrb.mxu1 %v22523_v11  ;;  %v5828_v59 = vmax.f32 %v18260_v60, %v5768_v48  ;;  %9011 = vmatpush.msrb.mxu2 %v18562_v0  ;;  %22524 = vst [vmem:[#allocation111_spill] sm:$0xff] %v18941_v20  ;;  %v18943_v40 = vpop.f32.mrf.mxu3  ;;  %v22531_v48 = vld [vmem:[#allocation129_spill] sm:$0xff]  ;;  %v22570_v20 = vld [vmem:[#allocation143_spill] sm:$0xff] }
 0x579   :  { %v5827_v63 = vmax.f32 %v18235_v54, %v5767_v38  ;;  %9665 = vmatpush.msra.mxu0 %v22523_v11  ;;  %12856 = vmatmul.msk.f32.vlgmr.msrb.gmra.mxu1 %vm1300_vm4, %v18367_v18  ;;  %22525 = vst [vmem:[#allocation47_spill] sm:$0xff] %v18943_v40  ;;  %v22527_v54 = vld [vmem:[#allocation159_spill] sm:$0xff]  ;;  %v18968_v38 = vpop.f32.mrf.mxu1 }
 0x57a   :  { %12858 = vmatmul.msk.f32.vlgmr.msrb.gmra.mxu2 %vm1300_vm4, %v18367_v18  ;;  %v18945_v34 = vmax.f32 %v5828_v59, %v6042_v57  ;;  %9316 = vmatpush.msra.mxu1 %v17673_v36  ;;  %v1980_v60 = vadd.f32 %v22445_v56, %v22527_v54  ;;  %v22529_v59 = vld [vmem:[#allocation135_spill] sm:$0xff]  ;;  %22530 = vst [vmem:[#allocation62_spill] sm:$0xff] %v18968_v38  ;;  %v22532_v54 = vld [vmem:[#allocation137_spill] sm:$0xff] }
 0x57b   :  { %v6071_v29 = vmax.f32 %v5827_v63, %v6041_v12  ;;  %9339 = vmatpush.msra.mxu2 %v22360_v9  ;;  %9993 = vmatpush.msrb.mxu0 %v17673_v36  ;;  %v22528_v63 = vld [vmem:[#allocation158_spill] sm:$0xff] }
 0x57c   :  { %22526 = vst [vmem:[#allocation84_spill] sm:$0xff] %v18945_v34  ;;  %12879 = vmatmul.msk.f32.gmra.mxu3 %vm1300_vm4, %v18672_v10  ;;  %v21507_v13 = vmax.f32 %v18945_v34, 0.0  ;;  %9317 = vmatpush.msra.mxu1 %v22347_v61  ;;  %v1979_v57 = vadd.f32 %v22445_v56, %v22528_v63  ;;  %v2881_v12 = vadd.f32 %v22529_v59, %v1980_v60  ;;  %v22534_v60 = vld [vmem:[#allocation37_spill] sm:$0xff]  ;;  %v22566_v34 = vld [vmem:[#allocation126_spill] sm:$0xff] }
 0x57d   :  { %v18954_v18 = vmax.f32 %v6071_v29, 0.0  ;;  %9340 = vmatpush.msra.mxu2 %v17829_v53  ;;  %9994 = vmatpush.msrb.mxu0 %v22347_v61  ;;  %v22533_v61 = vld [vmem:[#allocation102_spill] sm:$0xff]  ;;  %v18978_v59 = vpop.f32.mrf.mxu0 }
 0x57e   :  { %9318 = vmatpush.msra.mxu1 %v22351_v42  ;;  %v2880_v29 = vadd.f32 %v22531_v48, %v1979_v57  ;;  %v3782_v32 = vadd.f32 %v22532_v54, %v2881_v12  ;;  %12889 = vmatmul.msk.f32.gmra.mxu0 %vm1300_vm4, %v18672_v10  ;;  %22535 = vst [vmem:[#allocation88_spill] sm:$0xff] %v18978_v59  ;;  %v22536_v57 = vld [vmem:[#allocation86_spill] sm:$0xff]  ;;  %v18984_v48 = vpop.f32.mrf.mxu2 }
 0x57f   :  { %9341 = vmatpush.msra.mxu2 %v22366_v16  ;;  %v13717_v36 = vpack.i.bf16 %v21507_v13, %v18954_v18  ;;  %9995 = vmatpush.msrb.mxu0 %v22351_v42  ;;  %v22537_v12 = vld [vmem:[#allocation94_spill] sm:$0xff]  ;;  %22538 = vst [vmem:[#allocation92_spill] sm:$0xff] %v18984_v48  ;;  %v22540_v42 = vld [vmem:[#allocation36_spill] sm:$0xff] }
 0x580   :  { %v3781_v56 = vadd.f32 %v22533_v61, %v2880_v29  ;;  %v4683_v63 = vadd.f32 %v22534_v60, %v3782_v32  ;;  %9319 = vmatpush.msra.mxu1 %v22536_v57  ;;  %v18986_v54 = vpop.f32.mrf.mxu3  ;;  %v22542_v32 = vld [vmem:[#allocation43_spill] sm:$0xff]  ;;  %v22543_v61 = vld [vmem:[#allocation112_spill] sm:$0xff]  ;;  %v22544_v59 = vld [vmem:[#allocation42_spill] sm:$0xff] }
 0x581   :  { %13718 = vrot.lane.b32.xlu2 %v13717_v36, %s14161_s21  ;;  %13713 = vrot.lane.b32.xlu1 %v13717_v36, %s14167_s28  ;;  %22539 = vst [vmem:[#allocation65_spill] sm:$0xff] %v18986_v54  ;;  %v22562_v54 = vld [vmem:[#allocation90_spill] sm:$0xff] }
 0x582   :  { %13708 = vrot.lane.b32.xlu0 %v13717_v36, %s14166_s27  ;;  %9342 = vmatpush.msra.mxu2 %v22537_v12  ;;  %v4682_v13 = vadd.f32 %v22540_v42, %v3781_v56  ;;  %v5584_v29 = vadd.f32 %v22541_v17, %v4683_v63  ;;  %v22545_v56 = vld [vmem:[#allocation89_spill] sm:$0xff]  ;;  %v22546_v17 = vld [vmem:[#allocation104_spill] sm:$0xff] }
 0x583   :  { %9996 = vmatpush.msrb.mxu0 %v22536_v57  ;;  %12857 = vmatmul.msk.f32.gmra.mxu1 %vm1300_vm4, %v18381_v28  ;;  %v19010_v57 = vpop.f32.mrf.mxu1 }
 0x584   :  { %12859 = vmatmul.msk.f32.gmra.mxu2 %vm1300_vm4, %v18381_v28  ;;  %9320 = vmatpush.msra.mxu1 %v22542_v32  ;;  %v18997_v60 = vadd.f32 %v22543_v61, %v4682_v13  ;;  %v22547_v28 = vld [vmem:[#allocation87_spill] sm:$0xff]  ;;  %v22548_v13 = vld [vmem:[#allocation108_spill] sm:$0xff]  ;;  %22549 = vst [vmem:[#allocation95_spill] sm:$0xff] %v19010_v57 }
 0x585   :  { %9343 = vmatpush.msra.mxu2 %v22544_v59  ;;  %9997 = vmatpush.msrb.mxu0 %v22542_v32  ;;  %v22551_v32 = vld [vmem:[#allocation114_spill] sm:$0xff]  ;;  %v19024_v57 = vpop.f32.mrf.mxu0 }
 0x586   :  { %9408 = vmatpush.msrb.mxu1 %v22545_v56  ;;  %v13732_v63 = vpack.i.bf16 %v5584_v29, %v18997_v60  ;;  %12896 = vmatmul.msk.f32.vlgmr.msra.gmra.mxu0 %vm1300_vm4, %v18647_v19  ;;  %v13727_v42 = vpack.i.bf16 %v18997_v60, %v18602_v31  ;;  %v22550_v29 = vld [vmem:[#allocation45_spill] sm:$0xff]  ;;  %v19018_v61 = vpop.f32.mrf.mxu2  ;;  %22554 = vst [vmem:[#allocation160_spill] sm:$0xff] %v19024_v57  ;;  %v22560_v57 = vld [vmem:[#allocation119_spill] sm:$0xff] }
 0x587   :  { %9431 = vmatpush.msrb.mxu2 %v22546_v17  ;;  %12886 = vmatmul.msk.f32.vlgmr.msra.gmra.mxu3 %vm1300_vm4, %v18647_v19  ;;  %22552 = vst [vmem:[#allocation101_spill] sm:$0xff] %v19018_v61 }
 0x588   :  { %9409 = vmatpush.msrb.mxu1 %v22547_v28  ;;  %10085 = vmatpush.msra.mxu0 %v22545_v56  ;;  %v19020_v38 = vpop.f32.mrf.mxu3  ;;  %v22555_v56 = vld [vmem:[#allocation105_spill] sm:$0xff] }
 0x589   :  { %9432 = vmatpush.msrb.mxu2 %v22548_v13  ;;  %13733 = vrot.lane.b32.xlu2 %v13732_v63, %s14164_s13  ;;  %22553 = vst [vmem:[#allocation38_spill] sm:$0xff] %v19020_v38  ;;  %v22556_v63 = vld [vmem:[#allocation120_spill] sm:$0xff]  ;;  %v22557_v38 = vld [vmem:[#allocation49_spill] sm:$0xff] }
 0x58a   :  { %9410 = vmatpush.msrb.mxu1 %v22550_v29  ;;  %13728 = vrot.lane.b32.xlu1 %v13727_v42, %s14164_s13  ;;  %v22558_v42 = vld [vmem:[#allocation48_spill] sm:$0xff] }
 0x58b   :  { %9433 = vmatpush.msrb.mxu2 %v22551_v32  ;;  %13723 = vrot.lane.b32.xlu0 %v13717_v36, %s14163_s23  ;;  %v22559_v36 = vld [vmem:[#allocation103_spill] sm:$0xff]  ;;  %v19043_v40 = vpop.f32.mrf.mxu1 }
 0x58c   :  { %10086 = vmatpush.msra.mxu0 %v22547_v28  ;;  %9411 = vmatpush.msrb.mxu1 %v22555_v56  ;;  %v22561_v28 = vld [vmem:[#allocation118_spill] sm:$0xff]  ;;  %22563 = vst [vmem:[#allocation68_spill] sm:$0xff] %v19043_v40  ;;  %v22569_v40 = vld [vmem:[#allocation80_spill] sm:$0xff] }
 0x58d   :  { %9434 = vmatpush.msrb.mxu2 %v22556_v63  ;;  %12866 = vmatmul.msk.f32.vlgmr.msra.gmra.mxu1 %vm1300_vm4, %v18647_v19  ;;  %v19056_v48 = vpop.f32.mrf.mxu0 }
 0x58e   :  { %12868 = vmatmul.msk.f32.vlgmr.msra.gmra.mxu2 %vm1300_vm4, %v18647_v19  ;;  %10087 = vmatpush.msra.mxu0 %v22550_v29  ;;  %v19047_v29 = vpop.f32.mrf.mxu2  ;;  %22568 = vst [vmem:[#allocation59_spill] sm:$0xff] %v19056_v48 }
 0x58f   :  { %9412 = vmatpush.msrb.mxu1 %v22557_v38  ;;  %9435 = vmatpush.msrb.mxu2 %v22558_v42  ;;  %22564 = vst [vmem:[#allocation51_spill] sm:$0xff] %v19047_v29  ;;  %v22571_v29 = vld [vmem:[#allocation53_spill] sm:$0xff] }
 0x590   :  { %10088 = vmatpush.msra.mxu0 %v22555_v56  ;;  %12887 = vmatmul.msk.f32.gmra.mxu3 %vm1300_vm4, %v18672_v10  ;;  %v19049_v61 = vpop.f32.mrf.mxu3  ;;  %v22567_v56 = vld [vmem:[#allocation142_spill] sm:$0xff] }
 0x591   :  { %9500 = vmatpush.msra.mxu1 %v22559_v36  ;;  %9523 = vmatpush.msra.mxu2 %v22560_v57  ;;  %22565 = vst [vmem:[#allocation57_spill] sm:$0xff] %v19049_v61  ;;  %v22572_v61 = vld [vmem:[#allocation52_spill] sm:$0xff] }
 0x592   :  { %12897 = vmatmul.msk.f32.gmra.mxu0 %vm1300_vm4, %v18672_v10 }
 0x593   :  { %9501 = vmatpush.msra.mxu1 %v22561_v28  ;;  %9524 = vmatpush.msra.mxu2 %v22562_v54  ;;  %v19078_v6 = vpop.f32.mrf.mxu1 }
 0x594   :  { %10089 = vmatpush.msra.mxu0 %v22557_v38  ;;  %v19066_v38 = vld [vmem:[%s20952_s3 + $0x40] sm:$0xff]  ;;  %22575 = vst [vmem:[#allocation109_spill] sm:$0xff] %v19078_v6  ;;  %v19095_v6 = vld [vmem:[%s20952_s3 + $0x48] sm:$0xff] }
 0x595   :  { %9502 = vmatpush.msra.mxu1 %v22566_v34  ;;  %9525 = vmatpush.msra.mxu2 %v22567_v56  ;;  %v19087_v37 = vpop.f32.mrf.mxu0 }
 0x596   :  { %12867 = vmatmul.msk.f32.gmra.mxu1 %vm1300_vm4, %v18672_v10  ;;  %12869 = vmatmul.msk.f32.gmra.mxu2 %vm1300_vm4, %v18672_v10  ;;  %v19073_v48 = vpop.f32.mrf.mxu2  ;;  %22578 = vst [vmem:[#allocation138_spill] sm:$0xff] %v19087_v37 }
 0x597   :  { %9503 = vmatpush.msra.mxu1 %v22569_v40  ;;  %9526 = vmatpush.msra.mxu2 %v22570_v20  ;;  %22573 = vst [vmem:[#allocation74_spill] sm:$0xff] %v19073_v48  ;;  %v22582_v48 = vld [vmem:[#allocation21_spill] sm:$0xff] }
 0x598   :  { %12894 = vmatmul.msk.f32.vlgmr.msrb.gmra.mxu3 %vm1300_vm4, %v18647_v19  ;;  %v19075_v11 = vpop.f32.mrf.mxu3 }
 0x599   :  { %9504 = vmatpush.msra.mxu1 %v22571_v29  ;;  %9527 = vmatpush.msra.mxu2 %v22572_v61  ;;  %22574 = vst [vmem:[#allocation110_spill] sm:$0xff] %v19075_v11  ;;  %v22579_v11 = vld [vmem:[#allocation77_spill] sm:$0xff] }
 0x59a   :  { %12906 = vmatmul.msk.f32.vlgmr.msrb.gmra.mxu0 %vm1300_vm4, %v19066_v38 }
 0x59b   :  { %10177 = vmatpush.msrb.mxu0 %v22559_v36  ;;  %v22580_v36 = vld [vmem:[#allocation9_spill] sm:$0xff] }
 0x59d   :  { %10178 = vmatpush.msrb.mxu0 %v22561_v28  ;;  %v22581_v28 = vld [vmem:[#allocation144_spill] sm:$0xff] }
 0x59e   :  { %12874 = vmatmul.msk.f32.vlgmr.msrb.gmra.mxu1 %vm1300_vm4, %v18647_v19  ;;  %12876 = vmatmul.msk.f32.vlgmr.msrb.gmra.mxu2 %vm1300_vm4, %v18647_v19  ;;  %v19102_v37 = vpop.f32.mrf.mxu2 }
 0x59f   :  { %9592 = vmatpush.msrb.mxu1 %v22576_v39  ;;  %9615 = vmatpush.msrb.mxu2 %v22577_v35  ;;  %22583 = vst [vmem:[#allocation82_spill] sm:$0xff] %v19102_v37  ;;  %v19119_v37 = vpop.f32.mrf.mxu0 }
 0x5a0   :  { %10179 = vmatpush.msrb.mxu0 %v22566_v34  ;;  %12895 = vmatmul.msk.f32.gmra.mxu3 %vm1300_vm4, %v18672_v10  ;;  %v19104_v34 = vpop.f32.mrf.mxu3 }
 0x5a1   :  { %9593 = vmatpush.msrb.mxu1 %v22579_v11  ;;  %9616 = vmatpush.msrb.mxu2 %v22580_v36  ;;  %22584 = vst [vmem:[#allocation117_spill] sm:$0xff] %v19104_v34  ;;  %v22589_v34 = vld [vmem:[#allocation25_spill] sm:$0xff] }
 0x5a2   :  { %10180 = vmatpush.msrb.mxu0 %v22569_v40  ;;  %v19113_v40 = vpop.f32.mrf.mxu1 }
 0x5a3   :  { %9594 = vmatpush.msrb.mxu1 %v22581_v28  ;;  %9617 = vmatpush.msrb.mxu2 %v22582_v48  ;;  %22587 = vst [vmem:[#allocation44_spill] sm:$0xff] %v19113_v40 }
 0x5a4   :  { %12907 = vmatmul.msk.f32.gmra.mxu0 %vm1300_vm4, %v19095_v6 }
 0x5a5   :  { %10181 = vmatpush.msrb.mxu0 %v22571_v29  ;;  %9595 = vmatpush.msrb.mxu1 %v22585_v46 }
 0x5a6   :  { %9618 = vmatpush.msrb.mxu2 %v22586_v26  ;;  %12875 = vmatmul.msk.f32.gmra.mxu1 %vm1300_vm4, %v18672_v10  ;;  %v19121_v24 = vpop.f32.mrf.mxu2 }
 0x5a7   :  { %9596 = vmatpush.msrb.mxu1 %v22588_v49  ;;  %12877 = vmatmul.msk.f32.gmra.mxu2 %vm1300_vm4, %v18672_v10  ;;  %22590 = vst [vmem:[#allocation40_spill] sm:$0xff] %v19121_v24 }
 0x5a8   :  { %9619 = vmatpush.msrb.mxu2 %v22589_v34  ;;  %v19123_v29 = vpop.f32.mrf.mxu3 }
 0x5a9   :  { %22591 = vst [vmem:[#allocation46_spill] sm:$0xff] %v19123_v29 }
 0x5aa   :  { %v19132_v40 = vpop.f32.mrf.mxu1 }
 0x5ac   :  { %12914 = vmatmul.msk.f32.vlgmr.msra.gmra.mxu0 %vm1300_vm4, %v19066_v38 }
 0x5ad   :  { %10269 = vmatpush.msra.mxu0 %v22576_v39 }
 0x5ae   :  { %12882 = vmatmul.msk.f32.vlgmr.msra.gmra.mxu1 %vm1300_vm4, %v18647_v19  ;;  %v19140_v39 = vpop.f32.mrf.mxu2 }
 0x5af   :  { %10270 = vmatpush.msra.mxu0 %v22579_v11  ;;  %9684 = vmatpush.msra.mxu1 %v18852_v25  ;;  %22592 = vst [vmem:[#allocation85_spill] sm:$0xff] %v19140_v39  ;;  %v19146_v11 = vpop.f32.mrf.mxu0 }
 0x5b0   :  { %12884 = vmatmul.msk.f32.vlgmr.msra.gmra.mxu2 %vm1300_vm4, %v18647_v19  ;;  %v19142_v29 = vpop.f32.mrf.mxu3 }
 0x5b1   :  { %10271 = vmatpush.msra.mxu0 %v22581_v28  ;;  %9685 = vmatpush.msra.mxu1 %v18872_v5  ;;  %22593 = vst [vmem:[#allocation113_spill] sm:$0xff] %v19142_v29 }
 0x5b3   :  { %10272 = vmatpush.msra.mxu0 %v22585_v46  ;;  %9686 = vmatpush.msra.mxu1 %v18888_v47  ;;  %v19155_v46 = vpop.f32.mrf.mxu1 }
 0x5b4   :  { %12915 = vmatmul.msk.f32.gmra.mxu0 %vm1300_vm4, %v19095_v6  ;;  %22594 = vst [vmem:[#allocation96_spill] sm:$0xff] %v19155_v46 }
 0x5b5   :  { %10273 = vmatpush.msra.mxu0 %v22588_v49  ;;  %9687 = vmatpush.msra.mxu1 %v18908_v30 }
 0x5b6   :  { %12883 = vmatmul.msk.f32.gmra.mxu1 %vm1300_vm4, %v18672_v10  ;;  %v19157_v28 = vpop.f32.mrf.mxu2 }
 0x5b7   :  { %9688 = vmatpush.msra.mxu1 %v18562_v0  ;;  %22595 = vst [vmem:[#allocation98_spill] sm:$0xff] %v19157_v28  ;;  %v19166_v49 = vpop.f32.mrf.mxu0 }
 0x5b8   :  { %12885 = vmatmul.msk.f32.gmra.mxu2 %vm1300_vm4, %v18672_v10  ;;  %v19159_v29 = vpop.f32.mrf.mxu3  ;;  %22597 = vst [vmem:[#allocation50_spill] sm:$0xff] %v19166_v49 }
 0x5b9   :  { %22596 = vst [vmem:[#allocation99_spill] sm:$0xff] %v19159_v29 }
 0x5bc   :  { %12922 = vmatmul.msk.f32.vlgmr.msrb.gmra.mxu0 %vm1300_vm4, %v19066_v38 }
 0x5bd   :  { %10361 = vmatpush.msrb.mxu0 %v18852_v25 }
 0x5be   :  { %12890 = vmatmul.msk.f32.vlgmr.msrb.gmra.mxu1 %vm1300_vm4, %v18647_v19  ;;  %v19176_v25 = vpop.f32.mrf.mxu2 }
 0x5bf   :  { %10362 = vmatpush.msrb.mxu0 %v18872_v5  ;;  %10016 = vmatpush.msrb.mxu1 %v22360_v9  ;;  %v19184_v9 = vpop.f32.mrf.mxu1 }
 0x5c0   :  { %12892 = vmatmul.msk.f32.vlgmr.msrb.gmra.mxu2 %vm1300_vm4, %v18647_v19  ;;  %v19178_v29 = vpop.f32.mrf.mxu3  ;;  %22598 = vst [vmem:[#allocation106_spill] sm:$0xff] %v19184_v9 }
 0x5c1   :  { %10363 = vmatpush.msrb.mxu0 %v18888_v47  ;;  %10017 = vmatpush.msrb.mxu1 %v17829_v53  ;;  %v19191_v53 = vpop.f32.mrf.mxu0 }
 0x5c2   :  { %22599 = vst [vmem:[#allocation159_spill] sm:$0xff] %v19191_v53 }
 0x5c3   :  { %10364 = vmatpush.msrb.mxu0 %v18908_v30  ;;  %10018 = vmatpush.msrb.mxu1 %v22366_v16 }
 0x5c4   :  { %12923 = vmatmul.msk.f32.gmra.mxu0 %vm1300_vm4, %v19095_v6 }
 0x5c5   :  { %10365 = vmatpush.msrb.mxu0 %v18562_v0  ;;  %10019 = vmatpush.msrb.mxu1 %v22537_v12 }
 0x5c6   :  { %12891 = vmatmul.msk.f32.gmra.mxu1 %vm1300_vm4, %v18672_v10  ;;  %v19195_v16 = vpop.f32.mrf.mxu2 }
 0x5c7   :  { %10020 = vmatpush.msrb.mxu1 %v22544_v59  ;;  %v19202_v5 = vpop.f32.mrf.mxu1 }
 0x5c8   :  { %12893 = vmatmul.msk.f32.gmra.mxu2 %vm1300_vm4, %v18672_v10  ;;  %v19197_v0 = vpop.f32.mrf.mxu3  ;;  %22600 = vst [vmem:[#allocation158_spill] sm:$0xff] %v19202_v5 }
 0x5c9   :  { %v19205_v47 = vpop.f32.mrf.mxu0 }
 0x5ca   :  { %22601 = vst [vmem:[#allocation135_spill] sm:$0xff] %v19205_v47  ;;  %v22613_v47 = vunpack.i.h.bf16 %v18834_v1 }
 0x5cc   :  { %12930 = vmatmul.msk.f32.vlgmr.msra.gmra.mxu0 %vm1300_vm4, %v19066_v38 }
 0x5ce   :  { %12898 = vmatmul.msk.f32.vlgmr.msra.gmra.mxu1 %vm1300_vm4, %v18647_v19  ;;  %v19213_v30 = vpop.f32.mrf.mxu2 }
 0x5cf   :  { %10108 = vmatpush.msra.mxu1 %v22546_v17  ;;  %v19218_v12 = vpop.f32.mrf.mxu1 }
 0x5d0   :  { %v19216_v59 = vpop.f32.mrf.mxu3  ;;  %22602 = vst [vmem:[#allocation129_spill] sm:$0xff] %v19218_v12 }
 0x5d1   :  { %10109 = vmatpush.msra.mxu1 %v22548_v13  ;;  %v19222_v17 = vpop.f32.mrf.mxu0 }
 0x5d2   :  { %22603 = vst [vmem:[#allocation137_spill] sm:$0xff] %v19222_v17 }
 0x5d3   :  { %10110 = vmatpush.msra.mxu1 %v22551_v32 }
 0x5d4   :  { %12931 = vmatmul.msk.f32.gmra.mxu0 %vm1300_vm4, %v19095_v6 }
 0x5d5   :  { %10111 = vmatpush.msra.mxu1 %v22556_v63 }
 0x5d6   :  { %12899 = vmatmul.msk.f32.gmra.mxu1 %vm1300_vm4, %v18672_v10  ;;  %v19227_v13 = vpop.f32.mrf.mxu2 }
 0x5d7   :  { %10112 = vmatpush.msra.mxu1 %v22558_v42  ;;  %v19233_v63 = vpop.f32.mrf.mxu1 }
 0x5d8   :  { %v19230_v32 = vpop.f32.mrf.mxu3  ;;  %22604 = vst [vmem:[#allocation102_spill] sm:$0xff] %v19233_v63 }
 0x5d9   :  { %v19240_v42 = vpop.f32.mrf.mxu0 }
 0x5da   :  { %22605 = vst [vmem:[#allocation37_spill] sm:$0xff] %v19240_v42 }
 0x5dc   :  { %12938 = vmatmul.msk.f32.vlgmr.msrb.gmra.mxu0 %vm1300_vm4, %v19066_v38 }
 0x5de   :  { %12908 = vmatmul.msk.f32.vlgmr.msrb.gmra.mxu1 %vm1300_vm4, %v19066_v38 }
 0x5df   :  { %10200 = vmatpush.msrb.mxu1 %v22560_v57  ;;  %v19243_v57 = vpop.f32.mrf.mxu2  ;;  %v19247_v28 = vpop.f32.mrf.mxu1 }
 0x5e0   :  { %22607 = vst [vmem:[#allocation94_spill] sm:$0xff] %v19247_v28 }
 0x5e1   :  { %10201 = vmatpush.msrb.mxu1 %v22562_v54  ;;  %v19245_v54 = vpop.f32.mrf.mxu3 }
 0x5e2   :  { %22606 = vst [vmem:[#allocation86_spill] sm:$0xff] %v19245_v54 }
 0x5e3   :  { %10202 = vmatpush.msrb.mxu1 %v22567_v56  ;;  %v19252_v56 = vpop.permute.xlu2 %13718 }
 0x5e4   :  { %12939 = vmatmul.msk.f32.gmra.mxu0 %vm1300_vm4, %v19095_v6  ;;  %v22617_v1 = vunpack.i.h.bf16 %v19252_v56 }
 0x5e5   :  { %10203 = vmatpush.msrb.mxu1 %v22570_v20  ;;  %v19254_v20 = vpop.f32.mrf.mxu0 }
 0x5e6   :  { %12909 = vmatmul.msk.f32.gmra.mxu1 %vm1300_vm4, %v19095_v6  ;;  %22608 = vst [vmem:[#allocation36_spill] sm:$0xff] %v19254_v20 }
 0x5e7   :  { %10204 = vmatpush.msrb.mxu1 %v22572_v61  ;;  %v19265_v39 = vpop.f32.mrf.mxu2 }
 0x5e8   :  { %22609 = vst [vmem:[#allocation156_spill] sm:$0xff] %v19265_v39 }
 0x5e9   :  { %v19269_v20 = vpop.f32.mrf.mxu3 }
 0x5ea   :  { %22610 = vst [vmem:[#allocation43_spill] sm:$0xff] %v19269_v20 }
 0x5ee   :  { %12916 = vmatmul.msk.f32.vlgmr.msra.gmra.mxu1 %vm1300_vm4, %v19066_v38 }
 0x5ef   :  { %10292 = vmatpush.msra.mxu1 %v22577_v35 }
 0x5f1   :  { %10293 = vmatpush.msra.mxu1 %v22580_v36  ;;  %v22611_v36 = vunpack.i.h.bf16 %v18836_v55 }
 0x5f3   :  { %10294 = vmatpush.msra.mxu1 %v22582_v48  ;;  %v19258_v61 = vpop.permute.xlu1 %13713  ;;  %v13720_v48 = vunpack.i.l.bf16 %v19252_v56 }
 0x5f4   :  { %v19260_v63 = vpop.permute.xlu0 %13708  ;;  %v13715_v42 = vunpack.i.l.bf16 %v19258_v61 }
 0x5f5   :  { %v21518_v28 = vunpack.i.h.bf16 %v19260_v63  ;;  %v13710_v12 = vunpack.i.l.bf16 %v19260_v63  ;;  %10295 = vmatpush.msra.mxu1 %v22586_v26  ;;  %v19299_v26 = vpop.f32.mrf.mxu0 }
 0x5f6   :  { %12917 = vmatmul.msk.f32.gmra.mxu1 %vm1300_vm4, %v19095_v6  ;;  %v19284_v35 = vpop.f32.mrf.mxu1  ;;  %v6695_v55 = vsel %vm6669_vm6, %v22613_v47, %v13715_v42  ;;  %22616 = vst [vmem:[#allocation42_spill] sm:$0xff] %v19299_v26  ;;  %v19304_v47 = vsel %vm1029_vm0, %v13720_v48, %v22617_v1  ;;  %v19313_v26 = vpop.f32.mrf.mxu2  ;;  %v22619_v1 = vunpack.i.h.bf16 %v18855_v43 }
 0x5f7   :  { %v6903_v17 = vsel %vm6877_vm5, %v22611_v36, %v13710_v12  ;;  %v19280_v5 = vsel %vm6877_vm5, %v13710_v12, %v21518_v28  ;;  %10296 = vmatpush.msra.mxu1 %v22589_v34  ;;  %22612 = vst [vmem:[#allocation112_spill] sm:$0xff] %v19284_v35  ;;  %v22614_v36 = vunpack.i.h.bf16 %v19258_v61  ;;  %v13734_v12 = vpop.permute.xlu2 %13733  ;;  %v22615_v34 = vunpack.i.h.bf16 %v18826_v52 }
 0x5f8   :  { %9707 = vmatpush.msra.mxu2 %v6903_v17  ;;  %9730 = vmatpush.msra.mxu3 %v19280_v5  ;;  %v13736_v35 = vunpack.i.h.bf16 %v13734_v12 }
 0x5f9   :  { %v19293_v9 = vsel %vm6669_vm6, %v13715_v42, %v22614_v36  ;;  %v6487_v28 = vsel %vm1029_vm0, %v22615_v34, %v13720_v48  ;;  %v13735_v42 = vunpack.i.l.bf16 %v13734_v12  ;;  %v19315_v48 = vpop.f32.mrf.mxu3 }
 0x5fa   :  { %9708 = vmatpush.msra.mxu2 %v6695_v55  ;;  %9731 = vmatpush.msra.mxu3 %v19293_v9  ;;  %22618 = vst [vmem:[#allocation89_spill] sm:$0xff] %v19315_v48 }
 0x5fc   :  { %9709 = vmatpush.msra.mxu2 %v6487_v28  ;;  %9732 = vmatpush.msra.mxu3 %v19304_v47  ;;  %v13729_v36 = vpop.permute.xlu1 %13728 }
 0x5fd   :  { %v19307_v24 = vpop.permute.xlu0 %13723  ;;  %v13731_v53 = vunpack.i.h.bf16 %v13729_v36  ;;  %v13730_v20 = vunpack.i.l.bf16 %v13729_v36  ;;  %v22620_v36 = vunpack.i.h.bf16 %v18899_v14 }
 0x5fe   :  { %v13725_v34 = vunpack.i.l.bf16 %v19307_v24  ;;  %12924 = vmatmul.msk.f32.vlgmr.msrb.gmra.mxu1 %vm1300_vm4, %v19066_v38  ;;  %v22623_v14 = vunpack.i.h.bf16 %v19307_v24 }
 0x5ff   :  { %10384 = vmatpush.msrb.mxu1 %v6903_v17  ;;  %v5983_v12 = vsel %vm258_vm3, %v22619_v1, %v13731_v53  ;;  %v5984_v39 = vsel %vm258_vm3, %v13731_v53, %v13736_v35  ;;  %v5769_v52 = vsel %vm258_vm3, %v22620_v36, %v13730_v20  ;;  %v5770_v46 = vsel %vm258_vm3, %v13730_v20, %v13735_v42  ;;  %v22643_v36 = vld [vmem:[#allocation55_spill] sm:$0xff] }
 0x600   :  { %v6043_v49 = vmax.f32 %v18602_v31, %v5983_v12  ;;  %v6044_v54 = vmax.f32 %v18997_v60, %v5984_v39  ;;  %v5829_v17 = vmax.f32 %v18605_v41, %v5769_v52  ;;  %v5830_v48 = vmax.f32 %v18602_v31, %v5770_v46  ;;  %v19329_v43 = vpop.f32.mrf.mxu1  ;;  %v19342_v31 = vpop.f32.mrf.mxu0  ;;  %v22640_v52 = vld [vmem:[#allocation132_spill] sm:$0xff] }
 0x601   :  { %10385 = vmatpush.msrb.mxu1 %v6695_v55  ;;  %22621 = vst [vmem:[#allocation104_spill] sm:$0xff] %v19329_v43  ;;  %v22622_v1 = vunpack.i.h.bf16 %v18882_v21  ;;  %v19337_v35 = vsel %vm515_vm2, %v13725_v34, %v22623_v14  ;;  %v22625_v21 = vld [vmem:[#allocation131_spill] sm:$0xff]  ;;  %v19355_v46 = vpop.f32.mrf.mxu2 }
 0x602   :  { %v19339_v20 = vmax.f32 %v5829_v17, %v6043_v49  ;;  %v6074_v42 = vmax.f32 %v5830_v48, %v6044_v54  ;;  %9733 = vmatpush.msra.mxu3 %v19337_v35  ;;  %22624 = vst [vmem:[#allocation87_spill] sm:$0xff] %v19342_v31  ;;  %v22639_v54 = vld [vmem:[#allocation162_spill] sm:$0xff] }
 0x603   :  { %v6280_v53 = vsel %vm515_vm2, %v22622_v1, %v13725_v34  ;;  %10386 = vmatpush.msrb.mxu1 %v6487_v28  ;;  %v19359_v28 = vpop.f32.mrf.mxu3  ;;  %v22641_v34 = vld [vmem:[#allocation163_spill] sm:$0xff]  ;;  %v22642_v48 = vld [vmem:[#allocation54_spill] sm:$0xff] }
 0x604   :  { %9710 = vmatpush.msra.mxu2 %v6280_v53  ;;  %v21519_v41 = vmax.f32 %v19339_v20, 0.0  ;;  %v6104_v60 = vmax.f32 %v6074_v42, 0.0  ;;  %9734 = vmatpush.msra.mxu3 %v18954_v18  ;;  %v22646_v42 = vld [vmem:[#allocation140_spill] sm:$0xff] }
 0x605   :  { %12902 = vmatmul.msk.f32.vlgmr.msra.gmra.mxu3 %vm1300_vm4, %v18647_v19  ;;  %10387 = vmatpush.msrb.mxu1 %v6280_v53  ;;  %v22645_v53 = vld [vmem:[#allocation128_spill] sm:$0xff] }
 0x606   :  { %9711 = vmatpush.msra.mxu2 %v22625_v21  ;;  %10062 = vmatpush.msrb.mxu3 %v22463_v8  ;;  %v13747_v39 = vpack.i.bf16 %v6104_v60, %v21519_v41  ;;  %v22628_v8 = vld [vmem:[#allocation70_spill] sm:$0xff]  ;;  %v22647_v60 = vld [vmem:[#allocation11_spill] sm:$0xff] }
 0x607   :  { %12900 = vmatmul.msk.f32.vlgmr.msra.gmra.mxu2 %vm1300_vm4, %v18647_v19  ;;  %12925 = vmatmul.msk.f32.gmra.mxu1 %vm1300_vm4, %v19095_v6  ;;  %v22637_v19 = vld [vmem:[#allocation64_spill] sm:$0xff] }
 0x608   :  { %10039 = vmatpush.msrb.mxu2 %v22431_v58  ;;  %10063 = vmatpush.msrb.mxu3 %v22465_v62  ;;  %v22629_v62 = vld [vmem:[#allocation124_spill] sm:$0xff] }
 0x609   :  { %13748 = vrot.lane.b32.xlu2 %v13747_v39, %s14161_s21  ;;  %10388 = vmatpush.msrb.mxu1 %v22625_v21  ;;  %v22648_v21 = vld [vmem:[#allocation10_spill] sm:$0xff] }
 0x60a   :  { %10040 = vmatpush.msrb.mxu2 %v22437_v15  ;;  %v19366_v58 = vpop.f32.mrf.mxu1  ;;  %10064 = vmatpush.msrb.mxu3 %v22466_v44  ;;  %v19375_v15 = vpop.f32.mrf.mxu0  ;;  %v22632_v44 = vld [vmem:[#allocation122_spill] sm:$0xff] }
 0x60b   :  { %13743 = vrot.lane.b32.xlu1 %v13747_v39, %s14167_s28  ;;  %13738 = vrot.lane.b32.xlu0 %v13747_v39, %s14166_s27 }
 0x60c   :  { %10041 = vmatpush.msrb.mxu2 %v22439_v45  ;;  %10065 = vmatpush.msrb.mxu3 %v22469_v7  ;;  %v6965_v45 = vld [vmem:[%s20953_s4] sm:$0xff]  ;;  %v22634_v7 = vld [vmem:[#allocation97_spill] sm:$0xff] }
 0x60d   :  { %12903 = vmatmul.msk.f32.gmra.mxu3 %vm1300_vm4, %v18672_v10 }
 0x60e   :  { %10042 = vmatpush.msrb.mxu2 %v22443_v22  ;;  %10066 = vmatpush.msrb.mxu3 %v22471_v33  ;;  %v6966_v22 = vld [vmem:[%s20953_s4 + $0x8] sm:$0xff]  ;;  %s14168_s4 = smov 104  }
 0x60f   :  { %12901 = vmatmul.msk.f32.gmra.mxu2 %vm1300_vm4, %v18672_v10  ;;  %12932 = vmatmul.msk.f32.vlgmr.msra.gmra.mxu1 %vm1300_vm4, %v19066_v38  ;;  %v22635_v10 = vld [vmem:[#allocation107_spill] sm:$0xff] }
 0x610   :  { %10043 = vmatpush.msrb.mxu2 %v22448_v51  ;;  %10154 = vmatpush.msra.mxu3 %v22472_v2  ;;  %v19392_v51 = vpop.f32.mrf.mxu2 }
 0x611   :  { %22626 = vst [vmem:[#allocation108_spill] sm:$0xff] %v19392_v51  ;;  %7565 = vperm.xlu2 %13757, %v6965_v45  }
 0x612   :  { %10131 = vmatpush.msra.mxu2 %v22452_v27  ;;  %10155 = vmatpush.msra.mxu3 %v22391_v50  ;;  %v19395_v27 = vpop.f32.mrf.mxu3  ;;  %v22630_v50 = vld [vmem:[#allocation56_spill] sm:$0xff] }
 0x613   :  { %22627 = vst [vmem:[#allocation45_spill] sm:$0xff] %v19395_v27  ;;  %7570 = vperm.xlu1 %13331, %v6966_v22   ;;  %13753 = vrot.lane.b32.xlu0 %v13747_v39, %s14163_s23  ;;  %v19400_v2 = vpop.f32.mrf.mxu1  ;;  %v22649_v39 = vld [vmem:[#allocation34_spill] sm:$0xff]  ;;  %v22650_v22 = vld [vmem:[#allocation13_spill] sm:$0xff] }
 0x614   :  { %10132 = vmatpush.msra.mxu2 %v22458_v23  ;;  %10156 = vmatpush.msra.mxu3 %v22393_v3  ;;  %v19409_v23 = vpop.f32.mrf.mxu0  ;;  %v22633_v3 = vld [vmem:[#allocation141_spill] sm:$0xff] }
 0x615   :  { %12912 = vmatmul.msk.f32.vlgmr.msrb.gmra.mxu3 %vm1300_vm4, %v19066_v38 }
 0x616   :  { %10133 = vmatpush.msra.mxu2 %v22464_v4  ;;  %10157 = vmatpush.msra.mxu3 %v22629_v62  ;;  %v22631_v4 = vld [vmem:[#allocation60_spill] sm:$0xff]  ;;  %v22652_v62 = vld [vmem:[#allocation66_spill] sm:$0xff] }
 0x617   :  { %12910 = vmatmul.msk.f32.vlgmr.msrb.gmra.mxu2 %vm1300_vm4, %v19066_v38  ;;  %12933 = vmatmul.msk.f32.gmra.mxu1 %vm1300_vm4, %v19095_v6 }
 0x618   :  { %10134 = vmatpush.msra.mxu2 %v22628_v8  ;;  %10158 = vmatpush.msra.mxu3 %v22631_v4  ;;  %v19418_v33 = vpop.f32.mrf.mxu2  ;;  %v22651_v8 = vld [vmem:[#allocation75_spill] sm:$0xff] }
 0x619   :  { %22636 = vst [vmem:[#allocation114_spill] sm:$0xff] %v19418_v33 }
 0x61a   :  { %10135 = vmatpush.msra.mxu2 %v22630_v50  ;;  %10246 = vmatpush.msrb.mxu3 %v22633_v3  ;;  %v19421_v49 = vpop.f32.mrf.mxu3  ;;  %v22653_v50 = vld [vmem:[#allocation164_spill] sm:$0xff] }
 0x61b   :  { %22638 = vst [vmem:[#allocation105_spill] sm:$0xff] %v19421_v49  ;;  %v19424_v55 = vpop.f32.mrf.mxu1  ;;  %v22668_v49 = vld [vmem:[#allocation26_spill] sm:$0xff] }
 0x61c   :  { %10223 = vmatpush.msrb.mxu2 %v22632_v44  ;;  %10247 = vmatpush.msrb.mxu3 %v22635_v10  ;;  %v19435_v12 = vpop.f32.mrf.mxu0  ;;  %v22655_v44 = vld [vmem:[#allocation139_spill] sm:$0xff] }
 0x61d   :  { %12913 = vmatmul.msk.f32.gmra.mxu3 %vm1300_vm4, %v19095_v6 }
 0x61e   :  { %10224 = vmatpush.msrb.mxu2 %v22634_v7  ;;  %10248 = vmatpush.msrb.mxu3 %v22639_v54 }
 0x61f   :  { %12911 = vmatmul.msk.f32.gmra.mxu2 %vm1300_vm4, %v19095_v6  ;;  %12940 = vmatmul.msk.f32.vlgmr.msrb.gmra.mxu1 %vm1300_vm4, %v19066_v38 }
 0x620   :  { %10225 = vmatpush.msrb.mxu2 %v22637_v19  ;;  %10249 = vmatpush.msrb.mxu3 %v22641_v34  ;;  %v19438_v17 = vpop.f32.mrf.mxu2 }
 0x621   :  { %22644 = vst [vmem:[#allocation120_spill] sm:$0xff] %v19438_v17  ;;  %v22667_v17 = vld [vmem:[#allocation81_spill] sm:$0xff] }
 0x622   :  { %10226 = vmatpush.msrb.mxu2 %v22640_v52  ;;  %10250 = vmatpush.msrb.mxu3 %v22643_v36  ;;  %v19442_v1 = vpop.f32.mrf.mxu3 }
 0x623   :  { %v19447_v14 = vpop.f32.mrf.mxu1 }
 0x624   :  { %10227 = vmatpush.msrb.mxu2 %v22642_v48  ;;  %v19455_v45 = vpop.f32.mrf.mxu0 }
 0x625   :  { %12920 = vmatmul.msk.f32.vlgmr.msra.gmra.mxu3 %vm1300_vm4, %v19066_v38 }
 0x626   :  { %10338 = vmatpush.msra.mxu3 %v22646_v42 }
 0x627   :  { %12918 = vmatmul.msk.f32.vlgmr.msra.gmra.mxu2 %vm1300_vm4, %v19066_v38  ;;  %12941 = vmatmul.msk.f32.gmra.mxu1 %vm1300_vm4, %v19095_v6 }
 0x628   :  { %10315 = vmatpush.msra.mxu2 %v22645_v53  ;;  %10339 = vmatpush.msra.mxu3 %v22648_v21  ;;  %v19465_v4 = vpop.f32.mrf.mxu2 }
 0x629   :  { %22654 = vst [vmem:[#allocation49_spill] sm:$0xff] %v19465_v4 }
 0x62a   :  { %10316 = vmatpush.msra.mxu2 %v22647_v60  ;;  %10340 = vmatpush.msra.mxu3 %v22650_v22  ;;  %v19468_v3 = vpop.f32.mrf.mxu3 }
 0x62b   :  { %v19470_v7 = vpop.f32.mrf.mxu1 }
 0x62c   :  { %10317 = vmatpush.msra.mxu2 %v22649_v39  ;;  %10341 = vmatpush.msra.mxu3 %v22652_v62  ;;  %22656 = vst [vmem:[#allocation48_spill] sm:$0xff] %v19470_v7  ;;  %v19472_v10 = vpop.f32.mrf.mxu0 }
 0x62d   :  { %12921 = vmatmul.msk.f32.gmra.mxu3 %vm1300_vm4, %v19095_v6 }
 0x62e   :  { %10318 = vmatpush.msra.mxu2 %v22651_v8  ;;  %10342 = vmatpush.msra.mxu3 %v22655_v44 }
 0x62f   :  { %12919 = vmatmul.msk.f32.gmra.mxu2 %vm1300_vm4, %v19095_v6 }
 0x630   :  { %10319 = vmatpush.msra.mxu2 %v22653_v50  ;;  %v19480_v19 = vpop.f32.mrf.mxu2 }
 0x632   :  { %v19482_v54 = vpop.f32.mrf.mxu3 }
 0x633   :  { %v19485_v52 = vpop.f32.mrf.mxu1 }
 0x634   :  { %22657 = vst [vmem:[#allocation103_spill] sm:$0xff] %v19485_v52 }
 0x635   :  { %12928 = vmatmul.msk.f32.vlgmr.msrb.gmra.mxu3 %vm1300_vm4, %v19066_v38 }
 0x637   :  { %12926 = vmatmul.msk.f32.vlgmr.msrb.gmra.mxu2 %vm1300_vm4, %v19066_v38 }
 0x638   :  { %10407 = vmatpush.msrb.mxu2 %v19280_v5  ;;  %v19493_v5 = vpop.f32.mrf.mxu0 }
 0x63a   :  { %10408 = vmatpush.msrb.mxu2 %v19293_v9  ;;  %v19495_v9 = vpop.f32.mrf.mxu2  ;;  %v19497_v34 = vpop.f32.mrf.mxu3 }
 0x63b   :  { %v19499_v48 = vpop.f32.mrf.mxu1 }
 0x63c   :  { %10409 = vmatpush.msrb.mxu2 %v19304_v47  ;;  %22658 = vst [vmem:[#allocation119_spill] sm:$0xff] %v19499_v48 }
 0x63d   :  { %12929 = vmatmul.msk.f32.gmra.mxu3 %vm1300_vm4, %v19095_v6 }
 0x63e   :  { %10410 = vmatpush.msrb.mxu2 %v19337_v35 }
 0x63f   :  { %12927 = vmatmul.msk.f32.gmra.mxu2 %vm1300_vm4, %v19095_v6 }
 0x640   :  { %10411 = vmatpush.msrb.mxu2 %v18954_v18  ;;  %v19505_v47 = vpop.f32.mrf.mxu0 }
 0x641   :  { %22659 = vst [vmem:[#allocation118_spill] sm:$0xff] %v19505_v47 }
 0x642   :  { %v19507_v35 = vpop.f32.mrf.mxu2  ;;  %v19511_v18 = vpop.f32.mrf.mxu3 }
 0x643   :  { %v19515_v36 = vpop.f32.mrf.mxu1 }
 0x644   :  { %22660 = vst [vmem:[#allocation90_spill] sm:$0xff] %v19515_v36  ;;  %v22669_v36 = vld [vmem:[#allocation76_spill] sm:$0xff] }
 0x645   :  { %12936 = vmatmul.msk.f32.vlgmr.msra.gmra.mxu3 %vm1300_vm4, %v19066_v38 }
 0x647   :  { %12934 = vmatmul.msk.f32.vlgmr.msra.gmra.mxu2 %vm1300_vm4, %v19066_v38 }
 0x648   :  { %v19517_v53 = vpop.f32.mrf.mxu0 }
 0x64a   :  { %v19521_v42 = vpop.f32.mrf.mxu2  ;;  %v19523_v60 = vpop.f32.mrf.mxu3 }
 0x64b   :  { %v19525_v21 = vpop.f32.mrf.mxu1 }
 0x64c   :  { %22661 = vst [vmem:[#allocation126_spill] sm:$0xff] %v19525_v21 }
 0x64d   :  { %12937 = vmatmul.msk.f32.gmra.mxu3 %vm1300_vm4, %v19095_v6 }
 0x64f   :  { %12935 = vmatmul.msk.f32.gmra.mxu2 %vm1300_vm4, %v19095_v6 }
 0x650   :  { %v19527_v39 = vpop.f32.mrf.mxu0 }
 0x651   :  { %22662 = vst [vmem:[#allocation142_spill] sm:$0xff] %v19527_v39  ;;  %v22670_v39 = vld [vmem:[#allocation69_spill] sm:$0xff] }
 0x652   :  { %v19531_v22 = vpop.f32.mrf.mxu2  ;;  %v19533_v8 = vpop.f32.mrf.mxu3 }
 0x653   :  { %22663 = vst [vmem:[#allocation80_spill] sm:$0xff] %v19531_v22  ;;  %v19535_v50 = vpop.f32.mrf.mxu1 }
 0x654   :  { %22664 = vst [vmem:[#allocation143_spill] sm:$0xff] %v19535_v50 }
 0x657   :  { %12942 = vmatmul.msk.f32.vlgmr.msrb.gmra.mxu2 %vm1300_vm4, %v19066_v38 }
 0x658   :  { %v19537_v44 = vpop.f32.mrf.mxu0 }
 0x659   :  { %22665 = vst [vmem:[#allocation53_spill] sm:$0xff] %v19537_v44 }
 0x65a   :  { %v19539_v41 = vpop.f32.mrf.mxu2  ;;  %v19541_v4 = vpop.f32.mrf.mxu3 }
 0x65b   :  { %22666 = vst [vmem:[#allocation52_spill] sm:$0xff] %v19539_v41  ;;  %v10022_v21 = vpop.f32.mrf.mxu1 }
 0x65f   :  { %12943 = vmatmul.msk.f32.gmra.mxu2 %vm1300_vm4, %v19095_v6 }
 0x660   :  { %v9999_v41 = vpop.f32.mrf.mxu0 }
 0x662   :  { %v19555_v47 = vpop.f32.mrf.mxu2 }
 0x663   :  { %v13749_v62 = vpop.permute.xlu2 %13748  ;;  %22671 = vst [vmem:[#allocation161_spill] sm:$0xff] %v19555_v47 }
 0x66b   :  { %v19543_v43 = vpop.permute.xlu2 %7565 }
 0x66c   :  { %v7573_v31 = vadd.f32 %v19543_v43, %v22667_v17  ;;  %v7574_v33 = vadd.f32 %v19543_v43, %v22668_v49  ;;  %v19561_v49 = vpop.f32.mrf.mxu3 }
 0x66d   :  { %22674 = vst [vmem:[#allocation9_spill] sm:$0xff] %v19561_v49  ;;  %v22690_v49 = vld [vmem:[#allocation92_spill] sm:$0xff] }
 0x66e   :  { %v8296_v48 = vadd.f32 %v22669_v36, %v7573_v31  ;;  %v8297_v27 = vadd.f32 %v22670_v39, %v7574_v33  ;;  %v19565_v33 = vpop.f32.mrf.mxu1  ;;  %v13751_v36 = vunpack.i.h.bf16 %v13749_v62  ;;  %v22677_v39 = vunpack.i.h.bf16 %v19260_v63 }
 0x66f   :  { %v22679_v63 = vunpack.i.h.bf16 %v19252_v56  ;;  %v22683_v56 = vld [vmem:[#allocation12_spill] sm:$0xff] }
 0x670   :  { %v9019_v50 = vadd.f32 %v19176_v25, %v8296_v48  ;;  %v9020_v44 = vadd.f32 %v19178_v29, %v8297_v27  ;;  %v10002_v29 = vpop.f32.mrf.mxu0  ;;  %v19568_v27 = vpop.f32.mrf.mxu2 }
 0x671   :  { %22675 = vst [vmem:[#allocation144_spill] sm:$0xff] %v19568_v27 }
 0x672   :  { %v9742_v51 = vadd.f32 %v19442_v1, %v9019_v50  ;;  %v9743_v52 = vadd.f32 %v19375_v15, %v9020_v44 }
 0x674   :  { %v19557_v17 = vadd.f32 %v9999_v41, %v9742_v51  ;;  %v19559_v22 = vadd.f32 %v10022_v21, %v9743_v52  ;;  %v19570_v1 = vpop.f32.mrf.mxu3  ;;  %v13750_v21 = vunpack.i.l.bf16 %v13749_v62 }
 0x675   :  { %22676 = vst [vmem:[#allocation21_spill] sm:$0xff] %v19570_v1 }
 0x676   :  { %22672 = vst [vmem:[#allocation121_spill] sm:$0xff] %v19557_v17  ;;  %v13758_v31 = vpack.i.bf16 %v19559_v22, %v19557_v17  ;;  %v6489_v62 = vsel %vm1029_vm0, %v22679_v63, %v13750_v21 }
 0x677   :  { %22673 = vst [vmem:[#allocation77_spill] sm:$0xff] %v19559_v22  ;;  %v22678_v22 = vunpack.i.h.bf16 %v19258_v61 }
 0x678   :  { %13759 = vrot.lane.b32.xlu0 %v13758_v31, %s14163_s23  ;;  %v19576_v31 = vpop.f32.mrf.mxu1 }
 0x67d   :  { %v13744_v25 = vpop.permute.xlu1 %13743  ;;  %v13739_v15 = vpop.permute.xlu0 %13738 }
 0x67e   :  { %v13746_v41 = vunpack.i.h.bf16 %v13744_v25  ;;  %v13745_v51 = vunpack.i.l.bf16 %v13744_v25  ;;  %v13741_v52 = vunpack.i.h.bf16 %v13739_v15  ;;  %v13740_v48 = vunpack.i.l.bf16 %v13739_v15 }
 0x680   :  { %v6905_v50 = vsel %vm6877_vm5, %v22677_v39, %v13740_v48  ;;  %v6906_v44 = vsel %vm6877_vm5, %v13740_v48, %v13741_v52  ;;  %v6697_v17 = vsel %vm6669_vm6, %v22678_v22, %v13745_v51  ;;  %v6698_v25 = vsel %vm6669_vm6, %v13745_v51, %v13746_v41  ;;  %v10091_v48 = vpop.f32.mrf.mxu0  ;;  %v22681_v22 = vld [vmem:[#allocation14_spill] sm:$0xff]  ;;  %v19608_v7 = vpop.f32.mrf.mxu1 }
 0x681   :  { %10430 = vmatpush.msrb.mxu3 %v6905_v50  ;;  %10453 = vmatpush.msra.mxu0 %v6906_v44  ;;  %v6490_v52 = vsel %vm1029_vm0, %v13750_v21, %v13751_v36  ;;  %v22680_v50 = vld [vmem:[#allocation19_spill] sm:$0xff]  ;;  %v7578_v41 = vadd.f32 %v19543_v43, %v22681_v22  ;;  %v22682_v44 = vld [vmem:[#allocation165_spill] sm:$0xff]  ;;  %v22686_v21 = vunpack.i.h.bf16 %v19307_v24  ;;  %v22693_v24 = vmax.f32 %v19339_v20, 0.0 }
 0x682   :  { %v7577_v61 = vadd.f32 %v19543_v43, %v22680_v50  ;;  %v22687_v50 = vld [vmem:[#allocation91_spill] sm:$0xff]  ;;  %v22688_v22 = vld [vmem:[#allocation73_spill] sm:$0xff] }
 0x683   :  { %10431 = vmatpush.msrb.mxu3 %v6697_v17  ;;  %10454 = vmatpush.msra.mxu0 %v6698_v25 }
 0x685   :  { %v19582_v15 = vpop.permute.xlu1 %7570  ;;  %v13754_v39 = vpop.permute.xlu0 %13753  ;;  %10432 = vmatpush.msrb.mxu3 %v6489_v62  ;;  %10455 = vmatpush.msra.mxu0 %v6490_v52 }
 0x686   :  { %v13756_v17 = vunpack.i.h.bf16 %v13754_v39  ;;  %v13755_v51 = vunpack.i.l.bf16 %v13754_v39  ;;  %v7594_v25 = vadd.f32 %v19582_v15, %v22682_v44  ;;  %v7595_v63 = vadd.f32 %v19582_v15, %v22683_v56  ;;  %v22689_v44 = vld [vmem:[#allocation111_spill] sm:$0xff] }
 0x687   :  { %v8300_v39 = vadd.f32 %v22687_v50, %v7577_v61  ;;  %v8301_v56 = vadd.f32 %v22690_v49, %v7578_v41  ;;  %v22695_v41 = vld [vmem:[#allocation145_spill] sm:$0xff] }
 0x688   :  { %v19598_v36 = vpop.f32.mrf.mxu3  ;;  %v6282_v62 = vsel %vm515_vm2, %v22686_v21, %v13755_v51  ;;  %v6283_v52 = vsel %vm515_vm2, %v13755_v51, %v13756_v17  ;;  %v8317_v27 = vadd.f32 %v22688_v22, %v7594_v25  ;;  %v8318_v47 = vadd.f32 %v22689_v44, %v7595_v63  ;;  %v22694_v21 = vld [vmem:[#allocation24_spill] sm:$0xff]  ;;  %v22699_v22 = vld [vmem:[#allocation123_spill] sm:$0xff] }
 0x689   :  { %22685 = vst [vmem:[#allocation17_spill] sm:$0xff] %v19598_v36  ;;  %10433 = vmatpush.msrb.mxu3 %v6282_v62  ;;  %10456 = vmatpush.msra.mxu0 %v6283_v52  ;;  %v7575_v17 = vadd.f32 %v19543_v43, %v22694_v21  ;;  %v9023_v51 = vadd.f32 %v19213_v30, %v8300_v39  ;;  %v10094_v52 = vpop.f32.mrf.mxu0  ;;  %v22701_v21 = vld [vmem:[#allocation155_spill] sm:$0xff] }
 0x68a   :  { %v19596_v1 = vpop.f32.mrf.mxu2  ;;  %v9040_v61 = vadd.f32 %v19195_v16, %v8317_v27  ;;  %v9041_v49 = vadd.f32 %v19197_v0, %v8318_v47  ;;  %v9024_v63 = vadd.f32 %v19216_v59, %v8301_v56  ;;  %v22697_v16 = vld [vmem:[#allocation39_spill] sm:$0xff] }
 0x68b   :  { %22684 = vst [vmem:[#allocation100_spill] sm:$0xff] %v19596_v1  ;;  %v22691_v1 = vld [vmem:[#allocation84_spill] sm:$0xff]  ;;  %10457 = vmatpush.msra.mxu0 %v22693_v24  ;;  %v8298_v27 = vadd.f32 %v22697_v16, %v7575_v17  ;;  %v22700_v56 = vld [vmem:[#allocation147_spill] sm:$0xff] }
 0x68c   :  { %v22692_v36 = vmax.f32 %v22691_v1, 0.0  ;;  %12946 = vmatmul.msk.f32.vlgmr.msra.gmra.mxu0 %vm1300_vm4, %v19066_v38  ;;  %v7576_v1 = vadd.f32 %v19543_v43, %v22695_v41  ;;  %v9763_v20 = vadd.f32 %v19468_v3, %v9040_v61  ;;  %v9764_v25 = vadd.f32 %v19409_v23, %v9041_v49  ;;  %v22698_v3 = vld [vmem:[#allocation41_spill] sm:$0xff]  ;;  %v22703_v61 = vld [vmem:[#allocation146_spill] sm:$0xff]  ;;  %v22706_v16 = vld [vmem:[#allocation47_spill] sm:$0xff] }
 0x68d   :  { %v9746_v23 = vadd.f32 %v19482_v54, %v9023_v51  ;;  %v9747_v39 = vadd.f32 %v19435_v12, %v9024_v63  ;;  %v7599_v24 = vadd.f32 %v19582_v15, %v22700_v56  ;;  %v22702_v54 = vld [vmem:[#allocation44_spill] sm:$0xff]  ;;  %v7597_v12 = vadd.f32 %v19582_v15, %v22703_v61  ;;  %v22704_v49 = vld [vmem:[#allocation101_spill] sm:$0xff]  ;;  %v22705_v63 = vld [vmem:[#allocation58_spill] sm:$0xff] }
 0x68e   :  { %10434 = vmatpush.msrb.mxu3 %v22692_v36  ;;  %v22696_v36 = vld [vmem:[#allocation31_spill] sm:$0xff]  ;;  %v19635_v47 = vadd.f32 %v10002_v29, %v9763_v20  ;;  %v19638_v30 = vadd.f32 %v19565_v33, %v9764_v25  ;;  %v8299_v50 = vadd.f32 %v22698_v3, %v7576_v1  ;;  %v9021_v29 = vadd.f32 %v19119_v37, %v8298_v27  ;;  %v10206_v1 = vpop.f32.mrf.mxu1  ;;  %v22707_v3 = vld [vmem:[#allocation16_spill] sm:$0xff]  ;;  %v22709_v56 = vld [vmem:[#allocation30_spill] sm:$0xff] }
 0x68f   :  { %12944 = vmatmul.msk.f32.vlgmr.msrb.gmra.mxu3 %vm1300_vm4, %v19066_v38  ;;  %v7598_v62 = vadd.f32 %v19582_v15, %v22696_v36  ;;  %v7596_v33 = vadd.f32 %v19582_v15, %v22701_v21  ;;  %v8322_v41 = vadd.f32 %v22704_v49, %v7599_v24  ;;  %v19660_v37 = vadd.f32 %v10091_v48, %v9746_v23  ;;  %v22708_v23 = vld [vmem:[#allocation151_spill] sm:$0xff]  ;;  %v22710_v21 = vld [vmem:[#allocation20_spill] sm:$0xff] }
 0x690   :  { %v19633_v0 = vpop.f32.mrf.mxu3  ;;  %v13768_v59 = vpack.i.bf16 %v19638_v30, %v19635_v47  ;;  %v9022_v17 = vadd.f32 %v22702_v54, %v8299_v50  ;;  %v19663_v51 = vadd.f32 %v19576_v31, %v9747_v39  ;;  %v7581_v36 = vadd.f32 %v19543_v43, %v22705_v63  ;;  %v22711_v54 = vld [vmem:[#allocation51_spill] sm:$0xff] }
 0x691   :  { %v8321_v44 = vadd.f32 %v22699_v22, %v7598_v62  ;;  %v9045_v25 = vadd.f32 %v19230_v32, %v8322_v41  ;;  %v9744_v62 = vadd.f32 %v19366_v58, %v9021_v29  ;;  %v8319_v27 = vadd.f32 %v22706_v16, %v7596_v33  ;;  %v22713_v41 = vld [vmem:[#allocation8_spill] sm:$0xff]  ;;  %v22715_v16 = vld [vmem:[#allocation65_spill] sm:$0xff] }
 0x692   :  { %v19630_v38 = vpop.f32.mrf.mxu2  ;;  %13769 = vrot.lane.b32.xlu0 %v13768_v59, %s14163_s23  ;;  %v7582_v50 = vadd.f32 %v19543_v43, %v22707_v3  ;;  %v9745_v48 = vadd.f32 %v19480_v19, %v9022_v17  ;;  %v8320_v31 = vadd.f32 %v22708_v23, %v7597_v12  ;;  %v10183_v59 = vpop.f32.mrf.mxu0  ;;  %v13783_v22 = vpack.i.bf16 %v19663_v51, %v19660_v37  ;;  %v22716_v3 = vld [vmem:[#allocation86_spill] sm:$0xff] }
 0x693   :  { %v9044_v20 = vadd.f32 %v19227_v13, %v8321_v44  ;;  %v9768_v44 = vadd.f32 %v19455_v45, %v9045_v25  ;;  %v8304_v24 = vadd.f32 %v22709_v56, %v7581_v36  ;;  %v9042_v29 = vadd.f32 %v19146_v11, %v8319_v27  ;;  %v22712_v45 = vld [vmem:[#allocation15_spill] sm:$0xff]  ;;  %v22714_v25 = vld [vmem:[#allocation134_spill] sm:$0xff] }
 0x694   :  { %12947 = vmatmul.msk.f32.gmra.mxu0 %vm1300_vm4, %v19095_v6  ;;  %v7579_v33 = vadd.f32 %v19543_v43, %v22710_v21  ;;  %v8305_v17 = vadd.f32 %v22711_v54, %v7582_v50  ;;  %v7580_v12 = vadd.f32 %v19543_v43, %v22712_v45  ;;  %v7603_v63 = vadd.f32 %v19582_v15, %v22714_v25  ;;  %v22721_v21 = vld [vmem:[#allocation127_spill] sm:$0xff]  ;;  %v22723_v45 = vld [vmem:[#allocation33_spill] sm:$0xff] }
 0x695   :  { %v9767_v58 = vadd.f32 %v19497_v34, %v9044_v20  ;;  %v9043_v34 = vadd.f32 %v19132_v40, %v8320_v31  ;;  %v19701_v49 = vadd.f32 %v19608_v7, %v9768_v44  ;;  %v7602_v20 = vadd.f32 %v19582_v15, %v22713_v41  ;;  %v22717_v7 = vld [vmem:[#allocation152_spill] sm:$0xff]  ;;  %v22725_v25 = vld [vmem:[#allocation43_spill] sm:$0xff] }
 0x696   :  { %v9027_v40 = vadd.f32 %v19243_v57, %v8304_v24  ;;  %v10209_v36 = vpop.f32.mrf.mxu1  ;;  %v8302_v27 = vadd.f32 %v22715_v16, %v7579_v33  ;;  %v9028_v50 = vadd.f32 %v22716_v3, %v8305_v17  ;;  %v7600_v33 = vadd.f32 %v19582_v15, %v22721_v21  ;;  %v22724_v41 = vld [vmem:[#allocation156_spill] sm:$0xff] }
 0x697   :  { %12945 = vmatmul.msk.f32.gmra.mxu3 %vm1300_vm4, %v19095_v6  ;;  %v19698_v11 = vadd.f32 %v10094_v52, %v9767_v58 }
 0x698   :  { %v10068_v13 = vpop.f32.mrf.mxu3  ;;  %v9750_v24 = vadd.f32 %v19511_v18, %v9027_v40  ;;  %v9751_v54 = vadd.f32 %v19472_v10, %v9028_v50  ;;  %v7601_v18 = vadd.f32 %v19582_v15, %v22723_v45  ;;  %v22728_v50 = vld [vmem:[#allocation153_spill] sm:$0xff] }
 0x699   :  { %v19677_v32 = vadd.f32 %v10068_v13, %v9745_v48  ;;  %v8303_v48 = vadd.f32 %v22717_v7, %v7580_v12  ;;  %v13798_v57 = vpack.i.bf16 %v19701_v49, %v19698_v11  ;;  %v22729_v7 = vld [vmem:[#allocation18_spill] sm:$0xff] }
 0x69a   :  { %v10045_v6 = vpop.f32.mrf.mxu2  ;;  %13784 = vrot.lane.b32.xlu0 %v13783_v22, %s14163_s23  ;;  %v22718_v22 = vld [vmem:[#allocation125_spill] sm:$0xff]  ;;  %v10186_v56 = vpop.f32.mrf.mxu0  ;;  %v19735_v12 = vadd.f32 %v10206_v1, %v9751_v54 }
 0x69b   :  { %v19675_v39 = vadd.f32 %v10045_v6, %v9744_v62  ;;  %v13778_v61 = vpack.i.bf16 %v19660_v37, %v19677_v32  ;;  %v9765_v62 = vadd.f32 %v19400_v2, %v9042_v29  ;;  %v9766_v6 = vadd.f32 %v19495_v9, %v9043_v34  ;;  %v22719_v2 = vld [vmem:[#allocation74_spill] sm:$0xff] }
 0x69c   :  { %v8325_v58 = vadd.f32 %v22718_v22, %v7602_v20  ;;  %v8326_v44 = vadd.f32 %v22719_v2, %v7603_v63  ;;  %v19740_v63 = vadd.f32 %v10183_v59, %v9750_v24 }
 0x69d   :  { %v13763_v19 = vpack.i.bf16 %v19675_v39, %v19675_v39  ;;  %13779 = vrot.lane.b32.xlu2 %v13778_v61, %s14163_s23  ;;  %v22722_v61 = vld [vmem:[#allocation96_spill] sm:$0xff] }
 0x69e   :  { %v9026_v34 = vadd.f32 %v22722_v61, %v8303_v48  ;;  %v9048_v20 = vadd.f32 %v22724_v41, %v8325_v58  ;;  %v9049_v10 = vadd.f32 %v22725_v25, %v8326_v44  ;;  %v8324_v48 = vadd.f32 %v22729_v7, %v7601_v18  ;;  %v19752_v59 = vpop.f32.mrf.mxu1 }
 0x69f   :  { %13764 = vrot.lane.b32.xlu1 %v13763_v19, %s14163_s23  ;;  %v22720_v19 = vld [vmem:[#allocation50_spill] sm:$0xff]  ;;  %v13813_v58 = vpack.i.bf16 %v19735_v12, %v19740_v63 }
 0x6a0   :  { %v10071_v31 = vpop.f32.mrf.mxu3  ;;  %v9025_v29 = vadd.f32 %v22720_v19, %v8302_v27  ;;  %v22727_v27 = vld [vmem:[#allocation23_spill] sm:$0xff]  ;;  %v9771_v44 = vadd.f32 %v19523_v60, %v9048_v20  ;;  %v9772_v24 = vadd.f32 %v19493_v5, %v9049_v10  ;;  %v22736_v5 = vld [vmem:[#allocation106_spill] sm:$0xff] }
 0x6a1   :  { %v19715_v13 = vadd.f32 %v10071_v31, %v9766_v6  ;;  %v7606_v3 = vadd.f32 %v19582_v15, %v22727_v27  ;;  %v9749_v6 = vadd.f32 %v19507_v35, %v9026_v34  ;;  %v22730_v31 = vld [vmem:[#allocation22_spill] sm:$0xff]  ;;  %v22735_v34 = vld [vmem:[#allocation40_spill] sm:$0xff]  ;;  %v9047_v18 = vadd.f32 %v22736_v5, %v8324_v48  ;;  %v22740_v48 = vld [vmem:[#allocation149_spill] sm:$0xff] }
 0x6a2   :  { %v10048_v52 = vpop.f32.mrf.mxu2  ;;  %13799 = vrot.lane.b32.xlu0 %v13798_v57, %s14163_s23  ;;  %v9748_v40 = vadd.f32 %v19424_v55, %v9025_v29  ;;  %v7585_v57 = vadd.f32 %v19543_v43, %v22730_v31  ;;  %v22732_v29 = vld [vmem:[#allocation79_spill] sm:$0xff]  ;;  %v10275_v41 = vpop.f32.mrf.mxu0  ;;  %v22737_v20 = vld [vmem:[#allocation78_spill] sm:$0xff]  ;;  %v19778_v10 = vadd.f32 %v10186_v56, %v9771_v44  ;;  %v7586_v31 = vadd.f32 %v19543_v43, %v22740_v48  ;;  %v22752_v48 = vld [vmem:[#allocation148_spill] sm:$0xff] }
 0x6a3   :  { %v19713_v23 = vadd.f32 %v10048_v52, %v9765_v62  ;;  %v13793_v17 = vpack.i.bf16 %v19698_v11, %v19715_v13  ;;  %v22726_v62 = vld [vmem:[#allocation38_spill] sm:$0xff]  ;;  %v7607_v52 = vadd.f32 %v19582_v15, %v22728_v50  ;;  %v7583_v21 = vadd.f32 %v19543_v43, %v22732_v29  ;;  %v22742_v44 = vld [vmem:[#allocation83_spill] sm:$0xff] }
 0x6a4   :  { %v8323_v16 = vadd.f32 %v22726_v62, %v7600_v33  ;;  %v22733_v33 = vld [vmem:[#allocation29_spill] sm:$0xff]  ;;  %v8308_v25 = vadd.f32 %v22737_v20, %v7585_v57 }
 0x6a5   :  { %v13773_v9 = vpack.i.bf16 %v19713_v23, %v19713_v23  ;;  %13794 = vrot.lane.b32.xlu2 %v13793_v17, %s14163_s23  ;;  %v7584_v54 = vadd.f32 %v19543_v43, %v22733_v33  ;;  %v22734_v17 = vld [vmem:[#allocation67_spill] sm:$0xff]  ;;  %v8330_v45 = vadd.f32 %v22735_v34, %v7607_v52  ;;  %v22747_v34 = vld [vmem:[#allocation110_spill] sm:$0xff] }
 0x6a6   :  { %v8329_v61 = vadd.f32 %v22734_v17, %v7606_v3  ;;  %v9031_v57 = vadd.f32 %v19313_v26, %v8308_v25  ;;  %v22749_v25 = vld [vmem:[#allocation130_spill] sm:$0xff] }
 0x6a7   :  { %13774 = vrot.lane.b32.xlu1 %v13773_v9, %s14163_s23  ;;  %v22731_v9 = vld [vmem:[#allocation159_spill] sm:$0xff]  ;;  %v9053_v50 = vadd.f32 %v19359_v28, %v8330_v45 }
 0x6a8   :  { %v10160_v55 = vpop.f32.mrf.mxu3  ;;  %v9046_v19 = vadd.f32 %v22731_v9, %v8323_v16  ;;  %v22738_v16 = vld [vmem:[#allocation57_spill] sm:$0xff]  ;;  %v9052_v3 = vadd.f32 %v19355_v46, %v8329_v61  ;;  %v22746_v61 = vld [vmem:[#allocation48_spill] sm:$0xff] }
 0x6a9   :  { %v19758_v2 = vadd.f32 %v10160_v55, %v9749_v6  ;;  %v8306_v27 = vadd.f32 %v22738_v16, %v7583_v21  ;;  %v22739_v6 = vld [vmem:[#allocation71_spill] sm:$0xff]  ;;  %v10301_v55 = vpop.f32.mrf.mxu1  ;;  %v9776_v9 = vadd.f32 %v19517_v53, %v9053_v50  ;;  %v22744_v21 = vld [vmem:[#allocation82_spill] sm:$0xff]  ;;  %v22750_v16 = vld [vmem:[#allocation89_spill] sm:$0xff] }
 0x6aa   :  { %v10137_v1 = vpop.f32.mrf.mxu2  ;;  %13814 = vrot.lane.b32.xlu0 %v13813_v58, %s14163_s23  ;;  %v9769_v62 = vadd.f32 %v19447_v14, %v9046_v19  ;;  %v8307_v7 = vadd.f32 %v22739_v6, %v7584_v54  ;;  %v22743_v19 = vld [vmem:[#allocation158_spill] sm:$0xff]  ;;  %v8309_v33 = vadd.f32 %v22744_v21, %v7586_v31  ;;  %v9754_v54 = vadd.f32 %v19533_v8, %v9031_v57  ;;  %v22751_v8 = vld [vmem:[#allocation133_spill] sm:$0xff] }
 0x6ab   :  { %v19754_v22 = vadd.f32 %v10137_v1, %v9748_v40  ;;  %v13808_v60 = vpack.i.bf16 %v19740_v63, %v19758_v2  ;;  %v19780_v40 = vadd.f32 %v10209_v36, %v9772_v24  ;;  %v9770_v1 = vadd.f32 %v19521_v42, %v9047_v18  ;;  %v22741_v42 = vld [vmem:[#allocation135_spill] sm:$0xff]  ;;  %v22748_v18 = vld [vmem:[#allocation80_spill] sm:$0xff]  ;;  %v22753_v57 = vld [vmem:[#allocation137_spill] sm:$0xff] }
 0x6ac   :  { %v9029_v58 = vadd.f32 %v22741_v42, %v8306_v27  ;;  %v7604_v24 = vadd.f32 %v19582_v15, %v22742_v44  ;;  %v9030_v29 = vadd.f32 %v22743_v19, %v8307_v7  ;;  %v19811_v17 = vadd.f32 %v10301_v55, %v9776_v9  ;;  %v22754_v55 = vld [vmem:[#allocation32_spill] sm:$0xff]  ;;  %v22755_v42 = vld [vmem:[#allocation93_spill] sm:$0xff]  ;;  %v22756_v44 = vld [vmem:[#allocation62_spill] sm:$0xff] }
 0x6ad   :  { %v13788_v35 = vpack.i.bf16 %v19754_v22, %v19754_v22  ;;  %13809 = vrot.lane.b32.xlu2 %v13808_v60, %s14163_s23  ;;  %v13828_v46 = vpack.i.bf16 %v19780_v40, %v19778_v10  ;;  %v9032_v27 = vadd.f32 %v22750_v16, %v8309_v33  ;;  %v7605_v31 = vadd.f32 %v19582_v15, %v22752_v48  ;;  %v22760_v33 = vld [vmem:[#allocation103_spill] sm:$0xff] }
 0x6ae   :  { %22745 = vst [vmem:[#allocation63_spill] sm:$0xff] %v19811_v17  ;;  %v9752_v53 = vadd.f32 %v22746_v61, %v9029_v58  ;;  %v8327_v45 = vadd.f32 %v22747_v34, %v7604_v24  ;;  %v9753_v20 = vadd.f32 %v22748_v18, %v9030_v29  ;;  %v22759_v29 = vld [vmem:[#allocation28_spill] sm:$0xff] }
 0x6af   :  { %13789 = vrot.lane.b32.xlu1 %v13788_v35, %s14163_s23  ;;  %v9775_v35 = vadd.f32 %v19541_v4, %v9052_v3  ;;  %v10278_v4 = vpop.f32.mrf.mxu0  ;;  %v7590_v3 = vadd.f32 %v19543_v43, %v22751_v8  ;;  %v8328_v21 = vadd.f32 %v22759_v29, %v7605_v31  ;;  %v22764_v18 = vld [vmem:[#allocation108_spill] sm:$0xff]  ;;  %v22766_v8 = vld [vmem:[#allocation129_spill] sm:$0xff]  ;;  %v22774_v29 = vld [vmem:[#allocation119_spill] sm:$0xff] }
 0x6b0   :  { %v10163_v36 = vpop.f32.mrf.mxu3  ;;  %v22768_v31 = vld [vmem:[#allocation116_spill] sm:$0xff] }
 0x6b1   :  { %v19793_v14 = vadd.f32 %v10163_v36, %v9770_v1  ;;  %v19816_v60 = vadd.f32 %v10278_v4, %v9775_v35  ;;  %v19826_v1 = vadd.f32 %v10275_v41, %v9754_v54  ;;  %v7588_v41 = vadd.f32 %v19543_v43, %v22755_v42  ;;  %v22757_v35 = vld [vmem:[#allocation85_spill] sm:$0xff] }
 0x6b2   :  { %v10140_v52 = vpop.f32.mrf.mxu2  ;;  %13829 = vrot.lane.b32.xlu0 %v13828_v46, %s14163_s23  ;;  %v9050_v46 = vadd.f32 %v22753_v57, %v8327_v45  ;;  %v8313_v9 = vadd.f32 %v22757_v35, %v7590_v3  ;;  %v22761_v4 = vld [vmem:[#allocation117_spill] sm:$0xff]  ;;  %v9051_v3 = vadd.f32 %v22766_v8, %v8328_v21 }
 0x6b3   :  { %v19790_v56 = vadd.f32 %v10140_v52, %v9769_v62  ;;  %v13818_v26 = vpack.i.bf16 %v19778_v10, %v19793_v14  ;;  %v7589_v62 = vadd.f32 %v19543_v43, %v22749_v25  ;;  %v13853_v6 = vpack.i.bf16 %v19811_v17, %v19816_v60  ;;  %v22765_v25 = vld [vmem:[#allocation45_spill] sm:$0xff] }
 0x6b4   :  { %v9773_v54 = vadd.f32 %v22760_v33, %v9050_v46  ;;  %v22775_v33 = vld [vmem:[#allocation46_spill] sm:$0xff] }
 0x6b5   :  { %v13803_v28 = vpack.i.bf16 %v19790_v56, %v19790_v56  ;;  %13819 = vrot.lane.b32.xlu2 %v13818_v26, %s14163_s23  ;;  %v8312_v24 = vadd.f32 %v22756_v44, %v7589_v62  ;;  %v22758_v26 = vld [vmem:[#allocation118_spill] sm:$0xff]  ;;  %v9036_v62 = vadd.f32 %v22765_v25, %v8313_v9  ;;  %v22773_v9 = vld [vmem:[#allocation52_spill] sm:$0xff] }
 0x6b6   :  { %v9755_v19 = vadd.f32 %v22758_v26, %v9032_v27  ;;  %v22772_v44 = vld [vmem:[#allocation142_spill] sm:$0xff]  ;;  %v9774_v26 = vadd.f32 %v22773_v9, %v9051_v3  ;;  %v22785_v9 = vld [vmem:[#allocation35_spill] sm:$0xff] }
 0x6b7   :  { %13804 = vrot.lane.b32.xlu1 %v13803_v28, %s14163_s23  ;;  %v7587_v28 = vadd.f32 %v19543_v43, %v22754_v55  ;;  %v10390_v55 = vpop.f32.mrf.mxu1  ;;  %v10367_v35 = vpop.f32.mrf.mxu0 }
 0x6b8   :  { %v10252_v52 = vpop.f32.mrf.mxu3  ;;  %v19854_v45 = vadd.f32 %v19752_v59, %v9755_v19  ;;  %v22769_v59 = vld [vmem:[#allocation102_spill] sm:$0xff] }
 0x6b9   :  { %v19830_v7 = vadd.f32 %v10252_v52, %v9753_v20  ;;  %v8310_v61 = vadd.f32 %v22761_v4, %v7587_v28  ;;  %v9035_v20 = vadd.f32 %v22764_v18, %v8312_v24  ;;  %v22770_v28 = vld [vmem:[#allocation150_spill] sm:$0xff]  ;;  %v9759_v24 = vadd.f32 %v22772_v44, %v9036_v62  ;;  %v22776_v4 = vld [vmem:[#allocation161_spill] sm:$0xff] }
 0x6ba   :  { %v10229_v5 = vpop.f32.mrf.mxu2  ;;  %13854 = vrot.lane.b32.xlu0 %v13853_v6, %s14163_s23  ;;  %22763 = vst [vmem:[#allocation25_spill] sm:$0xff] %v19854_v45  ;;  %v22767_v6 = vld [vmem:[#allocation37_spill] sm:$0xff]  ;;  %v13843_v46 = vpack.i.bf16 %v19854_v45, %v19826_v1  ;;  %v7609_v42 = vadd.f32 %v19582_v15, %v22770_v28 }
 0x6bb   :  { %v19824_v50 = vadd.f32 %v10229_v5, %v9752_v53  ;;  %v13838_v58 = vpack.i.bf16 %v19826_v1, %v19830_v7  ;;  %v22762_v53 = vld [vmem:[#allocation88_spill] sm:$0xff]  ;;  %v9033_v48 = vadd.f32 %v22767_v6, %v8310_v61  ;;  %v19876_v19 = vadd.f32 %v10390_v55, %v9759_v24  ;;  %v22782_v28 = vld [vmem:[#allocation113_spill] sm:$0xff]  ;;  %v22784_v24 = vld [vmem:[#allocation154_spill] sm:$0xff] }
 0x6bc   :  { %v8311_v34 = vadd.f32 %v22762_v53, %v7588_v41  ;;  %v22771_v41 = vld [vmem:[#allocation9_spill] sm:$0xff] }
 0x6bd   :  { %v13823_v36 = vpack.i.bf16 %v19824_v50, %v19824_v50  ;;  %13839 = vrot.lane.b32.xlu2 %v13838_v58, %s14163_s23  ;;  %v9758_v58 = vadd.f32 %v22771_v41, %v9035_v20  ;;  %v9756_v21 = vadd.f32 %v22774_v29, %v9033_v48  ;;  %v22779_v48 = vld [vmem:[#allocation61_spill] sm:$0xff] }
 0x6be   :  { %v9034_v57 = vadd.f32 %v22769_v59, %v8311_v34  ;;  %v22780_v59 = vld [vmem:[#allocation94_spill] sm:$0xff] }
 0x6bf   :  { %13824 = vrot.lane.b32.xlu1 %v13823_v36, %s14163_s23  ;;  %v7608_v36 = vadd.f32 %v19582_v15, %v22768_v31  ;;  %v19884_v20 = vadd.f32 %v10367_v35, %v9758_v58  ;;  %v7591_v31 = vadd.f32 %v19543_v43, %v22779_v48  ;;  %v22783_v58 = vld [vmem:[#allocation144_spill] sm:$0xff]  ;;  %v7610_v35 = vadd.f32 %v19582_v15, %v22784_v24  ;;  %v22796_v24 = vld [vmem:[#allocation21_spill] sm:$0xff] }
 0x6c0   :  { %v10255_v27 = vpop.f32.mrf.mxu3  ;;  %v9757_v61 = vadd.f32 %v22776_v4, %v9034_v57 }
 0x6c1   :  { %v19881_v53 = vadd.f32 %v10255_v27, %v9774_v26  ;;  %v13863_v3 = vpack.i.bf16 %v19876_v19, %v19884_v20  ;;  %v7611_v26 = vadd.f32 %v19582_v15, %v22785_v9  ;;  %v22797_v9 = vld [vmem:[#allocation53_spill] sm:$0xff] }
 0x6c2   :  { %v10232_v5 = vpop.f32.mrf.mxu2 }
 0x6c3   :  { %v19858_v16 = vadd.f32 %v10232_v5, %v9773_v54  ;;  %v8331_v54 = vadd.f32 %v22775_v33, %v7608_v36  ;;  %v22777_v5 = vld [vmem:[#allocation160_spill] sm:$0xff]  ;;  %v13848_v27 = vpack.i.bf16 %v19816_v60, %v19881_v53 }
 0x6c4   :  { %v8332_v18 = vadd.f32 %v22777_v5, %v7609_v42  ;;  %v8314_v42 = vadd.f32 %v22782_v28, %v7591_v31  ;;  %v22792_v31 = vld [vmem:[#allocation99_spill] sm:$0xff] }
 0x6c5   :  { %v13833_v52 = vpack.i.bf16 %v19858_v16, %v19858_v16  ;;  %13844 = vrot.lane.b32.xlu2 %v13843_v46, %s14163_s23  ;;  %v22781_v46 = vld [vmem:[#allocation90_spill] sm:$0xff] }
 0x6c6   :  { %v9055_v57 = vadd.f32 %v22780_v59, %v8332_v18  ;;  %v22789_v18 = vld [vmem:[#allocation95_spill] sm:$0xff]  ;;  %v22793_v59 = vld [vmem:[#allocation114_spill] sm:$0xff] }
 0x6c7   :  { %13834 = vrot.lane.b32.xlu1 %v13833_v52, %s14163_s23  ;;  %v22778_v52 = vld [vmem:[#allocation36_spill] sm:$0xff] }
 0x6c8   :  { %v10344_v62 = vpop.f32.mrf.mxu3  ;;  %v9054_v6 = vadd.f32 %v22778_v52, %v8331_v54  ;;  %v9778_v44 = vadd.f32 %v22783_v58, %v9055_v57  ;;  %v22787_v54 = vld [vmem:[#allocation42_spill] sm:$0xff] }
 0x6c9   :  { %v19888_v8 = vadd.f32 %v10344_v62, %v9757_v61  ;;  %v9037_v4 = vadd.f32 %v22787_v54, %v8314_v42  ;;  %v22788_v61 = vld [vmem:[#allocation136_spill] sm:$0xff]  ;;  %v8333_v62 = vadd.f32 %v22789_v18, %v7610_v35 }
 0x6ca   :  { %v10321_v34 = vpop.f32.mrf.mxu2  ;;  %v9777_v55 = vadd.f32 %v22781_v46, %v9054_v6  ;;  %v22791_v6 = vld [vmem:[#allocation126_spill] sm:$0xff]  ;;  %v22794_v46 = vld [vmem:[#allocation105_spill] sm:$0xff] }
 0x6cb   :  { %v19886_v25 = vadd.f32 %v10321_v34, %v9756_v21  ;;  %v7612_v34 = vadd.f32 %v19582_v15, %v22788_v61  ;;  %v9760_v48 = vadd.f32 %v22791_v6, %v9037_v4  ;;  %v9056_v57 = vadd.f32 %v22793_v59, %v8333_v62  ;;  %v22798_v4 = vld [vmem:[#allocation143_spill] sm:$0xff] }
 0x6cd   :  { %v13858_v36 = vpack.i.bf16 %v19888_v8, %v19886_v25  ;;  %13849 = vrot.lane.b32.xlu2 %v13848_v27, %s14163_s23  ;;  %v8335_v27 = vadd.f32 %v22792_v31, %v7612_v34  ;;  %v9779_v35 = vadd.f32 %v22796_v24, %v9056_v57  ;;  %v22799_v31 = vld [vmem:[#allocation27_spill] sm:$0xff] }
 0x6cf   :  { %13864 = vrot.lane.b32.xlu1 %v13863_v3, %s14163_s23  ;;  %13859 = vrot.lane.b32.xlu0 %v13858_v36, %s14163_s23  ;;  %v22790_v3 = vld [vmem:[#allocation98_spill] sm:$0xff] }
 0x6d0   :  { %v10347_v21 = vpop.f32.mrf.mxu3  ;;  %v8334_v52 = vadd.f32 %v22790_v3, %v7611_v26 }
 0x6d1   :  { %v19912_v33 = vadd.f32 %v10347_v21, %v9778_v44  ;;  %v10393_v44 = vpop.f32.mrf.mxu1  ;;  %v10370_v21 = vpop.f32.mrf.mxu0 }
 0x6d2   :  { %v10324_v41 = vpop.f32.mrf.mxu2 }
 0x6d3   :  { %v19910_v29 = vadd.f32 %v10324_v41, %v9777_v55  ;;  %22786 = vst [vmem:[#allocation131_spill] sm:$0xff] %v19912_v33  ;;  %v9057_v55 = vadd.f32 %v22794_v46, %v8334_v52  ;;  %v22795_v41 = vld [vmem:[#allocation87_spill] sm:$0xff] }
 0x6d4   :  { %v9058_v58 = vadd.f32 %v22795_v41, %v8335_v27  ;;  %v7592_v27 = vadd.f32 %v19543_v43, %v22799_v31  ;;  %v22801_v46 = vld [vmem:[#allocation59_spill] sm:$0xff] }
 0x6d5   :  { %v13868_v5 = vpack.i.bf16 %v19912_v33, %v19910_v29  ;;  %v9780_v26 = vadd.f32 %v22797_v9, %v9057_v55  ;;  %v22810_v33 = vld [vmem:[#allocation109_spill] sm:$0xff] }
 0x6d6   :  { %v9781_v61 = vadd.f32 %v22798_v4, %v9058_v58  ;;  %v8315_v55 = vadd.f32 %v22801_v46, %v7592_v27  ;;  %v22807_v27 = vld [vmem:[#allocation100_spill] sm:$0xff] }
 0x6d7   :  { %13869 = vrot.lane.b32.xlu1 %v13868_v5, %s14163_s23  ;;  %v19934_v54 = vadd.f32 %v10393_v44, %v9780_v26  ;;  %v19937_v5 = vadd.f32 %v10370_v21, %v9779_v35  ;;  %v22803_v44 = vld [vmem:[#allocation115_spill] sm:$0xff]  ;;  %v22804_v26 = vld [vmem:[#allocation72_spill] sm:$0xff] }
 0x6d8   :  { %v7613_v24 = vadd.f32 %v19582_v15, %v22803_v44  ;;  %v7614_v21 = vadd.f32 %v19582_v15, %v22804_v26 }
 0x6d9   :  { %v13878_v62 = vpack.i.bf16 %v19934_v54, %v19937_v5 }
 0x6da   :  { %v10413_v36 = vpop.f32.mrf.mxu2 }
 0x6db   :  { %v19926_v28 = vadd.f32 %v10413_v36, %v9760_v48  ;;  %v22800_v36 = vld [vmem:[#allocation157_spill] sm:$0xff] }
 0x6dc   :  { %v7593_v59 = vadd.f32 %v19543_v43, %v22800_v36  ;;  %v22805_v43 = vld [vmem:[#allocation112_spill] sm:$0xff] }
 0x6dd   :  { %v13873_v42 = vpack.i.bf16 %v19926_v28, %v19926_v28 }
 0x6df   :  { %13874 = vrot.lane.b32.xlu2 %v13873_v42, %s14163_s23  ;;  %v22802_v42 = vld [vmem:[#allocation68_spill] sm:$0xff] }
 0x6e0   :  { %v8316_v41 = vadd.f32 %v22802_v42, %v7593_v59  ;;  %v22808_v59 = vld [vmem:[#allocation17_spill] sm:$0xff]  ;;  %v22809_v42 = vld [vmem:[#allocation138_spill] sm:$0xff] }
 0x6e1   :  { %v8336_v17 = vadd.f32 %v22809_v42, %v7613_v24  ;;  %v22811_v24 = vld [vmem:[#allocation121_spill] sm:$0xff] }
 0x6e2   :  { %v10416_v34 = vpop.f32.mrf.mxu2 }
 0x6e3   :  { %v19939_v18 = vadd.f32 %v10416_v34, %v9781_v61 }
 0x6e5   :  { %v13883_v3 = vpack.i.bf16 %v19939_v18, %v19939_v18 }
 0x6e7   :  { %13879 = vrot.lane.b32.xlu2 %v13878_v62, %s14163_s23  ;;  %13884 = vrot.lane.b32.xlu0 %v13883_v3, %s14163_s23  ;;  %v9038_v62 = vadd.f32 %v22805_v43, %v8315_v55  ;;  %v22806_v3 = vld [vmem:[#allocation120_spill] sm:$0xff] }
 0x6e8   :  { %v9039_v31 = vadd.f32 %v22806_v3, %v8316_v41 }
 0x6e9   :  { %v9761_v36 = vadd.f32 %v22807_v27, %v9038_v62 }
 0x6ea   :  { %v13760_v6 = vpop.permute.xlu0 %13759  ;;  %v9762_v46 = vadd.f32 %v22808_v59, %v9039_v31 }
 0x6eb   :  { %v13762_v35 = vunpack.i.h.bf16 %v13760_v6  ;;  %v13761_v9 = vunpack.i.l.bf16 %v13760_v6  ;;  %v8337_v6 = vadd.f32 %v22810_v33, %v7614_v21 }
 0x6ed   :  { %v10701_v44 = vsel %vm515_vm2, %v13761_v9, %v13762_v35 }
 0x6ee   :  { %v10773_v27 = vmax.f32 %v22811_v24, %v10701_v44 }
 0x6f7   :  { %v13780_v52 = vpop.permute.xlu2 %13779 }
 0x6f8   :  { %v13782_v4 = vunpack.i.h.bf16 %v13780_v52  ;;  %v13781_v61 = vunpack.i.l.bf16 %v13780_v52 }
 0x6fa   :  { %v10964_v45 = vsel %vm515_vm2, %v13781_v61, %v13782_v4 }
 0x6fb   :  { %v11036_v9 = vmax.f32 %v19677_v32, %v10964_v45 }
 0x6ff   :  { %v19947_v48 = vpop.permute.xlu2 %13794 }
 0x700   :  { %v13797_v15 = vunpack.i.h.bf16 %v19947_v48  ;;  %v13796_v52 = vunpack.i.l.bf16 %v19947_v48 }
 0x702   :  { %v10982_v45 = vsel %vm515_vm2, %v13796_v52, %v13797_v15 }
 0x704   :  { %v19953_v57 = vpop.permute.xlu0 %13769 }
 0x705   :  { %v13772_v48 = vunpack.i.h.bf16 %v19953_v57 }
 0x707   :  { %v19957_v58 = vpop.permute.xlu2 %13809 }
 0x709   :  { %v10459_v34 = vpop.f32.mrf.mxu0 }
 0x70a   :  { %v10485_v43 = vadd.f32 %v10459_v34, %v9762_v46  ;;  %v13771_v34 = vunpack.i.l.bf16 %v19953_v57  ;;  %v22812_v46 = vld [vmem:[#allocation77_spill] sm:$0xff] }
 0x70c   :  { %v19973_v41 = vpop.permute.xlu0 %13784 }
 0x70f   :  { %v19984_v59 = vpop.permute.xlu2 %13819 }
 0x711   :  { %v13765_v55 = vpop.permute.xlu1 %13764 }
 0x712   :  { %v10436_v26 = vpop.f32.mrf.mxu3  ;;  %v13767_v3 = vunpack.i.h.bf16 %v13765_v55  ;;  %v13766_v31 = vunpack.i.l.bf16 %v13765_v55  ;;  %v22814_v55 = vld [vmem:[#allocation49_spill] sm:$0xff] }
 0x713   :  { %v19975_v62 = vadd.f32 %v10436_v26, %v9761_v36  ;;  %v22813_v26 = vld [vmem:[#allocation104_spill] sm:$0xff]  ;;  %v9060_v32 = vadd.f32 %v22814_v55, %v8337_v6 }
 0x714   :  { %v10963_v21 = vsel %vm515_vm2, %v13767_v3, %v13781_v61  ;;  %v10702_v4 = vsel %vm515_vm2, %v13762_v35, %v13766_v31  ;;  %v9059_v44 = vadd.f32 %v22813_v26, %v8336_v17  ;;  %v11054_v31 = vmax.f32 %v19715_v13, %v10982_v45 }
 0x715   :  { %v13888_v33 = vpack.i.bf16 %v10485_v43, %v19975_v62  ;;  %v11035_v36 = vmax.f32 %v19675_v39, %v10963_v21  ;;  %v10774_v42 = vmax.f32 %v22812_v46, %v10702_v4  ;;  %v10462_v43 = vpop.f32.mrf.mxu0  ;;  %v9783_v57 = vadd.f32 %v19633_v0, %v9060_v32 }
 0x716   :  { %v9782_v3 = vadd.f32 %v19630_v38, %v9059_v44  ;;  %v10719_v39 = vsel %vm515_vm2, %v13771_v34, %v13772_v48  ;;  %v13811_v38 = vunpack.i.l.bf16 %v19957_v58  ;;  %v13787_v0 = vunpack.i.h.bf16 %v19973_v41 }
 0x717   :  { %13889 = vrot.lane.b32.xlu0 %v13888_v33, %s14163_s23  ;;  %v11071_v61 = vmax.f32 %v10773_v27, %v11035_v36  ;;  %v11072_v35 = vmax.f32 %v10774_v42, %v11036_v9  ;;  %v10506_v4 = vadd.f32 %v10462_v43, %v9783_v57  ;;  %v13812_v9 = vunpack.i.h.bf16 %v19957_v58  ;;  %v13800_v36 = vpop.permute.xlu0 %13799  ;;  %v20017_v32 = vpop.permute.xlu2 %13839 }
 0x718   :  { %v13786_v34 = vunpack.i.l.bf16 %v19973_v41  ;;  %v10791_v44 = vmax.f32 %v19635_v47, %v10719_v39  ;;  %v13822_v57 = vunpack.i.h.bf16 %v19984_v59  ;;  %v13821_v39 = vunpack.i.l.bf16 %v19984_v59 }
 0x719   :  { %v19996_v24 = vmax.f32 %v11071_v61, 0.0  ;;  %v11108_v17 = vmax.f32 %v11072_v35, 0.0  ;;  %v13775_v6 = vpop.permute.xlu1 %13774  ;;  %v10968_v41 = vsel %vm515_vm2, %v13811_v38, %v13812_v9 }
 0x71a   :  { %v10439_v21 = vpop.f32.mrf.mxu3  ;;  %v13777_v33 = vunpack.i.h.bf16 %v13775_v6  ;;  %v13776_v27 = vunpack.i.l.bf16 %v13775_v6  ;;  %v10705_v47 = vsel %vm515_vm2, %v13786_v34, %v13787_v0  ;;  %v11040_v61 = vmax.f32 %v19758_v2, %v10968_v41 }
 0x71b   :  { %v19998_v15 = vadd.f32 %v10439_v21, %v9782_v3  ;;  %v20004_v13 = vpack.i.bf16 %v11108_v17, %v19996_v24  ;;  %v10777_v3 = vmax.f32 %v19660_v37, %v10705_v47  ;;  %v13802_v6 = vunpack.i.h.bf16 %v13800_v36 }
 0x71c   :  { %v10981_v42 = vsel %vm515_vm2, %v13777_v33, %v13796_v52  ;;  %v10720_v26 = vsel %vm515_vm2, %v13772_v48, %v13776_v27  ;;  %v10986_v9 = vsel %vm515_vm2, %v13821_v39, %v13822_v57 }
 0x71d   :  { %v13893_v46 = vpack.i.bf16 %v10506_v4, %v19998_v15  ;;  %v11053_v55 = vmax.f32 %v19713_v23, %v10981_v42  ;;  %v10792_v58 = vmax.f32 %v19638_v30, %v10720_v26  ;;  %13904 = vrot.lane.b32.xlu2 %v20004_v13, %s14168_s4  ;;  %v13801_v4 = vunpack.i.l.bf16 %v13800_v36 }
 0x71e   :  { %v11058_v42 = vmax.f32 %v19793_v14, %v10986_v9  ;;  %v13842_v26 = vunpack.i.h.bf16 %v20017_v32 }
 0x71f   :  { %13894 = vrot.lane.b32.xlu1 %v13893_v46, %s14163_s23  ;;  %v11089_v45 = vmax.f32 %v10791_v44, %v11053_v55  ;;  %v11090_v52 = vmax.f32 %v10792_v58, %v11054_v31  ;;  %13909 = vrot.lane.b32.xlu0 %v20004_v13, %s14166_s27  ;;  %v13815_v37 = vpop.permute.xlu0 %13814  ;;  %v13841_v44 = vunpack.i.l.bf16 %v20017_v32 }
 0x720   :  { %v13816_v47 = vunpack.i.l.bf16 %v13815_v37 }
 0x721   :  { %v20022_v23 = vmax.f32 %v11089_v45, 0.0  ;;  %v11126_v30 = vmax.f32 %v11090_v52, 0.0  ;;  %v13790_v48 = vpop.permute.xlu1 %13789  ;;  %v13817_v52 = vunpack.i.h.bf16 %v13815_v37 }
 0x722   :  { %v13792_v35 = vunpack.i.h.bf16 %v13790_v48  ;;  %v13791_v43 = vunpack.i.l.bf16 %v13790_v48 }
 0x723   :  { %v20029_v31 = vpack.i.bf16 %v11126_v30, %v20022_v23 }
 0x724   :  { %v10967_v17 = vsel %vm515_vm2, %v13792_v35, %v13811_v38  ;;  %v10706_v21 = vsel %vm515_vm2, %v13787_v0, %v13791_v43  ;;  %v10723_v38 = vsel %vm515_vm2, %v13801_v4, %v13802_v6  ;;  %v10709_v35 = vsel %vm515_vm2, %v13816_v47, %v13817_v52 }
 0x725   :  { %v11039_v33 = vmax.f32 %v19754_v22, %v10967_v17  ;;  %v10778_v2 = vmax.f32 %v19663_v51, %v10706_v21  ;;  %13914 = vrot.lane.b32.xlu2 %v20029_v31, %s14169_s16  ;;  %v20043_v22 = vpop.permute.xlu2 %13844  ;;  %v10795_v58 = vmax.f32 %v19698_v11, %v10723_v38  ;;  %v10972_v11 = vsel %vm515_vm2, %v13841_v44, %v13842_v26 }
 0x727   :  { %13899 = vrot.lane.b32.xlu1 %v20004_v13, %s14169_s16  ;;  %v11075_v59 = vmax.f32 %v10777_v3, %v11039_v33  ;;  %v11076_v27 = vmax.f32 %v10778_v2, %v11040_v61  ;;  %13919 = vrot.lane.b32.xlu0 %v20029_v31, %s14168_s4  ;;  %v13830_v61 = vpop.permute.xlu0 %13829 }
 0x728   :  { %v13832_v2 = vunpack.i.h.bf16 %v13830_v61  ;;  %v13831_v37 = vunpack.i.l.bf16 %v13830_v61 }
 0x729   :  { %v20045_v51 = vmax.f32 %v11075_v59, 0.0  ;;  %v11112_v0 = vmax.f32 %v11076_v27, 0.0  ;;  %v13805_v34 = vpop.permute.xlu1 %13804 }
 0x72a   :  { %v13807_v36 = vunpack.i.h.bf16 %v13805_v34  ;;  %v13806_v46 = vunpack.i.l.bf16 %v13805_v34 }
 0x72b   :  { %v20051_v55 = vpack.i.bf16 %v11112_v0, %v20045_v51  ;;  %v10727_v0 = vsel %vm515_vm2, %v13831_v37, %v13832_v2 }
 0x72c   :  { %v10985_v41 = vsel %vm515_vm2, %v13807_v36, %v13821_v39  ;;  %v10724_v45 = vsel %vm515_vm2, %v13802_v6, %v13806_v46  ;;  %v10781_v6 = vmax.f32 %v19740_v63, %v10709_v35  ;;  %v13847_v35 = vunpack.i.h.bf16 %v20043_v22 }
 0x72d   :  { %v11057_v30 = vmax.f32 %v19790_v56, %v10985_v41  ;;  %v10796_v48 = vmax.f32 %v19701_v49, %v10724_v45  ;;  %13929 = vrot.lane.b32.xlu2 %v20051_v55, %s14166_s27  ;;  %v11044_v49 = vmax.f32 %v19830_v7, %v10972_v11  ;;  %v13850_v17 = vpop.permute.xlu2 %13849 }
 0x72e   :  { %v13852_v7 = vunpack.i.h.bf16 %v13850_v17  ;;  %v13851_v9 = vunpack.i.l.bf16 %v13850_v17 }
 0x72f   :  { %13924 = vrot.lane.b32.xlu1 %v20029_v31, %s14166_s27  ;;  %v11093_v14 = vmax.f32 %v10795_v58, %v11057_v30  ;;  %v11094_v32 = vmax.f32 %v10796_v48, %v11058_v42  ;;  %v10799_v58 = vmax.f32 %v19778_v10, %v10727_v0 }
 0x731   :  { %v20064_v43 = vmax.f32 %v11093_v14, 0.0  ;;  %v11130_v3 = vmax.f32 %v11094_v32, 0.0  ;;  %v13825_v57 = vpop.permute.xlu1 %13824 }
 0x732   :  { %v13827_v56 = vunpack.i.h.bf16 %v13825_v57  ;;  %v13826_v39 = vunpack.i.l.bf16 %v13825_v57 }
 0x733   :  { %v20068_v21 = vpack.i.bf16 %v11130_v3, %v20064_v43  ;;  %v13846_v3 = vunpack.i.l.bf16 %v20043_v22 }
 0x734   :  { %v10971_v4 = vsel %vm515_vm2, %v13827_v56, %v13841_v44  ;;  %v10710_v33 = vsel %vm515_vm2, %v13817_v52, %v13826_v39 }
 0x735   :  { %v11043_v59 = vmax.f32 %v19824_v50, %v10971_v4  ;;  %v10782_v27 = vmax.f32 %v19735_v12, %v10710_v33  ;;  %13944 = vrot.lane.b32.xlu0 %v20068_v21, %s14161_s21  ;;  %v10990_v50 = vsel %vm515_vm2, %v13851_v9, %v13852_v7  ;;  %v20084_v12 = vpop.permute.xlu0 %13854 }
 0x736   :  { %v11062_v52 = vmax.f32 %v19881_v53, %v10990_v50  ;;  %v13857_v57 = vunpack.i.h.bf16 %v20084_v12  ;;  %v13856_v56 = vunpack.i.l.bf16 %v20084_v12  ;;  %v11681_v12 = vld [vmem:[%s20954_s5 + $0x140] sm:$0xff] }
 0x737   :  { %13934 = vrot.lane.b32.xlu1 %v20051_v55, %s14161_s21  ;;  %v20079_v38 = vmax.f32 %v10781_v6, %v11043_v59  ;;  %v11080_v63 = vmax.f32 %v10782_v27, %v11044_v49  ;;  %v10713_v49 = vsel %vm515_vm2, %v13846_v3, %v13847_v35 }
 0x738   :  { %v10731_v6 = vsel %vm515_vm2, %v13856_v56, %v13857_v57  ;;  %v10785_v59 = vmax.f32 %v19826_v1, %v10713_v49  ;;  %v14018_v1 = vpack.i.bf16 %v19937_v5, %v19910_v29 }
 0x739   :  { %v11115_v34 = vmax.f32 %v20079_v38, 0.0  ;;  %v11116_v36 = vmax.f32 %v11080_v63, 0.0  ;;  %v13835_v46 = vpop.permute.xlu1 %13834  ;;  %v10803_v27 = vmax.f32 %v19816_v60, %v10731_v6  ;;  %v14023_v60 = vpack.i.bf16 %v19884_v20, %v19886_v25  ;;  %v11645_v38 = vld [vmem:[%s20954_s5 + $0x20] sm:$0xff] }
 0x73a   :  { %v13837_v42 = vunpack.i.h.bf16 %v13835_v46  ;;  %v13836_v26 = vunpack.i.l.bf16 %v13835_v46 }
 0x73b   :  { %v13963_v44 = vpack.i.bf16 %v11116_v36, %v11115_v34 }
 0x73c   :  { %v10989_v41 = vsel %vm515_vm2, %v13837_v42, %v13851_v9  ;;  %v10728_v45 = vsel %vm515_vm2, %v13832_v2, %v13836_v26 }
 0x73d   :  { %v11061_v47 = vmax.f32 %v19858_v16, %v10989_v41  ;;  %v10800_v30 = vmax.f32 %v19780_v40, %v10728_v45  ;;  %13964 = vrot.lane.b32.xlu2 %v13963_v44, %s14161_s21  ;;  %13949 = vrot.lane.b32.xlu0 %v13963_v44, %s14169_s16 }
 0x73f   :  { %13939 = vrot.lane.b32.xlu1 %v20068_v21, %s14166_s27  ;;  %v20098_v48 = vmax.f32 %v10799_v58, %v11061_v47  ;;  %v11098_v10 = vmax.f32 %v10800_v30, %v11062_v52 }
 0x741   :  { %v11133_v14 = vmax.f32 %v20098_v48, 0.0  ;;  %v11134_v32 = vmax.f32 %v11098_v10, 0.0  ;;  %v13865_v11 = vpop.permute.xlu1 %13864  ;;  %v20101_v61 = vpop.permute.xlu0 %13859 }
 0x742   :  { %v13862_v40 = vunpack.i.h.bf16 %v20101_v61  ;;  %v13861_v53 = vunpack.i.l.bf16 %v20101_v61  ;;  %v13867_v50 = vunpack.i.h.bf16 %v13865_v11  ;;  %v13866_v42 = vunpack.i.l.bf16 %v13865_v11 }
 0x743   :  { %v13968_v16 = vpack.i.bf16 %v11134_v32, %v11133_v14 }
 0x744   :  { %v10975_v39 = vsel %vm515_vm2, %v13861_v53, %v13862_v40 }
 0x745   :  { %13969 = vrot.lane.b32.xlu2 %v13968_v16, %s14169_s16  ;;  %13954 = vrot.lane.b32.xlu0 %v13963_v44, %s14168_s4  ;;  %v11047_v2 = vmax.f32 %v19886_v25, %v10975_v39  ;;  %v10717_v25 = vsel %vm515_vm2, %v13866_v42, %v13867_v50 }
 0x746   :  { %v10789_v32 = vmax.f32 %v19884_v20, %v10717_v25 }
 0x747   :  { %13959 = vrot.lane.b32.xlu1 %v13963_v44, %s14166_s27  ;;  %v20137_v9 = vmax.f32 %v10785_v59, %v11047_v2 }
 0x749   :  { %v20120_v17 = vpop.permute.xlu1 %13869  ;;  %v11119_v36 = vmax.f32 %v20137_v9, 0.0 }
 0x74a   :  { %v13872_v4 = vunpack.i.h.bf16 %v20120_v17  ;;  %v13871_v33 = vunpack.i.l.bf16 %v20120_v17  ;;  %v11649_v17 = vld [vmem:[%s20954_s5 + $0x40] sm:$0xff] }
 0x74c   :  { %v10993_v37 = vsel %vm515_vm2, %v13871_v33, %v13872_v4 }
 0x74d   :  { %13984 = vrot.lane.b32.xlu2 %v13968_v16, %s14166_s27  ;;  %v11065_v7 = vmax.f32 %v19910_v29, %v10993_v37  ;;  %13994 = vrot.lane.b32.xlu0 %v13968_v16, %s14161_s21 }
 0x74f   :  { %13974 = vrot.lane.b32.xlu1 %v13968_v16, %s14168_s4  ;;  %v20139_v63 = vmax.f32 %v10803_v27, %v11065_v7 }
 0x751   :  { %v11137_v0 = vmax.f32 %v20139_v63, 0.0  ;;  %v11650_v63 = vld [vmem:[%s20954_s5 + $0x48] sm:$0xff] }
 0x753   :  { %11965 = vmatpush.msra.mxu2 %v11137_v0 }
 0x755   :  { %13989 = vrot.lane.b32.xlu2 %v20004_v13, %s14161_s21  ;;  %11966 = vmatpush.msra.mxu2 %v11119_v36  ;;  %v13875_v13 = vpop.permute.xlu2 %13874 }
 0x756   :  { %13999 = vrot.lane.b32.xlu0 %v20068_v21, %s14169_s16  ;;  %v13877_v44 = vunpack.i.h.bf16 %v13875_v13 }
 0x757   :  { %13979 = vrot.lane.b32.xlu1 %v20029_v31, %s14161_s21 }
 0x75d   :  { %14009 = vrot.lane.b32.xlu2 %v20068_v21, %s14168_s4  ;;  %v13880_v31 = vpop.permute.xlu2 %13879  ;;  %v13885_v21 = vpop.permute.xlu0 %13884 }
 0x75e   :  { %14014 = vrot.lane.b32.xlu0 %v20051_v55, %s14168_s4  ;;  %v13882_v52 = vunpack.i.h.bf16 %v13880_v31  ;;  %v13881_v47 = vunpack.i.l.bf16 %v13880_v31  ;;  %v13886_v3 = vunpack.i.l.bf16 %v13885_v21  ;;  %v13887_v59 = vunpack.i.h.bf16 %v13885_v21 }
 0x75f   :  { %14004 = vrot.lane.b32.xlu1 %v20051_v55, %s14169_s16  ;;  %v13876_v55 = vunpack.i.l.bf16 %v13875_v13 }
 0x760   :  { %v10735_v6 = vsel %vm515_vm2, %v13881_v47, %v13882_v52  ;;  %v10736_v20 = vsel %vm515_vm2, %v13882_v52, %v13886_v3 }
 0x761   :  { %v10718_v29 = vsel %vm515_vm2, %v13867_v50, %v13876_v55 }
 0x762   :  { %v10790_v11 = vmax.f32 %v19876_v19, %v10718_v29 }
 0x765   :  { %14024 = vrot.lane.b32.xlu2 %v14023_v60, %s14163_s23  ;;  %v10807_v60 = vmax.f32 %v19937_v5, %v10735_v6 }
 0x767   :  { %14019 = vrot.lane.b32.xlu1 %v14018_v1, %s14163_s23  ;;  %v10808_v1 = vmax.f32 %v19934_v54, %v10736_v20 }
 0x777   :  { %v20165_v46 = vpop.permute.xlu2 %13904 }
 0x77f   :  { %v20167_v26 = vpop.permute.xlu2 %13914 }
 0x787   :  { %v13930_v49 = vpop.permute.xlu2 %13929 }
 0x788   :  { %v13932_v3 = vunpack.i.h.bf16 %v13930_v49 }
 0x789   :  { %v13890_v58 = vpop.permute.xlu0 %13889 }
 0x78a   :  { %v13892_v41 = vunpack.i.h.bf16 %v13890_v58  ;;  %v13891_v45 = vunpack.i.l.bf16 %v13890_v58 }
 0x78c   :  { %v10979_v30 = vsel %vm515_vm2, %v13877_v44, %v13891_v45  ;;  %v10980_v10 = vsel %vm515_vm2, %v13891_v45, %v13892_v41 }
 0x78d   :  { %v11051_v16 = vmax.f32 %v19926_v28, %v10979_v30  ;;  %v11052_v53 = vmax.f32 %v19975_v62, %v10980_v10 }
 0x78f   :  { %v20177_v56 = vmax.f32 %v10789_v32, %v11051_v16  ;;  %v11088_v39 = vmax.f32 %v10790_v11, %v11052_v53 }
 0x791   :  { %v11123_v33 = vmax.f32 %v20177_v56, 0.0  ;;  %v11124_v2 = vmax.f32 %v11088_v39, 0.0  ;;  %v13895_v37 = vpop.permute.xlu1 %13894  ;;  %v20194_v21 = vpop.permute.xlu0 %13909  ;;  %v13931_v39 = vunpack.i.l.bf16 %v13930_v49  ;;  %v11682_v56 = vld [vmem:[%s20954_s5 + $0x148] sm:$0xff] }
 0x792   :  { %v13897_v27 = vunpack.i.h.bf16 %v13895_v37  ;;  %v13896_v19 = vunpack.i.l.bf16 %v13895_v37  ;;  %v13911_v61 = vunpack.i.l.bf16 %v20194_v21 }
 0x793   :  { %v20184_v28 = vpack.i.bf16 %v11124_v2, %v11123_v33 }
 0x794   :  { %v10997_v62 = vsel %vm515_vm2, %v13887_v59, %v13896_v19  ;;  %v10998_v7 = vsel %vm515_vm2, %v13896_v19, %v13897_v27 }
 0x795   :  { %v11069_v13 = vmax.f32 %v19939_v18, %v10997_v62  ;;  %v11070_v31 = vmax.f32 %v19998_v15, %v10998_v7  ;;  %14029 = vrot.lane.b32.xlu1 %v20184_v28, %s14168_s4  ;;  %v11315_v7 = vsel %vm6877_vm5, %v13931_v39, %v13932_v3 }
 0x797   :  { %v20196_v50 = vmax.f32 %v10807_v60, %v11069_v13  ;;  %v11106_v42 = vmax.f32 %v10808_v1, %v11070_v31  ;;  %v20198_v55 = vpop.permute.xlu2 %13964 }
 0x799   :  { %v11141_v44 = vmax.f32 %v20196_v50, 0.0  ;;  %v11142_v58 = vmax.f32 %v11106_v42, 0.0  ;;  %v20201_v5 = vpop.permute.xlu1 %13899  ;;  %v20213_v18 = vpop.permute.xlu0 %13919  ;;  %v13917_v42 = vunpack.i.h.bf16 %v20167_v26  ;;  %v11755_v50 = vld [vmem:[%s20955_s6] sm:$0xff] }
 0x79b   :  { %v20205_v54 = vpack.i.bf16 %v11142_v58, %v11141_v44  ;;  %v13916_v58 = vunpack.i.l.bf16 %v20167_v26  ;;  %v13921_v26 = vunpack.i.l.bf16 %v20213_v18 }
 0x79d   :  { %14059 = vrot.lane.b32.xlu1 %v20205_v54, %s14161_s21  ;;  %14044 = vrot.lane.b32.xlu2 %v20205_v54, %s14166_s27 }
 0x79e   :  { %14034 = vrot.lane.b32.xlu0 %v20205_v54, %s14168_s4 }
 0x79f   :  { %v13970_v15 = vpop.permute.xlu2 %13969 }
 0x7a0   :  { %v13972_v25 = vunpack.i.h.bf16 %v13970_v15  ;;  %v13971_v29 = vunpack.i.l.bf16 %v13970_v15  ;;  %v13902_v15 = vunpack.i.h.bf16 %v20201_v5 }
 0x7a1   :  { %v20215_v41 = vpop.permute.xlu1 %13924 }
 0x7a2   :  { %v11452_v45 = vsel %vm11266_vm7, %v13971_v29, %v13972_v25  ;;  %v13901_v25 = vunpack.i.l.bf16 %v20201_v5  ;;  %v13907_v29 = vunpack.i.h.bf16 %v20165_v46 }
 0x7a3   :  { %11967 = vmatpush.msra.mxu2 %v11452_v45  ;;  %v13906_v45 = vunpack.i.l.bf16 %v20165_v46 }
 0x7a4   :  { %v11267_v39 = vsel %vm11266_vm7, %v13901_v25, %v13902_v15 }
 0x7a5   :  { %14049 = vrot.lane.b32.xlu2 %v20184_v28, %s14161_s21 }
 0x7a6   :  { %14039 = vrot.lane.b32.xlu0 %v20184_v28, %s14166_s27 }
 0x7a7   :  { %v20222_v52 = vpop.permute.xlu2 %13984  ;;  %v13945_v47 = vpop.permute.xlu0 %13944 }
 0x7a8   :  { %v13947_v59 = vunpack.i.h.bf16 %v13945_v47  ;;  %v13946_v20 = vunpack.i.l.bf16 %v13945_v47  ;;  %v13922_v47 = vunpack.i.h.bf16 %v20213_v18  ;;  %v13986_v22 = vunpack.i.l.bf16 %v20222_v52 }
 0x7a9   :  { %v13935_v30 = vpop.permute.xlu1 %13934 }
 0x7aa   :  { %v13937_v19 = vunpack.i.h.bf16 %v13935_v30  ;;  %v13936_v62 = vunpack.i.l.bf16 %v13935_v30  ;;  %v11294_v49 = vsel %vm1029_vm0, %v13946_v20, %v13947_v59  ;;  %v22815_v20 = vld [vmem:[#allocation25_spill] sm:$0xff] }
 0x7ac   :  { %v11293_v31 = vsel %vm1029_vm0, %v13936_v62, %v13937_v19  ;;  %v13912_v62 = vunpack.i.h.bf16 %v20194_v21 }
 0x7af   :  { %v20224_v10 = vpop.permute.xlu2 %13989  ;;  %v13950_v32 = vpop.permute.xlu0 %13949 }
 0x7b0   :  { %v13952_v11 = vunpack.i.h.bf16 %v13950_v32  ;;  %v13951_v16 = vunpack.i.l.bf16 %v13950_v32  ;;  %v11268_v32 = vsel %vm11266_vm7, %v13916_v58, %v13917_v42  ;;  %v11221_v42 = vsel %vm6877_vm5, %v13911_v61, %v13912_v62  ;;  %v22816_v61 = vld [vmem:[#allocation131_spill] sm:$0xff] }
 0x7b1   :  { %v13940_v53 = vpop.permute.xlu1 %13939  ;;  %v13992_v58 = vunpack.i.h.bf16 %v20224_v10 }
 0x7b2   :  { %v13942_v6 = vunpack.i.h.bf16 %v13940_v53  ;;  %v13941_v2 = vunpack.i.l.bf16 %v13940_v53  ;;  %v11451_v37 = vsel %vm11266_vm7, %v13951_v16, %v13952_v11 }
 0x7b3   :  { %11968 = vmatpush.msra.mxu2 %v11451_v37 }
 0x7b4   :  { %v11316_v27 = vsel %vm6877_vm5, %v13941_v2, %v13942_v6 }
 0x7b5   :  { %11900 = vmatpush.msra.mxu1 %v11316_v27  ;;  %12964 = vmatpush.msra.mxu3 %v11316_v27  ;;  %v11245_v27 = vsel %vm11243_vm8, %v13921_v26, %v13922_v47 }
 0x7b7   :  { %11901 = vmatpush.msra.mxu1 %v11315_v7  ;;  %12965 = vmatpush.msra.mxu3 %v11315_v7  ;;  %v20229_v60 = vpop.permute.xlu2 %14009  ;;  %v13955_v1 = vpop.permute.xlu0 %13954 }
 0x7b8   :  { %v13957_v6 = vunpack.i.h.bf16 %v13955_v1  ;;  %v13956_v18 = vunpack.i.l.bf16 %v13955_v1  ;;  %v14011_v48 = vunpack.i.l.bf16 %v20229_v60 }
 0x7b9   :  { %v20232_v13 = vpop.permute.xlu1 %13959  ;;  %11902 = vmatpush.msra.mxu1 %v11294_v49  ;;  %12966 = vmatpush.msra.mxu3 %v11294_v49 }
 0x7ba   :  { %v13962_v7 = vunpack.i.h.bf16 %v20232_v13  ;;  %v13961_v49 = vunpack.i.l.bf16 %v20232_v13  ;;  %v11429_v1 = vsel %vm11243_vm8, %v13956_v18, %v13957_v6 }
 0x7bb   :  { %11903 = vmatpush.msra.mxu1 %v11293_v31  ;;  %12967 = vmatpush.msra.mxu3 %v11293_v31 }
 0x7bd   :  { %11904 = vmatpush.msra.mxu1 %v20064_v43  ;;  %12968 = vmatpush.msra.mxu3 %v20064_v43  ;;  %v13927_v43 = vunpack.i.h.bf16 %v20215_v41 }
 0x7bf   :  { %11905 = vmatpush.msra.mxu1 %v20045_v51  ;;  %12969 = vmatpush.msra.mxu3 %v20045_v51  ;;  %v14025_v30 = vpop.permute.xlu2 %14024  ;;  %v13995_v5 = vpop.permute.xlu0 %13994  ;;  %v13926_v51 = vunpack.i.l.bf16 %v20215_v41 }
 0x7c0   :  { %v14027_v11 = vunpack.i.h.bf16 %v14025_v30  ;;  %v14026_v16 = vunpack.i.l.bf16 %v14025_v30  ;;  %v13997_v15 = vunpack.i.h.bf16 %v13995_v5  ;;  %v13996_v25 = vunpack.i.l.bf16 %v13995_v5 }
 0x7c1   :  { %v13975_v53 = vpop.permute.xlu1 %13974  ;;  %11906 = vmatpush.msra.mxu1 %v11268_v32  ;;  %12970 = vmatpush.msra.mxu3 %v11268_v32  ;;  %v11222_v21 = vsel %vm6877_vm5, %v13926_v51, %v13927_v43  ;;  %v11407_v32 = vsel %vm6877_vm5, %v13961_v49, %v13962_v7  ;;  %v13967_v43 = vunpack.i.h.bf16 %v20198_v55  ;;  %v11641_v51 = vld [vmem:[%s20954_s5] sm:$0xff] }
 0x7c2   :  { %v13977_v3 = vunpack.i.h.bf16 %v13975_v53  ;;  %v13976_v46 = vunpack.i.l.bf16 %v13975_v53  ;;  %v10976_v2 = vsel %vm515_vm2, %v13862_v40, %v14027_v11  ;;  %v10714_v37 = vsel %vm515_vm2, %v13847_v35, %v14026_v16  ;;  %v11653_v49 = vld [vmem:[%s20954_s5 + $0x60] sm:$0xff] }
 0x7c3   :  { %11907 = vmatpush.msra.mxu1 %v11267_v39  ;;  %12971 = vmatpush.msra.mxu3 %v11267_v39  ;;  %v11048_v59 = vmax.f32 %v19888_v8, %v10976_v2  ;;  %v10786_v41 = vmax.f32 %v22815_v20, %v10714_v37  ;;  %v13987_v40 = vunpack.i.h.bf16 %v20222_v52  ;;  %v11244_v8 = vsel %vm11243_vm8, %v13906_v45, %v13907_v29 }
 0x7c4   :  { %v11430_v19 = vsel %vm11243_vm8, %v13976_v46, %v13977_v3  ;;  %v13991_v45 = vunpack.i.l.bf16 %v20224_v10  ;;  %v13966_v11 = vunpack.i.l.bf16 %v20198_v55  ;;  %v11673_v3 = vld [vmem:[%s20954_s5 + $0x100] sm:$0xff] }
 0x7c5   :  { %11908 = vmatpush.msra.mxu1 %v11245_v27  ;;  %12972 = vmatpush.msra.mxu3 %v11245_v27  ;;  %v11084_v35 = vmax.f32 %v10786_v41, %v11048_v59  ;;  %v11408_v52 = vsel %vm6877_vm5, %v13986_v22, %v13987_v40  ;;  %v11642_v41 = vld [vmem:[%s20954_s5 + $0x8] sm:$0xff]  ;;  %v22817_v22 = vld [vmem:[#allocation63_spill] sm:$0xff] }
 0x7c6   :  { %11969 = vmatpush.msra.mxu2 %v11430_v19  ;;  %v11199_v10 = vsel %vm1029_vm0, %v13991_v45, %v13992_v58  ;;  %v11385_v16 = vsel %vm1029_vm0, %v13966_v11, %v13967_v43  ;;  %v11693_v58 = vld [vmem:[%s20954_s5 + $0x1a0] sm:$0xff]  ;;  %v11662_v45 = vld [vmem:[%s20954_s5 + $0xa8] sm:$0xff]  ;;  %v11762_v11 = vld [vmem:[%s20955_s6 + $0x38] sm:$0xff] }
 0x7c7   :  { %11909 = vmatpush.msra.mxu1 %v11244_v8  ;;  %12973 = vmatpush.msra.mxu3 %v11244_v8  ;;  %v11120_v31 = vmax.f32 %v11084_v35, 0.0 }
 0x7c8   :  { %11970 = vmatpush.msra.mxu2 %v11429_v1  ;;  %v14000_v47 = vpop.permute.xlu0 %13999  ;;  %v11685_v1 = vld [vmem:[%s20954_s5 + $0x160] sm:$0xff] }
 0x7c9   :  { %11910 = vmatpush.msra.mxu1 %v11222_v21  ;;  %12974 = vmatpush.msra.mxu3 %v11222_v21  ;;  %v13980_v29 = vpop.permute.xlu1 %13979  ;;  %v20275_v13 = vpack.i.bf16 %v11120_v31, %v11119_v36  ;;  %v11386_v36 = vsel %vm1029_vm0, %v13996_v25, %v13997_v15  ;;  %v14002_v5 = vunpack.i.h.bf16 %v14000_v47  ;;  %v14001_v55 = vunpack.i.l.bf16 %v14000_v47  ;;  %v11689_v31 = vld [vmem:[%s20954_s5 + $0x180] sm:$0xff]  ;;  %v11654_v21 = vld [vmem:[%s20954_s5 + $0x68] sm:$0xff]  ;;  %v11765_v47 = vld [vmem:[%s20955_s6 + $0x50] sm:$0xff] }
 0x7ca   :  { %11971 = vmatpush.msra.mxu2 %v11408_v52  ;;  %v13982_v26 = vunpack.i.h.bf16 %v13980_v29  ;;  %v13981_v30 = vunpack.i.l.bf16 %v13980_v29  ;;  %v11770_v52 = vld [vmem:[%s20955_s6 + $0x78] sm:$0xff]  ;;  %v11658_v15 = vld [vmem:[%s20954_s5 + $0x88] sm:$0xff]  ;;  %v11767_v25 = vld [vmem:[%s20955_s6 + $0x60] sm:$0xff] }
 0x7cb   :  { %11911 = vmatpush.msra.mxu1 %v11221_v42  ;;  %12975 = vmatpush.msra.mxu3 %v11221_v42  ;;  %v11661_v42 = vld [vmem:[%s20954_s5 + $0xa0] sm:$0xff] }
 0x7cc   :  { %11972 = vmatpush.msra.mxu2 %v11407_v32  ;;  %14064 = vrot.lane.b32.xlu1 %v20275_v13, %s14169_s16  ;;  %v11200_v9 = vsel %vm1029_vm0, %v13981_v30, %v13982_v26  ;;  %v11665_v29 = vld [vmem:[%s20954_s5 + $0xc0] sm:$0xff]  ;;  %v11666_v32 = vld [vmem:[%s20954_s5 + $0xc8] sm:$0xff] }
 0x7cd   :  { %11912 = vmatpush.msra.mxu1 %v11200_v9  ;;  %12976 = vmatpush.msra.mxu3 %v11200_v9  ;;  %v11669_v26 = vld [vmem:[%s20954_s5 + $0xe0] sm:$0xff]  ;;  %v11764_v9 = vld [vmem:[%s20955_s6 + $0x48] sm:$0xff] }
 0x7ce   :  { %11973 = vmatpush.msra.mxu2 %v11386_v36  ;;  %v11701_v30 = vld [vmem:[%s20954_s5 + $0x1e0] sm:$0xff] }
 0x7cf   :  { %11913 = vmatpush.msra.mxu1 %v11199_v10  ;;  %12977 = vmatpush.msra.mxu3 %v11199_v10 }
 0x7d0   :  { %11974 = vmatpush.msra.mxu2 %v11385_v16  ;;  %v14015_v6 = vpop.permute.xlu0 %14014 }
 0x7d1   :  { %v14005_v53 = vpop.permute.xlu1 %14004  ;;  %11914 = vmatpush.msra.mxu1 %v20022_v23  ;;  %12978 = vmatpush.msra.mxu3 %v20022_v23  ;;  %v14012_v23 = vunpack.i.h.bf16 %v20229_v60  ;;  %v14017_v18 = vunpack.i.h.bf16 %v14015_v6  ;;  %v14016_v2 = vunpack.i.l.bf16 %v14015_v6  ;;  %v11677_v60 = vld [vmem:[%s20954_s5 + $0x120] sm:$0xff] }
 0x7d2   :  { %11975 = vmatpush.msra.mxu2 %v11133_v14  ;;  %v14007_v46 = vunpack.i.h.bf16 %v14005_v53  ;;  %v14006_v39 = vunpack.i.l.bf16 %v14005_v53  ;;  %v11360_v14 = vsel %vm11266_vm7, %v14001_v55, %v14002_v5  ;;  %v11759_v6 = vld [vmem:[%s20955_s6 + $0x20] sm:$0xff] }
 0x7d3   :  { %11915 = vmatpush.msra.mxu1 %v19996_v24  ;;  %12979 = vmatpush.msra.mxu3 %v19996_v24  ;;  %v11338_v24 = vsel %vm11243_vm8, %v14011_v48, %v14012_v23  ;;  %v11337_v27 = vsel %vm11243_vm8, %v14016_v2, %v14017_v18  ;;  %v11761_v23 = vld [vmem:[%s20955_s6 + $0x30] sm:$0xff]  ;;  %v11768_v2 = vld [vmem:[%s20955_s6 + $0x68] sm:$0xff] }
 0x7d4   :  { %11976 = vmatpush.msra.mxu2 %v11115_v34  ;;  %11916 = vmatmul.f32.vlgmr.msra.gmra.mxu1 %v11641_v51  ;;  %v11359_v37 = vsel %vm11266_vm7, %v14006_v39, %v14007_v46  ;;  %v11670_v39 = vld [vmem:[%s20954_s5 + $0xe8] sm:$0xff] }
 0x7d5   :  { %11940 = vmatmul.f32.vlgmr.msra.gmra.mxu3 %v11673_v3 }
 0x7d6   :  { %11977 = vmatpush.msra.mxu2 %v11360_v14 }
 0x7d8   :  { %11978 = vmatpush.msra.mxu2 %v11359_v37 }
 0x7d9   :  { %v14020_v59 = vpop.permute.xlu1 %14019 }
 0x7da   :  { %v14022_v34 = vunpack.i.h.bf16 %v14020_v59  ;;  %v14021_v20 = vunpack.i.l.bf16 %v14020_v59  ;;  %11979 = vmatpush.msra.mxu2 %v11338_v24 }
 0x7dc   :  { %v10994_v19 = vsel %vm515_vm2, %v13872_v4, %v14022_v34  ;;  %v10732_v62 = vsel %vm515_vm2, %v13857_v57, %v14021_v20  ;;  %11980 = vmatpush.msra.mxu2 %v11337_v27  ;;  %11919 = vmatmul.f32.gmra.mxu1 %v11645_v38  ;;  %v11646_v57 = vld [vmem:[%s20954_s5 + $0x28] sm:$0xff] }
 0x7dd   :  { %v11066_v40 = vmax.f32 %v22816_v61, %v10994_v19  ;;  %v10804_v35 = vmax.f32 %v22817_v22, %v10732_v62  ;;  %11943 = vmatmul.f32.gmra.mxu3 %v11677_v60  ;;  %11981 = vmatmul.f32.vlgmr.msra.gmra.mxu2 %v11642_v41  ;;  %v11674_v19 = vld [vmem:[%s20954_s5 + $0x108] sm:$0xff]  ;;  %v11758_v61 = vld [vmem:[%s20955_s6 + $0x18] sm:$0xff] }
 0x7de   :  { %v11756_v62 = vld [vmem:[%s20955_s6 + $0x8] sm:$0xff] }
 0x7df   :  { %v11102_v8 = vmax.f32 %v10804_v35, %v11066_v40  ;;  %v11763_v35 = vld [vmem:[%s20955_s6 + $0x40] sm:$0xff] }
 0x7e1   :  { %v11138_v7 = vmax.f32 %v11102_v8, 0.0  ;;  %v11678_v8 = vld [vmem:[%s20954_s5 + $0x128] sm:$0xff] }
 0x7e3   :  { %v14078_v4 = vpack.i.bf16 %v11138_v7, %v11137_v0  ;;  %v11657_v0 = vld [vmem:[%s20954_s5 + $0x80] sm:$0xff]  ;;  %v12206_v7 = vld [vmem:[%s20956_s8 + $0x70] sm:$0xff] }
 0x7e4   :  { %11922 = vmatmul.f32.gmra.mxu1 %v11649_v17  ;;  %v12205_v17 = vld [vmem:[%s20956_s8 + $0x68] sm:$0xff] }
 0x7e5   :  { %11946 = vmatmul.f32.gmra.mxu3 %v11681_v12  ;;  %11984 = vmatmul.f32.gmra.mxu2 %v11646_v57  ;;  %v11757_v12 = vld [vmem:[%s20955_s6 + $0x10] sm:$0xff]  ;;  %v11686_v57 = vld [vmem:[%s20954_s5 + $0x168] sm:$0xff] }
 0x7e6   :  { %14079 = vrot.lane.b32.xlu1 %v14078_v4, %s14166_s27  ;;  %14069 = vrot.lane.b32.xlu2 %v14078_v4, %s14168_s4 }
 0x7e7   :  { %14054 = vrot.lane.b32.xlu0 %v14078_v4, %s14169_s16 }
 0x7ec   :  { %11925 = vmatmul.f32.gmra.mxu1 %v11653_v49  ;;  %v12202_v49 = vld [vmem:[%s20956_s8 + $0x50] sm:$0xff] }
 0x7ed   :  { %11949 = vmatmul.f32.gmra.mxu3 %v11685_v1  ;;  %11987 = vmatmul.f32.gmra.mxu2 %v11650_v63  ;;  %v11690_v1 = vld [vmem:[%s20954_s5 + $0x188] sm:$0xff] }
 0x7ee   :  { %14094 = vrot.lane.b32.xlu1 %v20275_v13, %s14161_s21  ;;  %14084 = vrot.lane.b32.xlu2 %v20275_v13, %s14166_s27  ;;  %v12197_v63 = vld [vmem:[%s20956_s8 + $0x28] sm:$0xff] }
 0x7ef   :  { %14074 = vrot.lane.b32.xlu0 %v20275_v13, %s14168_s4  ;;  %v11697_v13 = vld [vmem:[%s20954_s5 + $0x1c0] sm:$0xff] }
 0x7f4   :  { %11928 = vmatmul.f32.gmra.mxu1 %v11657_v0  ;;  %v12199_v0 = vld [vmem:[%s20956_s8 + $0x38] sm:$0xff] }
 0x7f5   :  { %11952 = vmatmul.f32.gmra.mxu3 %v11689_v31  ;;  %11990 = vmatmul.f32.gmra.mxu2 %v11654_v21  ;;  %v11694_v21 = vld [vmem:[%s20954_s5 + $0x1a8] sm:$0xff] }
 0x7f6   :  { %11848 = vperm.xlu1 %13331, %v11770_v52   ;;  %14099 = vrot.lane.b32.xlu2 %v20205_v54, %s14169_s16  ;;  %v11769_v54 = vld [vmem:[%s20955_s6 + $0x70] sm:$0xff] }
 0x7f7   :  { %14089 = vrot.lane.b32.xlu0 %v14078_v4, %s14161_s21  ;;  %v14045_v36 = vpop.permute.xlu2 %14044  ;;  %v12200_v4 = vld [vmem:[%s20956_s8 + $0x40] sm:$0xff]  ;;  %v12194_v52 = vld [vmem:[%s20956_s8 + $0x10] sm:$0xff] }
 0x7f8   :  { %v14047_v51 = vunpack.i.h.bf16 %v14045_v36  ;;  %v14046_v3 = vunpack.i.l.bf16 %v14045_v36 }
 0x7fa   :  { %v11592_v18 = vsel %vm6877_vm5, %v14046_v3, %v14047_v51 }
 0x7fc   :  { %11931 = vmatmul.f32.gmra.mxu1 %v11661_v42  ;;  %v12196_v42 = vld [vmem:[%s20956_s8 + $0x20] sm:$0xff] }
 0x7fd   :  { %11955 = vmatmul.f32.gmra.mxu3 %v11693_v58  ;;  %11993 = vmatmul.f32.gmra.mxu2 %v11658_v15  ;;  %v11698_v15 = vld [vmem:[%s20954_s5 + $0x1c8] sm:$0xff] }
 0x7fe   :  { %11833 = vperm.xlu1 %13331, %v11767_v25   ;;  %11843 = vperm.xlu2 %13757, %v11769_v54   ;;  %v12385_v25 = vld [vmem:[%s20957_s10] sm:$0xff]  ;;  %v12193_v54 = vld [vmem:[%s20956_s8 + $0x8] sm:$0xff] }
 0x7ff   :  { %14104 = vrot.lane.b32.xlu0 %v20184_v28, %s14169_s16  ;;  %v11766_v28 = vld [vmem:[%s20955_s6 + $0x58] sm:$0xff]  ;;  %v14050_v37 = vpop.permute.xlu2 %14049 }
 0x800   :  { %v14052_v60 = vunpack.i.h.bf16 %v14050_v37  ;;  %v14051_v41 = vunpack.i.l.bf16 %v14050_v37 }
 0x802   :  { %v11569_v22 = vsel %vm1029_vm0, %v14051_v41, %v14052_v60 }
 0x804   :  { %11934 = vmatmul.f32.gmra.mxu1 %v11665_v29 }
 0x805   :  { %11958 = vmatmul.f32.gmra.mxu3 %v11697_v13  ;;  %11996 = vmatmul.f32.gmra.mxu2 %v11662_v45 }
 0x806   :  { %11823 = vperm.xlu1 %13331, %v11765_v47   ;;  %11828 = vperm.xlu2 %13757, %v11766_v28   ;;  %v11702_v47 = vld [vmem:[%s20954_s5 + $0x1e8] sm:$0xff] }
 0x807   :  { %v14030_v43 = vpop.permute.xlu1 %14029  ;;  %11838 = vperm.xlu0 %14108, %v11768_v2  }
 0x808   :  { %v14032_v16 = vunpack.i.h.bf16 %v14030_v43  ;;  %v14031_v5 = vunpack.i.l.bf16 %v14030_v43 }
 0x80a   :  { %v11613_v48 = vsel %vm11243_vm8, %v14031_v5, %v14032_v16  ;;  %v12391_v5 = vld [vmem:[%s20957_s10 + $0x30] sm:$0xff] }
 0x80c   :  { %11937 = vmatmul.f32.gmra.mxu1 %v11669_v26  ;;  %v12388_v26 = vld [vmem:[%s20957_s10 + $0x18] sm:$0xff] }
 0x80d   :  { %11961 = vmatmul.f32.gmra.mxu3 %v11701_v30  ;;  %11999 = vmatmul.f32.gmra.mxu2 %v11666_v32  ;;  %v12386_v30 = vld [vmem:[%s20957_s10 + $0x8] sm:$0xff] }
 0x80e   :  { %11808 = vperm.xlu1 %13331, %v11762_v11   ;;  %11818 = vperm.xlu2 %13757, %v11764_v9  }
 0x80f   :  { %v14060_v14 = vpop.permute.xlu1 %14059  ;;  %11813 = vperm.xlu0 %14108, %v11763_v35  }
 0x810   :  { %v14035_v10 = vpop.permute.xlu0 %14034  ;;  %v14062_v24 = vunpack.i.h.bf16 %v14060_v14  ;;  %v14061_v38 = vunpack.i.l.bf16 %v14060_v14 }
 0x811   :  { %v14037_v55 = vunpack.i.h.bf16 %v14035_v10  ;;  %v14036_v53 = vunpack.i.l.bf16 %v14035_v10 }
 0x812   :  { %v11570_v40 = vsel %vm1029_vm0, %v14061_v38, %v14062_v24  ;;  %v12394_v24 = vld [vmem:[%s20957_s10 + $0x48] sm:$0xff]  ;;  %v12392_v38 = vld [vmem:[%s20957_s10 + $0x38] sm:$0xff] }
 0x813   :  { %v11614_v46 = vsel %vm11243_vm8, %v14036_v53, %v14037_v55  ;;  %v12389_v55 = vld [vmem:[%s20957_s10 + $0x20] sm:$0xff] }
 0x814   :  { %12030 = vmatpush.msrb.mxu3 %v11614_v46 }
 0x815   :  { %12002 = vmatmul.f32.gmra.mxu2 %v11670_v39 }
 0x816   :  { %12031 = vmatpush.msrb.mxu3 %v11613_v48  ;;  %11793 = vperm.xlu1 %13331, %v11759_v6  }
 0x817   :  { %11803 = vperm.xlu2 %13757, %v11761_v23  }
 0x818   :  { %v14040_v59 = vpop.permute.xlu0 %14039  ;;  %12032 = vmatpush.msrb.mxu3 %v11592_v18 }
 0x819   :  { %v14042_v34 = vunpack.i.h.bf16 %v14040_v59  ;;  %v14041_v20 = vunpack.i.l.bf16 %v14040_v59 }
 0x81b   :  { %v11591_v27 = vsel %vm6877_vm5, %v14041_v20, %v14042_v34 }
 0x81c   :  { %12033 = vmatpush.msrb.mxu3 %v11591_v27 }
 0x81d   :  { %12005 = vmatmul.f32.gmra.mxu2 %v11674_v19 }
 0x81e   :  { %12034 = vmatpush.msrb.mxu3 %v11570_v40  ;;  %11778 = vperm.xlu1 %13331, %v11756_v62  }
 0x81f   :  { %11788 = vperm.xlu2 %13757, %v11758_v61  }
 0x820   :  { %12035 = vmatpush.msrb.mxu3 %v11569_v22 }
 0x822   :  { %12036 = vmatpush.msrb.mxu3 %v11141_v44  ;;  %v11760_v44 = vld [vmem:[%s20955_s6 + $0x28] sm:$0xff] }
 0x823   :  { %11798 = vperm.xlu0 %14108, %v11760_v44   ;;  %v12395_v44 = vld [vmem:[%s20957_s10 + $0x50] sm:$0xff] }
 0x824   :  { %12037 = vmatpush.msrb.mxu3 %v11123_v33  ;;  %v12203_v33 = vld [vmem:[%s20956_s8 + $0x58] sm:$0xff] }
 0x825   :  { %12008 = vmatmul.f32.gmra.mxu2 %v11678_v8 }
 0x826   :  { %12280 = vperm.xlu1 %13331, %v12206_v7  }
 0x827   :  { %11773 = vperm.xlu2 %13757, %v11755_v50   ;;  %v12397_v50 = vld [vmem:[%s20957_s10 + $0x60] sm:$0xff] }
 0x82b   :  { %11783 = vperm.xlu0 %14108, %v11757_v12  }
 0x82d   :  { %12011 = vmatmul.f32.gmra.mxu2 %v11682_v56 }
 0x82e   :  { %12265 = vperm.xlu1 %13331, %v12203_v33   ;;  %v11643_v33 = vld [vmem:[%s20954_s5 + $0x10] sm:$0xff] }
 0x82f   :  { %12275 = vperm.xlu2 %13757, %v12205_v17  }
 0x835   :  { %12014 = vmatmul.f32.gmra.mxu2 %v11686_v57 }
 0x836   :  { %12250 = vperm.xlu1 %13331, %v12200_v4  }
 0x837   :  { %12260 = vperm.xlu2 %13757, %v12202_v49  }
 0x83d   :  { %12017 = vmatmul.f32.gmra.mxu2 %v11690_v1 }
 0x83e   :  { %12235 = vperm.xlu1 %13331, %v12197_v63   ;;  %v14065_v32 = vpop.permute.xlu1 %14064  ;;  %v12400_v63 = vld [vmem:[%s20957_s10 + $0x78] sm:$0xff] }
 0x83f   :  { %12245 = vperm.xlu2 %13757, %v12199_v0   ;;  %v14067_v9 = vunpack.i.h.bf16 %v14065_v32  ;;  %v14066_v36 = vunpack.i.l.bf16 %v14065_v32  ;;  %v12398_v0 = vld [vmem:[%s20957_s10 + $0x68] sm:$0xff]  ;;  %v11656_v32 = vld [vmem:[%s20954_s5 + $0x78] sm:$0xff] }
 0x840   :  { %v14070_v31 = vpop.permute.xlu2 %14069 }
 0x841   :  { %v14072_v53 = vunpack.i.h.bf16 %v14070_v31  ;;  %v14071_v51 = vunpack.i.l.bf16 %v14070_v31  ;;  %v11543_v39 = vsel %vm11266_vm7, %v14066_v36, %v14067_v9 }
 0x843   :  { %v11522_v23 = vsel %vm11243_vm8, %v14071_v51, %v14072_v53  ;;  %v11663_v53 = vld [vmem:[%s20954_s5 + $0xb0] sm:$0xff] }
 0x845   :  { %12020 = vmatmul.f32.gmra.mxu2 %v11694_v21  ;;  %v11644_v21 = vld [vmem:[%s20954_s5 + $0x18] sm:$0xff] }
 0x846   :  { %12220 = vperm.xlu1 %13331, %v12194_v52   ;;  %v11647_v52 = vld [vmem:[%s20954_s5 + $0x30] sm:$0xff] }
 0x847   :  { %12230 = vperm.xlu2 %13757, %v12196_v42  }
 0x848   :  { %v14085_v58 = vpop.permute.xlu2 %14084 }
 0x849   :  { %v14087_v34 = vunpack.i.h.bf16 %v14085_v58  ;;  %v14086_v20 = vunpack.i.l.bf16 %v14085_v58 }
 0x84b   :  { %v11499_v61 = vsel %vm6877_vm5, %v14086_v20, %v14087_v34  ;;  %v11671_v34 = vld [vmem:[%s20954_s5 + $0xf0] sm:$0xff] }
 0x84d   :  { %12023 = vmatmul.f32.gmra.mxu2 %v11698_v15  ;;  %v11648_v15 = vld [vmem:[%s20954_s5 + $0x38] sm:$0xff] }
 0x84e   :  { %12403 = vperm.xlu1 %13331, %v12385_v25   ;;  %v11651_v25 = vld [vmem:[%s20954_s5 + $0x50] sm:$0xff] }
 0x84f   :  { %12215 = vperm.xlu2 %13757, %v12193_v54  }
 0x850   :  { %v14100_v29 = vpop.permute.xlu2 %14099 }
 0x851   :  { %v14102_v13 = vunpack.i.h.bf16 %v14100_v29  ;;  %v14101_v45 = vunpack.i.l.bf16 %v14100_v29  ;;  %v11652_v29 = vld [vmem:[%s20954_s5 + $0x58] sm:$0xff] }
 0x853   :  { %v11636_v28 = vsel %vm11266_vm7, %v14101_v45, %v14102_v13  ;;  %v11655_v13 = vld [vmem:[%s20954_s5 + $0x70] sm:$0xff] }
 0x854   :  { %12109 = vmatpush.msrb.mxu0 %v11636_v28  ;;  %12980 = vmatpush.msrb.mxu2 %v11636_v28  ;;  %v11917_v28 = vpop.f32.mrf.mxu1 }
 0x855   :  { %12026 = vmatmul.f32.gmra.mxu2 %v11702_v47 }
 0x856   :  { %12418 = vperm.xlu1 %13331, %v12388_v26   ;;  %v12207_v26 = vld [vmem:[%s20956_s8 + $0x78] sm:$0xff] }
 0x857   :  { %12408 = vperm.xlu2 %13757, %v12386_v30   ;;  %12285 = vperm.xlu0 %14108, %v12207_v26  }
 0x858   :  { %v20519_v43 = vpop.permute.xlu2 %11843  ;;  %v14080_v46 = vpop.permute.xlu1 %14079 }
 0x859   :  { %v14055_v11 = vpop.permute.xlu0 %14054  ;;  %v14082_v18 = vunpack.i.h.bf16 %v14080_v46  ;;  %v14081_v2 = vunpack.i.l.bf16 %v14080_v46  ;;  %v20610_v36 = vpop.f32.mrf.mxu3  ;;  %v12201_v46 = vld [vmem:[%s20956_s8 + $0x48] sm:$0xff] }
 0x85a   :  { %v14057_v10 = vunpack.i.h.bf16 %v14055_v11  ;;  %v14056_v16 = vunpack.i.l.bf16 %v14055_v11  ;;  %v11659_v11 = vld [vmem:[%s20954_s5 + $0x90] sm:$0xff] }
 0x85b   :  { %v11500_v41 = vsel %vm6877_vm5, %v14081_v2, %v14082_v18  ;;  %v12198_v2 = vld [vmem:[%s20956_s8 + $0x30] sm:$0xff] }
 0x85c   :  { %v11544_v3 = vsel %vm11266_vm7, %v14056_v16, %v14057_v10  ;;  %v12204_v16 = vld [vmem:[%s20956_s8 + $0x60] sm:$0xff] }
 0x85d   :  { %12038 = vmatpush.msrb.mxu3 %v11544_v3 }
 0x85e   :  { %12433 = vperm.xlu1 %13331, %v12391_v5   ;;  %v11676_v5 = vld [vmem:[%s20954_s5 + $0x118] sm:$0xff] }
 0x85f   :  { %12423 = vperm.xlu2 %13757, %v12389_v55   ;;  %12039 = vmatpush.msrb.mxu3 %v11543_v39  ;;  %v11660_v55 = vld [vmem:[%s20954_s5 + $0x98] sm:$0xff] }
 0x860   :  { %v20529_v6 = vpop.f32.mrf.mxu2  ;;  %v20532_v48 = vpop.permute.xlu2 %11828  ;;  %12270 = vperm.xlu0 %14108, %v12204_v16   ;;  %v11680_v39 = vld [vmem:[%s20954_s5 + $0x138] sm:$0xff]  ;;  %v12393_v16 = vld [vmem:[%s20957_s10 + $0x40] sm:$0xff] }
 0x861   :  { %12040 = vmatpush.msrb.mxu3 %v11522_v23  ;;  %v14075_v14 = vpop.permute.xlu0 %14074  ;;  %v14095_v27 = vpop.permute.xlu1 %14094  ;;  %v11664_v23 = vld [vmem:[%s20954_s5 + $0xb8] sm:$0xff] }
 0x862   :  { %v14077_v37 = vunpack.i.h.bf16 %v14075_v14  ;;  %v14076_v59 = vunpack.i.l.bf16 %v14075_v14  ;;  %v14097_v22 = vunpack.i.h.bf16 %v14095_v27  ;;  %v14096_v35 = vunpack.i.l.bf16 %v14095_v27  ;;  %v11667_v14 = vld [vmem:[%s20954_s5 + $0xd0] sm:$0xff]  ;;  %v12195_v27 = vld [vmem:[%s20956_s8 + $0x18] sm:$0xff] }
 0x864   :  { %v11521_v60 = vsel %vm11243_vm8, %v14076_v59, %v14077_v37  ;;  %v11477_v17 = vsel %vm1029_vm0, %v14096_v35, %v14097_v22  ;;  %v11684_v37 = vld [vmem:[%s20954_s5 + $0x158] sm:$0xff]  ;;  %v11675_v35 = vld [vmem:[%s20954_s5 + $0x110] sm:$0xff] }
 0x865   :  { %12041 = vmatpush.msrb.mxu3 %v11521_v60 }
 0x866   :  { %12448 = vperm.xlu1 %13331, %v12394_v24  }
 0x867   :  { %12438 = vperm.xlu2 %13757, %v12392_v38   ;;  %12042 = vmatpush.msrb.mxu3 %v11500_v41  ;;  %v11668_v38 = vld [vmem:[%s20954_s5 + $0xd8] sm:$0xff] }
 0x868   :  { %v20542_v19 = vpop.f32.mrf.mxu2  ;;  %v20544_v62 = vpop.permute.xlu2 %11818  ;;  %12255 = vperm.xlu0 %14108, %v12201_v46  }
 0x869   :  { %v14090_v40 = vpop.permute.xlu0 %14089  ;;  %12043 = vmatpush.msrb.mxu3 %v11499_v61  ;;  %v20628_v51 = vpop.permute.xlu1 %11848  ;;  %v11688_v61 = vld [vmem:[%s20954_s5 + $0x178] sm:$0xff] }
 0x86a   :  { %v14092_v8 = vunpack.i.h.bf16 %v14090_v40  ;;  %v14091_v7 = vunpack.i.l.bf16 %v14090_v40 }
 0x86c   :  { %v11478_v56 = vsel %vm1029_vm0, %v14091_v7, %v14092_v8 }
 0x86d   :  { %12044 = vmatpush.msrb.mxu3 %v11478_v56  ;;  %v12192_v56 = vld [vmem:[%s20956_s8] sm:$0xff] }
 0x86e   :  { %12463 = vperm.xlu1 %13331, %v12397_v50  }
 0x86f   :  { %12453 = vperm.xlu2 %13757, %v12395_v44   ;;  %12045 = vmatpush.msrb.mxu3 %v11477_v17  ;;  %v11679_v17 = vld [vmem:[%s20954_s5 + $0x130] sm:$0xff] }
 0x870   :  { %v20558_v12 = vpop.f32.mrf.mxu2  ;;  %12046 = vmatmul.f32.vlgmr.msrb.gmra.mxu3 %v11643_v33  ;;  %12240 = vperm.xlu0 %14108, %v12198_v2   ;;  %v11692_v33 = vld [vmem:[%s20954_s5 + $0x198] sm:$0xff] }
 0x871   :  { %v14105_v57 = vpop.permute.xlu0 %14104  ;;  %v20560_v4 = vpop.permute.xlu2 %11803 }
 0x872   :  { %v14107_v49 = vunpack.i.h.bf16 %v14105_v57  ;;  %v14106_v1 = vunpack.i.l.bf16 %v14105_v57  ;;  %v11834_v59 = vpop.permute.xlu1 %11833 }
 0x874   :  { %v11635_v31 = vsel %vm11266_vm7, %v14106_v1, %v14107_v49 }
 0x875   :  { %12110 = vmatpush.msrb.mxu0 %v11635_v31  ;;  %12981 = vmatpush.msrb.mxu2 %v11635_v31  ;;  %v12387_v31 = vld [vmem:[%s20957_s10 + $0x10] sm:$0xff] }
 0x876   :  { %12478 = vperm.xlu1 %13331, %v12400_v63   ;;  %12948 = vmatmul.msk.f32.vlgmr.msrb.gmra.mxu0 %vm11851_vm9, %v11644_v21  ;;  %v11696_v21 = vld [vmem:[%s20954_s5 + $0x1b8] sm:$0xff] }
 0x877   :  { %12468 = vperm.xlu2 %13757, %v12398_v0   ;;  %12956 = vmatmul.msk.f32.vlgmr.msrb.gmra.mxu2 %vm11851_vm9, %v11676_v5  ;;  %v11704_v5 = vld [vmem:[%s20954_s5 + $0x1f8] sm:$0xff] }
 0x878   :  { %v20576_v42 = vpop.f32.mrf.mxu2  ;;  %12049 = vmatmul.f32.gmra.mxu3 %v11647_v52  ;;  %12225 = vperm.xlu0 %14108, %v12195_v27  }
 0x879   :  { %v20578_v58 = vpop.permute.xlu2 %11788  ;;  %v11839_v7 = vpop.permute.xlu0 %11838 }
 0x87a   :  { %v11824_v40 = vpop.permute.xlu1 %11823 }
 0x87e   :  { %12949 = vmatmul.msk.f32.gmra.mxu0 %vm11851_vm9, %v11648_v15 }
 0x87f   :  { %12957 = vmatmul.msk.f32.gmra.mxu2 %vm11851_vm9, %v11680_v39  ;;  %v12396_v39 = vld [vmem:[%s20957_s10 + $0x58] sm:$0xff] }
 0x880   :  { %v20587_v54 = vpop.f32.mrf.mxu2  ;;  %12052 = vmatmul.f32.gmra.mxu3 %v11651_v25  ;;  %12210 = vperm.xlu0 %14108, %v12192_v56  }
 0x881   :  { %v11774_v45 = vpop.permute.xlu2 %11773  ;;  %v11814_v63 = vpop.permute.xlu0 %11813 }
 0x882   :  { %v11918_v30 = vadd.f32 %v11917_v28, %v11774_v45  ;;  %v11942_v52 = vadd.f32 %v20610_v36, %v11814_v63  ;;  %v12390_v45 = vld [vmem:[%s20957_s10 + $0x28] sm:$0xff]  ;;  %v11700_v28 = vld [vmem:[%s20954_s5 + $0x1d8] sm:$0xff]  ;;  %v11809_v2 = vpop.permute.xlu1 %11808 }
 0x884   :  { %v20608_v9 = vadd.f32 %v20529_v6, %v11918_v30  ;;  %v11944_v6 = vpop.f32.mrf.mxu3 }
 0x885   :  { %v11945_v20 = vadd.f32 %v11944_v6, %v20544_v62  ;;  %v11672_v62 = vld [vmem:[%s20954_s5 + $0xf8] sm:$0xff] }
 0x886   :  { %12950 = vmatmul.msk.f32.gmra.mxu0 %vm11851_vm9, %v11652_v29 }
 0x887   :  { %12958 = vmatmul.msk.f32.gmra.mxu2 %vm11851_vm9, %v11684_v37  ;;  %v11703_v37 = vld [vmem:[%s20954_s5 + $0x1f0] sm:$0xff] }
 0x888   :  { %v20596_v47 = vpop.f32.mrf.mxu2  ;;  %12055 = vmatmul.f32.gmra.mxu3 %v11655_v13  ;;  %12413 = vperm.xlu0 %14108, %v12387_v31  }
 0x88c   :  { %v11947_v24 = vpop.f32.mrf.mxu3 }
 0x88d   :  { %v11948_v8 = vadd.f32 %v11947_v24, %v11824_v40  ;;  %v11794_v24 = vpop.permute.xlu1 %11793 }
 0x88e   :  { %12951 = vmatmul.msk.f32.gmra.mxu0 %vm11851_vm9, %v11656_v32  ;;  %v11687_v32 = vld [vmem:[%s20954_s5 + $0x170] sm:$0xff] }
 0x88f   :  { %12959 = vmatmul.msk.f32.gmra.mxu2 %vm11851_vm9, %v11688_v61 }
 0x890   :  { %v20613_v10 = vpop.f32.mrf.mxu2  ;;  %12058 = vmatmul.f32.gmra.mxu3 %v11659_v11  ;;  %12428 = vperm.xlu0 %14108, %v12390_v45  }
 0x894   :  { %v11950_v22 = vpop.f32.mrf.mxu3 }
 0x895   :  { %v11951_v57 = vadd.f32 %v11950_v22, %v20532_v48  ;;  %v11683_v48 = vld [vmem:[%s20954_s5 + $0x150] sm:$0xff] }
 0x896   :  { %12952 = vmatmul.msk.f32.gmra.mxu0 %vm11851_vm9, %v11660_v55 }
 0x897   :  { %12960 = vmatmul.msk.f32.gmra.mxu2 %vm11851_vm9, %v11692_v33 }
 0x898   :  { %v20631_v3 = vpop.f32.mrf.mxu2  ;;  %12061 = vmatmul.f32.gmra.mxu3 %v11663_v53  ;;  %12443 = vperm.xlu0 %14108, %v12393_v16   ;;  %v11691_v53 = vld [vmem:[%s20954_s5 + $0x190] sm:$0xff] }
 0x89c   :  { %v11953_v49 = vpop.f32.mrf.mxu3 }
 0x89d   :  { %v11954_v15 = vadd.f32 %v11953_v49, %v11834_v59  ;;  %v11920_v59 = vpop.f32.mrf.mxu1 }
 0x89e   :  { %12953 = vmatmul.msk.f32.gmra.mxu0 %vm11851_vm9, %v11664_v23 }
 0x89f   :  { %12961 = vmatmul.msk.f32.gmra.mxu2 %vm11851_vm9, %v11696_v21 }
 0x8a0   :  { %v12006_v18 = vpop.f32.mrf.mxu2  ;;  %12064 = vmatmul.f32.gmra.mxu3 %v11667_v14  ;;  %12458 = vperm.xlu0 %14108, %v12396_v39   ;;  %v11695_v14 = vld [vmem:[%s20954_s5 + $0x1b0] sm:$0xff] }
 0x8a1   :  { %v20704_v29 = vadd.f32 %v12006_v18, %v11942_v52  ;;  %v12399_v18 = vld [vmem:[%s20957_s10 + $0x70] sm:$0xff] }
 0x8a4   :  { %v11956_v26 = vpop.f32.mrf.mxu3 }
 0x8a5   :  { %v11957_v30 = vadd.f32 %v11956_v26, %v11839_v7 }
 0x8a6   :  { %12954 = vmatmul.msk.f32.gmra.mxu0 %vm11851_vm9, %v11668_v38 }
 0x8a7   :  { %12962 = vmatmul.msk.f32.gmra.mxu2 %vm11851_vm9, %v11700_v28 }
 0x8a8   :  { %v12009_v60 = vpop.f32.mrf.mxu2  ;;  %12067 = vmatmul.f32.gmra.mxu3 %v11671_v34  ;;  %12473 = vperm.xlu0 %14108, %v12399_v18   ;;  %v20748_v34 = vpop.f32.mrf.mxu1 }
 0x8a9   :  { %v20662_v41 = vadd.f32 %v12009_v60, %v11945_v20  ;;  %v11779_v20 = vpop.permute.xlu1 %11778 }
 0x8aa   :  { %v11921_v40 = vadd.f32 %v11920_v59, %v11779_v20 }
 0x8ac   :  { %v11959_v55 = vpop.f32.mrf.mxu3  ;;  %v11986_v22 = vadd.f32 %v20542_v19, %v11921_v40 }
 0x8ad   :  { %v11960_v46 = vadd.f32 %v11959_v55, %v20519_v43  ;;  %v11699_v43 = vld [vmem:[%s20954_s5 + $0x1d0] sm:$0xff] }
 0x8ae   :  { %12955 = vmatmul.msk.f32.gmra.mxu0 %vm11851_vm9, %v11672_v62 }
 0x8af   :  { %12963 = vmatmul.msk.f32.gmra.mxu2 %vm11851_vm9, %v11704_v5 }
 0x8b0   :  { %v12012_v50 = vpop.f32.mrf.mxu2  ;;  %12070 = vmatmul.f32.gmra.mxu3 %v11675_v35  ;;  %v11926_v7 = vpop.f32.mrf.mxu1 }
 0x8b1   :  { %v20678_v44 = vadd.f32 %v12012_v50, %v11948_v8  ;;  %v11927_v56 = vadd.f32 %v11926_v7, %v20578_v58 }
 0x8b4   :  { %v11962_v38 = vpop.f32.mrf.mxu3 }
 0x8b8   :  { %v12015_v1 = vpop.f32.mrf.mxu2  ;;  %12073 = vmatmul.f32.gmra.mxu3 %v11679_v17  ;;  %v11929_v33 = vpop.f32.mrf.mxu1  ;;  %v11992_v17 = vadd.f32 %v20576_v42, %v11927_v56 }
 0x8b9   :  { %v20691_v0 = vadd.f32 %v12015_v1, %v11951_v57 }
 0x8c0   :  { %v12018_v25 = vpop.f32.mrf.mxu2  ;;  %12076 = vmatmul.f32.gmra.mxu3 %v11683_v48  ;;  %v11932_v1 = vpop.f32.mrf.mxu1 }
 0x8c1   :  { %v20706_v13 = vadd.f32 %v12018_v25, %v11954_v15 }
 0x8c8   :  { %v12021_v11 = vpop.f32.mrf.mxu2  ;;  %12079 = vmatmul.f32.gmra.mxu3 %v11687_v32  ;;  %v11935_v21 = vpop.f32.mrf.mxu1 }
 0x8c9   :  { %v20718_v36 = vadd.f32 %v12021_v11, %v11957_v30  ;;  %v11936_v15 = vadd.f32 %v11935_v21, %v20560_v4 }
 0x8cb   :  { %v12001_v58 = vadd.f32 %v20613_v10, %v11936_v15 }
 0x8d0   :  { %v12024_v6 = vpop.f32.mrf.mxu2  ;;  %12082 = vmatmul.f32.gmra.mxu3 %v11691_v53  ;;  %v11938_v45 = vpop.f32.mrf.mxu1 }
 0x8d1   :  { %v20734_v23 = vadd.f32 %v12024_v6, %v11960_v46  ;;  %v11939_v26 = vadd.f32 %v11938_v45, %v11809_v2 }
 0x8d3   :  { %v12004_v30 = vadd.f32 %v20631_v3, %v11939_v26 }
 0x8d8   :  { %12085 = vmatmul.f32.gmra.mxu3 %v11695_v14  ;;  %v12027_v48 = vpop.f32.mrf.mxu2 }
 0x8e0   :  { %12088 = vmatmul.f32.gmra.mxu3 %v11699_v43 }
 0x8e8   :  { %12091 = vmatmul.f32.gmra.mxu3 %v11703_v37 }
 0x8f3   :  { %v12047_v60 = vpop.f32.mrf.mxu3  ;;  %v12112_v61 = vpop.f32.mrf.mxu0 }
 0x8f4   :  { %v12048_v27 = vadd.f32 %v12047_v60, %v20608_v9  ;;  %v11930_v9 = vadd.f32 %v11929_v33, %v11794_v24  ;;  %v11963_v60 = vadd.f32 %v11962_v38, %v20628_v51 }
 0x8f6   :  { %v20751_v62 = vadd.f32 %v12112_v61, %v12048_v27  ;;  %v11995_v63 = vadd.f32 %v20587_v54, %v11930_v9  ;;  %v12028_v27 = vadd.f32 %v12027_v48, %v11963_v60  ;;  %v12189_v60 = vld [vmem:[%s20958_s7 + $0x68] sm:$0xff] }
 0x8fa   :  { %v12136_v28 = vpop.f32.mrf.mxu2 }
 0x8fb   :  { %v12050_v35 = vpop.f32.mrf.mxu3  ;;  %v20775_v46 = vpop.f32.mrf.mxu0 }
 0x8fc   :  { %v20754_v8 = vadd.f32 %v12050_v35, %v11986_v22 }
 0x902   :  { %v12139_v11 = vpop.f32.mrf.mxu2 }
 0x903   :  { %v20756_v50 = vpop.f32.mrf.mxu3  ;;  %v20777_v6 = vpop.f32.mrf.mxu0 }
 0x90a   :  { %v12142_v53 = vpop.f32.mrf.mxu2 }
 0x90b   :  { %v12056_v57 = vpop.f32.mrf.mxu3  ;;  %v12121_v43 = vpop.f32.mrf.mxu0 }
 0x90c   :  { %v20760_v49 = vadd.f32 %v12056_v57, %v11992_v17  ;;  %v11799_v57 = vpop.permute.xlu0 %11798 }
 0x912   :  { %v12145_v39 = vpop.f32.mrf.mxu2 }
 0x913   :  { %v12059_v31 = vpop.f32.mrf.mxu3  ;;  %v12124_v37 = vpop.f32.mrf.mxu0 }
 0x914   :  { %v20763_v19 = vadd.f32 %v12059_v31, %v11995_v63 }
 0x91a   :  { %v12148_v18 = vpop.f32.mrf.mxu2 }
 0x91b   :  { %v20765_v52 = vpop.f32.mrf.mxu3 }
 0x922   :  { %v12151_v2 = vpop.f32.mrf.mxu2 }
 0x923   :  { %v12065_v25 = vpop.f32.mrf.mxu3 }
 0x924   :  { %v20769_v42 = vadd.f32 %v12065_v25, %v12001_v58  ;;  %v11933_v58 = vadd.f32 %v11932_v1, %v11799_v57 }
 0x92a   :  { %v12154_v24 = vpop.f32.mrf.mxu2 }
 0x92b   :  { %v12068_v54 = vpop.f32.mrf.mxu3 }
 0x92c   :  { %v12069_v32 = vadd.f32 %v12068_v54, %v12004_v30  ;;  %v11998_v30 = vadd.f32 %v20596_v47, %v11933_v58 }
 0x932   :  { %v12157_v22 = vpop.f32.mrf.mxu2 }
 0x933   :  { %v12071_v16 = vpop.f32.mrf.mxu3 }
 0x934   :  { %v12072_v5 = vadd.f32 %v12071_v16, %v20704_v29  ;;  %v12127_v29 = vpop.f32.mrf.mxu0 }
 0x936   :  { %v20773_v55 = vadd.f32 %v12136_v28, %v12072_v5 }
 0x93b   :  { %v12074_v4 = vpop.f32.mrf.mxu3 }
 0x93c   :  { %v12130_v9 = vpop.f32.mrf.mxu0 }
 0x93d   :  { %v12131_v1 = vadd.f32 %v12130_v9, %v20769_v42 }
 0x943   :  { %v12077_v10 = vpop.f32.mrf.mxu3 }
 0x944   :  { %v12078_v51 = vadd.f32 %v12077_v10, %v20678_v44  ;;  %v12133_v26 = vpop.f32.mrf.mxu0 }
 0x945   :  { %v12134_v16 = vadd.f32 %v12133_v26, %v12069_v32 }
 0x947   :  { %v12167_v10 = vmax.f32 %v12134_v16, 0.0 }
 0x94b   :  { %v12080_v14 = vpop.f32.mrf.mxu3 }
 0x94c   :  { %v12081_v63 = vadd.f32 %v12080_v14, %v20691_v0  ;;  %v11784_v0 = vpop.permute.xlu0 %11783 }
 0x94d   :  { %v11924_v54 = vadd.f32 %v20748_v34, %v11784_v0  ;;  %v12166_v34 = vmax.f32 %v12131_v1, 0.0 }
 0x94e   :  { %v12146_v15 = vadd.f32 %v12145_v39, %v12081_v63  ;;  %v12125_v39 = vadd.f32 %v12124_v37, %v20763_v19  ;;  %v12160_v19 = vmax.f32 %v20751_v62, 0.0  ;;  %v12179_v62 = vld [vmem:[%s20958_s7 + $0x18] sm:$0xff]  ;;  %v12184_v37 = vld [vmem:[%s20958_s7 + $0x40] sm:$0xff] }
 0x950   :  { %v12171_v28 = vmax.f32 %v12146_v15, 0.0  ;;  %v12164_v14 = vmax.f32 %v12125_v39, 0.0  ;;  %v12276_v15 = vpop.permute.xlu2 %12275 }
 0x953   :  { %v12083_v3 = vpop.f32.mrf.mxu3 }
 0x954   :  { %v12084_v56 = vadd.f32 %v12083_v3, %v20706_v13  ;;  %v12143_v13 = vadd.f32 %v12142_v53, %v12078_v51  ;;  %v12168_v53 = vmax.f32 %v20773_v55, 0.0  ;;  %v12182_v3 = vld [vmem:[%s20958_s7 + $0x30] sm:$0xff] }
 0x956   :  { %v12149_v38 = vadd.f32 %v12148_v18, %v12084_v56  ;;  %v12170_v44 = vmax.f32 %v12143_v13, 0.0 }
 0x958   :  { %v12172_v25 = vmax.f32 %v12149_v38, 0.0  ;;  %v12286_v38 = vpop.permute.xlu0 %12285 }
 0x95b   :  { %v12086_v59 = vpop.f32.mrf.mxu3 }
 0x95c   :  { %v12087_v35 = vadd.f32 %v12086_v59, %v20718_v36  ;;  %v12185_v59 = vld [vmem:[%s20958_s7 + $0x48] sm:$0xff] }
 0x95e   :  { %v12152_v31 = vadd.f32 %v12151_v2, %v12087_v35  ;;  %v12183_v2 = vld [vmem:[%s20958_s7 + $0x38] sm:$0xff] }
 0x960   :  { %v12173_v36 = vmax.f32 %v12152_v31, 0.0 }
 0x963   :  { %v12089_v20 = vpop.f32.mrf.mxu3 }
 0x964   :  { %v12090_v61 = vadd.f32 %v12089_v20, %v20734_v23  ;;  %v12075_v23 = vadd.f32 %v12074_v4, %v20662_v41  ;;  %v12063_v41 = vadd.f32 %v20765_v52, %v11998_v30  ;;  %v12122_v52 = vadd.f32 %v12121_v43, %v20760_v49  ;;  %v12176_v49 = vld [vmem:[%s20958_s7] sm:$0xff]  ;;  %v12181_v43 = vld [vmem:[%s20958_s7 + $0x28] sm:$0xff]  ;;  %v12187_v20 = vld [vmem:[%s20958_s7 + $0x58] sm:$0xff] }
 0x966   :  { %v12155_v33 = vadd.f32 %v12154_v24, %v12090_v61  ;;  %v12140_v45 = vadd.f32 %v12139_v11, %v12075_v23  ;;  %v11989_v11 = vadd.f32 %v20558_v12, %v11924_v54  ;;  %v12128_v4 = vadd.f32 %v12127_v29, %v12063_v41  ;;  %v12186_v24 = vld [vmem:[%s20958_s7 + $0x50] sm:$0xff]  ;;  %v12188_v29 = vld [vmem:[%s20958_s7 + $0x60] sm:$0xff]  ;;  %v12191_v61 = vld [vmem:[%s20958_s7 + $0x78] sm:$0xff] }
 0x967   :  { %v12116_v12 = vadd.f32 %v20775_v46, %v20754_v8  ;;  %v12163_v55 = vmax.f32 %v12122_v52, 0.0  ;;  %v12178_v8 = vld [vmem:[%s20958_s7 + $0x10] sm:$0xff]  ;;  %v12180_v46 = vld [vmem:[%s20958_s7 + $0x20] sm:$0xff] }
 0x968   :  { %v12174_v48 = vmax.f32 %v12155_v33, 0.0  ;;  %v12169_v5 = vmax.f32 %v12140_v45, 0.0  ;;  %v12054_v47 = vadd.f32 %v20756_v50, %v11989_v11  ;;  %v12165_v32 = vmax.f32 %v12128_v4, 0.0 }
 0x969   :  { %v12161_v50 = vmax.f32 %v12116_v12, 0.0 }
 0x96a   :  { %v12119_v42 = vadd.f32 %v20777_v6, %v12054_v47  ;;  %v12177_v6 = vld [vmem:[%s20958_s7 + $0x8] sm:$0xff] }
 0x96b   :  { %v12092_v40 = vpop.f32.mrf.mxu3 }
 0x96c   :  { %v12093_v7 = vadd.f32 %v12092_v40, %v12028_v27  ;;  %v12162_v18 = vmax.f32 %v12119_v42, 0.0  ;;  %v12190_v27 = vld [vmem:[%s20958_s7 + $0x70] sm:$0xff] }
 0x96e   :  { %v12158_v17 = vadd.f32 %v12157_v22, %v12093_v7 }
 0x970   :  { %v12175_v21 = vmax.f32 %v12158_v17, 0.0 }
 0x972   :  { %12288 = vmatpush.msra.mxu0 %v12175_v21 }
 0x974   :  { %12289 = vmatpush.msra.mxu0 %v12174_v48  ;;  %v12281_v48 = vpop.permute.xlu1 %12280 }
 0x976   :  { %12290 = vmatpush.msra.mxu0 %v12173_v36  ;;  %v12271_v36 = vpop.permute.xlu0 %12270 }
 0x978   :  { %12291 = vmatpush.msra.mxu0 %v12172_v25  ;;  %v12261_v25 = vpop.permute.xlu2 %12260 }
 0x97a   :  { %12292 = vmatpush.msra.mxu0 %v12171_v28 }
 0x97c   :  { %12293 = vmatpush.msra.mxu0 %v12170_v44  ;;  %v12266_v13 = vpop.permute.xlu1 %12265 }
 0x97e   :  { %12294 = vmatpush.msra.mxu0 %v12169_v5  ;;  %v12256_v45 = vpop.permute.xlu0 %12255 }
 0x980   :  { %12295 = vmatpush.msra.mxu0 %v12168_v53  ;;  %v12246_v5 = vpop.permute.xlu2 %12245 }
 0x982   :  { %12296 = vmatpush.msra.mxu0 %v12167_v10 }
 0x984   :  { %12297 = vmatpush.msra.mxu0 %v12166_v34  ;;  %v12251_v54 = vpop.permute.xlu1 %12250 }
 0x986   :  { %12298 = vmatpush.msra.mxu0 %v12165_v32  ;;  %v12241_v11 = vpop.permute.xlu0 %12240 }
 0x988   :  { %12299 = vmatpush.msra.mxu0 %v12164_v14  ;;  %v12231_v12 = vpop.permute.xlu2 %12230 }
 0x98a   :  { %12300 = vmatpush.msra.mxu0 %v12163_v55 }
 0x98c   :  { %12301 = vmatpush.msra.mxu0 %v12162_v18  ;;  %v12236_v32 = vpop.permute.xlu1 %12235 }
 0x98e   :  { %12302 = vmatpush.msra.mxu0 %v12161_v50  ;;  %v12226_v50 = vpop.permute.xlu0 %12225 }
 0x990   :  { %12303 = vmatpush.msra.mxu0 %v12160_v19 }
 0x991   :  { %12304 = vmatmul.f32.vlgmr.msra.gmra.mxu0 %v12176_v49 }
 0x999   :  { %12307 = vmatmul.f32.gmra.mxu0 %v12177_v6 }
 0x9a1   :  { %12310 = vmatmul.f32.gmra.mxu0 %v12178_v8 }
 0x9a9   :  { %12313 = vmatmul.f32.gmra.mxu0 %v12179_v62 }
 0x9b1   :  { %12316 = vmatmul.f32.gmra.mxu0 %v12180_v46 }
 0x9b9   :  { %12319 = vmatmul.f32.gmra.mxu0 %v12181_v43  ;;  %v12221_v43 = vpop.permute.xlu1 %12220 }
 0x9c1   :  { %12322 = vmatmul.f32.gmra.mxu0 %v12182_v3 }
 0x9c9   :  { %12325 = vmatmul.f32.gmra.mxu0 %v12183_v2 }
 0x9d1   :  { %12328 = vmatmul.f32.gmra.mxu0 %v12184_v37  ;;  %v12216_v37 = vpop.permute.xlu2 %12215 }
 0x9d9   :  { %12331 = vmatmul.f32.gmra.mxu0 %v12185_v59 }
 0x9e1   :  { %12334 = vmatmul.f32.gmra.mxu0 %v12186_v24 }
 0x9e9   :  { %12337 = vmatmul.f32.gmra.mxu0 %v12187_v20  ;;  %v12211_v20 = vpop.permute.xlu0 %12210 }
 0x9f1   :  { %12340 = vmatmul.f32.gmra.mxu0 %v12188_v29 }
 0x9f9   :  { %12343 = vmatmul.f32.gmra.mxu0 %v12189_v60 }
 0xa01   :  { %12346 = vmatmul.f32.gmra.mxu0 %v12190_v27 }
 0xa09   :  { %12349 = vmatmul.f32.gmra.mxu0 %v12191_v61 }
 0xa0e   :  { %v20847_v40 = vpop.f32.mrf.mxu0 }
 0xa0f   :  { %v12306_v29 = vadd.f32 %v20847_v40, %v12211_v20  ;;  %v12371_v40 = vld [vmem:[%s20959_s9 + $0x10] sm:$0xff] }
 0xa11   :  { %v12353_v61 = vmax.f32 %v12306_v29, 0.0 }
 0xa16   :  { %v20849_v22 = vpop.f32.mrf.mxu0 }
 0xa17   :  { %v12309_v59 = vadd.f32 %v20849_v22, %v12216_v37  ;;  %v12370_v22 = vld [vmem:[%s20959_s9 + $0x8] sm:$0xff] }
 0xa19   :  { %v12354_v27 = vmax.f32 %v12309_v59, 0.0 }
 0xa1e   :  { %v12311_v35 = vpop.f32.mrf.mxu0 }
 0xa1f   :  { %v12312_v3 = vadd.f32 %v12311_v35, %v12221_v43  ;;  %v12369_v35 = vld [vmem:[%s20959_s9] sm:$0xff] }
 0xa21   :  { %v12355_v60 = vmax.f32 %v12312_v3, 0.0 }
 0xa26   :  { %v12314_v7 = vpop.f32.mrf.mxu0 }
 0xa27   :  { %v12315_v62 = vadd.f32 %v12314_v7, %v12226_v50  ;;  %v12372_v7 = vld [vmem:[%s20959_s9 + $0x18] sm:$0xff] }
 0xa29   :  { %v12356_v24 = vmax.f32 %v12315_v62, 0.0 }
 0xa2e   :  { %v12317_v56 = vpop.f32.mrf.mxu0 }
 0xa2f   :  { %v12318_v6 = vadd.f32 %v12317_v56, %v12231_v12  ;;  %v12373_v56 = vld [vmem:[%s20959_s9 + $0x20] sm:$0xff] }
 0xa31   :  { %v12357_v2 = vmax.f32 %v12318_v6, 0.0 }
 0xa36   :  { %v12320_v33 = vpop.f32.mrf.mxu0 }
 0xa37   :  { %v12321_v19 = vadd.f32 %v12320_v33, %v12236_v32  ;;  %v12374_v33 = vld [vmem:[%s20959_s9 + $0x28] sm:$0xff] }
 0xa39   :  { %v12358_v46 = vmax.f32 %v12321_v19, 0.0 }
 0xa3e   :  { %v12323_v17 = vpop.f32.mrf.mxu0 }
 0xa3f   :  { %v12324_v55 = vadd.f32 %v12323_v17, %v12241_v11  ;;  %v12375_v17 = vld [vmem:[%s20959_s9 + $0x30] sm:$0xff] }
 0xa41   :  { %v12359_v8 = vmax.f32 %v12324_v55, 0.0 }
 0xa46   :  { %v12326_v57 = vpop.f32.mrf.mxu0 }
 0xa47   :  { %v12327_v42 = vadd.f32 %v12326_v57, %v12246_v5  ;;  %v12376_v57 = vld [vmem:[%s20959_s9 + $0x38] sm:$0xff] }
 0xa49   :  { %v12360_v49 = vmax.f32 %v12327_v42, 0.0 }
 0xa4e   :  { %v12329_v9 = vpop.f32.mrf.mxu0 }
 0xa4f   :  { %v12330_v34 = vadd.f32 %v12329_v9, %v12251_v54  ;;  %v12377_v9 = vld [vmem:[%s20959_s9 + $0x40] sm:$0xff] }
 0xa51   :  { %v12361_v18 = vmax.f32 %v12330_v34, 0.0 }
 0xa56   :  { %v12332_v63 = vpop.f32.mrf.mxu0 }
 0xa57   :  { %v12333_v47 = vadd.f32 %v12332_v63, %v12256_v45  ;;  %v12378_v63 = vld [vmem:[%s20959_s9 + $0x48] sm:$0xff] }
 0xa59   :  { %v12362_v14 = vmax.f32 %v12333_v47, 0.0 }
 0xa5e   :  { %v12335_v31 = vpop.f32.mrf.mxu0 }
 0xa5f   :  { %v12336_v4 = vadd.f32 %v12335_v31, %v12261_v25  ;;  %v12379_v31 = vld [vmem:[%s20959_s9 + $0x50] sm:$0xff] }
 0xa61   :  { %v12363_v52 = vmax.f32 %v12336_v4, 0.0 }
 0xa66   :  { %v12338_v21 = vpop.f32.mrf.mxu0 }
 0xa67   :  { %v12339_v1 = vadd.f32 %v12338_v21, %v12266_v13  ;;  %v12380_v21 = vld [vmem:[%s20959_s9 + $0x58] sm:$0xff]  ;;  %v12409_v13 = vpop.permute.xlu2 %12408 }
 0xa69   :  { %v12364_v39 = vmax.f32 %v12339_v1, 0.0 }
 0xa6e   :  { %v12341_v51 = vpop.f32.mrf.mxu0 }
 0xa6f   :  { %v12342_v41 = vadd.f32 %v12341_v51, %v12271_v36  ;;  %v12381_v51 = vld [vmem:[%s20959_s9 + $0x60] sm:$0xff] }
 0xa71   :  { %v12365_v10 = vmax.f32 %v12342_v41, 0.0  ;;  %v12424_v41 = vpop.permute.xlu2 %12423 }
 0xa76   :  { %v12344_v23 = vpop.f32.mrf.mxu0 }
 0xa77   :  { %v12345_v30 = vadd.f32 %v12344_v23, %v12276_v15  ;;  %v12384_v23 = vld [vmem:[%s20959_s9 + $0x78] sm:$0xff]  ;;  %v12404_v15 = vpop.permute.xlu1 %12403 }
 0xa79   :  { %v12366_v53 = vmax.f32 %v12345_v30, 0.0 }
 0xa7e   :  { %v12347_v58 = vpop.f32.mrf.mxu0 }
 0xa7f   :  { %v12348_v0 = vadd.f32 %v12347_v58, %v12281_v48  ;;  %v12383_v48 = vld [vmem:[%s20959_s9 + $0x70] sm:$0xff]  ;;  %v12419_v30 = vpop.permute.xlu1 %12418 }
 0xa81   :  { %v12367_v16 = vmax.f32 %v12348_v0, 0.0 }
 0xa86   :  { %v12350_v28 = vpop.f32.mrf.mxu0 }
 0xa87   :  { %v12351_v26 = vadd.f32 %v12350_v28, %v12286_v38  ;;  %v12382_v38 = vld [vmem:[%s20959_s9 + $0x68] sm:$0xff]  ;;  %v12414_v28 = vpop.permute.xlu0 %12413  ;;  %v12434_v4 = vpop.permute.xlu1 %12433 }
 0xa89   :  { %v12368_v44 = vmax.f32 %v12351_v26, 0.0 }
 0xa8b   :  { %12481 = vmatpush.msrb.mxu1 %v12368_v44 }
 0xa8d   :  { %12482 = vmatpush.msrb.mxu1 %v12367_v16 }
 0xa8f   :  { %12483 = vmatpush.msrb.mxu1 %v12366_v53  ;;  %v12429_v1 = vpop.permute.xlu0 %12428  ;;  %v12449_v12 = vpop.permute.xlu1 %12448 }
 0xa91   :  { %12484 = vmatpush.msrb.mxu1 %v12365_v10 }
 0xa93   :  { %12485 = vmatpush.msrb.mxu1 %v12364_v39  ;;  %v12439_v39 = vpop.permute.xlu2 %12438 }
 0xa95   :  { %12486 = vmatpush.msrb.mxu1 %v12363_v52 }
 0xa97   :  { %12487 = vmatpush.msrb.mxu1 %v12362_v14  ;;  %v12444_v32 = vpop.permute.xlu0 %12443 }
 0xa99   :  { %12488 = vmatpush.msrb.mxu1 %v12361_v18 }
 0xa9b   :  { %12489 = vmatpush.msrb.mxu1 %v12360_v49  ;;  %v12454_v50 = vpop.permute.xlu2 %12453 }
 0xa9d   :  { %12490 = vmatpush.msrb.mxu1 %v12359_v8 }
 0xa9f   :  { %12491 = vmatpush.msrb.mxu1 %v12358_v46  ;;  %v12459_v6 = vpop.permute.xlu0 %12458  ;;  %v12464_v46 = vpop.permute.xlu1 %12463 }
 0xaa1   :  { %12492 = vmatpush.msrb.mxu1 %v12357_v2 }
 0xaa3   :  { %12493 = vmatpush.msrb.mxu1 %v12356_v24  ;;  %v12469_v2 = vpop.permute.xlu2 %12468 }
 0xaa5   :  { %12494 = vmatpush.msrb.mxu1 %v12355_v60 }
 0xaa7   :  { %12495 = vmatpush.msrb.mxu1 %v12354_v27  ;;  %v12474_v24 = vpop.permute.xlu0 %12473  ;;  %v12479_v60 = vpop.permute.xlu1 %12478 }
 0xaa9   :  { %12496 = vmatpush.msrb.mxu1 %v12353_v61 }
 0xaaa   :  { %12497 = vmatmul.f32.vlgmr.msrb.gmra.mxu1 %v12369_v35 }
 0xab2   :  { %12500 = vmatmul.f32.gmra.mxu1 %v12370_v22 }
 0xaba   :  { %12503 = vmatmul.f32.gmra.mxu1 %v12371_v40 }
 0xac2   :  { %12506 = vmatmul.f32.gmra.mxu1 %v12372_v7 }
 0xaca   :  { %12509 = vmatmul.f32.gmra.mxu1 %v12373_v56 }
 0xad2   :  { %12512 = vmatmul.f32.gmra.mxu1 %v12374_v33 }
 0xada   :  { %12515 = vmatmul.f32.gmra.mxu1 %v12375_v17 }
 0xae2   :  { %12518 = vmatmul.f32.gmra.mxu1 %v12376_v57 }
 0xaea   :  { %12521 = vmatmul.f32.gmra.mxu1 %v12377_v9 }
 0xaf2   :  { %12524 = vmatmul.f32.gmra.mxu1 %v12378_v63 }
 0xafa   :  { %12527 = vmatmul.f32.gmra.mxu1 %v12379_v31 }
 0xb02   :  { %12530 = vmatmul.f32.gmra.mxu1 %v12380_v21 }
 0xb0a   :  { %12533 = vmatmul.f32.gmra.mxu1 %v12381_v51 }
 0xb12   :  { %12536 = vmatmul.f32.gmra.mxu1 %v12382_v38 }
 0xb1a   :  { %12539 = vmatmul.f32.gmra.mxu1 %v12383_v48 }
 0xb22   :  { %12542 = vmatmul.f32.gmra.mxu1 %v12384_v23 }
 0xb27   :  { %v12498_v36 = vpop.f32.mrf.mxu1 }
 0xb28   :  { %v12499_v58 = vadd.f32 %v12498_v36, %v12404_v15 }
 0xb2a   :  { %12546 = vst [vmem:[%s20960_s11] sm:$0xff] %v12499_v58 }
 0xb2f   :  { %v12501_v25 = vpop.f32.mrf.mxu1 }
 0xb30   :  { %v12502_v45 = vadd.f32 %v12501_v25, %v12409_v13 }
 0xb32   :  { %12547 = vst [vmem:[%s20960_s11 + $0x8] sm:$0xff] %v12502_v45 }
 0xb37   :  { %v12504_v0 = vpop.f32.mrf.mxu1 }
 0xb38   :  { %v12505_v26 = vadd.f32 %v12504_v0, %v12414_v28 }
 0xb3a   :  { %12548 = vst [vmem:[%s20960_s11 + $0x10] sm:$0xff] %v12505_v26 }
 0xb3f   :  { %v12507_v44 = vpop.f32.mrf.mxu1 }
 0xb40   :  { %v12508_v54 = vadd.f32 %v12507_v44, %v12419_v30 }
 0xb42   :  { %12549 = vst [vmem:[%s20960_s11 + $0x18] sm:$0xff] %v12508_v54 }
 0xb47   :  { %v12510_v16 = vpop.f32.mrf.mxu1 }
 0xb48   :  { %v12511_v5 = vadd.f32 %v12510_v16, %v12424_v41 }
 0xb4a   :  { %12550 = vst [vmem:[%s20960_s11 + $0x20] sm:$0xff] %v12511_v5 }
 0xb4f   :  { %v12513_v53 = vpop.f32.mrf.mxu1 }
 0xb50   :  { %v12514_v11 = vadd.f32 %v12513_v53, %v12429_v1 }
 0xb52   :  { %12551 = vst [vmem:[%s20960_s11 + $0x28] sm:$0xff] %v12514_v11 }
 0xb57   :  { %v12516_v10 = vpop.f32.mrf.mxu1 }
 0xb58   :  { %v12517_v47 = vadd.f32 %v12516_v10, %v12434_v4 }
 0xb5a   :  { %12552 = vst [vmem:[%s20960_s11 + $0x30] sm:$0xff] %v12517_v47 }
 0xb5f   :  { %v12519_v34 = vpop.f32.mrf.mxu1 }
 0xb60   :  { %v12520_v52 = vadd.f32 %v12519_v34, %v12439_v39 }
 0xb62   :  { %12553 = vst [vmem:[%s20960_s11 + $0x38] sm:$0xff] %v12520_v52 }
 0xb67   :  { %v12522_v42 = vpop.f32.mrf.mxu1 }
 0xb68   :  { %v12523_v14 = vadd.f32 %v12522_v42, %v12444_v32 }
 0xb6a   :  { %12554 = vst [vmem:[%s20960_s11 + $0x40] sm:$0xff] %v12523_v14 }
 0xb6f   :  { %v12525_v55 = vpop.f32.mrf.mxu1 }
 0xb70   :  { %v12526_v18 = vadd.f32 %v12525_v55, %v12449_v12 }
 0xb72   :  { %12555 = vst [vmem:[%s20960_s11 + $0x48] sm:$0xff] %v12526_v18 }
 0xb77   :  { %v12528_v19 = vpop.f32.mrf.mxu1 }
 0xb78   :  { %v12529_v49 = vadd.f32 %v12528_v19, %v12454_v50 }
 0xb7a   :  { %12556 = vst [vmem:[%s20960_s11 + $0x50] sm:$0xff] %v12529_v49 }
 0xb7f   :  { %v12531_v8 = vpop.f32.mrf.mxu1 }
 0xb80   :  { %v12532_v62 = vadd.f32 %v12531_v8, %v12459_v6 }
 0xb82   :  { %12557 = vst [vmem:[%s20960_s11 + $0x58] sm:$0xff] %v12532_v62 }
 0xb87   :  { %v12534_v43 = vpop.f32.mrf.mxu1 }
 0xb88   :  { %v12535_v3 = vadd.f32 %v12534_v43, %v12464_v46 }
 0xb8a   :  { %12558 = vst [vmem:[%s20960_s11 + $0x60] sm:$0xff] %v12535_v3 }
 0xb8f   :  { %v12537_v37 = vpop.f32.mrf.mxu1 }
 0xb90   :  { %v12538_v59 = vadd.f32 %v12537_v37, %v12469_v2 }
 0xb92   :  { %12559 = vst [vmem:[%s20960_s11 + $0x68] sm:$0xff] %v12538_v59 }
 0xb97   :  { %v12540_v20 = vpop.f32.mrf.mxu1 }
 0xb98   :  { %v12541_v29 = vadd.f32 %v12540_v20, %v12474_v24 }
 0xb9a   :  { %12560 = vst [vmem:[%s20960_s11 + $0x70] sm:$0xff] %v12541_v29 }
 0xb9f   :  { %v12543_v27 = vpop.f32.mrf.mxu1 }
 0xba0   :  { %v12544_v61 = vadd.f32 %v12543_v27, %v12479_v60 }
 0xba2   :  { %12561 = vst [vmem:[%s20960_s11 + $0x78] sm:$0xff] %v12544_v61 }

</bundles_post_ra>
